<compile_context>
chip_gen: v7x
topology: tpu7x:2x2x1
jax: 0.10.0
libtpu: 0.0.40
codegen_flags: <defaults>
</compile_context>

<pallas_src>
import functools
import math

import jax
import jax.numpy as jnp
from jax.experimental import pallas as pl
from jax.experimental.pallas import tpu as pltpu


_VMEM_LIMIT = 32 * 1024 * 1024   # safe on v7x (64 MiB physical), > v5e default
_BN_EPS = 1e-5


# ----------------------------- tiling helpers -----------------------------

def _round_up(x, m):
    return ((x + m - 1) // m) * m


def _row_tile(rows, max_tile=512):
    """Row (sublane) tile size and padded row count.

    Rows are padded to a multiple of 16 so bf16 operand blocks are legal on
    all generations.  Layers with >= 128 rows get at least two row tiles so a
    v7x megacore has work to shard; big layers use 512-row tiles (bigger DMAs,
    closer to HBM roofline than 256).
    """
    pp = _round_up(rows, 16)
    if pp < 128:
        return pp, pp                       # one tiny tile
    if pp <= 2 * max_tile:
        tm = _round_up((pp + 1) // 2, 16)   # exactly two tiles
        return tm, 2 * tm
    return max_tile, _round_up(pp, max_tile)


def _col_pad(c):
    return _round_up(c, 128)                # lane-dense output columns


def _k_pad(k):
    return _round_up(k, 128)                # MXU-friendly contraction dim


# ----------------------------- Pallas kernels -----------------------------

def _pack_stats(s1, s2):
    """Pack (1, C) sum and sum-of-squares rows into one (1, 8, C) tile:
    sublane 0 = sum, sublane 1 = sum of squares, sublanes 2-7 = zero."""
    c = s1.shape[-1]
    row = jax.lax.broadcasted_iota(jnp.int32, (8, c), 0)
    packed = jnp.where(row == 0, jnp.broadcast_to(s1, (8, c)),
                       jnp.where(row == 1, jnp.broadcast_to(s2, (8, c)),
                                 jnp.zeros((8, c), jnp.float32)))
    return packed[None]


def _matmul_stats_kernel(x_ref, w_ref, y_ref, s_ref):
    """One (tm, Cp) output row-tile: full-K matmul + per-tile BN partial stats.

    Padded rows of x are zero and there is no bias, so the matmul output is
    exactly zero on padded rows and the partial sums stay exact.
    """
    y = jnp.dot(x_ref[...], w_ref[...], preferred_element_type=jnp.float32)
    y_ref[...] = y
    s1 = jnp.sum(y, axis=0, keepdims=True)
    s2 = jnp.sum(y * y, axis=0, keepdims=True)
    s_ref[...] = _pack_stats(s1, s2)


def _matmul_kernel(x_ref, w_ref, y_ref):
    """Plain full-K matmul row tile (used for the deconv tap matmul, whose BN
    statistics are taken after col2im, not here)."""
    y_ref[...] = jnp.dot(x_ref[...], w_ref[...],
                         preferred_element_type=jnp.float32)


def _stats_kernel(x_ref, s_ref):
    """Per-row-tile BN partial statistics of an f32 activation tile."""
    x = x_ref[...]
    s1 = jnp.sum(x, axis=0, keepdims=True)
    s2 = jnp.sum(x * x, axis=0, keepdims=True)
    s_ref[...] = _pack_stats(s1, s2)


def _bn_lrelu_kernel(y_ref, scale_ref, shift_ref, o_ref, *, slope):
    """Normalize (precomputed per-channel scale/shift) + LeakyReLU; emits the
    activation in the (possibly bf16) output dtype.  Math stays f32."""
    y = y_ref[...] * scale_ref[...] + shift_ref[...]
    o_ref[...] = jnp.where(y >= 0.0, y, slope * y).astype(o_ref.dtype)


# --------------------------- Pallas call wrappers --------------------------

def _cparams():
    return pltpu.CompilerParams(dimension_semantics=("parallel",),
                                vmem_limit_bytes=_VMEM_LIMIT)


def pallas_matmul(x_pad, w_pad, *, tm, with_stats):
    """[Pp, Kp] bf16 @ [Kp, Cp] bf16 -> [Pp, Cp] f32 (+ optional BN partial
    stats [n_tiles, 8, Cp]).  Single grid axis over row tiles; full weight
    resident in VMEM."""
    pp, kp = x_pad.shape
    kp2, cp = w_pad.shape
    assert kp == kp2 and pp % tm == 0
    nr = pp // tm
    cost = pl.CostEstimate(
        flops=2 * pp * kp * cp + (3 * pp * cp if with_stats else 0),
        transcendentals=0,
        bytes_accessed=pp * kp * 2 + kp * cp * 2 + pp * cp * 4
        + (nr * 8 * cp * 4 if with_stats else 0))
    x_spec = pl.BlockSpec((tm, kp), lambda i: (i, 0))
    w_spec = pl.BlockSpec((kp, cp), lambda i: (0, 0))     # whole weight, once
    y_spec = pl.BlockSpec((tm, cp), lambda i: (i, 0))
    if with_stats:
        return pl.pallas_call(
            _matmul_stats_kernel,
            out_shape=(jax.ShapeDtypeStruct((pp, cp), jnp.float32),
                       jax.ShapeDtypeStruct((nr, 8, cp), jnp.float32)),
            grid=(nr,),
            in_specs=[x_spec, w_spec],
            out_specs=(y_spec, pl.BlockSpec((1, 8, cp), lambda i: (i, 0, 0))),
            compiler_params=_cparams(),
            cost_estimate=cost,
        )(x_pad, w_pad)
    return pl.pallas_call(
        _matmul_kernel,
        out_shape=jax.ShapeDtypeStruct((pp, cp), jnp.float32),
        grid=(nr,),
        in_specs=[x_spec, w_spec],
        out_specs=y_spec,
        compiler_params=_cparams(),
        cost_estimate=cost,
    )(x_pad, w_pad)


def pallas_stats(x_pad, *, tm):
    """Per-row-tile BN partial statistics for an [Pp, Cp] f32 activation whose
    padded rows are zero."""
    pp, cp = x_pad.shape
    assert pp % tm == 0
    nr = pp // tm
    return pl.pallas_call(
        _stats_kernel,
        out_shape=jax.ShapeDtypeStruct((nr, 8, cp), jnp.float32),
        grid=(nr,),
        in_specs=[pl.BlockSpec((tm, cp), lambda i: (i, 0))],
        out_specs=pl.BlockSpec((1, 8, cp), lambda i: (i, 0, 0)),
        compiler_params=_cparams(),
        cost_estimate=pl.CostEstimate(flops=3 * pp * cp, transcendentals=0,
                                      bytes_accessed=pp * cp * 4 + nr * 8 * cp * 4),
    )(x_pad)


def pallas_bn_apply(y_pad, scale, shift, *, tm, slope, out_dtype):
    """y * scale + shift followed by LeakyReLU, emitted in `out_dtype`."""
    pp, cp = y_pad.shape
    assert pp % tm == 0
    nr = pp // tm
    kern = functools.partial(_bn_lrelu_kernel, slope=float(slope))
    out_bytes = jnp.dtype(out_dtype).itemsize
    return pl.pallas_call(
        kern,
        out_shape=jax.ShapeDtypeStruct((pp, cp), out_dtype),
        grid=(nr,),
        in_specs=[pl.BlockSpec((tm, cp), lambda i: (i, 0)),
                  pl.BlockSpec((1, cp), lambda i: (0, 0)),
                  pl.BlockSpec((1, cp), lambda i: (0, 0))],
        out_specs=pl.BlockSpec((tm, cp), lambda i: (i, 0)),
        compiler_params=_cparams(),
        cost_estimate=pl.CostEstimate(flops=4 * pp * cp, transcendentals=0,
                                      bytes_accessed=pp * cp * 4
                                      + pp * cp * out_bytes + 2 * cp * 4),
    )(y_pad, scale, shift)


# ------------------------------ glue (JAX) ---------------------------------

def _bn_scale_shift(stats, rows, eps=_BN_EPS):
    """Reduce per-row-tile partial stats and turn them into per-channel
    (scale, shift) rows.  Training-mode BN: batch stats, gamma=1, beta=0."""
    s1 = jnp.sum(stats[:, 0, :], axis=0)
    s2 = jnp.sum(stats[:, 1, :], axis=0)
    mean = s1 / rows
    var = jnp.maximum(s2 / rows - mean * mean, 0.0)
    scale = jax.lax.rsqrt(var + eps)
    shift = -mean * scale
    return scale.reshape(1, -1), shift.reshape(1, -1)


def _im2col(x, k, stride, padding):
    # x: NHWC (bf16) -> patches [N*Ho*Wo, k*k*C] flattened as (kh, kw, C).
    # TODO(synk): implicit-GEMM (in-kernel im2col) would remove the k^2 HBM
    # amplification of this materialized patch matrix.
    n, h, w, c = x.shape
    xp = jnp.pad(x, ((0, 0), (padding, padding), (padding, padding), (0, 0)))
    hp, wp = h + 2 * padding, w + 2 * padding
    ho = (hp - k) // stride + 1
    wo = (wp - k) // stride + 1
    cols = []
    for i in range(k):
        for j in range(k):
            cols.append(xp[:, i:i + (ho - 1) * stride + 1:stride,
                              j:j + (wo - 1) * stride + 1:stride, :])
    cols = jnp.stack(cols, axis=3)                  # (N, Ho, Wo, k*k, C)
    return cols.reshape(n * ho * wo, k * k * c), ho, wo


def conv_layer(x, p, *, out_dtype=jnp.bfloat16):
    """Conv2d (bias cancelled by BN) -> BatchNorm2d (batch stats) -> LeakyReLU."""
    n = x.shape[0]
    k, s, pad, cout = p["k"], p["stride"], p["padding"], p["cout"]
    patches, ho, wo = _im2col(x, k, s, pad)
    rows, kdim = patches.shape
    assert kdim == p["K"]
    tm, pp = _row_tile(rows)
    xb = jnp.pad(patches, ((0, pp - rows), (0, p["Kp"] - kdim)))
    y, stats = pallas_matmul(xb, p["w_mat"], tm=tm, with_stats=True)
    scale, shift = _bn_scale_shift(stats, rows)
    y = pallas_bn_apply(y, scale, shift, tm=tm, slope=p["slope"],
                        out_dtype=out_dtype)
    return y[:rows, :cout].reshape(n, ho, wo, cout)


def deconv_layer(x, p, *, out_dtype=jnp.bfloat16):
    """ConvTranspose2d (bias cancelled by BN) -> BatchNorm2d -> LeakyReLU.

    One dense matmul over the real input taps (no dilated zeros), then a
    strided col2im scatter-add, then BN+LeakyReLU.
    """
    n, h, w, cin = x.shape
    k, s, pad, cout = p["k"], p["stride"], p["padding"], p["cout"]
    rows = n * h * w
    assert cin == p["K"]
    tm, pp = _row_tile(rows)
    xb = jnp.pad(x.reshape(rows, cin), ((0, pp - rows), (0, p["Kp"] - cin)))
    t = pallas_matmul(xb, p["w_mat"], tm=tm, with_stats=False)
    t = t[:rows, :p["cols"]].reshape(n, h, w, k, k, cout)

    # TODO(synk): move this k*k strided scatter-add (col2im) into a Pallas
    # kernel that accumulates tap planes in VMEM before one store.
    hf, wf = (h - 1) * s + k, (w - 1) * s + k
    out_full = jnp.zeros((n, hf, wf, cout), jnp.float32)
    for kh in range(k):
        for kw in range(k):
            out_full = out_full.at[:, kh:kh + (h - 1) * s + 1:s,
                                      kw:kw + (w - 1) * s + 1:s, :].add(
                t[:, :, :, kh, kw, :])
    ho, wo = (h - 1) * s - 2 * pad + k, (w - 1) * s - 2 * pad + k
    out = out_full[:, pad:pad + ho, pad:pad + wo, :]

    rows_o = n * ho * wo
    tmo, ppo = _row_tile(rows_o)
    cpo = _col_pad(cout)
    yb = jnp.pad(out.reshape(rows_o, cout), ((0, ppo - rows_o), (0, cpo - cout)))
    stats = pallas_stats(yb, tm=tmo)
    scale, shift = _bn_scale_shift(stats, rows_o)
    y = pallas_bn_apply(yb, scale, shift, tm=tmo, slope=p["slope"],
                        out_dtype=out_dtype)
    return y[:rows_o, :cout].reshape(n, ho, wo, cout)


# --------------------------- parameter handling -----------------------------
# Biases are omitted: every Conv/ConvTranspose here feeds a training-mode
# BatchNorm (gamma=1, beta=0, batch statistics), which exactly cancels any
# additive per-channel constant, so dropping them is numerically equivalent.

def _init_conv(key, cout, cin, k, stride, padding, slope):
    std = math.sqrt(1.0 / (k * k * cin))            # Encoder.initial(), FAN_IN
    w = jax.random.normal(key, (cout, cin, k, k), jnp.float32) * std
    return dict(w=w, stride=stride, padding=padding, slope=slope, kind="conv")


def _init_deconv(key, cin, cout, k, stride, padding, slope):
    std = math.sqrt(1.0 / (k * k * cin))            # FAN_IN uses in_channels
    w = jax.random.normal(key, (cin, cout, k, k), jnp.float32) * std
    return dict(w=w, stride=stride, padding=padding, slope=slope, kind="deconv")


def init_encoder_params(key, in_channels=3, M=6, out_channels=60):
    c = [128, 64, 64, 64, 64, 64]
    ch = out_channels // 6
    keys = iter(jax.random.split(key, 32))
    params = {}
    params["d"] = [_init_conv(next(keys), 3, 3, 3, 2, 1, 0.0)
                   for _ in range(M - 1)]
    f = []
    for i in range(3):
        f.append((_init_conv(next(keys), c[i], 3, 3, 1, 1, 0.0),
                  _init_conv(next(keys), c[i], c[i], 4, 2, 1, 0.0)))
    for i in range(3, M):
        f.append((_init_conv(next(keys), c[i], 3, 3, 1, 1, 0.0),
                  _init_conv(next(keys), c[i], c[i], 3, 1, 1, 0.0)))
    params["f"] = f
    params["g"] = [
        _init_conv(next(keys), ch, c[0], 5, 4, 1, 0.2),
        _init_conv(next(keys), ch, c[1], 3, 2, 1, 0.2),
        _init_conv(next(keys), ch, c[2], 3, 1, 1, 0.2),
        _init_conv(next(keys), ch, c[3], 3, 1, 1, 0.2),
        _init_deconv(next(keys), c[4], ch, 4, 2, 1, 0.2),
        _init_deconv(next(keys), c[5], ch, 6, 4, 1, 0.2),
    ]
    params["G"] = _init_conv(next(keys), out_channels, out_channels, 3, 1, 1, 0.0)
    return params


def _prepare_conv(raw):
    w = raw["w"]                                    # (Cout, Cin, k, k)
    cout, cin, k, _ = w.shape
    kdim = k * k * cin
    kp, cp = _k_pad(kdim), _col_pad(cout)
    w_mat = jnp.transpose(w, (2, 3, 1, 0)).reshape(kdim, cout)
    w_mat = jnp.pad(w_mat, ((0, kp - kdim), (0, cp - cout))).astype(jnp.bfloat16)
    return dict(kind="conv", w_mat=w_mat, cout=cout, k=k, stride=raw["stride"],
                padding=raw["padding"], slope=raw["slope"], K=kdim, Kp=kp, Cp=cp)


def _prepare_deconv(raw):
    w = raw["w"]                                    # (Cin, Cout, k, k)
    cin, cout, k, _ = w.shape
    cols = k * k * cout
    kp, cp = _k_pad(cin), _col_pad(cols)
    w_mat = jnp.transpose(w, (0, 2, 3, 1)).reshape(cin, cols)   # (kh, kw, Cout)
    w_mat = jnp.pad(w_mat, ((0, kp - cin), (0, cp - cols))).astype(jnp.bfloat16)
    return dict(kind="deconv", w_mat=w_mat, cout=cout, k=k, stride=raw["stride"],
                padding=raw["padding"], slope=raw["slope"], K=cin, Kp=kp, Cp=cp,
                cols=cols)


def prepare_encoder_params(raw):
    prep = lambda r: _prepare_deconv(r) if r["kind"] == "deconv" else _prepare_conv(r)
    return {
        "d": [prep(r) for r in raw["d"]],
        "f": [(prep(a), prep(b)) for a, b in raw["f"]],
        "g": [prep(r) for r in raw["g"]],
        "G": prep(raw["G"]),
    }


# -------------------------------- forward ----------------------------------

def encoder_forward(params, x_nchw, M=6):
    x = jnp.transpose(x_nchw, (0, 2, 3, 1)).astype(jnp.bfloat16)   # NCHW -> NHWC
    dx = [x]
    for i in range(M - 1):
        dx.append(conv_layer(dx[i], params["d"][i]))
    gx = []
    for i in range(M):
        f1, f2 = params["f"][i]
        y = conv_layer(conv_layer(dx[i], f1), f2)
        gp = params["g"][i]
        y = deconv_layer(y, gp) if gp["kind"] == "deconv" else conv_layer(y, gp)
        gx.append(y)
    cat = jnp.concatenate(gx, axis=-1)               # == torch.cat(gx, dim=1)
    out = conv_layer(cat, params["G"], out_dtype=jnp.float32)
    return jnp.transpose(out, (0, 3, 1, 2))          # NHWC -> NCHW


# ---------------------------------- main ------------------------------------

if __name__ == "__main__":
    key = jax.random.PRNGKey(0)
    pkey, xkey = jax.random.split(key)
    raw_params = init_encoder_params(pkey)
    params = prepare_encoder_params(raw_params)

    # NCHW input like the PyTorch module; H, W divisible by 32 so the d-chain
    # reaches 1x1 cleanly and all g-branch outputs align at 4x4.
    x = jax.random.normal(xkey, (2, 3, 32, 32), jnp.float32)

    fwd = jax.jit(lambda inp: encoder_forward(params, inp))
    out = jax.block_until_ready(fwd(x))

    assert out.shape == (2, 60, 4, 4), out.shape
    assert bool(jnp.all(jnp.isfinite(out)))
    print("KERNEL_OK")
</pallas_src>

<mosaic_0001>
module attributes {stable_mosaic.version = 11 : i64} {
  func.func @_matmul_stats_kernel(%arg0: i32, %arg1: memref<256x128xbf16, #tpu.memory_space<vmem>>, %arg2: memref<128x128xbf16, #tpu.memory_space<vmem>>, %arg3: memref<256x128xf32, #tpu.memory_space<vmem>>, %arg4: memref<1x8x128xf32, #tpu.memory_space<vmem>>) attributes {dimension_semantics = [#tpu.dimension_semantics<parallel>], iteration_bounds = array<i64: 2>, scalar_prefetch = 0 : i64, scratch_operands = 0 : i64, tpu.core_type = #tpu.core_type<tc>, window_params = [{transform_indices = @transform_0, window_bounds = array<i64: 256, 128>}, {pipeline_mode = #tpu.pipeline_mode<synchronous>, transform_indices = @transform_1, window_bounds = array<i64: 128, 128>}, {transform_indices = @transform_2, window_bounds = array<i64: 256, 128>}, {transform_indices = @transform_3, window_bounds = array<i64: 1, 8, 128>}]} {
    %c0 = arith.constant 0 : index
    %c0_0 = arith.constant 0 : index
    %0 = vector.load %arg1[%c0, %c0_0] : memref<256x128xbf16, #tpu.memory_space<vmem>>, vector<256x128xbf16>
    %c0_1 = arith.constant 0 : index
    %c0_2 = arith.constant 0 : index
    %1 = vector.load %arg2[%c0_1, %c0_2] : memref<128x128xbf16, #tpu.memory_space<vmem>>, vector<128x128xbf16>
    %cst = arith.constant dense<0.000000e+00> : vector<256x128xf32>
    %2 = tpu.matmul %0, %1, %cst {dimension_numbers = #tpu.dot_dimension_numbers<[1], [0], [0], [1], [0, 0, 1, 1], [], []>} : vector<256x128xbf16>, vector<128x128xbf16>, vector<256x128xf32> -> vector<256x128xf32>
    %c0_3 = arith.constant 0 : index
    %c0_4 = arith.constant 0 : index
    %3 = vector.load %arg3[%c0_3, %c0_4] : memref<256x128xf32, #tpu.memory_space<vmem>>, vector<256x128xf32>
    tpu.vector_store %arg3[%c0_3, %c0_4], %2 {strides = array<i32>} : memref<256x128xf32, #tpu.memory_space<vmem>>, vector<256x128xf32>,
    %cst_5 = arith.constant dense<0.000000e+00> : vector<128xf32>
    %4 = vector.multi_reduction <add>, %2, %cst_5 [0] : vector<256x128xf32> to vector<128xf32>
    %5 = vector.shape_cast %4 : vector<128xf32> to vector<1x128xf32>
    %6 = arith.mulf %2, %2 : vector<256x128xf32>
    %cst_6 = arith.constant dense<0.000000e+00> : vector<128xf32>
    %7 = vector.multi_reduction <add>, %6, %cst_6 [0] : vector<256x128xf32> to vector<128xf32>
    %8 = vector.shape_cast %7 : vector<128xf32> to vector<1x128xf32>
    %9 = tpu.iota {dimensions = array<i32: 0>} : vector<8x128xi32>
    %c0_i32 = arith.constant 0 : i32
    %10 = vector.broadcast %c0_i32 : i32 to vector<8x128xi32>
    %11 = arith.cmpi eq, %9, %10 : vector<8x128xi32>
    %12 = vector.shape_cast %5 : vector<1x128xf32> to vector<1x128xf32>
    %13 = vector.broadcast %12 : vector<1x128xf32> to vector<8x128xf32>
    %c1_i32 = arith.constant 1 : i32
    %14 = vector.broadcast %c1_i32 : i32 to vector<8x128xi32>
    %15 = arith.cmpi eq, %9, %14 : vector<8x128xi32>
    %16 = vector.shape_cast %8 : vector<1x128xf32> to vector<1x128xf32>
    %17 = vector.broadcast %16 : vector<1x128xf32> to vector<8x128xf32>
    %cst_7 = arith.constant 0.000000e+00 : f32
    %18 = vector.broadcast %cst_7 : f32 to vector<8x128xf32>
    %19 = arith.select %15, %17, %18 : vector<8x128xi1>, vector<8x128xf32>
    %20 = arith.select %11, %13, %19 : vector<8x128xi1>, vector<8x128xf32>
    %21 = vector.shape_cast %20 : vector<8x128xf32> to vector<1x8x128xf32>
    %c0_8 = arith.constant 0 : index
    %c0_9 = arith.constant 0 : index
    %c0_10 = arith.constant 0 : index
    %22 = vector.load %arg4[%c0_8, %c0_9, %c0_10] : memref<1x8x128xf32, #tpu.memory_space<vmem>>, vector<1x8x128xf32>
    tpu.vector_store %arg4[%c0_8, %c0_9, %c0_10], %21 {strides = array<i32>} : memref<1x8x128xf32, #tpu.memory_space<vmem>>, vector<1x8x128xf32>,
    return
  }
  func.func @transform_0(%arg0: i32) -> (i32, i32) {
    %c0_i32 = arith.constant 0 : i32
    %c0_i32_0 = arith.constant 0 : i32
    return %arg0, %c0_i32 : i32, i32
  }
  func.func @transform_1(%arg0: i32) -> (i32, i32) {
    %c0_i32 = arith.constant 0 : i32
    %c0_i32_0 = arith.constant 0 : i32
    %c0_i32_1 = arith.constant 0 : i32
    return %c0_i32, %c0_i32_0 : i32, i32
  }
  func.func @transform_2(%arg0: i32) -> (i32, i32) {
    %c0_i32 = arith.constant 0 : i32
    %c0_i32_0 = arith.constant 0 : i32
    return %arg0, %c0_i32 : i32, i32
  }
  func.func @transform_3(%arg0: i32) -> (i32, i32, i32) {
    %c0_i32 = arith.constant 0 : i32
    %c0_i32_0 = arith.constant 0 : i32
    %c0_i32_1 = arith.constant 0 : i32
    return %arg0, %c0_i32, %c0_i32_0 : i32, i32, i32
  }
}

module attributes {stable_mosaic.version = 11 : i64} {
  func.func @_bn_lrelu_kernel(%arg0: i32, %arg1: memref<256x128xf32, #tpu.memory_space<vmem>>, %arg2: memref<1x128xf32, #tpu.memory_space<vmem>>, %arg3: memref<1x128xf32, #tpu.memory_space<vmem>>, %arg4: memref<256x128xbf16, #tpu.memory_space<vmem>>) attributes {dimension_semantics = [#tpu.dimension_semantics<parallel>], iteration_bounds = array<i64: 2>, scalar_prefetch = 0 : i64, scratch_operands = 0 : i64, tpu.core_type = #tpu.core_type<tc>, window_params = [{transform_indices = @transform_0, window_bounds = array<i64: 256, 128>}, {pipeline_mode = #tpu.pipeline_mode<synchronous>, transform_indices = @transform_1, window_bounds = array<i64: 1, 128>}, {pipeline_mode = #tpu.pipeline_mode<synchronous>, transform_indices = @transform_2, window_bounds = array<i64: 1, 128>}, {transform_indices = @transform_3, window_bounds = array<i64: 256, 128>}]} {
    %c0 = arith.constant 0 : index
    %c0_0 = arith.constant 0 : index
    %0 = vector.load %arg1[%c0, %c0_0] : memref<256x128xf32, #tpu.memory_space<vmem>>, vector<256x128xf32>
    %c0_1 = arith.constant 0 : index
    %c0_2 = arith.constant 0 : index
    %1 = vector.load %arg2[%c0_1, %c0_2] : memref<1x128xf32, #tpu.memory_space<vmem>>, vector<1x128xf32>
    %2 = vector.broadcast %1 : vector<1x128xf32> to vector<256x128xf32>
    %3 = arith.mulf %0, %2 : vector<256x128xf32>
    %c0_3 = arith.constant 0 : index
    %c0_4 = arith.constant 0 : index
    %4 = vector.load %arg3[%c0_3, %c0_4] : memref<1x128xf32, #tpu.memory_space<vmem>>, vector<1x128xf32>
    %5 = vector.broadcast %4 : vector<1x128xf32> to vector<256x128xf32>
    %6 = arith.addf %3, %5 : vector<256x128xf32>
    %cst = arith.constant 0.000000e+00 : f32
    %7 = vector.broadcast %cst : f32 to vector<256x128xf32>
    %8 = arith.cmpf oge, %6, %7 : vector<256x128xf32>
    %cst_5 = arith.constant 0.000000e+00 : f32
    %9 = vector.broadcast %cst_5 : f32 to vector<256x128xf32>
    %10 = arith.mulf %9, %6 : vector<256x128xf32>
    %11 = arith.select %8, %6, %10 : vector<256x128xi1>, vector<256x128xf32>
    %12 = arith.truncf %11 : vector<256x128xf32> to vector<256x128xbf16>
    %c0_6 = arith.constant 0 : index
    %c0_7 = arith.constant 0 : index
    %13 = vector.load %arg4[%c0_6, %c0_7] : memref<256x128xbf16, #tpu.memory_space<vmem>>, vector<256x128xbf16>
    tpu.vector_store %arg4[%c0_6, %c0_7], %12 {strides = array<i32>} : memref<256x128xbf16, #tpu.memory_space<vmem>>, vector<256x128xbf16>,
    return
  }
  func.func @transform_0(%arg0: i32) -> (i32, i32) {
    %c0_i32 = arith.constant 0 : i32
    %c0_i32_0 = arith.constant 0 : i32
    return %arg0, %c0_i32 : i32, i32
  }
  func.func @transform_1(%arg0: i32) -> (i32, i32) {
    %c0_i32 = arith.constant 0 : i32
    %c0_i32_0 = arith.constant 0 : i32
    %c0_i32_1 = arith.constant 0 : i32
    return %c0_i32, %c0_i32_0 : i32, i32
  }
  func.func @transform_2(%arg0: i32) -> (i32, i32) {
    %c0_i32 = arith.constant 0 : i32
    %c0_i32_0 = arith.constant 0 : i32
    %c0_i32_1 = arith.constant 0 : i32
    return %c0_i32, %c0_i32_0 : i32, i32
  }
  func.func @transform_3(%arg0: i32) -> (i32, i32) {
    %c0_i32 = arith.constant 0 : i32
    %c0_i32_0 = arith.constant 0 : i32
    return %arg0, %c0_i32 : i32, i32
  }
}

module attributes {stable_mosaic.version = 11 : i64} {
  func.func @_matmul_stats_kernel(%arg0: i32, %arg1: memref<64x128xbf16, #tpu.memory_space<vmem>>, %arg2: memref<128x128xbf16, #tpu.memory_space<vmem>>, %arg3: memref<64x128xf32, #tpu.memory_space<vmem>>, %arg4: memref<1x8x128xf32, #tpu.memory_space<vmem>>) attributes {dimension_semantics = [#tpu.dimension_semantics<parallel>], iteration_bounds = array<i64: 2>, scalar_prefetch = 0 : i64, scratch_operands = 0 : i64, tpu.core_type = #tpu.core_type<tc>, window_params = [{transform_indices = @transform_0, window_bounds = array<i64: 64, 128>}, {pipeline_mode = #tpu.pipeline_mode<synchronous>, transform_indices = @transform_1, window_bounds = array<i64: 128, 128>}, {transform_indices = @transform_2, window_bounds = array<i64: 64, 128>}, {transform_indices = @transform_3, window_bounds = array<i64: 1, 8, 128>}]} {
    %c0 = arith.constant 0 : index
    %c0_0 = arith.constant 0 : index
    %0 = vector.load %arg1[%c0, %c0_0] : memref<64x128xbf16, #tpu.memory_space<vmem>>, vector<64x128xbf16>
    %c0_1 = arith.constant 0 : index
    %c0_2 = arith.constant 0 : index
    %1 = vector.load %arg2[%c0_1, %c0_2] : memref<128x128xbf16, #tpu.memory_space<vmem>>, vector<128x128xbf16>
    %cst = arith.constant dense<0.000000e+00> : vector<64x128xf32>
    %2 = tpu.matmul %0, %1, %cst {dimension_numbers = #tpu.dot_dimension_numbers<[1], [0], [0], [1], [0, 0, 1, 1], [], []>} : vector<64x128xbf16>, vector<128x128xbf16>, vector<64x128xf32> -> vector<64x128xf32>
    %c0_3 = arith.constant 0 : index
    %c0_4 = arith.constant 0 : index
    %3 = vector.load %arg3[%c0_3, %c0_4] : memref<64x128xf32, #tpu.memory_space<vmem>>, vector<64x128xf32>
    tpu.vector_store %arg3[%c0_3, %c0_4], %2 {strides = array<i32>} : memref<64x128xf32, #tpu.memory_space<vmem>>, vector<64x128xf32>,
    %cst_5 = arith.constant dense<0.000000e+00> : vector<128xf32>
    %4 = vector.multi_reduction <add>, %2, %cst_5 [0] : vector<64x128xf32> to vector<128xf32>
    %5 = vector.shape_cast %4 : vector<128xf32> to vector<1x128xf32>
    %6 = arith.mulf %2, %2 : vector<64x128xf32>
    %cst_6 = arith.constant dense<0.000000e+00> : vector<128xf32>
    %7 = vector.multi_reduction <add>, %6, %cst_6 [0] : vector<64x128xf32> to vector<128xf32>
    %8 = vector.shape_cast %7 : vector<128xf32> to vector<1x128xf32>
    %9 = tpu.iota {dimensions = array<i32: 0>} : vector<8x128xi32>
    %c0_i32 = arith.constant 0 : i32
    %10 = vector.broadcast %c0_i32 : i32 to vector<8x128xi32>
    %11 = arith.cmpi eq, %9, %10 : vector<8x128xi32>
    %12 = vector.shape_cast %5 : vector<1x128xf32> to vector<1x128xf32>
    %13 = vector.broadcast %12 : vector<1x128xf32> to vector<8x128xf32>
    %c1_i32 = arith.constant 1 : i32
    %14 = vector.broadcast %c1_i32 : i32 to vector<8x128xi32>
    %15 = arith.cmpi eq, %9, %14 : vector<8x128xi32>
    %16 = vector.shape_cast %8 : vector<1x128xf32> to vector<1x128xf32>
    %17 = vector.broadcast %16 : vector<1x128xf32> to vector<8x128xf32>
    %cst_7 = arith.constant 0.000000e+00 : f32
    %18 = vector.broadcast %cst_7 : f32 to vector<8x128xf32>
    %19 = arith.select %15, %17, %18 : vector<8x128xi1>, vector<8x128xf32>
    %20 = arith.select %11, %13, %19 : vector<8x128xi1>, vector<8x128xf32>
    %21 = vector.shape_cast %20 : vector<8x128xf32> to vector<1x8x128xf32>
    %c0_8 = arith.constant 0 : index
    %c0_9 = arith.constant 0 : index
    %c0_10 = arith.constant 0 : index
    %22 = vector.load %arg4[%c0_8, %c0_9, %c0_10] : memref<1x8x128xf32, #tpu.memory_space<vmem>>, vector<1x8x128xf32>
    tpu.vector_store %arg4[%c0_8, %c0_9, %c0_10], %21 {strides = array<i32>} : memref<1x8x128xf32, #tpu.memory_space<vmem>>, vector<1x8x128xf32>,
    return
  }
  func.func @transform_0(%arg0: i32) -> (i32, i32) {
    %c0_i32 = arith.constant 0 : i32
    %c0_i32_0 = arith.constant 0 : i32
    return %arg0, %c0_i32 : i32, i32
  }
  func.func @transform_1(%arg0: i32) -> (i32, i32) {
    %c0_i32 = arith.constant 0 : i32
    %c0_i32_0 = arith.constant 0 : i32
    %c0_i32_1 = arith.constant 0 : i32
    return %c0_i32, %c0_i32_0 : i32, i32
  }
  func.func @transform_2(%arg0: i32) -> (i32, i32) {
    %c0_i32 = arith.constant 0 : i32
    %c0_i32_0 = arith.constant 0 : i32
    return %arg0, %c0_i32 : i32, i32
  }
  func.func @transform_3(%arg0: i32) -> (i32, i32, i32) {
    %c0_i32 = arith.constant 0 : i32
    %c0_i32_0 = arith.constant 0 : i32
    %c0_i32_1 = arith.constant 0 : i32
    return %arg0, %c0_i32, %c0_i32_0 : i32, i32, i32
  }
}

module attributes {stable_mosaic.version = 11 : i64} {
  func.func @_bn_lrelu_kernel(%arg0: i32, %arg1: memref<64x128xf32, #tpu.memory_space<vmem>>, %arg2: memref<1x128xf32, #tpu.memory_space<vmem>>, %arg3: memref<1x128xf32, #tpu.memory_space<vmem>>, %arg4: memref<64x128xbf16, #tpu.memory_space<vmem>>) attributes {dimension_semantics = [#tpu.dimension_semantics<parallel>], iteration_bounds = array<i64: 2>, scalar_prefetch = 0 : i64, scratch_operands = 0 : i64, tpu.core_type = #tpu.core_type<tc>, window_params = [{transform_indices = @transform_0, window_bounds = array<i64: 64, 128>}, {pipeline_mode = #tpu.pipeline_mode<synchronous>, transform_indices = @transform_1, window_bounds = array<i64: 1, 128>}, {pipeline_mode = #tpu.pipeline_mode<synchronous>, transform_indices = @transform_2, window_bounds = array<i64: 1, 128>}, {transform_indices = @transform_3, window_bounds = array<i64: 64, 128>}]} {
    %c0 = arith.constant 0 : index
    %c0_0 = arith.constant 0 : index
    %0 = vector.load %arg1[%c0, %c0_0] : memref<64x128xf32, #tpu.memory_space<vmem>>, vector<64x128xf32>
    %c0_1 = arith.constant 0 : index
    %c0_2 = arith.constant 0 : index
    %1 = vector.load %arg2[%c0_1, %c0_2] : memref<1x128xf32, #tpu.memory_space<vmem>>, vector<1x128xf32>
    %2 = vector.broadcast %1 : vector<1x128xf32> to vector<64x128xf32>
    %3 = arith.mulf %0, %2 : vector<64x128xf32>
    %c0_3 = arith.constant 0 : index
    %c0_4 = arith.constant 0 : index
    %4 = vector.load %arg3[%c0_3, %c0_4] : memref<1x128xf32, #tpu.memory_space<vmem>>, vector<1x128xf32>
    %5 = vector.broadcast %4 : vector<1x128xf32> to vector<64x128xf32>
    %6 = arith.addf %3, %5 : vector<64x128xf32>
    %cst = arith.constant 0.000000e+00 : f32
    %7 = vector.broadcast %cst : f32 to vector<64x128xf32>
    %8 = arith.cmpf oge, %6, %7 : vector<64x128xf32>
    %cst_5 = arith.constant 0.000000e+00 : f32
    %9 = vector.broadcast %cst_5 : f32 to vector<64x128xf32>
    %10 = arith.mulf %9, %6 : vector<64x128xf32>
    %11 = arith.select %8, %6, %10 : vector<64x128xi1>, vector<64x128xf32>
    %12 = arith.truncf %11 : vector<64x128xf32> to vector<64x128xbf16>
    %c0_6 = arith.constant 0 : index
    %c0_7 = arith.constant 0 : index
    %13 = vector.load %arg4[%c0_6, %c0_7] : memref<64x128xbf16, #tpu.memory_space<vmem>>, vector<64x128xbf16>
    tpu.vector_store %arg4[%c0_6, %c0_7], %12 {strides = array<i32>} : memref<64x128xbf16, #tpu.memory_space<vmem>>, vector<64x128xbf16>,
    return
  }
  func.func @transform_0(%arg0: i32) -> (i32, i32) {
    %c0_i32 = arith.constant 0 : i32
    %c0_i32_0 = arith.constant 0 : i32
    return %arg0, %c0_i32 : i32, i32
  }
  func.func @transform_1(%arg0: i32) -> (i32, i32) {
    %c0_i32 = arith.constant 0 : i32
    %c0_i32_0 = arith.constant 0 : i32
    %c0_i32_1 = arith.constant 0 : i32
    return %c0_i32, %c0_i32_0 : i32, i32
  }
  func.func @transform_2(%arg0: i32) -> (i32, i32) {
    %c0_i32 = arith.constant 0 : i32
    %c0_i32_0 = arith.constant 0 : i32
    %c0_i32_1 = arith.constant 0 : i32
    return %c0_i32, %c0_i32_0 : i32, i32
  }
  func.func @transform_3(%arg0: i32) -> (i32, i32) {
    %c0_i32 = arith.constant 0 : i32
    %c0_i32_0 = arith.constant 0 : i32
    return %arg0, %c0_i32 : i32, i32
  }
}

module attributes {stable_mosaic.version = 11 : i64} {
  func.func @_bn_lrelu_kernel(%arg0: i32, %arg1: memref<32x128xf32, #tpu.memory_space<vmem>>, %arg2: memref<1x128xf32, #tpu.memory_space<vmem>>, %arg3: memref<1x128xf32, #tpu.memory_space<vmem>>, %arg4: memref<32x128xbf16, #tpu.memory_space<vmem>>) attributes {dimension_semantics = [#tpu.dimension_semantics<parallel>], iteration_bounds = array<i64: 1>, scalar_prefetch = 0 : i64, scratch_operands = 0 : i64, tpu.core_type = #tpu.core_type<tc>, window_params = [{transform_indices = @transform_0, window_bounds = array<i64: 32, 128>}, {pipeline_mode = #tpu.pipeline_mode<synchronous>, transform_indices = @transform_1, window_bounds = array<i64: 1, 128>}, {pipeline_mode = #tpu.pipeline_mode<synchronous>, transform_indices = @transform_2, window_bounds = array<i64: 1, 128>}, {transform_indices = @transform_3, window_bounds = array<i64: 32, 128>}]} {
    %c0 = arith.constant 0 : index
    %c0_0 = arith.constant 0 : index
    %0 = vector.load %arg1[%c0, %c0_0] : memref<32x128xf32, #tpu.memory_space<vmem>>, vector<32x128xf32>
    %c0_1 = arith.constant 0 : index
    %c0_2 = arith.constant 0 : index
    %1 = vector.load %arg2[%c0_1, %c0_2] : memref<1x128xf32, #tpu.memory_space<vmem>>, vector<1x128xf32>
    %2 = vector.broadcast %1 : vector<1x128xf32> to vector<32x128xf32>
    %3 = arith.mulf %0, %2 : vector<32x128xf32>
    %c0_3 = arith.constant 0 : index
    %c0_4 = arith.constant 0 : index
    %4 = vector.load %arg3[%c0_3, %c0_4] : memref<1x128xf32, #tpu.memory_space<vmem>>, vector<1x128xf32>
    %5 = vector.broadcast %4 : vector<1x128xf32> to vector<32x128xf32>
    %6 = arith.addf %3, %5 : vector<32x128xf32>
    %cst = arith.constant 0.000000e+00 : f32
    %7 = vector.broadcast %cst : f32 to vector<32x128xf32>
    %8 = arith.cmpf oge, %6, %7 : vector<32x128xf32>
    %cst_5 = arith.constant 0.000000e+00 : f32
    %9 = vector.broadcast %cst_5 : f32 to vector<32x128xf32>
    %10 = arith.mulf %9, %6 : vector<32x128xf32>
    %11 = arith.select %8, %6, %10 : vector<32x128xi1>, vector<32x128xf32>
    %12 = arith.truncf %11 : vector<32x128xf32> to vector<32x128xbf16>
    %c0_6 = arith.constant 0 : index
    %c0_7 = arith.constant 0 : index
    %13 = vector.load %arg4[%c0_6, %c0_7] : memref<32x128xbf16, #tpu.memory_space<vmem>>, vector<32x128xbf16>
    tpu.vector_store %arg4[%c0_6, %c0_7], %12 {strides = array<i32>} : memref<32x128xbf16, #tpu.memory_space<vmem>>, vector<32x128xbf16>,
    return
  }
  func.func @transform_0(%arg0: i32) -> (i32, i32) {
    %c0_i32 = arith.constant 0 : i32
    %c0_i32_0 = arith.constant 0 : i32
    return %arg0, %c0_i32 : i32, i32
  }
  func.func @transform_1(%arg0: i32) -> (i32, i32) {
    %c0_i32 = arith.constant 0 : i32
    %c0_i32_0 = arith.constant 0 : i32
    %c0_i32_1 = arith.constant 0 : i32
    return %c0_i32, %c0_i32_0 : i32, i32
  }
  func.func @transform_2(%arg0: i32) -> (i32, i32) {
    %c0_i32 = arith.constant 0 : i32
    %c0_i32_0 = arith.constant 0 : i32
    %c0_i32_1 = arith.constant 0 : i32
    return %c0_i32, %c0_i32_0 : i32, i32
  }
  func.func @transform_3(%arg0: i32) -> (i32, i32) {
    %c0_i32 = arith.constant 0 : i32
    %c0_i32_0 = arith.constant 0 : i32
    return %arg0, %c0_i32 : i32, i32
  }
}

module attributes {stable_mosaic.version = 11 : i64} {
  func.func @_matmul_stats_kernel(%arg0: i32, %arg1: memref<32x128xbf16, #tpu.memory_space<vmem>>, %arg2: memref<128x128xbf16, #tpu.memory_space<vmem>>, %arg3: memref<32x128xf32, #tpu.memory_space<vmem>>, %arg4: memref<1x8x128xf32, #tpu.memory_space<vmem>>) attributes {dimension_semantics = [#tpu.dimension_semantics<parallel>], iteration_bounds = array<i64: 1>, scalar_prefetch = 0 : i64, scratch_operands = 0 : i64, tpu.core_type = #tpu.core_type<tc>, window_params = [{transform_indices = @transform_0, window_bounds = array<i64: 32, 128>}, {pipeline_mode = #tpu.pipeline_mode<synchronous>, transform_indices = @transform_1, window_bounds = array<i64: 128, 128>}, {transform_indices = @transform_2, window_bounds = array<i64: 32, 128>}, {transform_indices = @transform_3, window_bounds = array<i64: 1, 8, 128>}]} {
    %c0 = arith.constant 0 : index
    %c0_0 = arith.constant 0 : index
    %0 = vector.load %arg1[%c0, %c0_0] : memref<32x128xbf16, #tpu.memory_space<vmem>>, vector<32x128xbf16>
    %c0_1 = arith.constant 0 : index
    %c0_2 = arith.constant 0 : index
    %1 = vector.load %arg2[%c0_1, %c0_2] : memref<128x128xbf16, #tpu.memory_space<vmem>>, vector<128x128xbf16>
    %cst = arith.constant dense<0.000000e+00> : vector<32x128xf32>
    %2 = tpu.matmul %0, %1, %cst {dimension_numbers = #tpu.dot_dimension_numbers<[1], [0], [0], [1], [0, 0, 1, 1], [], []>} : vector<32x128xbf16>, vector<128x128xbf16>, vector<32x128xf32> -> vector<32x128xf32>
    %c0_3 = arith.constant 0 : index
    %c0_4 = arith.constant 0 : index
    %3 = vector.load %arg3[%c0_3, %c0_4] : memref<32x128xf32, #tpu.memory_space<vmem>>, vector<32x128xf32>
    tpu.vector_store %arg3[%c0_3, %c0_4], %2 {strides = array<i32>} : memref<32x128xf32, #tpu.memory_space<vmem>>, vector<32x128xf32>,
    %cst_5 = arith.constant dense<0.000000e+00> : vector<128xf32>
    %4 = vector.multi_reduction <add>, %2, %cst_5 [0] : vector<32x128xf32> to vector<128xf32>
    %5 = vector.shape_cast %4 : vector<128xf32> to vector<1x128xf32>
    %6 = arith.mulf %2, %2 : vector<32x128xf32>
    %cst_6 = arith.constant dense<0.000000e+00> : vector<128xf32>
    %7 = vector.multi_reduction <add>, %6, %cst_6 [0] : vector<32x128xf32> to vector<128xf32>
    %8 = vector.shape_cast %7 : vector<128xf32> to vector<1x128xf32>
    %9 = tpu.iota {dimensions = array<i32: 0>} : vector<8x128xi32>
    %c0_i32 = arith.constant 0 : i32
    %10 = vector.broadcast %c0_i32 : i32 to vector<8x128xi32>
    %11 = arith.cmpi eq, %9, %10 : vector<8x128xi32>
    %12 = vector.shape_cast %5 : vector<1x128xf32> to vector<1x128xf32>
    %13 = vector.broadcast %12 : vector<1x128xf32> to vector<8x128xf32>
    %c1_i32 = arith.constant 1 : i32
    %14 = vector.broadcast %c1_i32 : i32 to vector<8x128xi32>
    %15 = arith.cmpi eq, %9, %14 : vector<8x128xi32>
    %16 = vector.shape_cast %8 : vector<1x128xf32> to vector<1x128xf32>
    %17 = vector.broadcast %16 : vector<1x128xf32> to vector<8x128xf32>
    %cst_7 = arith.constant 0.000000e+00 : f32
    %18 = vector.broadcast %cst_7 : f32 to vector<8x128xf32>
    %19 = arith.select %15, %17, %18 : vector<8x128xi1>, vector<8x128xf32>
    %20 = arith.select %11, %13, %19 : vector<8x128xi1>, vector<8x128xf32>
    %21 = vector.shape_cast %20 : vector<8x128xf32> to vector<1x8x128xf32>
    %c0_8 = arith.constant 0 : index
    %c0_9 = arith.constant 0 : index
    %c0_10 = arith.constant 0 : index
    %22 = vector.load %arg4[%c0_8, %c0_9, %c0_10] : memref<1x8x128xf32, #tpu.memory_space<vmem>>, vector<1x8x128xf32>
    tpu.vector_store %arg4[%c0_8, %c0_9, %c0_10], %21 {strides = array<i32>} : memref<1x8x128xf32, #tpu.memory_space<vmem>>, vector<1x8x128xf32>,
    return
  }
  func.func @transform_0(%arg0: i32) -> (i32, i32) {
    %c0_i32 = arith.constant 0 : i32
    %c0_i32_0 = arith.constant 0 : i32
    return %arg0, %c0_i32 : i32, i32
  }
  func.func @transform_1(%arg0: i32) -> (i32, i32) {
    %c0_i32 = arith.constant 0 : i32
    %c0_i32_0 = arith.constant 0 : i32
    %c0_i32_1 = arith.constant 0 : i32
    return %c0_i32, %c0_i32_0 : i32, i32
  }
  func.func @transform_2(%arg0: i32) -> (i32, i32) {
    %c0_i32 = arith.constant 0 : i32
    %c0_i32_0 = arith.constant 0 : i32
    return %arg0, %c0_i32 : i32, i32
  }
  func.func @transform_3(%arg0: i32) -> (i32, i32, i32) {
    %c0_i32 = arith.constant 0 : i32
    %c0_i32_0 = arith.constant 0 : i32
    %c0_i32_1 = arith.constant 0 : i32
    return %arg0, %c0_i32, %c0_i32_0 : i32, i32, i32
  }
}

module attributes {stable_mosaic.version = 11 : i64} {
  func.func @_matmul_stats_kernel(%arg0: i32, %arg1: memref<16x128xbf16, #tpu.memory_space<vmem>>, %arg2: memref<128x128xbf16, #tpu.memory_space<vmem>>, %arg3: memref<16x128xf32, #tpu.memory_space<vmem>>, %arg4: memref<1x8x128xf32, #tpu.memory_space<vmem>>) attributes {dimension_semantics = [#tpu.dimension_semantics<parallel>], iteration_bounds = array<i64: 1>, scalar_prefetch = 0 : i64, scratch_operands = 0 : i64, tpu.core_type = #tpu.core_type<tc>, window_params = [{transform_indices = @transform_0, window_bounds = array<i64: 16, 128>}, {pipeline_mode = #tpu.pipeline_mode<synchronous>, transform_indices = @transform_1, window_bounds = array<i64: 128, 128>}, {transform_indices = @transform_2, window_bounds = array<i64: 16, 128>}, {transform_indices = @transform_3, window_bounds = array<i64: 1, 8, 128>}]} {
    %c0 = arith.constant 0 : index
    %c0_0 = arith.constant 0 : index
    %0 = vector.load %arg1[%c0, %c0_0] : memref<16x128xbf16, #tpu.memory_space<vmem>>, vector<16x128xbf16>
    %c0_1 = arith.constant 0 : index
    %c0_2 = arith.constant 0 : index
    %1 = vector.load %arg2[%c0_1, %c0_2] : memref<128x128xbf16, #tpu.memory_space<vmem>>, vector<128x128xbf16>
    %cst = arith.constant dense<0.000000e+00> : vector<16x128xf32>
    %2 = tpu.matmul %0, %1, %cst {dimension_numbers = #tpu.dot_dimension_numbers<[1], [0], [0], [1], [0, 0, 1, 1], [], []>} : vector<16x128xbf16>, vector<128x128xbf16>, vector<16x128xf32> -> vector<16x128xf32>
    %c0_3 = arith.constant 0 : index
    %c0_4 = arith.constant 0 : index
    %3 = vector.load %arg3[%c0_3, %c0_4] : memref<16x128xf32, #tpu.memory_space<vmem>>, vector<16x128xf32>
    tpu.vector_store %arg3[%c0_3, %c0_4], %2 {strides = array<i32>} : memref<16x128xf32, #tpu.memory_space<vmem>>, vector<16x128xf32>,
    %cst_5 = arith.constant dense<0.000000e+00> : vector<128xf32>
    %4 = vector.multi_reduction <add>, %2, %cst_5 [0] : vector<16x128xf32> to vector<128xf32>
    %5 = vector.shape_cast %4 : vector<128xf32> to vector<1x128xf32>
    %6 = arith.mulf %2, %2 : vector<16x128xf32>
    %cst_6 = arith.constant dense<0.000000e+00> : vector<128xf32>
    %7 = vector.multi_reduction <add>, %6, %cst_6 [0] : vector<16x128xf32> to vector<128xf32>
    %8 = vector.shape_cast %7 : vector<128xf32> to vector<1x128xf32>
    %9 = tpu.iota {dimensions = array<i32: 0>} : vector<8x128xi32>
    %c0_i32 = arith.constant 0 : i32
    %10 = vector.broadcast %c0_i32 : i32 to vector<8x128xi32>
    %11 = arith.cmpi eq, %9, %10 : vector<8x128xi32>
    %12 = vector.shape_cast %5 : vector<1x128xf32> to vector<1x128xf32>
    %13 = vector.broadcast %12 : vector<1x128xf32> to vector<8x128xf32>
    %c1_i32 = arith.constant 1 : i32
    %14 = vector.broadcast %c1_i32 : i32 to vector<8x128xi32>
    %15 = arith.cmpi eq, %9, %14 : vector<8x128xi32>
    %16 = vector.shape_cast %8 : vector<1x128xf32> to vector<1x128xf32>
    %17 = vector.broadcast %16 : vector<1x128xf32> to vector<8x128xf32>
    %cst_7 = arith.constant 0.000000e+00 : f32
    %18 = vector.broadcast %cst_7 : f32 to vector<8x128xf32>
    %19 = arith.select %15, %17, %18 : vector<8x128xi1>, vector<8x128xf32>
    %20 = arith.select %11, %13, %19 : vector<8x128xi1>, vector<8x128xf32>
    %21 = vector.shape_cast %20 : vector<8x128xf32> to vector<1x8x128xf32>
    %c0_8 = arith.constant 0 : index
    %c0_9 = arith.constant 0 : index
    %c0_10 = arith.constant 0 : index
    %22 = vector.load %arg4[%c0_8, %c0_9, %c0_10] : memref<1x8x128xf32, #tpu.memory_space<vmem>>, vector<1x8x128xf32>
    tpu.vector_store %arg4[%c0_8, %c0_9, %c0_10], %21 {strides = array<i32>} : memref<1x8x128xf32, #tpu.memory_space<vmem>>, vector<1x8x128xf32>,
    return
  }
  func.func @transform_0(%arg0: i32) -> (i32, i32) {
    %c0_i32 = arith.constant 0 : i32
    %c0_i32_0 = arith.constant 0 : i32
    return %arg0, %c0_i32 : i32, i32
  }
  func.func @transform_1(%arg0: i32) -> (i32, i32) {
    %c0_i32 = arith.constant 0 : i32
    %c0_i32_0 = arith.constant 0 : i32
    %c0_i32_1 = arith.constant 0 : i32
    return %c0_i32, %c0_i32_0 : i32, i32
  }
  func.func @transform_2(%arg0: i32) -> (i32, i32) {
    %c0_i32 = arith.constant 0 : i32
    %c0_i32_0 = arith.constant 0 : i32
    return %arg0, %c0_i32 : i32, i32
  }
  func.func @transform_3(%arg0: i32) -> (i32, i32, i32) {
    %c0_i32 = arith.constant 0 : i32
    %c0_i32_0 = arith.constant 0 : i32
    %c0_i32_1 = arith.constant 0 : i32
    return %arg0, %c0_i32, %c0_i32_0 : i32, i32, i32
  }
}

module attributes {stable_mosaic.version = 11 : i64} {
  func.func @_bn_lrelu_kernel(%arg0: i32, %arg1: memref<16x128xf32, #tpu.memory_space<vmem>>, %arg2: memref<1x128xf32, #tpu.memory_space<vmem>>, %arg3: memref<1x128xf32, #tpu.memory_space<vmem>>, %arg4: memref<16x128xbf16, #tpu.memory_space<vmem>>) attributes {dimension_semantics = [#tpu.dimension_semantics<parallel>], iteration_bounds = array<i64: 1>, scalar_prefetch = 0 : i64, scratch_operands = 0 : i64, tpu.core_type = #tpu.core_type<tc>, window_params = [{transform_indices = @transform_0, window_bounds = array<i64: 16, 128>}, {pipeline_mode = #tpu.pipeline_mode<synchronous>, transform_indices = @transform_1, window_bounds = array<i64: 1, 128>}, {pipeline_mode = #tpu.pipeline_mode<synchronous>, transform_indices = @transform_2, window_bounds = array<i64: 1, 128>}, {transform_indices = @transform_3, window_bounds = array<i64: 16, 128>}]} {
    %c0 = arith.constant 0 : index
    %c0_0 = arith.constant 0 : index
    %0 = vector.load %arg1[%c0, %c0_0] : memref<16x128xf32, #tpu.memory_space<vmem>>, vector<16x128xf32>
    %c0_1 = arith.constant 0 : index
    %c0_2 = arith.constant 0 : index
    %1 = vector.load %arg2[%c0_1, %c0_2] : memref<1x128xf32, #tpu.memory_space<vmem>>, vector<1x128xf32>
    %2 = vector.broadcast %1 : vector<1x128xf32> to vector<16x128xf32>
    %3 = arith.mulf %0, %2 : vector<16x128xf32>
    %c0_3 = arith.constant 0 : index
    %c0_4 = arith.constant 0 : index
    %4 = vector.load %arg3[%c0_3, %c0_4] : memref<1x128xf32, #tpu.memory_space<vmem>>, vector<1x128xf32>
    %5 = vector.broadcast %4 : vector<1x128xf32> to vector<16x128xf32>
    %6 = arith.addf %3, %5 : vector<16x128xf32>
    %cst = arith.constant 0.000000e+00 : f32
    %7 = vector.broadcast %cst : f32 to vector<16x128xf32>
    %8 = arith.cmpf oge, %6, %7 : vector<16x128xf32>
    %cst_5 = arith.constant 0.000000e+00 : f32
    %9 = vector.broadcast %cst_5 : f32 to vector<16x128xf32>
    %10 = arith.mulf %9, %6 : vector<16x128xf32>
    %11 = arith.select %8, %6, %10 : vector<16x128xi1>, vector<16x128xf32>
    %12 = arith.truncf %11 : vector<16x128xf32> to vector<16x128xbf16>
    %c0_6 = arith.constant 0 : index
    %c0_7 = arith.constant 0 : index
    %13 = vector.load %arg4[%c0_6, %c0_7] : memref<16x128xbf16, #tpu.memory_space<vmem>>, vector<16x128xbf16>
    tpu.vector_store %arg4[%c0_6, %c0_7], %12 {strides = array<i32>} : memref<16x128xbf16, #tpu.memory_space<vmem>>, vector<16x128xbf16>,
    return
  }
  func.func @transform_0(%arg0: i32) -> (i32, i32) {
    %c0_i32 = arith.constant 0 : i32
    %c0_i32_0 = arith.constant 0 : i32
    return %arg0, %c0_i32 : i32, i32
  }
  func.func @transform_1(%arg0: i32) -> (i32, i32) {
    %c0_i32 = arith.constant 0 : i32
    %c0_i32_0 = arith.constant 0 : i32
    %c0_i32_1 = arith.constant 0 : i32
    return %c0_i32, %c0_i32_0 : i32, i32
  }
  func.func @transform_2(%arg0: i32) -> (i32, i32) {
    %c0_i32 = arith.constant 0 : i32
    %c0_i32_0 = arith.constant 0 : i32
    %c0_i32_1 = arith.constant 0 : i32
    return %c0_i32, %c0_i32_0 : i32, i32
  }
  func.func @transform_3(%arg0: i32) -> (i32, i32) {
    %c0_i32 = arith.constant 0 : i32
    %c0_i32_0 = arith.constant 0 : i32
    return %arg0, %c0_i32 : i32, i32
  }
}

module attributes {stable_mosaic.version = 11 : i64} {
  func.func @_matmul_stats_kernel(%arg0: i32, %arg1: memref<16x640xbf16, #tpu.memory_space<vmem>>, %arg2: memref<640x128xbf16, #tpu.memory_space<vmem>>, %arg3: memref<16x128xf32, #tpu.memory_space<vmem>>, %arg4: memref<1x8x128xf32, #tpu.memory_space<vmem>>) attributes {dimension_semantics = [#tpu.dimension_semantics<parallel>], iteration_bounds = array<i64: 1>, scalar_prefetch = 0 : i64, scratch_operands = 0 : i64, tpu.core_type = #tpu.core_type<tc>, window_params = [{transform_indices = @transform_0, window_bounds = array<i64: 16, 640>}, {pipeline_mode = #tpu.pipeline_mode<synchronous>, transform_indices = @transform_1, window_bounds = array<i64: 640, 128>}, {transform_indices = @transform_2, window_bounds = array<i64: 16, 128>}, {transform_indices = @transform_3, window_bounds = array<i64: 1, 8, 128>}]} {
    %c0 = arith.constant 0 : index
    %c0_0 = arith.constant 0 : index
    %0 = vector.load %arg1[%c0, %c0_0] : memref<16x640xbf16, #tpu.memory_space<vmem>>, vector<16x640xbf16>
    %c0_1 = arith.constant 0 : index
    %c0_2 = arith.constant 0 : index
    %1 = vector.load %arg2[%c0_1, %c0_2] : memref<640x128xbf16, #tpu.memory_space<vmem>>, vector<640x128xbf16>
    %cst = arith.constant dense<0.000000e+00> : vector<16x128xf32>
    %2 = tpu.matmul %0, %1, %cst {dimension_numbers = #tpu.dot_dimension_numbers<[1], [0], [0], [1], [0, 0, 1, 1], [], []>} : vector<16x640xbf16>, vector<640x128xbf16>, vector<16x128xf32> -> vector<16x128xf32>
    %c0_3 = arith.constant 0 : index
    %c0_4 = arith.constant 0 : index
    %3 = vector.load %arg3[%c0_3, %c0_4] : memref<16x128xf32, #tpu.memory_space<vmem>>, vector<16x128xf32>
    tpu.vector_store %arg3[%c0_3, %c0_4], %2 {strides = array<i32>} : memref<16x128xf32, #tpu.memory_space<vmem>>, vector<16x128xf32>,
    %cst_5 = arith.constant dense<0.000000e+00> : vector<128xf32>
    %4 = vector.multi_reduction <add>, %2, %cst_5 [0] : vector<16x128xf32> to vector<128xf32>
    %5 = vector.shape_cast %4 : vector<128xf32> to vector<1x128xf32>
    %6 = arith.mulf %2, %2 : vector<16x128xf32>
    %cst_6 = arith.constant dense<0.000000e+00> : vector<128xf32>
    %7 = vector.multi_reduction <add>, %6, %cst_6 [0] : vector<16x128xf32> to vector<128xf32>
    %8 = vector.shape_cast %7 : vector<128xf32> to vector<1x128xf32>
    %9 = tpu.iota {dimensions = array<i32: 0>} : vector<8x128xi32>
    %c0_i32 = arith.constant 0 : i32
    %10 = vector.broadcast %c0_i32 : i32 to vector<8x128xi32>
    %11 = arith.cmpi eq, %9, %10 : vector<8x128xi32>
    %12 = vector.shape_cast %5 : vector<1x128xf32> to vector<1x128xf32>
    %13 = vector.broadcast %12 : vector<1x128xf32> to vector<8x128xf32>
    %c1_i32 = arith.constant 1 : i32
    %14 = vector.broadcast %c1_i32 : i32 to vector<8x128xi32>
    %15 = arith.cmpi eq, %9, %14 : vector<8x128xi32>
    %16 = vector.shape_cast %8 : vector<1x128xf32> to vector<1x128xf32>
    %17 = vector.broadcast %16 : vector<1x128xf32> to vector<8x128xf32>
    %cst_7 = arith.constant 0.000000e+00 : f32
    %18 = vector.broadcast %cst_7 : f32 to vector<8x128xf32>
    %19 = arith.select %15, %17, %18 : vector<8x128xi1>, vector<8x128xf32>
    %20 = arith.select %11, %13, %19 : vector<8x128xi1>, vector<8x128xf32>
    %21 = vector.shape_cast %20 : vector<8x128xf32> to vector<1x8x128xf32>
    %c0_8 = arith.constant 0 : index
    %c0_9 = arith.constant 0 : index
    %c0_10 = arith.constant 0 : index
    %22 = vector.load %arg4[%c0_8, %c0_9, %c0_10] : memref<1x8x128xf32, #tpu.memory_space<vmem>>, vector<1x8x128xf32>
    tpu.vector_store %arg4[%c0_8, %c0_9, %c0_10], %21 {strides = array<i32>} : memref<1x8x128xf32, #tpu.memory_space<vmem>>, vector<1x8x128xf32>,
    return
  }
  func.func @transform_0(%arg0: i32) -> (i32, i32) {
    %c0_i32 = arith.constant 0 : i32
    %c0_i32_0 = arith.constant 0 : i32
    return %arg0, %c0_i32 : i32, i32
  }
  func.func @transform_1(%arg0: i32) -> (i32, i32) {
    %c0_i32 = arith.constant 0 : i32
    %c0_i32_0 = arith.constant 0 : i32
    %c0_i32_1 = arith.constant 0 : i32
    return %c0_i32, %c0_i32_0 : i32, i32
  }
  func.func @transform_2(%arg0: i32) -> (i32, i32) {
    %c0_i32 = arith.constant 0 : i32
    %c0_i32_0 = arith.constant 0 : i32
    return %arg0, %c0_i32 : i32, i32
  }
  func.func @transform_3(%arg0: i32) -> (i32, i32, i32) {
    %c0_i32 = arith.constant 0 : i32
    %c0_i32_0 = arith.constant 0 : i32
    %c0_i32_1 = arith.constant 0 : i32
    return %arg0, %c0_i32, %c0_i32_0 : i32, i32, i32
  }
}

module attributes {stable_mosaic.version = 11 : i64} {
  func.func @_matmul_kernel(%arg0: i32, %arg1: memref<16x128xbf16, #tpu.memory_space<vmem>>, %arg2: memref<128x384xbf16, #tpu.memory_space<vmem>>, %arg3: memref<16x384xf32, #tpu.memory_space<vmem>>) attributes {dimension_semantics = [#tpu.dimension_semantics<parallel>], iteration_bounds = array<i64: 1>, scalar_prefetch = 0 : i64, scratch_operands = 0 : i64, tpu.core_type = #tpu.core_type<tc>, window_params = [{transform_indices = @transform_0, window_bounds = array<i64: 16, 128>}, {pipeline_mode = #tpu.pipeline_mode<synchronous>, transform_indices = @transform_1, window_bounds = array<i64: 128, 384>}, {transform_indices = @transform_2, window_bounds = array<i64: 16, 384>}]} {
    %c0 = arith.constant 0 : index
    %c0_0 = arith.constant 0 : index
    %0 = vector.load %arg1[%c0, %c0_0] : memref<16x128xbf16, #tpu.memory_space<vmem>>, vector<16x128xbf16>
    %c0_1 = arith.constant 0 : index
    %c0_2 = arith.constant 0 : index
    %1 = vector.load %arg2[%c0_1, %c0_2] : memref<128x384xbf16, #tpu.memory_space<vmem>>, vector<128x384xbf16>
    %cst = arith.constant dense<0.000000e+00> : vector<16x384xf32>
    %2 = tpu.matmul %0, %1, %cst {dimension_numbers = #tpu.dot_dimension_numbers<[1], [0], [0], [1], [0, 0, 1, 1], [], []>} : vector<16x128xbf16>, vector<128x384xbf16>, vector<16x384xf32> -> vector<16x384xf32>
    %c0_3 = arith.constant 0 : index
    %c0_4 = arith.constant 0 : index
    %3 = vector.load %arg3[%c0_3, %c0_4] : memref<16x384xf32, #tpu.memory_space<vmem>>, vector<16x384xf32>
    tpu.vector_store %arg3[%c0_3, %c0_4], %2 {strides = array<i32>} : memref<16x384xf32, #tpu.memory_space<vmem>>, vector<16x384xf32>,
    return
  }
  func.func @transform_0(%arg0: i32) -> (i32, i32) {
    %c0_i32 = arith.constant 0 : i32
    %c0_i32_0 = arith.constant 0 : i32
    return %arg0, %c0_i32 : i32, i32
  }
  func.func @transform_1(%arg0: i32) -> (i32, i32) {
    %c0_i32 = arith.constant 0 : i32
    %c0_i32_0 = arith.constant 0 : i32
    %c0_i32_1 = arith.constant 0 : i32
    return %c0_i32, %c0_i32_0 : i32, i32
  }
  func.func @transform_2(%arg0: i32) -> (i32, i32) {
    %c0_i32 = arith.constant 0 : i32
    %c0_i32_0 = arith.constant 0 : i32
    return %arg0, %c0_i32 : i32, i32
  }
}

module attributes {stable_mosaic.version = 11 : i64} {
  func.func @_bn_lrelu_kernel(%arg0: i32, %arg1: memref<32x128xf32, #tpu.memory_space<vmem>>, %arg2: memref<1x128xf32, #tpu.memory_space<vmem>>, %arg3: memref<1x128xf32, #tpu.memory_space<vmem>>, %arg4: memref<32x128xbf16, #tpu.memory_space<vmem>>) attributes {dimension_semantics = [#tpu.dimension_semantics<parallel>], iteration_bounds = array<i64: 1>, scalar_prefetch = 0 : i64, scratch_operands = 0 : i64, tpu.core_type = #tpu.core_type<tc>, window_params = [{transform_indices = @transform_0, window_bounds = array<i64: 32, 128>}, {pipeline_mode = #tpu.pipeline_mode<synchronous>, transform_indices = @transform_1, window_bounds = array<i64: 1, 128>}, {pipeline_mode = #tpu.pipeline_mode<synchronous>, transform_indices = @transform_2, window_bounds = array<i64: 1, 128>}, {transform_indices = @transform_3, window_bounds = array<i64: 32, 128>}]} {
    %c0 = arith.constant 0 : index
    %c0_0 = arith.constant 0 : index
    %0 = vector.load %arg1[%c0, %c0_0] : memref<32x128xf32, #tpu.memory_space<vmem>>, vector<32x128xf32>
    %c0_1 = arith.constant 0 : index
    %c0_2 = arith.constant 0 : index
    %1 = vector.load %arg2[%c0_1, %c0_2] : memref<1x128xf32, #tpu.memory_space<vmem>>, vector<1x128xf32>
    %2 = vector.broadcast %1 : vector<1x128xf32> to vector<32x128xf32>
    %3 = arith.mulf %0, %2 : vector<32x128xf32>
    %c0_3 = arith.constant 0 : index
    %c0_4 = arith.constant 0 : index
    %4 = vector.load %arg3[%c0_3, %c0_4] : memref<1x128xf32, #tpu.memory_space<vmem>>, vector<1x128xf32>
    %5 = vector.broadcast %4 : vector<1x128xf32> to vector<32x128xf32>
    %6 = arith.addf %3, %5 : vector<32x128xf32>
    %cst = arith.constant 0.000000e+00 : f32
    %7 = vector.broadcast %cst : f32 to vector<32x128xf32>
    %8 = arith.cmpf oge, %6, %7 : vector<32x128xf32>
    %cst_5 = arith.constant 2.000000e-01 : f32
    %9 = vector.broadcast %cst_5 : f32 to vector<32x128xf32>
    %10 = arith.mulf %9, %6 : vector<32x128xf32>
    %11 = arith.select %8, %6, %10 : vector<32x128xi1>, vector<32x128xf32>
    %12 = arith.truncf %11 : vector<32x128xf32> to vector<32x128xbf16>
    %c0_6 = arith.constant 0 : index
    %c0_7 = arith.constant 0 : index
    %13 = vector.load %arg4[%c0_6, %c0_7] : memref<32x128xbf16, #tpu.memory_space<vmem>>, vector<32x128xbf16>
    tpu.vector_store %arg4[%c0_6, %c0_7], %12 {strides = array<i32>} : memref<32x128xbf16, #tpu.memory_space<vmem>>, vector<32x128xbf16>,
    return
  }
  func.func @transform_0(%arg0: i32) -> (i32, i32) {
    %c0_i32 = arith.constant 0 : i32
    %c0_i32_0 = arith.constant 0 : i32
    return %arg0, %c0_i32 : i32, i32
  }
  func.func @transform_1(%arg0: i32) -> (i32, i32) {
    %c0_i32 = arith.constant 0 : i32
    %c0_i32_0 = arith.constant 0 : i32
    %c0_i32_1 = arith.constant 0 : i32
    return %c0_i32, %c0_i32_0 : i32, i32
  }
  func.func @transform_2(%arg0: i32) -> (i32, i32) {
    %c0_i32 = arith.constant 0 : i32
    %c0_i32_0 = arith.constant 0 : i32
    %c0_i32_1 = arith.constant 0 : i32
    return %c0_i32, %c0_i32_0 : i32, i32
  }
  func.func @transform_3(%arg0: i32) -> (i32, i32) {
    %c0_i32 = arith.constant 0 : i32
    %c0_i32_0 = arith.constant 0 : i32
    return %arg0, %c0_i32 : i32, i32
  }
}

module attributes {stable_mosaic.version = 11 : i64} {
  func.func @_stats_kernel(%arg0: i32, %arg1: memref<32x128xf32, #tpu.memory_space<vmem>>, %arg2: memref<1x8x128xf32, #tpu.memory_space<vmem>>) attributes {dimension_semantics = [#tpu.dimension_semantics<parallel>], iteration_bounds = array<i64: 1>, scalar_prefetch = 0 : i64, scratch_operands = 0 : i64, tpu.core_type = #tpu.core_type<tc>, window_params = [{transform_indices = @transform_0, window_bounds = array<i64: 32, 128>}, {transform_indices = @transform_1, window_bounds = array<i64: 1, 8, 128>}]} {
    %c0 = arith.constant 0 : index
    %c0_0 = arith.constant 0 : index
    %0 = vector.load %arg1[%c0, %c0_0] : memref<32x128xf32, #tpu.memory_space<vmem>>, vector<32x128xf32>
    %cst = arith.constant dense<0.000000e+00> : vector<128xf32>
    %1 = vector.multi_reduction <add>, %0, %cst [0] : vector<32x128xf32> to vector<128xf32>
    %2 = vector.shape_cast %1 : vector<128xf32> to vector<1x128xf32>
    %3 = arith.mulf %0, %0 : vector<32x128xf32>
    %cst_1 = arith.constant dense<0.000000e+00> : vector<128xf32>
    %4 = vector.multi_reduction <add>, %3, %cst_1 [0] : vector<32x128xf32> to vector<128xf32>
    %5 = vector.shape_cast %4 : vector<128xf32> to vector<1x128xf32>
    %6 = tpu.iota {dimensions = array<i32: 0>} : vector<8x128xi32>
    %c0_i32 = arith.constant 0 : i32
    %7 = vector.broadcast %c0_i32 : i32 to vector<8x128xi32>
    %8 = arith.cmpi eq, %6, %7 : vector<8x128xi32>
    %9 = vector.shape_cast %2 : vector<1x128xf32> to vector<1x128xf32>
    %10 = vector.broadcast %9 : vector<1x128xf32> to vector<8x128xf32>
    %c1_i32 = arith.constant 1 : i32
    %11 = vector.broadcast %c1_i32 : i32 to vector<8x128xi32>
    %12 = arith.cmpi eq, %6, %11 : vector<8x128xi32>
    %13 = vector.shape_cast %5 : vector<1x128xf32> to vector<1x128xf32>
    %14 = vector.broadcast %13 : vector<1x128xf32> to vector<8x128xf32>
    %cst_2 = arith.constant 0.000000e+00 : f32
    %15 = vector.broadcast %cst_2 : f32 to vector<8x128xf32>
    %16 = arith.select %12, %14, %15 : vector<8x128xi1>, vector<8x128xf32>
    %17 = arith.select %8, %10, %16 : vector<8x128xi1>, vector<8x128xf32>
    %18 = vector.shape_cast %17 : vector<8x128xf32> to vector<1x8x128xf32>
    %c0_3 = arith.constant 0 : index
    %c0_4 = arith.constant 0 : index
    %c0_5 = arith.constant 0 : index
    %19 = vector.load %arg2[%c0_3, %c0_4, %c0_5] : memref<1x8x128xf32, #tpu.memory_space<vmem>>, vector<1x8x128xf32>
    tpu.vector_store %arg2[%c0_3, %c0_4, %c0_5], %18 {strides = array<i32>} : memref<1x8x128xf32, #tpu.memory_space<vmem>>, vector<1x8x128xf32>,
    return
  }
  func.func @transform_0(%arg0: i32) -> (i32, i32) {
    %c0_i32 = arith.constant 0 : i32
    %c0_i32_0 = arith.constant 0 : i32
    return %arg0, %c0_i32 : i32, i32
  }
  func.func @transform_1(%arg0: i32) -> (i32, i32, i32) {
    %c0_i32 = arith.constant 0 : i32
    %c0_i32_0 = arith.constant 0 : i32
    %c0_i32_1 = arith.constant 0 : i32
    return %arg0, %c0_i32, %c0_i32_0 : i32, i32, i32
  }
}

module attributes {stable_mosaic.version = 11 : i64} {
  func.func @_matmul_kernel(%arg0: i32, %arg1: memref<16x128xbf16, #tpu.memory_space<vmem>>, %arg2: memref<128x256xbf16, #tpu.memory_space<vmem>>, %arg3: memref<16x256xf32, #tpu.memory_space<vmem>>) attributes {dimension_semantics = [#tpu.dimension_semantics<parallel>], iteration_bounds = array<i64: 1>, scalar_prefetch = 0 : i64, scratch_operands = 0 : i64, tpu.core_type = #tpu.core_type<tc>, window_params = [{transform_indices = @transform_0, window_bounds = array<i64: 16, 128>}, {pipeline_mode = #tpu.pipeline_mode<synchronous>, transform_indices = @transform_1, window_bounds = array<i64: 128, 256>}, {transform_indices = @transform_2, window_bounds = array<i64: 16, 256>}]} {
    %c0 = arith.constant 0 : index
    %c0_0 = arith.constant 0 : index
    %0 = vector.load %arg1[%c0, %c0_0] : memref<16x128xbf16, #tpu.memory_space<vmem>>, vector<16x128xbf16>
    %c0_1 = arith.constant 0 : index
    %c0_2 = arith.constant 0 : index
    %1 = vector.load %arg2[%c0_1, %c0_2] : memref<128x256xbf16, #tpu.memory_space<vmem>>, vector<128x256xbf16>
    %cst = arith.constant dense<0.000000e+00> : vector<16x256xf32>
    %2 = tpu.matmul %0, %1, %cst {dimension_numbers = #tpu.dot_dimension_numbers<[1], [0], [0], [1], [0, 0, 1, 1], [], []>} : vector<16x128xbf16>, vector<128x256xbf16>, vector<16x256xf32> -> vector<16x256xf32>
    %c0_3 = arith.constant 0 : index
    %c0_4 = arith.constant 0 : index
    %3 = vector.load %arg3[%c0_3, %c0_4] : memref<16x256xf32, #tpu.memory_space<vmem>>, vector<16x256xf32>
    tpu.vector_store %arg3[%c0_3, %c0_4], %2 {strides = array<i32>} : memref<16x256xf32, #tpu.memory_space<vmem>>, vector<16x256xf32>,
    return
  }
  func.func @transform_0(%arg0: i32) -> (i32, i32) {
    %c0_i32 = arith.constant 0 : i32
    %c0_i32_0 = arith.constant 0 : i32
    return %arg0, %c0_i32 : i32, i32
  }
  func.func @transform_1(%arg0: i32) -> (i32, i32) {
    %c0_i32 = arith.constant 0 : i32
    %c0_i32_0 = arith.constant 0 : i32
    %c0_i32_1 = arith.constant 0 : i32
    return %c0_i32, %c0_i32_0 : i32, i32
  }
  func.func @transform_2(%arg0: i32) -> (i32, i32) {
    %c0_i32 = arith.constant 0 : i32
    %c0_i32_0 = arith.constant 0 : i32
    return %arg0, %c0_i32 : i32, i32
  }
}

module attributes {stable_mosaic.version = 11 : i64} {
  func.func @_matmul_stats_kernel(%arg0: i32, %arg1: memref<32x640xbf16, #tpu.memory_space<vmem>>, %arg2: memref<640x128xbf16, #tpu.memory_space<vmem>>, %arg3: memref<32x128xf32, #tpu.memory_space<vmem>>, %arg4: memref<1x8x128xf32, #tpu.memory_space<vmem>>) attributes {dimension_semantics = [#tpu.dimension_semantics<parallel>], iteration_bounds = array<i64: 1>, scalar_prefetch = 0 : i64, scratch_operands = 0 : i64, tpu.core_type = #tpu.core_type<tc>, window_params = [{transform_indices = @transform_0, window_bounds = array<i64: 32, 640>}, {pipeline_mode = #tpu.pipeline_mode<synchronous>, transform_indices = @transform_1, window_bounds = array<i64: 640, 128>}, {transform_indices = @transform_2, window_bounds = array<i64: 32, 128>}, {transform_indices = @transform_3, window_bounds = array<i64: 1, 8, 128>}]} {
    %c0 = arith.constant 0 : index
    %c0_0 = arith.constant 0 : index
    %0 = vector.load %arg1[%c0, %c0_0] : memref<32x640xbf16, #tpu.memory_space<vmem>>, vector<32x640xbf16>
    %c0_1 = arith.constant 0 : index
    %c0_2 = arith.constant 0 : index
    %1 = vector.load %arg2[%c0_1, %c0_2] : memref<640x128xbf16, #tpu.memory_space<vmem>>, vector<640x128xbf16>
    %cst = arith.constant dense<0.000000e+00> : vector<32x128xf32>
    %2 = tpu.matmul %0, %1, %cst {dimension_numbers = #tpu.dot_dimension_numbers<[1], [0], [0], [1], [0, 0, 1, 1], [], []>} : vector<32x640xbf16>, vector<640x128xbf16>, vector<32x128xf32> -> vector<32x128xf32>
    %c0_3 = arith.constant 0 : index
    %c0_4 = arith.constant 0 : index
    %3 = vector.load %arg3[%c0_3, %c0_4] : memref<32x128xf32, #tpu.memory_space<vmem>>, vector<32x128xf32>
    tpu.vector_store %arg3[%c0_3, %c0_4], %2 {strides = array<i32>} : memref<32x128xf32, #tpu.memory_space<vmem>>, vector<32x128xf32>,
    %cst_5 = arith.constant dense<0.000000e+00> : vector<128xf32>
    %4 = vector.multi_reduction <add>, %2, %cst_5 [0] : vector<32x128xf32> to vector<128xf32>
    %5 = vector.shape_cast %4 : vector<128xf32> to vector<1x128xf32>
    %6 = arith.mulf %2, %2 : vector<32x128xf32>
    %cst_6 = arith.constant dense<0.000000e+00> : vector<128xf32>
    %7 = vector.multi_reduction <add>, %6, %cst_6 [0] : vector<32x128xf32> to vector<128xf32>
    %8 = vector.shape_cast %7 : vector<128xf32> to vector<1x128xf32>
    %9 = tpu.iota {dimensions = array<i32: 0>} : vector<8x128xi32>
    %c0_i32 = arith.constant 0 : i32
    %10 = vector.broadcast %c0_i32 : i32 to vector<8x128xi32>
    %11 = arith.cmpi eq, %9, %10 : vector<8x128xi32>
    %12 = vector.shape_cast %5 : vector<1x128xf32> to vector<1x128xf32>
    %13 = vector.broadcast %12 : vector<1x128xf32> to vector<8x128xf32>
    %c1_i32 = arith.constant 1 : i32
    %14 = vector.broadcast %c1_i32 : i32 to vector<8x128xi32>
    %15 = arith.cmpi eq, %9, %14 : vector<8x128xi32>
    %16 = vector.shape_cast %8 : vector<1x128xf32> to vector<1x128xf32>
    %17 = vector.broadcast %16 : vector<1x128xf32> to vector<8x128xf32>
    %cst_7 = arith.constant 0.000000e+00 : f32
    %18 = vector.broadcast %cst_7 : f32 to vector<8x128xf32>
    %19 = arith.select %15, %17, %18 : vector<8x128xi1>, vector<8x128xf32>
    %20 = arith.select %11, %13, %19 : vector<8x128xi1>, vector<8x128xf32>
    %21 = vector.shape_cast %20 : vector<8x128xf32> to vector<1x8x128xf32>
    %c0_8 = arith.constant 0 : index
    %c0_9 = arith.constant 0 : index
    %c0_10 = arith.constant 0 : index
    %22 = vector.load %arg4[%c0_8, %c0_9, %c0_10] : memref<1x8x128xf32, #tpu.memory_space<vmem>>, vector<1x8x128xf32>
    tpu.vector_store %arg4[%c0_8, %c0_9, %c0_10], %21 {strides = array<i32>} : memref<1x8x128xf32, #tpu.memory_space<vmem>>, vector<1x8x128xf32>,
    return
  }
  func.func @transform_0(%arg0: i32) -> (i32, i32) {
    %c0_i32 = arith.constant 0 : i32
    %c0_i32_0 = arith.constant 0 : i32
    return %arg0, %c0_i32 : i32, i32
  }
  func.func @transform_1(%arg0: i32) -> (i32, i32) {
    %c0_i32 = arith.constant 0 : i32
    %c0_i32_0 = arith.constant 0 : i32
    %c0_i32_1 = arith.constant 0 : i32
    return %c0_i32, %c0_i32_0 : i32, i32
  }
  func.func @transform_2(%arg0: i32) -> (i32, i32) {
    %c0_i32 = arith.constant 0 : i32
    %c0_i32_0 = arith.constant 0 : i32
    return %arg0, %c0_i32 : i32, i32
  }
  func.func @transform_3(%arg0: i32) -> (i32, i32, i32) {
    %c0_i32 = arith.constant 0 : i32
    %c0_i32_0 = arith.constant 0 : i32
    %c0_i32_1 = arith.constant 0 : i32
    return %arg0, %c0_i32, %c0_i32_0 : i32, i32, i32
  }
}

module attributes {stable_mosaic.version = 11 : i64} {
  func.func @_matmul_stats_kernel(%arg0: i32, %arg1: memref<32x1024xbf16, #tpu.memory_space<vmem>>, %arg2: memref<1024x128xbf16, #tpu.memory_space<vmem>>, %arg3: memref<32x128xf32, #tpu.memory_space<vmem>>, %arg4: memref<1x8x128xf32, #tpu.memory_space<vmem>>) attributes {dimension_semantics = [#tpu.dimension_semantics<parallel>], iteration_bounds = array<i64: 1>, scalar_prefetch = 0 : i64, scratch_operands = 0 : i64, tpu.core_type = #tpu.core_type<tc>, window_params = [{transform_indices = @transform_0, window_bounds = array<i64: 32, 1024>}, {pipeline_mode = #tpu.pipeline_mode<synchronous>, transform_indices = @transform_1, window_bounds = array<i64: 1024, 128>}, {transform_indices = @transform_2, window_bounds = array<i64: 32, 128>}, {transform_indices = @transform_3, window_bounds = array<i64: 1, 8, 128>}]} {
    %c0 = arith.constant 0 : index
    %c0_0 = arith.constant 0 : index
    %0 = vector.load %arg1[%c0, %c0_0] : memref<32x1024xbf16, #tpu.memory_space<vmem>>, vector<32x1024xbf16>
    %c0_1 = arith.constant 0 : index
    %c0_2 = arith.constant 0 : index
    %1 = vector.load %arg2[%c0_1, %c0_2] : memref<1024x128xbf16, #tpu.memory_space<vmem>>, vector<1024x128xbf16>
    %cst = arith.constant dense<0.000000e+00> : vector<32x128xf32>
    %2 = tpu.matmul %0, %1, %cst {dimension_numbers = #tpu.dot_dimension_numbers<[1], [0], [0], [1], [0, 0, 1, 1], [], []>} : vector<32x1024xbf16>, vector<1024x128xbf16>, vector<32x128xf32> -> vector<32x128xf32>
    %c0_3 = arith.constant 0 : index
    %c0_4 = arith.constant 0 : index
    %3 = vector.load %arg3[%c0_3, %c0_4] : memref<32x128xf32, #tpu.memory_space<vmem>>, vector<32x128xf32>
    tpu.vector_store %arg3[%c0_3, %c0_4], %2 {strides = array<i32>} : memref<32x128xf32, #tpu.memory_space<vmem>>, vector<32x128xf32>,
    %cst_5 = arith.constant dense<0.000000e+00> : vector<128xf32>
    %4 = vector.multi_reduction <add>, %2, %cst_5 [0] : vector<32x128xf32> to vector<128xf32>
    %5 = vector.shape_cast %4 : vector<128xf32> to vector<1x128xf32>
    %6 = arith.mulf %2, %2 : vector<32x128xf32>
    %cst_6 = arith.constant dense<0.000000e+00> : vector<128xf32>
    %7 = vector.multi_reduction <add>, %6, %cst_6 [0] : vector<32x128xf32> to vector<128xf32>
    %8 = vector.shape_cast %7 : vector<128xf32> to vector<1x128xf32>
    %9 = tpu.iota {dimensions = array<i32: 0>} : vector<8x128xi32>
    %c0_i32 = arith.constant 0 : i32
    %10 = vector.broadcast %c0_i32 : i32 to vector<8x128xi32>
    %11 = arith.cmpi eq, %9, %10 : vector<8x128xi32>
    %12 = vector.shape_cast %5 : vector<1x128xf32> to vector<1x128xf32>
    %13 = vector.broadcast %12 : vector<1x128xf32> to vector<8x128xf32>
    %c1_i32 = arith.constant 1 : i32
    %14 = vector.broadcast %c1_i32 : i32 to vector<8x128xi32>
    %15 = arith.cmpi eq, %9, %14 : vector<8x128xi32>
    %16 = vector.shape_cast %8 : vector<1x128xf32> to vector<1x128xf32>
    %17 = vector.broadcast %16 : vector<1x128xf32> to vector<8x128xf32>
    %cst_7 = arith.constant 0.000000e+00 : f32
    %18 = vector.broadcast %cst_7 : f32 to vector<8x128xf32>
    %19 = arith.select %15, %17, %18 : vector<8x128xi1>, vector<8x128xf32>
    %20 = arith.select %11, %13, %19 : vector<8x128xi1>, vector<8x128xf32>
    %21 = vector.shape_cast %20 : vector<8x128xf32> to vector<1x8x128xf32>
    %c0_8 = arith.constant 0 : index
    %c0_9 = arith.constant 0 : index
    %c0_10 = arith.constant 0 : index
    %22 = vector.load %arg4[%c0_8, %c0_9, %c0_10] : memref<1x8x128xf32, #tpu.memory_space<vmem>>, vector<1x8x128xf32>
    tpu.vector_store %arg4[%c0_8, %c0_9, %c0_10], %21 {strides = array<i32>} : memref<1x8x128xf32, #tpu.memory_space<vmem>>, vector<1x8x128xf32>,
    return
  }
  func.func @transform_0(%arg0: i32) -> (i32, i32) {
    %c0_i32 = arith.constant 0 : i32
    %c0_i32_0 = arith.constant 0 : i32
    return %arg0, %c0_i32 : i32, i32
  }
  func.func @transform_1(%arg0: i32) -> (i32, i32) {
    %c0_i32 = arith.constant 0 : i32
    %c0_i32_0 = arith.constant 0 : i32
    %c0_i32_1 = arith.constant 0 : i32
    return %c0_i32, %c0_i32_0 : i32, i32
  }
  func.func @transform_2(%arg0: i32) -> (i32, i32) {
    %c0_i32 = arith.constant 0 : i32
    %c0_i32_0 = arith.constant 0 : i32
    return %arg0, %c0_i32 : i32, i32
  }
  func.func @transform_3(%arg0: i32) -> (i32, i32, i32) {
    %c0_i32 = arith.constant 0 : i32
    %c0_i32_0 = arith.constant 0 : i32
    %c0_i32_1 = arith.constant 0 : i32
    return %arg0, %c0_i32, %c0_i32_0 : i32, i32, i32
  }
}

module attributes {stable_mosaic.version = 11 : i64} {
  func.func @_matmul_stats_kernel(%arg0: i32, %arg1: memref<64x1024xbf16, #tpu.memory_space<vmem>>, %arg2: memref<1024x128xbf16, #tpu.memory_space<vmem>>, %arg3: memref<64x128xf32, #tpu.memory_space<vmem>>, %arg4: memref<1x8x128xf32, #tpu.memory_space<vmem>>) attributes {dimension_semantics = [#tpu.dimension_semantics<parallel>], iteration_bounds = array<i64: 2>, scalar_prefetch = 0 : i64, scratch_operands = 0 : i64, tpu.core_type = #tpu.core_type<tc>, window_params = [{transform_indices = @transform_0, window_bounds = array<i64: 64, 1024>}, {pipeline_mode = #tpu.pipeline_mode<synchronous>, transform_indices = @transform_1, window_bounds = array<i64: 1024, 128>}, {transform_indices = @transform_2, window_bounds = array<i64: 64, 128>}, {transform_indices = @transform_3, window_bounds = array<i64: 1, 8, 128>}]} {
    %c0 = arith.constant 0 : index
    %c0_0 = arith.constant 0 : index
    %0 = vector.load %arg1[%c0, %c0_0] : memref<64x1024xbf16, #tpu.memory_space<vmem>>, vector<64x1024xbf16>
    %c0_1 = arith.constant 0 : index
    %c0_2 = arith.constant 0 : index
    %1 = vector.load %arg2[%c0_1, %c0_2] : memref<1024x128xbf16, #tpu.memory_space<vmem>>, vector<1024x128xbf16>
    %cst = arith.constant dense<0.000000e+00> : vector<64x128xf32>
    %2 = tpu.matmul %0, %1, %cst {dimension_numbers = #tpu.dot_dimension_numbers<[1], [0], [0], [1], [0, 0, 1, 1], [], []>} : vector<64x1024xbf16>, vector<1024x128xbf16>, vector<64x128xf32> -> vector<64x128xf32>
    %c0_3 = arith.constant 0 : index
    %c0_4 = arith.constant 0 : index
    %3 = vector.load %arg3[%c0_3, %c0_4] : memref<64x128xf32, #tpu.memory_space<vmem>>, vector<64x128xf32>
    tpu.vector_store %arg3[%c0_3, %c0_4], %2 {strides = array<i32>} : memref<64x128xf32, #tpu.memory_space<vmem>>, vector<64x128xf32>,
    %cst_5 = arith.constant dense<0.000000e+00> : vector<128xf32>
    %4 = vector.multi_reduction <add>, %2, %cst_5 [0] : vector<64x128xf32> to vector<128xf32>
    %5 = vector.shape_cast %4 : vector<128xf32> to vector<1x128xf32>
    %6 = arith.mulf %2, %2 : vector<64x128xf32>
    %cst_6 = arith.constant dense<0.000000e+00> : vector<128xf32>
    %7 = vector.multi_reduction <add>, %6, %cst_6 [0] : vector<64x128xf32> to vector<128xf32>
    %8 = vector.shape_cast %7 : vector<128xf32> to vector<1x128xf32>
    %9 = tpu.iota {dimensions = array<i32: 0>} : vector<8x128xi32>
    %c0_i32 = arith.constant 0 : i32
    %10 = vector.broadcast %c0_i32 : i32 to vector<8x128xi32>
    %11 = arith.cmpi eq, %9, %10 : vector<8x128xi32>
    %12 = vector.shape_cast %5 : vector<1x128xf32> to vector<1x128xf32>
    %13 = vector.broadcast %12 : vector<1x128xf32> to vector<8x128xf32>
    %c1_i32 = arith.constant 1 : i32
    %14 = vector.broadcast %c1_i32 : i32 to vector<8x128xi32>
    %15 = arith.cmpi eq, %9, %14 : vector<8x128xi32>
    %16 = vector.shape_cast %8 : vector<1x128xf32> to vector<1x128xf32>
    %17 = vector.broadcast %16 : vector<1x128xf32> to vector<8x128xf32>
    %cst_7 = arith.constant 0.000000e+00 : f32
    %18 = vector.broadcast %cst_7 : f32 to vector<8x128xf32>
    %19 = arith.select %15, %17, %18 : vector<8x128xi1>, vector<8x128xf32>
    %20 = arith.select %11, %13, %19 : vector<8x128xi1>, vector<8x128xf32>
    %21 = vector.shape_cast %20 : vector<8x128xf32> to vector<1x8x128xf32>
    %c0_8 = arith.constant 0 : index
    %c0_9 = arith.constant 0 : index
    %c0_10 = arith.constant 0 : index
    %22 = vector.load %arg4[%c0_8, %c0_9, %c0_10] : memref<1x8x128xf32, #tpu.memory_space<vmem>>, vector<1x8x128xf32>
    tpu.vector_store %arg4[%c0_8, %c0_9, %c0_10], %21 {strides = array<i32>} : memref<1x8x128xf32, #tpu.memory_space<vmem>>, vector<1x8x128xf32>,
    return
  }
  func.func @transform_0(%arg0: i32) -> (i32, i32) {
    %c0_i32 = arith.constant 0 : i32
    %c0_i32_0 = arith.constant 0 : i32
    return %arg0, %c0_i32 : i32, i32
  }
  func.func @transform_1(%arg0: i32) -> (i32, i32) {
    %c0_i32 = arith.constant 0 : i32
    %c0_i32_0 = arith.constant 0 : i32
    %c0_i32_1 = arith.constant 0 : i32
    return %c0_i32, %c0_i32_0 : i32, i32
  }
  func.func @transform_2(%arg0: i32) -> (i32, i32) {
    %c0_i32 = arith.constant 0 : i32
    %c0_i32_0 = arith.constant 0 : i32
    return %arg0, %c0_i32 : i32, i32
  }
  func.func @transform_3(%arg0: i32) -> (i32, i32, i32) {
    %c0_i32 = arith.constant 0 : i32
    %c0_i32_0 = arith.constant 0 : i32
    %c0_i32_1 = arith.constant 0 : i32
    return %arg0, %c0_i32, %c0_i32_0 : i32, i32, i32
  }
}

module attributes {stable_mosaic.version = 11 : i64} {
  func.func @_matmul_stats_kernel(%arg0: i32, %arg1: memref<512x128xbf16, #tpu.memory_space<vmem>>, %arg2: memref<128x128xbf16, #tpu.memory_space<vmem>>, %arg3: memref<512x128xf32, #tpu.memory_space<vmem>>, %arg4: memref<1x8x128xf32, #tpu.memory_space<vmem>>) attributes {dimension_semantics = [#tpu.dimension_semantics<parallel>], iteration_bounds = array<i64: 4>, scalar_prefetch = 0 : i64, scratch_operands = 0 : i64, tpu.core_type = #tpu.core_type<tc>, window_params = [{transform_indices = @transform_0, window_bounds = array<i64: 512, 128>}, {pipeline_mode = #tpu.pipeline_mode<synchronous>, transform_indices = @transform_1, window_bounds = array<i64: 128, 128>}, {transform_indices = @transform_2, window_bounds = array<i64: 512, 128>}, {transform_indices = @transform_3, window_bounds = array<i64: 1, 8, 128>}]} {
    %c0 = arith.constant 0 : index
    %c0_0 = arith.constant 0 : index
    %0 = vector.load %arg1[%c0, %c0_0] : memref<512x128xbf16, #tpu.memory_space<vmem>>, vector<512x128xbf16>
    %c0_1 = arith.constant 0 : index
    %c0_2 = arith.constant 0 : index
    %1 = vector.load %arg2[%c0_1, %c0_2] : memref<128x128xbf16, #tpu.memory_space<vmem>>, vector<128x128xbf16>
    %cst = arith.constant dense<0.000000e+00> : vector<512x128xf32>
    %2 = tpu.matmul %0, %1, %cst {dimension_numbers = #tpu.dot_dimension_numbers<[1], [0], [0], [1], [0, 0, 1, 1], [], []>} : vector<512x128xbf16>, vector<128x128xbf16>, vector<512x128xf32> -> vector<512x128xf32>
    %c0_3 = arith.constant 0 : index
    %c0_4 = arith.constant 0 : index
    %3 = vector.load %arg3[%c0_3, %c0_4] : memref<512x128xf32, #tpu.memory_space<vmem>>, vector<512x128xf32>
    tpu.vector_store %arg3[%c0_3, %c0_4], %2 {strides = array<i32>} : memref<512x128xf32, #tpu.memory_space<vmem>>, vector<512x128xf32>,
    %cst_5 = arith.constant dense<0.000000e+00> : vector<128xf32>
    %4 = vector.multi_reduction <add>, %2, %cst_5 [0] : vector<512x128xf32> to vector<128xf32>
    %5 = vector.shape_cast %4 : vector<128xf32> to vector<1x128xf32>
    %6 = arith.mulf %2, %2 : vector<512x128xf32>
    %cst_6 = arith.constant dense<0.000000e+00> : vector<128xf32>
    %7 = vector.multi_reduction <add>, %6, %cst_6 [0] : vector<512x128xf32> to vector<128xf32>
    %8 = vector.shape_cast %7 : vector<128xf32> to vector<1x128xf32>
    %9 = tpu.iota {dimensions = array<i32: 0>} : vector<8x128xi32>
    %c0_i32 = arith.constant 0 : i32
    %10 = vector.broadcast %c0_i32 : i32 to vector<8x128xi32>
    %11 = arith.cmpi eq, %9, %10 : vector<8x128xi32>
    %12 = vector.shape_cast %5 : vector<1x128xf32> to vector<1x128xf32>
    %13 = vector.broadcast %12 : vector<1x128xf32> to vector<8x128xf32>
    %c1_i32 = arith.constant 1 : i32
    %14 = vector.broadcast %c1_i32 : i32 to vector<8x128xi32>
    %15 = arith.cmpi eq, %9, %14 : vector<8x128xi32>
    %16 = vector.shape_cast %8 : vector<1x128xf32> to vector<1x128xf32>
    %17 = vector.broadcast %16 : vector<1x128xf32> to vector<8x128xf32>
    %cst_7 = arith.constant 0.000000e+00 : f32
    %18 = vector.broadcast %cst_7 : f32 to vector<8x128xf32>
    %19 = arith.select %15, %17, %18 : vector<8x128xi1>, vector<8x128xf32>
    %20 = arith.select %11, %13, %19 : vector<8x128xi1>, vector<8x128xf32>
    %21 = vector.shape_cast %20 : vector<8x128xf32> to vector<1x8x128xf32>
    %c0_8 = arith.constant 0 : index
    %c0_9 = arith.constant 0 : index
    %c0_10 = arith.constant 0 : index
    %22 = vector.load %arg4[%c0_8, %c0_9, %c0_10] : memref<1x8x128xf32, #tpu.memory_space<vmem>>, vector<1x8x128xf32>
    tpu.vector_store %arg4[%c0_8, %c0_9, %c0_10], %21 {strides = array<i32>} : memref<1x8x128xf32, #tpu.memory_space<vmem>>, vector<1x8x128xf32>,
    return
  }
  func.func @transform_0(%arg0: i32) -> (i32, i32) {
    %c0_i32 = arith.constant 0 : i32
    %c0_i32_0 = arith.constant 0 : i32
    return %arg0, %c0_i32 : i32, i32
  }
  func.func @transform_1(%arg0: i32) -> (i32, i32) {
    %c0_i32 = arith.constant 0 : i32
    %c0_i32_0 = arith.constant 0 : i32
    %c0_i32_1 = arith.constant 0 : i32
    return %c0_i32, %c0_i32_0 : i32, i32
  }
  func.func @transform_2(%arg0: i32) -> (i32, i32) {
    %c0_i32 = arith.constant 0 : i32
    %c0_i32_0 = arith.constant 0 : i32
    return %arg0, %c0_i32 : i32, i32
  }
  func.func @transform_3(%arg0: i32) -> (i32, i32, i32) {
    %c0_i32 = arith.constant 0 : i32
    %c0_i32_0 = arith.constant 0 : i32
    %c0_i32_1 = arith.constant 0 : i32
    return %arg0, %c0_i32, %c0_i32_0 : i32, i32, i32
  }
}

module attributes {stable_mosaic.version = 11 : i64} {
  func.func @_bn_lrelu_kernel(%arg0: i32, %arg1: memref<512x128xf32, #tpu.memory_space<vmem>>, %arg2: memref<1x128xf32, #tpu.memory_space<vmem>>, %arg3: memref<1x128xf32, #tpu.memory_space<vmem>>, %arg4: memref<512x128xbf16, #tpu.memory_space<vmem>>) attributes {dimension_semantics = [#tpu.dimension_semantics<parallel>], iteration_bounds = array<i64: 4>, scalar_prefetch = 0 : i64, scratch_operands = 0 : i64, tpu.core_type = #tpu.core_type<tc>, window_params = [{transform_indices = @transform_0, window_bounds = array<i64: 512, 128>}, {pipeline_mode = #tpu.pipeline_mode<synchronous>, transform_indices = @transform_1, window_bounds = array<i64: 1, 128>}, {pipeline_mode = #tpu.pipeline_mode<synchronous>, transform_indices = @transform_2, window_bounds = array<i64: 1, 128>}, {transform_indices = @transform_3, window_bounds = array<i64: 512, 128>}]} {
    %c0 = arith.constant 0 : index
    %c0_0 = arith.constant 0 : index
    %0 = vector.load %arg1[%c0, %c0_0] : memref<512x128xf32, #tpu.memory_space<vmem>>, vector<512x128xf32>
    %c0_1 = arith.constant 0 : index
    %c0_2 = arith.constant 0 : index
    %1 = vector.load %arg2[%c0_1, %c0_2] : memref<1x128xf32, #tpu.memory_space<vmem>>, vector<1x128xf32>
    %2 = vector.broadcast %1 : vector<1x128xf32> to vector<512x128xf32>
    %3 = arith.mulf %0, %2 : vector<512x128xf32>
    %c0_3 = arith.constant 0 : index
    %c0_4 = arith.constant 0 : index
    %4 = vector.load %arg3[%c0_3, %c0_4] : memref<1x128xf32, #tpu.memory_space<vmem>>, vector<1x128xf32>
    %5 = vector.broadcast %4 : vector<1x128xf32> to vector<512x128xf32>
    %6 = arith.addf %3, %5 : vector<512x128xf32>
    %cst = arith.constant 0.000000e+00 : f32
    %7 = vector.broadcast %cst : f32 to vector<512x128xf32>
    %8 = arith.cmpf oge, %6, %7 : vector<512x128xf32>
    %cst_5 = arith.constant 0.000000e+00 : f32
    %9 = vector.broadcast %cst_5 : f32 to vector<512x128xf32>
    %10 = arith.mulf %9, %6 : vector<512x128xf32>
    %11 = arith.select %8, %6, %10 : vector<512x128xi1>, vector<512x128xf32>
    %12 = arith.truncf %11 : vector<512x128xf32> to vector<512x128xbf16>
    %c0_6 = arith.constant 0 : index
    %c0_7 = arith.constant 0 : index
    %13 = vector.load %arg4[%c0_6, %c0_7] : memref<512x128xbf16, #tpu.memory_space<vmem>>, vector<512x128xbf16>
    tpu.vector_store %arg4[%c0_6, %c0_7], %12 {strides = array<i32>} : memref<512x128xbf16, #tpu.memory_space<vmem>>, vector<512x128xbf16>,
    return
  }
  func.func @transform_0(%arg0: i32) -> (i32, i32) {
    %c0_i32 = arith.constant 0 : i32
    %c0_i32_0 = arith.constant 0 : i32
    return %arg0, %c0_i32 : i32, i32
  }
  func.func @transform_1(%arg0: i32) -> (i32, i32) {
    %c0_i32 = arith.constant 0 : i32
    %c0_i32_0 = arith.constant 0 : i32
    %c0_i32_1 = arith.constant 0 : i32
    return %c0_i32, %c0_i32_0 : i32, i32
  }
  func.func @transform_2(%arg0: i32) -> (i32, i32) {
    %c0_i32 = arith.constant 0 : i32
    %c0_i32_0 = arith.constant 0 : i32
    %c0_i32_1 = arith.constant 0 : i32
    return %c0_i32, %c0_i32_0 : i32, i32
  }
  func.func @transform_3(%arg0: i32) -> (i32, i32) {
    %c0_i32 = arith.constant 0 : i32
    %c0_i32_0 = arith.constant 0 : i32
    return %arg0, %c0_i32 : i32, i32
  }
}

module attributes {stable_mosaic.version = 11 : i64} {
  func.func @_matmul_stats_kernel(%arg0: i32, %arg1: memref<256x2048xbf16, #tpu.memory_space<vmem>>, %arg2: memref<2048x128xbf16, #tpu.memory_space<vmem>>, %arg3: memref<256x128xf32, #tpu.memory_space<vmem>>, %arg4: memref<1x8x128xf32, #tpu.memory_space<vmem>>) attributes {dimension_semantics = [#tpu.dimension_semantics<parallel>], iteration_bounds = array<i64: 2>, scalar_prefetch = 0 : i64, scratch_operands = 0 : i64, tpu.core_type = #tpu.core_type<tc>, window_params = [{transform_indices = @transform_0, window_bounds = array<i64: 256, 2048>}, {pipeline_mode = #tpu.pipeline_mode<synchronous>, transform_indices = @transform_1, window_bounds = array<i64: 2048, 128>}, {transform_indices = @transform_2, window_bounds = array<i64: 256, 128>}, {transform_indices = @transform_3, window_bounds = array<i64: 1, 8, 128>}]} {
    %c0 = arith.constant 0 : index
    %c0_0 = arith.constant 0 : index
    %0 = vector.load %arg1[%c0, %c0_0] : memref<256x2048xbf16, #tpu.memory_space<vmem>>, vector<256x2048xbf16>
    %c0_1 = arith.constant 0 : index
    %c0_2 = arith.constant 0 : index
    %1 = vector.load %arg2[%c0_1, %c0_2] : memref<2048x128xbf16, #tpu.memory_space<vmem>>, vector<2048x128xbf16>
    %cst = arith.constant dense<0.000000e+00> : vector<256x128xf32>
    %2 = tpu.matmul %0, %1, %cst {dimension_numbers = #tpu.dot_dimension_numbers<[1], [0], [0], [1], [0, 0, 1, 1], [], []>} : vector<256x2048xbf16>, vector<2048x128xbf16>, vector<256x128xf32> -> vector<256x128xf32>
    %c0_3 = arith.constant 0 : index
    %c0_4 = arith.constant 0 : index
    %3 = vector.load %arg3[%c0_3, %c0_4] : memref<256x128xf32, #tpu.memory_space<vmem>>, vector<256x128xf32>
    tpu.vector_store %arg3[%c0_3, %c0_4], %2 {strides = array<i32>} : memref<256x128xf32, #tpu.memory_space<vmem>>, vector<256x128xf32>,
    %cst_5 = arith.constant dense<0.000000e+00> : vector<128xf32>
    %4 = vector.multi_reduction <add>, %2, %cst_5 [0] : vector<256x128xf32> to vector<128xf32>
    %5 = vector.shape_cast %4 : vector<128xf32> to vector<1x128xf32>
    %6 = arith.mulf %2, %2 : vector<256x128xf32>
    %cst_6 = arith.constant dense<0.000000e+00> : vector<128xf32>
    %7 = vector.multi_reduction <add>, %6, %cst_6 [0] : vector<256x128xf32> to vector<128xf32>
    %8 = vector.shape_cast %7 : vector<128xf32> to vector<1x128xf32>
    %9 = tpu.iota {dimensions = array<i32: 0>} : vector<8x128xi32>
    %c0_i32 = arith.constant 0 : i32
    %10 = vector.broadcast %c0_i32 : i32 to vector<8x128xi32>
    %11 = arith.cmpi eq, %9, %10 : vector<8x128xi32>
    %12 = vector.shape_cast %5 : vector<1x128xf32> to vector<1x128xf32>
    %13 = vector.broadcast %12 : vector<1x128xf32> to vector<8x128xf32>
    %c1_i32 = arith.constant 1 : i32
    %14 = vector.broadcast %c1_i32 : i32 to vector<8x128xi32>
    %15 = arith.cmpi eq, %9, %14 : vector<8x128xi32>
    %16 = vector.shape_cast %8 : vector<1x128xf32> to vector<1x128xf32>
    %17 = vector.broadcast %16 : vector<1x128xf32> to vector<8x128xf32>
    %cst_7 = arith.constant 0.000000e+00 : f32
    %18 = vector.broadcast %cst_7 : f32 to vector<8x128xf32>
    %19 = arith.select %15, %17, %18 : vector<8x128xi1>, vector<8x128xf32>
    %20 = arith.select %11, %13, %19 : vector<8x128xi1>, vector<8x128xf32>
    %21 = vector.shape_cast %20 : vector<8x128xf32> to vector<1x8x128xf32>
    %c0_8 = arith.constant 0 : index
    %c0_9 = arith.constant 0 : index
    %c0_10 = arith.constant 0 : index
    %22 = vector.load %arg4[%c0_8, %c0_9, %c0_10] : memref<1x8x128xf32, #tpu.memory_space<vmem>>, vector<1x8x128xf32>
    tpu.vector_store %arg4[%c0_8, %c0_9, %c0_10], %21 {strides = array<i32>} : memref<1x8x128xf32, #tpu.memory_space<vmem>>, vector<1x8x128xf32>,
    return
  }
  func.func @transform_0(%arg0: i32) -> (i32, i32) {
    %c0_i32 = arith.constant 0 : i32
    %c0_i32_0 = arith.constant 0 : i32
    return %arg0, %c0_i32 : i32, i32
  }
  func.func @transform_1(%arg0: i32) -> (i32, i32) {
    %c0_i32 = arith.constant 0 : i32
    %c0_i32_0 = arith.constant 0 : i32
    %c0_i32_1 = arith.constant 0 : i32
    return %c0_i32, %c0_i32_0 : i32, i32
  }
  func.func @transform_2(%arg0: i32) -> (i32, i32) {
    %c0_i32 = arith.constant 0 : i32
    %c0_i32_0 = arith.constant 0 : i32
    return %arg0, %c0_i32 : i32, i32
  }
  func.func @transform_3(%arg0: i32) -> (i32, i32, i32) {
    %c0_i32 = arith.constant 0 : i32
    %c0_i32_0 = arith.constant 0 : i32
    %c0_i32_1 = arith.constant 0 : i32
    return %arg0, %c0_i32, %c0_i32_0 : i32, i32, i32
  }
}

module attributes {stable_mosaic.version = 11 : i64} {
  func.func @_matmul_stats_kernel(%arg0: i32, %arg1: memref<32x3200xbf16, #tpu.memory_space<vmem>>, %arg2: memref<3200x128xbf16, #tpu.memory_space<vmem>>, %arg3: memref<32x128xf32, #tpu.memory_space<vmem>>, %arg4: memref<1x8x128xf32, #tpu.memory_space<vmem>>) attributes {dimension_semantics = [#tpu.dimension_semantics<parallel>], iteration_bounds = array<i64: 1>, scalar_prefetch = 0 : i64, scratch_operands = 0 : i64, tpu.core_type = #tpu.core_type<tc>, window_params = [{transform_indices = @transform_0, window_bounds = array<i64: 32, 3200>}, {pipeline_mode = #tpu.pipeline_mode<synchronous>, transform_indices = @transform_1, window_bounds = array<i64: 3200, 128>}, {transform_indices = @transform_2, window_bounds = array<i64: 32, 128>}, {transform_indices = @transform_3, window_bounds = array<i64: 1, 8, 128>}]} {
    %c0 = arith.constant 0 : index
    %c0_0 = arith.constant 0 : index
    %0 = vector.load %arg1[%c0, %c0_0] : memref<32x3200xbf16, #tpu.memory_space<vmem>>, vector<32x3200xbf16>
    %c0_1 = arith.constant 0 : index
    %c0_2 = arith.constant 0 : index
    %1 = vector.load %arg2[%c0_1, %c0_2] : memref<3200x128xbf16, #tpu.memory_space<vmem>>, vector<3200x128xbf16>
    %cst = arith.constant dense<0.000000e+00> : vector<32x128xf32>
    %2 = tpu.matmul %0, %1, %cst {dimension_numbers = #tpu.dot_dimension_numbers<[1], [0], [0], [1], [0, 0, 1, 1], [], []>} : vector<32x3200xbf16>, vector<3200x128xbf16>, vector<32x128xf32> -> vector<32x128xf32>
    %c0_3 = arith.constant 0 : index
    %c0_4 = arith.constant 0 : index
    %3 = vector.load %arg3[%c0_3, %c0_4] : memref<32x128xf32, #tpu.memory_space<vmem>>, vector<32x128xf32>
    tpu.vector_store %arg3[%c0_3, %c0_4], %2 {strides = array<i32>} : memref<32x128xf32, #tpu.memory_space<vmem>>, vector<32x128xf32>,
    %cst_5 = arith.constant dense<0.000000e+00> : vector<128xf32>
    %4 = vector.multi_reduction <add>, %2, %cst_5 [0] : vector<32x128xf32> to vector<128xf32>
    %5 = vector.shape_cast %4 : vector<128xf32> to vector<1x128xf32>
    %6 = arith.mulf %2, %2 : vector<32x128xf32>
    %cst_6 = arith.constant dense<0.000000e+00> : vector<128xf32>
    %7 = vector.multi_reduction <add>, %6, %cst_6 [0] : vector<32x128xf32> to vector<128xf32>
    %8 = vector.shape_cast %7 : vector<128xf32> to vector<1x128xf32>
    %9 = tpu.iota {dimensions = array<i32: 0>} : vector<8x128xi32>
    %c0_i32 = arith.constant 0 : i32
    %10 = vector.broadcast %c0_i32 : i32 to vector<8x128xi32>
    %11 = arith.cmpi eq, %9, %10 : vector<8x128xi32>
    %12 = vector.shape_cast %5 : vector<1x128xf32> to vector<1x128xf32>
    %13 = vector.broadcast %12 : vector<1x128xf32> to vector<8x128xf32>
    %c1_i32 = arith.constant 1 : i32
    %14 = vector.broadcast %c1_i32 : i32 to vector<8x128xi32>
    %15 = arith.cmpi eq, %9, %14 : vector<8x128xi32>
    %16 = vector.shape_cast %8 : vector<1x128xf32> to vector<1x128xf32>
    %17 = vector.broadcast %16 : vector<1x128xf32> to vector<8x128xf32>
    %cst_7 = arith.constant 0.000000e+00 : f32
    %18 = vector.broadcast %cst_7 : f32 to vector<8x128xf32>
    %19 = arith.select %15, %17, %18 : vector<8x128xi1>, vector<8x128xf32>
    %20 = arith.select %11, %13, %19 : vector<8x128xi1>, vector<8x128xf32>
    %21 = vector.shape_cast %20 : vector<8x128xf32> to vector<1x8x128xf32>
    %c0_8 = arith.constant 0 : index
    %c0_9 = arith.constant 0 : index
    %c0_10 = arith.constant 0 : index
    %22 = vector.load %arg4[%c0_8, %c0_9, %c0_10] : memref<1x8x128xf32, #tpu.memory_space<vmem>>, vector<1x8x128xf32>
    tpu.vector_store %arg4[%c0_8, %c0_9, %c0_10], %21 {strides = array<i32>} : memref<1x8x128xf32, #tpu.memory_space<vmem>>, vector<1x8x128xf32>,
    return
  }
  func.func @transform_0(%arg0: i32) -> (i32, i32) {
    %c0_i32 = arith.constant 0 : i32
    %c0_i32_0 = arith.constant 0 : i32
    return %arg0, %c0_i32 : i32, i32
  }
  func.func @transform_1(%arg0: i32) -> (i32, i32) {
    %c0_i32 = arith.constant 0 : i32
    %c0_i32_0 = arith.constant 0 : i32
    %c0_i32_1 = arith.constant 0 : i32
    return %c0_i32, %c0_i32_0 : i32, i32
  }
  func.func @transform_2(%arg0: i32) -> (i32, i32) {
    %c0_i32 = arith.constant 0 : i32
    %c0_i32_0 = arith.constant 0 : i32
    return %arg0, %c0_i32 : i32, i32
  }
  func.func @transform_3(%arg0: i32) -> (i32, i32, i32) {
    %c0_i32 = arith.constant 0 : i32
    %c0_i32_0 = arith.constant 0 : i32
    %c0_i32_1 = arith.constant 0 : i32
    return %arg0, %c0_i32, %c0_i32_0 : i32, i32, i32
  }
}

module attributes {stable_mosaic.version = 11 : i64} {
  func.func @_bn_lrelu_kernel(%arg0: i32, %arg1: memref<32x128xf32, #tpu.memory_space<vmem>>, %arg2: memref<1x128xf32, #tpu.memory_space<vmem>>, %arg3: memref<1x128xf32, #tpu.memory_space<vmem>>, %arg4: memref<32x128xf32, #tpu.memory_space<vmem>>) attributes {dimension_semantics = [#tpu.dimension_semantics<parallel>], iteration_bounds = array<i64: 1>, scalar_prefetch = 0 : i64, scratch_operands = 0 : i64, tpu.core_type = #tpu.core_type<tc>, window_params = [{transform_indices = @transform_0, window_bounds = array<i64: 32, 128>}, {pipeline_mode = #tpu.pipeline_mode<synchronous>, transform_indices = @transform_1, window_bounds = array<i64: 1, 128>}, {pipeline_mode = #tpu.pipeline_mode<synchronous>, transform_indices = @transform_2, window_bounds = array<i64: 1, 128>}, {transform_indices = @transform_3, window_bounds = array<i64: 32, 128>}]} {
    %c0 = arith.constant 0 : index
    %c0_0 = arith.constant 0 : index
    %0 = vector.load %arg1[%c0, %c0_0] : memref<32x128xf32, #tpu.memory_space<vmem>>, vector<32x128xf32>
    %c0_1 = arith.constant 0 : index
    %c0_2 = arith.constant 0 : index
    %1 = vector.load %arg2[%c0_1, %c0_2] : memref<1x128xf32, #tpu.memory_space<vmem>>, vector<1x128xf32>
    %2 = vector.broadcast %1 : vector<1x128xf32> to vector<32x128xf32>
    %3 = arith.mulf %0, %2 : vector<32x128xf32>
    %c0_3 = arith.constant 0 : index
    %c0_4 = arith.constant 0 : index
    %4 = vector.load %arg3[%c0_3, %c0_4] : memref<1x128xf32, #tpu.memory_space<vmem>>, vector<1x128xf32>
    %5 = vector.broadcast %4 : vector<1x128xf32> to vector<32x128xf32>
    %6 = arith.addf %3, %5 : vector<32x128xf32>
    %cst = arith.constant 0.000000e+00 : f32
    %7 = vector.broadcast %cst : f32 to vector<32x128xf32>
    %8 = arith.cmpf oge, %6, %7 : vector<32x128xf32>
    %cst_5 = arith.constant 0.000000e+00 : f32
    %9 = vector.broadcast %cst_5 : f32 to vector<32x128xf32>
    %10 = arith.mulf %9, %6 : vector<32x128xf32>
    %11 = arith.select %8, %6, %10 : vector<32x128xi1>, vector<32x128xf32>
    %c0_6 = arith.constant 0 : index
    %c0_7 = arith.constant 0 : index
    %12 = vector.load %arg4[%c0_6, %c0_7] : memref<32x128xf32, #tpu.memory_space<vmem>>, vector<32x128xf32>
    tpu.vector_store %arg4[%c0_6, %c0_7], %11 {strides = array<i32>} : memref<32x128xf32, #tpu.memory_space<vmem>>, vector<32x128xf32>,
    return
  }
  func.func @transform_0(%arg0: i32) -> (i32, i32) {
    %c0_i32 = arith.constant 0 : i32
    %c0_i32_0 = arith.constant 0 : i32
    return %arg0, %c0_i32 : i32, i32
  }
  func.func @transform_1(%arg0: i32) -> (i32, i32) {
    %c0_i32 = arith.constant 0 : i32
    %c0_i32_0 = arith.constant 0 : i32
    %c0_i32_1 = arith.constant 0 : i32
    return %c0_i32, %c0_i32_0 : i32, i32
  }
  func.func @transform_2(%arg0: i32) -> (i32, i32) {
    %c0_i32 = arith.constant 0 : i32
    %c0_i32_0 = arith.constant 0 : i32
    %c0_i32_1 = arith.constant 0 : i32
    return %c0_i32, %c0_i32_0 : i32, i32
  }
  func.func @transform_3(%arg0: i32) -> (i32, i32) {
    %c0_i32 = arith.constant 0 : i32
    %c0_i32_0 = arith.constant 0 : i32
    return %arg0, %c0_i32 : i32, i32
  }
}

</mosaic_0001>

<bundles_post_ra>
// kernel: _lambda_.51
= control target key start
LH: loop header
LB: loop body
LE: loop exit
PB: predicated region body
PF: predicated region fallthrough
CT: control target
= control target key end

     0   :  { %s804_s12 = smov 0   ;;  %s952_s0 = inlined_call_operand.vmem [shape: f32[512,128], index: 0, kind: input, shape index: {}]   ;;  %s953_s1 = inlined_call_operand.vmem [shape: f32[1,128], index: 1, kind: input, shape index: {}]   ;;  %s954_s2 = inlined_call_operand.vmem [shape: f32[1,128], index: 2, kind: input, shape index: {}]   ;;  %s955_s3 = inlined_call_operand.vmem [shape: bf16[512,128], index: 3, kind: output, shape index: {}]  }
   0x1 LB: > { %s596_s13 = sadd.s32 4294967295, %s782_s12   ;;  %p600_p0 = scmp.ge.s32.totalorder %s782_s12, 1  ;;  %s782_s12 = sphi %s804_s12, %s13_s12  }
   0x2   : > { %p138_p1 = scmp.lt.s32.totalorder %s782_s12, 3 }
   0x4   : > { %p139_p2 = pnand %p600_p0, %p138_p1 }
   0x5   : > { %s601_s14 = sshll.u32 (!%p139_p2), %s596_s13, 5  ;;  %v818_v0 = vld [vmem:[%s953_s1] ss:$0 sm:$0xff] (!%p139_p2) }
   0x6   : > { %142 = sbr.rel (%p139_p2) target bundleno = 67 (0x43), region = 32  ;;  %p163_p3 = scmp.lt.s32.totalorder (!%p139_p2), %s601_s14, 63  ;;  %v828_v1 = vld [vmem:[%s954_s2] ss:$0 sm:$0xff] (!%p139_p2) }
   0xd   : > { %s957_s14 = smov (!%p163_p3, %s601_s14), 63 }
   0xe   : > { %s602_s15 = sshll.u32 %s957_s14, 3  ;;  %s604_s23 = sshll.u32 %s957_s14, 2 }
   0xf   : > { %s823_s20 = scalar_lea.vmem %s952_s0, %s602_s15  ;;  %s856_s26 = scalar_lea.vmem %s955_s3, %s604_s23 }
  0x10   : > { %v174_v2 = vld [vmem:[%s823_s20] sm:$0xff]  ;;  %v175_v3 = vld [vmem:[%s823_s20 + $0x8] sm:$0xff]  ;;  %v176_v4 = vld [vmem:[%s823_s20 + $0x10] sm:$0xff] }
  0x11   : > { %v213_v5 = vmul.f32 %v818_v0, %v174_v2  ;;  %v214_v6 = vmul.f32 %v818_v0, %v175_v3  ;;  %v177_v7 = vld [vmem:[%s823_s20 + $0x18] sm:$0xff]  ;;  %v215_v8 = vmul.f32 %v818_v0, %v176_v4  ;;  %v178_v9 = vld [vmem:[%s823_s20 + $0x20] sm:$0xff]  ;;  %v179_v10 = vld [vmem:[%s823_s20 + $0x28] sm:$0xff] }
  0x12   : > { %v216_v11 = vmul.f32 %v818_v0, %v177_v7  ;;  %v217_v12 = vmul.f32 %v818_v0, %v178_v9  ;;  %v218_v13 = vmul.f32 %v818_v0, %v179_v10  ;;  %v180_v14 = vld [vmem:[%s823_s20 + $0x30] sm:$0xff]  ;;  %v181_v15 = vld [vmem:[%s823_s20 + $0x38] sm:$0xff]  ;;  %v182_v30 = vld [vmem:[%s823_s20 + $0x40] sm:$0xff] }
  0x13   : > { %v252_v16 = vadd.f32 %v828_v1, %v213_v5  ;;  %v253_v17 = vadd.f32 %v828_v1, %v214_v6  ;;  %v254_v18 = vadd.f32 %v828_v1, %v215_v8  ;;  %v219_v19 = vmul.f32 %v818_v0, %v180_v14  ;;  %v183_v31 = vld [vmem:[%s823_s20 + $0x48] sm:$0xff]  ;;  %v184_v32 = vld [vmem:[%s823_s20 + $0x50] sm:$0xff]  ;;  %v185_v44 = vld [vmem:[%s823_s20 + $0x58] sm:$0xff] }
  0x14   : > { %v255_v20 = vadd.f32 %v828_v1, %v216_v11  ;;  %v256_v21 = vadd.f32 %v828_v1, %v217_v12  ;;  %v257_v22 = vadd.f32 %v828_v1, %v218_v13  ;;  %v220_v23 = vmul.f32 %v818_v0, %v181_v15  ;;  %v186_v46 = vld [vmem:[%s823_s20 + $0x60] sm:$0xff]  ;;  %v187_v56 = vld [vmem:[%s823_s20 + $0x68] sm:$0xff]  ;;  %v188_v60 = vld [vmem:[%s823_s20 + $0x70] sm:$0xff] }
  0x15   : > { %vm284_vm0 = vcmp.ge.f32.partialorder %v252_v16, 0.0  ;;  %vm285_vm1 = vcmp.ge.f32.partialorder %v253_v17, 0.0  ;;  %v316_v24 = vmul.f32 0.0, %v252_v16  ;;  %v317_v25 = vmul.f32 0.0, %v253_v17  ;;  %v189_v6 = vld [vmem:[%s823_s20 + $0x78] sm:$0xff]  ;;  %v190_v10 = vld [vmem:[%s823_s20 + $0x80] sm:$0xff] }
  0x16   : > { %vm286_vm2 = vcmp.ge.f32.partialorder %v254_v18, 0.0  ;;  %vm287_vm3 = vcmp.ge.f32.partialorder %v255_v20, 0.0  ;;  %v318_v26 = vmul.f32 0.0, %v254_v18  ;;  %v319_v27 = vmul.f32 0.0, %v255_v20 }
  0x17   : > { %v348_v28 = vsel %vm284_vm0, %v252_v16, %v316_v24  ;;  %v349_v29 = vsel %vm285_vm1, %v253_v17, %v317_v25  ;;  %vm288_vm4 = vcmp.ge.f32.partialorder %v256_v21, 0.0  ;;  %vm289_vm5 = vcmp.ge.f32.partialorder %v257_v22, 0.0 }
  0x18   : > { %v676_v33 = vpack.c.bf16 %v349_v29, %v348_v28  ;;  %v350_v34 = vsel %vm286_vm2, %v254_v18, %v318_v26  ;;  %v351_v35 = vsel %vm287_vm3, %v255_v20, %v319_v27  ;;  %v320_v36 = vmul.f32 0.0, %v256_v21  ;;  %v191_v18 = vld [vmem:[%s823_s20 + $0x88] sm:$0xff]  ;;  %v193_v26 = vld [vmem:[%s823_s20 + $0x98] sm:$0xff] }
  0x19   : > { %v681_v37 = vpack.c.bf16 %v351_v35, %v350_v34  ;;  %v321_v38 = vmul.f32 0.0, %v257_v22  ;;  %v258_v39 = vadd.f32 %v828_v1, %v219_v19  ;;  %v259_v40 = vadd.f32 %v828_v1, %v220_v23  ;;  %v192_v19 = vld [vmem:[%s823_s20 + $0x90] sm:$0xff] }
  0x1a   : > { %677 = vst [vmem:[%s856_s26] sm:$0xff] %v676_v33   ;;  %v352_v41 = vsel %vm288_vm4, %v256_v21, %v320_v36  ;;  %v221_v42 = vmul.f32 %v818_v0, %v182_v30  ;;  %v222_v43 = vmul.f32 %v818_v0, %v183_v31  ;;  %v223_v45 = vmul.f32 %v818_v0, %v184_v32  ;;  %v194_v31 = vld [vmem:[%s823_s20 + $0xa0] sm:$0xff]  ;;  %v195_v32 = vld [vmem:[%s823_s20 + $0xa8] sm:$0xff] }
  0x1b   : > { %753 = vst [vmem:[%s856_s26 + $0x8] sm:$0xff] %v681_v37   ;;  %v353_v47 = vsel %vm289_vm5, %v257_v22, %v321_v38  ;;  %vm290_vm6 = vcmp.ge.f32.partialorder %v258_v39, 0.0  ;;  %vm291_vm7 = vcmp.ge.f32.partialorder %v259_v40, 0.0  ;;  %v322_v48 = vmul.f32 0.0, %v258_v39 }
  0x1c   : > { %v686_v49 = vpack.c.bf16 %v353_v47, %v352_v41  ;;  %v323_v50 = vmul.f32 0.0, %v259_v40  ;;  %v260_v51 = vadd.f32 %v828_v1, %v221_v42  ;;  %v261_v52 = vadd.f32 %v828_v1, %v222_v43  ;;  %v196_v43 = vld [vmem:[%s823_s20 + $0xb0] sm:$0xff] }
  0x1d   : > { %v354_v53 = vsel %vm290_vm6, %v258_v39, %v322_v48  ;;  %v224_v54 = vmul.f32 %v818_v0, %v185_v44  ;;  %v262_v55 = vadd.f32 %v828_v1, %v223_v45  ;;  %v225_v57 = vmul.f32 %v818_v0, %v186_v46  ;;  %v197_v44 = vld [vmem:[%s823_s20 + $0xb8] sm:$0xff] }
  0x1e   : > { %754 = vst [vmem:[%s856_s26 + $0x10] sm:$0xff] %v686_v49   ;;  %v355_v58 = vsel %vm291_vm7, %v259_v40, %v323_v50  ;;  %vm292_vm8 = vcmp.ge.f32.partialorder %v260_v51, 0.0  ;;  %vm293_vm9 = vcmp.ge.f32.partialorder %v261_v52, 0.0  ;;  %v324_v59 = vmul.f32 0.0, %v260_v51 }
  0x1f   : > { %v691_v61 = vpack.c.bf16 %v355_v58, %v354_v53  ;;  %v325_v62 = vmul.f32 0.0, %v261_v52  ;;  %v263_v63 = vadd.f32 %v828_v1, %v224_v54  ;;  %vm294_vm10 = vcmp.ge.f32.partialorder %v262_v55, 0.0 }
  0x20   : > { %v356_v2 = vsel %vm292_vm8, %v260_v51, %v324_v59  ;;  %v326_v3 = vmul.f32 0.0, %v262_v55  ;;  %v226_v4 = vmul.f32 %v818_v0, %v187_v56  ;;  %v264_v5 = vadd.f32 %v828_v1, %v225_v57  ;;  %v199_v59 = vld [vmem:[%s823_s20 + $0xc8] sm:$0xff] }
  0x21   : > { %755 = vst [vmem:[%s856_s26 + $0x18] sm:$0xff] %v691_v61   ;;  %v357_v7 = vsel %vm293_vm9, %v261_v52, %v325_v62  ;;  %vm295_vm11 = vcmp.ge.f32.partialorder %v263_v63, 0.0  ;;  %v327_v8 = vmul.f32 0.0, %v263_v63  ;;  %v227_v9 = vmul.f32 %v818_v0, %v188_v60 }
  0x22   : > { %v696_v11 = vpack.c.bf16 %v357_v7, %v356_v2  ;;  %v358_v12 = vsel %vm294_vm10, %v262_v55, %v326_v3  ;;  %v265_v13 = vadd.f32 %v828_v1, %v226_v4  ;;  %vm296_vm12 = vcmp.ge.f32.partialorder %v264_v5, 0.0  ;;  %v198_v55 = vld [vmem:[%s823_s20 + $0xc0] sm:$0xff]  ;;  %v200_v4 = vld [vmem:[%s823_s20 + $0xd0] sm:$0xff] }
  0x23   : > { %v359_v14 = vsel %vm295_vm11, %v263_v63, %v327_v8  ;;  %v328_v15 = vmul.f32 0.0, %v264_v5  ;;  %v228_v16 = vmul.f32 %v818_v0, %v189_v6  ;;  %v266_v17 = vadd.f32 %v828_v1, %v227_v9  ;;  %v201_v9 = vld [vmem:[%s823_s20 + $0xd8] sm:$0xff] }
  0x24   : > { %756 = vst [vmem:[%s856_s26 + $0x20] sm:$0xff] %v696_v11   ;;  %v701_v20 = vpack.c.bf16 %v359_v14, %v358_v12  ;;  %vm297_vm13 = vcmp.ge.f32.partialorder %v265_v13, 0.0  ;;  %v329_v21 = vmul.f32 0.0, %v265_v13  ;;  %v229_v22 = vmul.f32 %v818_v0, %v190_v10  ;;  %v202_v10 = vld [vmem:[%s823_s20 + $0xe0] sm:$0xff]  ;;  %v203_v11 = vld [vmem:[%s823_s20 + $0xe8] sm:$0xff] }
  0x25   : > { %v360_v23 = vsel %vm296_vm12, %v264_v5, %v328_v15  ;;  %v267_v24 = vadd.f32 %v828_v1, %v228_v16  ;;  %vm298_vm14 = vcmp.ge.f32.partialorder %v266_v17, 0.0  ;;  %v330_v25 = vmul.f32 0.0, %v266_v17 }
  0x26   : > { %757 = vst [vmem:[%s856_s26 + $0x28] sm:$0xff] %v701_v20   ;;  %v361_v27 = vsel %vm297_vm13, %v265_v13, %v329_v21  ;;  %v230_v28 = vmul.f32 %v818_v0, %v191_v18  ;;  %v268_v29 = vadd.f32 %v828_v1, %v229_v22  ;;  %v231_v30 = vmul.f32 %v818_v0, %v192_v19  ;;  %v204_v22 = vld [vmem:[%s823_s20 + $0xf0] sm:$0xff] }
  0x27   : > { %v706_v33 = vpack.c.bf16 %v361_v27, %v360_v23  ;;  %vm299_vm15 = vcmp.ge.f32.partialorder %v267_v24, 0.0  ;;  %v331_v34 = vmul.f32 0.0, %v267_v24  ;;  %v362_v35 = vsel %vm298_vm14, %v266_v17, %v330_v25 }
  0x28   : > { %v269_v36 = vadd.f32 %v828_v1, %v230_v28  ;;  %vm300_vm0 = vcmp.ge.f32.partialorder %v268_v29, 0.0  ;;  %v332_v37 = vmul.f32 0.0, %v268_v29  ;;  %v232_v38 = vmul.f32 %v818_v0, %v193_v26 }
  0x29   : > { %758 = vst [vmem:[%s856_s26 + $0x30] sm:$0xff] %v706_v33   ;;  %v363_v39 = vsel %vm299_vm15, %v267_v24, %v331_v34  ;;  %v270_v40 = vadd.f32 %v828_v1, %v231_v30  ;;  %v233_v41 = vmul.f32 %v818_v0, %v194_v31  ;;  %v234_v42 = vmul.f32 %v818_v0, %v195_v32  ;;  %v205_v32 = vld [vmem:[%s823_s20 + $0xf8] sm:$0xff] }
  0x2a   : > { %v711_v45 = vpack.c.bf16 %v363_v39, %v362_v35  ;;  %vm301_vm1 = vcmp.ge.f32.partialorder %v269_v36, 0.0  ;;  %v333_v46 = vmul.f32 0.0, %v269_v36  ;;  %v364_v47 = vsel %vm300_vm0, %v268_v29, %v332_v37 }
  0x2b   : > { %v271_v48 = vadd.f32 %v828_v1, %v232_v38  ;;  %vm302_vm2 = vcmp.ge.f32.partialorder %v270_v40, 0.0  ;;  %v334_v49 = vmul.f32 0.0, %v270_v40  ;;  %v272_v50 = vadd.f32 %v828_v1, %v233_v41 }
  0x2c   : > { %759 = vst [vmem:[%s856_s26 + $0x38] sm:$0xff] %v711_v45   ;;  %v365_v51 = vsel %vm301_vm1, %v269_v36, %v333_v46  ;;  %v273_v52 = vadd.f32 %v828_v1, %v234_v42  ;;  %v235_v53 = vmul.f32 %v818_v0, %v196_v43  ;;  %v236_v54 = vmul.f32 %v818_v0, %v197_v44 }
  0x2d   : > { %v716_v56 = vpack.c.bf16 %v365_v51, %v364_v47  ;;  %vm303_vm3 = vcmp.ge.f32.partialorder %v271_v48, 0.0  ;;  %v335_v57 = vmul.f32 0.0, %v271_v48  ;;  %v366_v58 = vsel %vm302_vm2, %v270_v40, %v334_v49 }
  0x2e   : > { %vm304_vm4 = vcmp.ge.f32.partialorder %v272_v50, 0.0  ;;  %vm305_vm5 = vcmp.ge.f32.partialorder %v273_v52, 0.0  ;;  %v336_v60 = vmul.f32 0.0, %v272_v50  ;;  %v337_v61 = vmul.f32 0.0, %v273_v52 }
  0x2f   : > { %760 = vst [vmem:[%s856_s26 + $0x40] sm:$0xff] %v716_v56   ;;  %v367_v62 = vsel %vm303_vm3, %v271_v48, %v335_v57  ;;  %v274_v63 = vadd.f32 %v828_v1, %v235_v53  ;;  %v275_v2 = vadd.f32 %v828_v1, %v236_v54  ;;  %v237_v3 = vmul.f32 %v818_v0, %v198_v55 }
  0x30   : > { %v721_v5 = vpack.c.bf16 %v367_v62, %v366_v58  ;;  %v368_v6 = vsel %vm304_vm4, %v272_v50, %v336_v60  ;;  %v369_v7 = vsel %vm305_vm5, %v273_v52, %v337_v61  ;;  %v238_v8 = vmul.f32 %v818_v0, %v199_v59 }
  0x31   : > { %v726_v12 = vpack.c.bf16 %v369_v7, %v368_v6  ;;  %vm306_vm6 = vcmp.ge.f32.partialorder %v274_v63, 0.0  ;;  %vm307_vm7 = vcmp.ge.f32.partialorder %v275_v2, 0.0  ;;  %v338_v13 = vmul.f32 0.0, %v274_v63 }
  0x32   : > { %761 = vst [vmem:[%s856_s26 + $0x48] sm:$0xff] %v721_v5   ;;  %v339_v14 = vmul.f32 0.0, %v275_v2  ;;  %v276_v15 = vadd.f32 %v828_v1, %v237_v3  ;;  %v277_v16 = vadd.f32 %v828_v1, %v238_v8  ;;  %v239_v17 = vmul.f32 %v818_v0, %v200_v4 }
  0x33   : > { %762 = vst [vmem:[%s856_s26 + $0x50] sm:$0xff] %v726_v12   ;;  %v370_v18 = vsel %vm306_vm6, %v274_v63, %v338_v13  ;;  %v240_v19 = vmul.f32 %v818_v0, %v201_v9  ;;  %v241_v20 = vmul.f32 %v818_v0, %v202_v10  ;;  %v242_v21 = vmul.f32 %v818_v0, %v203_v11 }
  0x34   : > { %v371_v23 = vsel %vm307_vm7, %v275_v2, %v339_v14  ;;  %vm308_vm8 = vcmp.ge.f32.partialorder %v276_v15, 0.0  ;;  %vm309_vm9 = vcmp.ge.f32.partialorder %v277_v16, 0.0  ;;  %v340_v24 = vmul.f32 0.0, %v276_v15 }
  0x35   : > { %v731_v25 = vpack.c.bf16 %v371_v23, %v370_v18  ;;  %v341_v26 = vmul.f32 0.0, %v277_v16  ;;  %v278_v27 = vadd.f32 %v828_v1, %v239_v17  ;;  %v279_v28 = vadd.f32 %v828_v1, %v240_v19 }
  0x36   : > { %v372_v29 = vsel %vm308_vm8, %v276_v15, %v340_v24  ;;  %v280_v30 = vadd.f32 %v828_v1, %v241_v20  ;;  %v281_v31 = vadd.f32 %v828_v1, %v242_v21  ;;  %v243_v33 = vmul.f32 %v818_v0, %v204_v22 }
  0x37   : > { %763 = vst [vmem:[%s856_s26 + $0x58] sm:$0xff] %v731_v25   ;;  %v373_v34 = vsel %vm309_vm9, %v277_v16, %v341_v26  ;;  %vm310_vm10 = vcmp.ge.f32.partialorder %v278_v27, 0.0  ;;  %vm311_vm11 = vcmp.ge.f32.partialorder %v279_v28, 0.0  ;;  %v342_v35 = vmul.f32 0.0, %v278_v27 }
  0x38   : > { %v736_v36 = vpack.c.bf16 %v373_v34, %v372_v29  ;;  %v343_v37 = vmul.f32 0.0, %v279_v28  ;;  %vm312_vm12 = vcmp.ge.f32.partialorder %v280_v30, 0.0  ;;  %vm313_vm13 = vcmp.ge.f32.partialorder %v281_v31, 0.0 }
  0x39   : > { %v374_v38 = vsel %vm310_vm10, %v278_v27, %v342_v35  ;;  %v344_v39 = vmul.f32 0.0, %v280_v30  ;;  %v345_v40 = vmul.f32 0.0, %v281_v31  ;;  %v244_v41 = vmul.f32 %v818_v0, %v205_v32 }
  0x3a   : > { %764 = vst [vmem:[%s856_s26 + $0x60] sm:$0xff] %v736_v36   ;;  %v375_v42 = vsel %vm311_vm11, %v279_v28, %v343_v37  ;;  %v282_v43 = vadd.f32 %v828_v1, %v243_v33 }
  0x3b   : > { %v741_v44 = vpack.c.bf16 %v375_v42, %v374_v38  ;;  %v376_v45 = vsel %vm312_vm12, %v280_v30, %v344_v39  ;;  %v377_v46 = vsel %vm313_vm13, %v281_v31, %v345_v40  ;;  %v283_v47 = vadd.f32 %v828_v1, %v244_v41 }
  0x3c   : > { %v746_v48 = vpack.c.bf16 %v377_v46, %v376_v45  ;;  %vm314_vm14 = vcmp.ge.f32.partialorder %v282_v43, 0.0  ;;  %v346_v49 = vmul.f32 0.0, %v282_v43 }
  0x3d   : > { %765 = vst [vmem:[%s856_s26 + $0x68] sm:$0xff] %v741_v44   ;;  %vm315_vm15 = vcmp.ge.f32.partialorder %v283_v47, 0.0  ;;  %v347_v50 = vmul.f32 0.0, %v283_v47 }
  0x3e   : > { %766 = vst [vmem:[%s856_s26 + $0x70] sm:$0xff] %v746_v48   ;;  %v378_v51 = vsel %vm314_vm14, %v282_v43, %v346_v49 }
  0x3f   : > { %v379_v52 = vsel %vm315_vm15, %v283_v47, %v347_v50 }
  0x40   : > { %v751_v0 = vpack.c.bf16 %v379_v52, %v378_v51 }
  0x42   : > { %767 = vst [vmem:[%s856_s26 + $0x78] sm:$0xff] %v751_v0  }
  0x43 PF: > { %s13_s12 = sadd.s32 1, %s782_s12  }
  0x44   : > { %p10_p4 = scmp.ge.s32.totalorder %s13_s12, 4  }
  0x46   :  { %12 = sbr.rel (!%p10_p4) target bundleno = 1 (0x1), region = 62 }

// kernel: _lambda_.50
= control target key start
LH: loop header
LB: loop body
LE: loop exit
PB: predicated region body
PF: predicated region fallthrough
CT: control target
= control target key end

     0   :  { %s955_s12 = smov 0   ;;  %s1138_s0 = inlined_call_operand.vmem [shape: bf16[512,128], index: 0, kind: input, shape index: {}]   ;;  %s1139_s1 = inlined_call_operand.vmem [shape: bf16[128,128], index: 1, kind: input, shape index: {}]   ;;  %s1140_s2 = inlined_call_operand.vmem [shape: f32[512,128], index: 2, kind: output, shape index: {0}]   ;;  %s1141_s3 = inlined_call_operand.vmem [shape: f32[2,8,128], index: 3, kind: output, shape index: {1}]  }
   0x1 LB: > { %s961_s13 = sadd.s32 4294967295, %s933_s12   ;;  %p775_p0 = scmp.ge.s32.totalorder %s933_s12, 1  ;;  %s933_s12 = sphi %s955_s12, %s14_s12  }
   0x2   : > { %p141_p1 = scmp.lt.s32.totalorder %s933_s12, 3 }
   0x4   : > { %p142_p2 = pnand %p775_p0, %p141_p1 }
   0x5   : > { %v903_v0 = vld [vmem:[%s1139_s1] sm:$0xff] (!%p142_p2)   ;;  %s776_s16 = sshll.u32 (!%p142_p2), %s961_s13, 5  ;;  %v904_v1 = vld [vmem:[%s1139_s1 + $0x8] sm:$0xff] (!%p142_p2)   ;;  %v905_v2 = vld [vmem:[%s1139_s1 + $0x10] sm:$0xff] (!%p142_p2)   ;;  %p181_p4 = scmp.lt.s32.totalorder (!%p142_p2), %s961_s13, 1 }
   0x6   : > { %145 = sbr.rel (%p142_p2) target bundleno = 332 (0x14c), region = 28  ;;  %p170_p3 = scmp.lt.s32.totalorder (!%p142_p2), %s776_s16, 63  ;;  %831 = vmatprep.subr.bf16.mxu0 (!%p142_p2), %v903_v0  ;;  %879 = vmatprep.subr.bf16.mxu1 (!%p142_p2), %v903_v0  ;;  %v906_v3 = vld [vmem:[%s1139_s1 + $0x18] sm:$0xff] (!%p142_p2)   ;;  %v907_v5 = vld [vmem:[%s1139_s1 + $0x20] sm:$0xff] (!%p142_p2)   ;;  %v908_v6 = vld [vmem:[%s1139_s1 + $0x28] sm:$0xff] (!%p142_p2)  }
   0x7   : > { %832 = vmatpush3.bf16.msra.mxu0 (!%p142_p2), %v903_v0  ;;  %887 = vmatpush3.bf16.msra.mxu1 (!%p142_p2), %v903_v0  ;;  %v909_v8 = vld [vmem:[%s1139_s1 + $0x30] sm:$0xff] (!%p142_p2)   ;;  %v910_v9 = vld [vmem:[%s1139_s1 + $0x38] sm:$0xff] (!%p142_p2)  }
   0x8   : > { %833 = vmatprep.subr.bf16.mxu0 (!%p142_p2), %v904_v1  ;;  %880 = vmatprep.subr.bf16.mxu1 (!%p142_p2), %v904_v1 }
   0xb   : > { %834 = vmatpush3.bf16.msra.mxu0 (!%p142_p2), %v904_v1  ;;  %888 = vmatpush3.bf16.msra.mxu1 (!%p142_p2), %v904_v1 }
   0xc   : > { %835 = vmatprep.subr.bf16.mxu0 (!%p142_p2), %v905_v2  ;;  %881 = vmatprep.subr.bf16.mxu1 (!%p142_p2), %v905_v2 }
   0xd   : > { %s1143_s16 = smov (!%p170_p3, %s776_s16), 63  ;;  %s1145_s13 = smov (!%p181_p4, %s961_s13), 1 }
   0xe   : > { %s777_s21 = sshll.u32 %s1143_s16, 2  ;;  %s779_s8 = sshll.u32 %s1143_s16, 3 }
   0xf   : > { %s981_s24 = scalar_lea.vmem %s1138_s0, %s777_s21  ;;  %836 = vmatpush3.bf16.msra.mxu0 %v905_v2  ;;  %889 = vmatpush3.bf16.msra.mxu1 %v905_v2  ;;  %s1018_s11 = scalar_lea.vmem %s1140_s2, %s779_s8 }
  0x10   : > { %v911_v4 = vld [vmem:[%s981_s24] sm:$0xff]   ;;  %837 = vmatprep.subr.bf16.mxu0 %v906_v3  ;;  %882 = vmatprep.subr.bf16.mxu1 %v906_v3  ;;  %v912_v10 = vld [vmem:[%s981_s24 + $0x8] sm:$0xff]   ;;  %v913_v12 = vld [vmem:[%s981_s24 + $0x10] sm:$0xff]   ;;  %s780_s14 = sshll.u32 %s1145_s13, 3 }
  0x11   : > { %847 = vmatprep.mubr.bf16.mxu0 %v911_v4  ;;  %v919_v7 = vld [vmem:[%s981_s24 + $0x40] sm:$0xff]   ;;  %v920_v11 = vld [vmem:[%s981_s24 + $0x48] sm:$0xff]   ;;  %v921_v13 = vld [vmem:[%s981_s24 + $0x50] sm:$0xff]   ;;  %s184_s17 = scalar_lea.vmem %s1141_s3, %s780_s14 }
  0x12   : > { %863 = vmatprep.mubr.bf16.mxu1 %v919_v7  ;;  %v914_v14 = vld [vmem:[%s981_s24 + $0x18] sm:$0xff]   ;;  %v915_v16 = vld [vmem:[%s981_s24 + $0x20] sm:$0xff]   ;;  %v916_v18 = vld [vmem:[%s981_s24 + $0x28] sm:$0xff]  }
  0x13   : > { %838 = vmatpush3.bf16.msra.mxu0 %v906_v3  ;;  %890 = vmatpush3.bf16.msra.mxu1 %v906_v3  ;;  %v922_v15 = vld [vmem:[%s981_s24 + $0x58] sm:$0xff]   ;;  %v923_v17 = vld [vmem:[%s981_s24 + $0x60] sm:$0xff]   ;;  %v924_v19 = vld [vmem:[%s981_s24 + $0x68] sm:$0xff]  }
  0x14   : > { %839 = vmatprep.subr.bf16.mxu0 %v907_v5  ;;  %883 = vmatprep.subr.bf16.mxu1 %v907_v5  ;;  %v917_v20 = vld [vmem:[%s981_s24 + $0x30] sm:$0xff]   ;;  %v918_v22 = vld [vmem:[%s981_s24 + $0x38] sm:$0xff]  }
  0x15   : > { %v925_v21 = vld [vmem:[%s981_s24 + $0x70] sm:$0xff]   ;;  %v926_v23 = vld [vmem:[%s981_s24 + $0x78] sm:$0xff]  }
  0x17   : > { %840 = vmatpush3.bf16.msra.mxu0 %v907_v5  ;;  %891 = vmatpush3.bf16.msra.mxu1 %v907_v5 }
  0x18   : > { %841 = vmatprep.subr.bf16.mxu0 %v908_v6  ;;  %884 = vmatprep.subr.bf16.mxu1 %v908_v6 }
  0x1b   : > { %842 = vmatpush3.bf16.msra.mxu0 %v908_v6  ;;  %892 = vmatpush3.bf16.msra.mxu1 %v908_v6 }
  0x1c   : > { %843 = vmatprep.subr.bf16.mxu0 %v909_v8  ;;  %885 = vmatprep.subr.bf16.mxu1 %v909_v8 }
  0x1f   : > { %844 = vmatpush3.bf16.msra.mxu0 %v909_v8  ;;  %893 = vmatpush3.bf16.msra.mxu1 %v909_v8 }
  0x20   : > { %845 = vmatprep.subr.bf16.mxu0 %v910_v9  ;;  %886 = vmatprep.subr.bf16.mxu1 %v910_v9 }
  0x23   : > { %846 = vmatpush3.bf16.msra.mxu0 %v910_v9  ;;  %894 = vmatpush3.bf16.msra.mxu1 %v910_v9 }
  0x26   : > { %848 = vmatmul.mubr.bf16.vlgmr.msra.gmra.mrb[0].mxu0 %v912_v10  ;;  %864 = vmatmul.mubr.bf16.vlgmr.msra.gmra.mrb[0].mxu1 %v920_v11 }
  0x27   : > { %851 = vmatprep.mubr.bf16.mxu0 %v913_v12  ;;  %867 = vmatprep.mubr.bf16.mxu1 %v921_v13 }
  0x2e   : > { %852 = vmatmul.mubr.bf16.gmra.mrb[4].mxu0 %v914_v14  ;;  %868 = vmatmul.mubr.bf16.gmra.mrb[4].mxu1 %v922_v15 }
  0x2f   : > { %855 = vmatprep.mubr.bf16.mxu0 %v915_v16  ;;  %871 = vmatprep.mubr.bf16.mxu1 %v923_v17 }
  0x36   : > { %856 = vmatmul.mubr.bf16.gmra.mrb[8].mxu0 %v916_v18  ;;  %872 = vmatmul.mubr.bf16.gmra.mrb[8].mxu1 %v924_v19 }
  0x37   : > { %859 = vmatprep.mubr.bf16.mxu0 %v917_v20  ;;  %875 = vmatprep.mubr.bf16.mxu1 %v925_v21 }
  0x3e   : > { %860 = vmatmul.mubr.bf16.gmra.mrb[12].mxu0 %v918_v22  ;;  %876 = vmatmul.mubr.bf16.gmra.mrb[12].mxu1 %v926_v23 }
  0xf9   : > { %v849_v24 = vpop.f32.mrb[0].mxu0  ;;  %v1020_v25 = vpop.f32.mrb[0].mxu1 }
  0xfa   : > { %541 = vst [vmem:[%s1018_s11 + $0x10] sm:$0xff] %v849_v24  ;;  %v412_v26 = vpop.f32.mrb[1].mxu0  ;;  %557 = vst [vmem:[%s1018_s11 + $0x90] sm:$0xff] %v1020_v25  ;;  %v1025_v27 = vpop.f32.mrb[1].mxu1  ;;  %v610_v35 = vmul.f32 %v849_v24, %v849_v24 }
  0xfb   : > { %539 = vst [vmem:[%s1018_s11] sm:$0xff] %v412_v26  ;;  %v850_v28 = vpop.f32.mrb[2].mxu0  ;;  %555 = vst [vmem:[%s1018_s11 + $0x80] sm:$0xff] %v1025_v27  ;;  %v1030_v29 = vpop.f32.mrb[2].mxu1  ;;  %v608_v32 = vmul.f32 %v412_v26, %v412_v26 }
  0xfc   : > { %542 = vst [vmem:[%s1018_s11 + $0x18] sm:$0xff] %v850_v28  ;;  %v415_v30 = vpop.f32.mrb[3].mxu0  ;;  %558 = vst [vmem:[%s1018_s11 + $0x98] sm:$0xff] %v1030_v29  ;;  %v1035_v31 = vpop.f32.mrb[3].mxu1  ;;  %v611_v38 = vmul.f32 %v850_v28, %v850_v28 }
  0xfd   : > { %540 = vst [vmem:[%s1018_s11 + $0x8] sm:$0xff] %v415_v30  ;;  %v571_v33 = vadd.f32 %v415_v30, %v412_v26  ;;  %v609_v34 = vmul.f32 %v415_v30, %v415_v30  ;;  %556 = vst [vmem:[%s1018_s11 + $0x88] sm:$0xff] %v1035_v31 }
  0xff   : > { %v572_v36 = vadd.f32 %v849_v24, %v571_v33  ;;  %v640_v37 = vadd.f32 %v609_v34, %v608_v32 }
 0x101   : > { %v641_v39 = vadd.f32 %v640_v37, %v610_v35  ;;  %v853_v40 = vpop.f32.mrb[4].mxu0  ;;  %v573_v41 = vadd.f32 %v850_v28, %v572_v36  ;;  %v1040_v42 = vpop.f32.mrb[4].mxu1 }
 0x102   : > { %545 = vst [vmem:[%s1018_s11 + $0x30] sm:$0xff] %v853_v40  ;;  %v428_v43 = vpop.f32.mrb[5].mxu0  ;;  %561 = vst [vmem:[%s1018_s11 + $0xb0] sm:$0xff] %v1040_v42  ;;  %v1045_v44 = vpop.f32.mrb[5].mxu1  ;;  %v614_v55 = vmul.f32 %v853_v40, %v853_v40 }
 0x103   : > { %543 = vst [vmem:[%s1018_s11 + $0x20] sm:$0xff] %v428_v43  ;;  %v574_v45 = vadd.f32 %v573_v41, %v428_v43  ;;  %v612_v46 = vmul.f32 %v428_v43, %v428_v43  ;;  %v642_v47 = vadd.f32 %v641_v39, %v611_v38  ;;  %v854_v48 = vpop.f32.mrb[6].mxu0  ;;  %559 = vst [vmem:[%s1018_s11 + $0xa0] sm:$0xff] %v1045_v44  ;;  %v1050_v49 = vpop.f32.mrb[6].mxu1 }
 0x104   : > { %546 = vst [vmem:[%s1018_s11 + $0x38] sm:$0xff] %v854_v48  ;;  %v431_v50 = vpop.f32.mrb[7].mxu0  ;;  %562 = vst [vmem:[%s1018_s11 + $0xb8] sm:$0xff] %v1050_v49  ;;  %v1055_v51 = vpop.f32.mrb[7].mxu1  ;;  %v615_v58 = vmul.f32 %v854_v48, %v854_v48  ;;  %v624_v41 = vmul.f32 %v1025_v27, %v1025_v27 }
 0x105   : > { %v643_v52 = vadd.f32 %v642_v47, %v612_v46  ;;  %544 = vst [vmem:[%s1018_s11 + $0x28] sm:$0xff] %v431_v50  ;;  %v575_v53 = vadd.f32 %v574_v45, %v431_v50  ;;  %v613_v54 = vmul.f32 %v431_v50, %v431_v50  ;;  %560 = vst [vmem:[%s1018_s11 + $0xa8] sm:$0xff] %v1055_v51 }
 0x106   : > { %v626_v50 = vmul.f32 %v1020_v25, %v1020_v25 }
 0x107   : > { %v576_v56 = vadd.f32 %v853_v40, %v575_v53  ;;  %v644_v57 = vadd.f32 %v643_v52, %v613_v54  ;;  %v627_v54 = vmul.f32 %v1030_v29, %v1030_v29 }
 0x109   : > { %v645_v59 = vadd.f32 %v644_v57, %v614_v55  ;;  %v857_v60 = vpop.f32.mrb[8].mxu0  ;;  %v577_v61 = vadd.f32 %v854_v48, %v576_v56  ;;  %v1060_v62 = vpop.f32.mrb[8].mxu1  ;;  %v625_v48 = vmul.f32 %v1035_v31, %v1035_v31 }
 0x10a   : > { %549 = vst [vmem:[%s1018_s11 + $0x50] sm:$0xff] %v857_v60  ;;  %v444_v63 = vpop.f32.mrb[9].mxu0  ;;  %565 = vst [vmem:[%s1018_s11 + $0xd0] sm:$0xff] %v1060_v62  ;;  %v1065_v0 = vpop.f32.mrb[9].mxu1  ;;  %v618_v11 = vmul.f32 %v857_v60, %v857_v60 }
 0x10b   : > { %547 = vst [vmem:[%s1018_s11 + $0x40] sm:$0xff] %v444_v63  ;;  %v578_v1 = vadd.f32 %v577_v61, %v444_v63  ;;  %v616_v2 = vmul.f32 %v444_v63, %v444_v63  ;;  %v646_v3 = vadd.f32 %v645_v59, %v615_v58  ;;  %v858_v4 = vpop.f32.mrb[10].mxu0  ;;  %563 = vst [vmem:[%s1018_s11 + $0xc0] sm:$0xff] %v1065_v0  ;;  %v1070_v5 = vpop.f32.mrb[10].mxu1 }
 0x10c   : > { %550 = vst [vmem:[%s1018_s11 + $0x58] sm:$0xff] %v858_v4  ;;  %v447_v6 = vpop.f32.mrb[11].mxu0  ;;  %566 = vst [vmem:[%s1018_s11 + $0xd8] sm:$0xff] %v1070_v5  ;;  %v1075_v7 = vpop.f32.mrb[11].mxu1  ;;  %v619_v14 = vmul.f32 %v858_v4, %v858_v4 }
 0x10d   : > { %v647_v8 = vadd.f32 %v646_v3, %v616_v2  ;;  %548 = vst [vmem:[%s1018_s11 + $0x48] sm:$0xff] %v447_v6  ;;  %v579_v9 = vadd.f32 %v578_v1, %v447_v6  ;;  %v617_v10 = vmul.f32 %v447_v6, %v447_v6  ;;  %564 = vst [vmem:[%s1018_s11 + $0xc8] sm:$0xff] %v1075_v7 }
 0x10f   : > { %v580_v12 = vadd.f32 %v857_v60, %v579_v9  ;;  %v648_v13 = vadd.f32 %v647_v8, %v617_v10  ;;  %v629_v60 = vmul.f32 %v1055_v51, %v1055_v51  ;;  %v633_v8 = vmul.f32 %v1075_v7, %v1075_v7 }
 0x111   : > { %v649_v15 = vadd.f32 %v648_v13, %v618_v11  ;;  %v861_v16 = vpop.f32.mrb[12].mxu0  ;;  %v581_v17 = vadd.f32 %v858_v4, %v580_v12  ;;  %v1080_v18 = vpop.f32.mrb[12].mxu1 }
 0x112   : > { %553 = vst [vmem:[%s1018_s11 + $0x70] sm:$0xff] %v861_v16  ;;  %v460_v19 = vpop.f32.mrb[13].mxu0  ;;  %569 = vst [vmem:[%s1018_s11 + $0xf0] sm:$0xff] %v1080_v18  ;;  %v524_v20 = vpop.f32.mrb[13].mxu1  ;;  %v622_v35 = vmul.f32 %v861_v16, %v861_v16 }
 0x113   : > { %551 = vst [vmem:[%s1018_s11 + $0x60] sm:$0xff] %v460_v19  ;;  %v582_v21 = vadd.f32 %v581_v17, %v460_v19  ;;  %v620_v22 = vmul.f32 %v460_v19, %v460_v19  ;;  %v650_v23 = vadd.f32 %v649_v15, %v619_v14  ;;  %v862_v24 = vpop.f32.mrb[14].mxu0  ;;  %567 = vst [vmem:[%s1018_s11 + $0xe0] sm:$0xff] %v524_v20  ;;  %v878_v26 = vpop.f32.mrb[14].mxu1 }
 0x114   : > { %554 = vst [vmem:[%s1018_s11 + $0x78] sm:$0xff] %v862_v24  ;;  %v463_v28 = vpop.f32.mrb[15].mxu0  ;;  %570 = vst [vmem:[%s1018_s11 + $0xf8] sm:$0xff] %v878_v26  ;;  %v527_v30 = vpop.f32.mrb[15].mxu1  ;;  %v623_v38 = vmul.f32 %v862_v24, %v862_v24  ;;  %v636_v12 = vmul.f32 %v524_v20, %v524_v20  ;;  %v638_v17 = vmul.f32 %v1080_v18, %v1080_v18 }
 0x115   : > { %v651_v32 = vadd.f32 %v650_v23, %v620_v22  ;;  %552 = vst [vmem:[%s1018_s11 + $0x68] sm:$0xff] %v463_v28  ;;  %v583_v33 = vadd.f32 %v582_v21, %v463_v28  ;;  %v621_v34 = vmul.f32 %v463_v28, %v463_v28  ;;  %568 = vst [vmem:[%s1018_s11 + $0xe8] sm:$0xff] %v527_v30 }
 0x116   : > { %v639_v21 = vmul.f32 %v878_v26, %v878_v26 }
 0x117   : > { %v584_v36 = vadd.f32 %v861_v16, %v583_v33  ;;  %v652_v37 = vadd.f32 %v651_v32, %v621_v34 }
 0x119   : > { %v653_v39 = vadd.f32 %v652_v37, %v622_v35  ;;  %v585_v40 = vadd.f32 %v862_v24, %v584_v36 }
 0x11b   : > { %v586_v43 = vadd.f32 %v585_v40, %v1025_v27  ;;  %v654_v45 = vadd.f32 %v653_v39, %v623_v38  ;;  %v628_v27 = vmul.f32 %v1045_v44, %v1045_v44 }
 0x11d   : > { %v655_v46 = vadd.f32 %v654_v45, %v624_v41  ;;  %v587_v47 = vadd.f32 %v586_v43, %v1035_v31 }
 0x11f   : > { %v588_v52 = vadd.f32 %v1020_v25, %v587_v47  ;;  %v656_v53 = vadd.f32 %v655_v46, %v625_v48  ;;  %v630_v25 = vmul.f32 %v1040_v42, %v1040_v42 }
 0x121   : > { %v657_v55 = vadd.f32 %v656_v53, %v626_v50  ;;  %v589_v56 = vadd.f32 %v1030_v29, %v588_v52  ;;  %v631_v29 = vmul.f32 %v1050_v49, %v1050_v49 }
 0x123   : > { %v590_v57 = vadd.f32 %v589_v56, %v1045_v44  ;;  %v658_v58 = vadd.f32 %v657_v55, %v627_v54  ;;  %v632_v44 = vmul.f32 %v1065_v0, %v1065_v0 }
 0x125   : > { %v659_v59 = vadd.f32 %v658_v58, %v628_v27  ;;  %v591_v31 = vadd.f32 %v590_v57, %v1055_v51 }
 0x127   : > { %v592_v61 = vadd.f32 %v1040_v42, %v591_v31  ;;  %v660_v63 = vadd.f32 %v659_v59, %v629_v60  ;;  %v634_v42 = vmul.f32 %v1060_v62, %v1060_v62 }
 0x129   : > { %v661_v1 = vadd.f32 %v660_v63, %v630_v25  ;;  %v593_v2 = vadd.f32 %v1050_v49, %v592_v61  ;;  %v635_v49 = vmul.f32 %v1070_v5, %v1070_v5 }
 0x12b   : > { %v594_v3 = vadd.f32 %v593_v2, %v1065_v0  ;;  %v662_v4 = vadd.f32 %v661_v1, %v631_v29 }
 0x12d   : > { %v663_v6 = vadd.f32 %v662_v4, %v632_v44  ;;  %v595_v51 = vadd.f32 %v594_v3, %v1075_v7  ;;  %v637_v7 = vmul.f32 %v527_v30, %v527_v30 }
 0x12f   : > { %v596_v9 = vadd.f32 %v1060_v62, %v595_v51  ;;  %v664_v10 = vadd.f32 %v663_v6, %v633_v8 }
 0x131   : > { %v665_v11 = vadd.f32 %v664_v10, %v634_v42  ;;  %v597_v0 = vadd.f32 %v1070_v5, %v596_v9 }
 0x133   : > { %v598_v13 = vadd.f32 %v597_v0, %v524_v20  ;;  %v666_v14 = vadd.f32 %v665_v11, %v635_v49  ;;  %v677_v20 = vlaneseq }
 0x135   : > { %v667_v15 = vadd.f32 %v666_v14, %v636_v12  ;;  %v599_v16 = vadd.f32 %v598_v13, %v527_v30  ;;  %v678_v36 = vshrl.u32 %v677_v20, 7 }
 0x137   : > { %v600_v62 = vadd.f32 %v1080_v18, %v599_v16  ;;  %v668_v19 = vadd.f32 %v667_v15, %v637_v7  ;;  %vm680_vm0 = vcmp.eq.s32.totalorder %v678_v36, 1  ;;  %vm679_vm1 = vcmp.eq.s32.totalorder %v678_v36, 0 }
 0x139   : > { %v601_v22 = vadd.f32 %v878_v26, %v600_v62  ;;  %v669_v23 = vadd.f32 %v668_v19, %v638_v17 }
 0x13b   : > { %v602_v24 = vrot.slane %v601_v22, 4  ;;  %v670_v28 = vadd.f32 %v669_v23, %v639_v21 }
 0x13d   : > { %v603_v5 = vadd.f32 %v602_v24, %v601_v22  ;;  %v671_v32 = vrot.slane %v670_v28, 4 }
 0x13f   : > { %v604_v33 = vrot.slane %v603_v5, 2  ;;  %v672_v34 = vadd.f32 %v671_v32, %v670_v28 }
 0x141   : > { %v605_v35 = vadd.f32 %v604_v33, %v603_v5  ;;  %v673_v30 = vrot.slane %v672_v34, 2 }
 0x143   : > { %v674_v37 = vadd.f32 %v673_v30, %v672_v34  ;;  %v606_v38 = vrot.slane %v605_v35, 1 }
 0x145   : > { %v675_v18 = vrot.slane %v674_v37, 1  ;;  %v607_v26 = vadd.f32 %v606_v38, %v605_v35 }
 0x147   : > { %v676_v39 = vadd.f32 %v675_v18, %v674_v37 }
 0x149   : > { %v681_v40 = vsel %vm680_vm0, %v676_v39, 0.0 }
 0x14a   : > { %v682_v41 = vsel %vm679_vm1, %v607_v26, %v681_v40 }
 0x14b   : > { %683 = vst [vmem:[%s184_s17] sm:$0xff] %v682_v41 }
 0x14c PF: > { %s14_s12 = sadd.s32 1, %s933_s12  }
 0x14d   : > { %p11_p5 = scmp.ge.s32.totalorder %s14_s12, 4  }
 0x14f   :  { %13 = sbr.rel (!%p11_p5) target bundleno = 1 (0x1), region = 70 }

// kernel: _lambda_.52
= control target key start
LH: loop header
LB: loop body
LE: loop exit
PB: predicated region body
PF: predicated region fallthrough
CT: control target
= control target key end

     0   :  { %s607_s12 = smov 0   ;;  %s666_s0 = inlined_call_operand.vmem [shape: bf16[128,128], index: 0, kind: input, shape index: {}]   ;;  %s667_s1 = inlined_call_operand.vmem [shape: bf16[128,128], index: 1, kind: input, shape index: {}]   ;;  %s668_s2 = inlined_call_operand.vmem [shape: f32[128,128], index: 2, kind: output, shape index: {0}]   ;;  %s669_s3 = inlined_call_operand.vmem [shape: f32[2,8,128], index: 3, kind: output, shape index: {1}]  }
   0x1 LB: > { %s613_s13 = sadd.s32 4294967295, %s585_s12   ;;  %p487_p0 = scmp.ge.s32.totalorder %s585_s12, 1  ;;  %s585_s12 = sphi %s607_s12, %s14_s12  }
   0x2   : > { %p141_p1 = scmp.lt.s32.totalorder %s585_s12, 3 }
   0x4   : > { %p142_p2 = pnand %p487_p0, %p141_p1 }
   0x5   : > { %v567_v0 = vld [vmem:[%s667_s1] sm:$0xff] (!%p142_p2)   ;;  %s488_s16 = sshll.u32 (!%p142_p2), %s613_s13, 3  ;;  %v568_v1 = vld [vmem:[%s667_s1 + $0x8] sm:$0xff] (!%p142_p2)   ;;  %v569_v2 = vld [vmem:[%s667_s1 + $0x10] sm:$0xff] (!%p142_p2)   ;;  %p181_p4 = scmp.lt.s32.totalorder (!%p142_p2), %s613_s13, 1  ;;  %v389_v45 = vlaneseq (!%p142_p2) }
   0x6   : > { %145 = sbr.rel (%p142_p2) target bundleno = 284 (0x11c), region = 28  ;;  %p170_p3 = scmp.lt.s32.totalorder (!%p142_p2), %s488_s16, 15  ;;  %519 = vmatprep.subr.bf16.mxu0 (!%p142_p2), %v567_v0  ;;  %543 = vmatprep.subr.bf16.mxu1 (!%p142_p2), %v567_v0  ;;  %v570_v3 = vld [vmem:[%s667_s1 + $0x18] sm:$0xff] (!%p142_p2)   ;;  %v571_v6 = vld [vmem:[%s667_s1 + $0x20] sm:$0xff] (!%p142_p2)   ;;  %v572_v7 = vld [vmem:[%s667_s1 + $0x28] sm:$0xff] (!%p142_p2)  }
   0x7   : > { %520 = vmatpush3.bf16.msra.mxu0 (!%p142_p2), %v567_v0  ;;  %551 = vmatpush3.bf16.msra.mxu1 (!%p142_p2), %v567_v0  ;;  %v573_v8 = vld [vmem:[%s667_s1 + $0x30] sm:$0xff] (!%p142_p2)   ;;  %v574_v9 = vld [vmem:[%s667_s1 + $0x38] sm:$0xff] (!%p142_p2)   ;;  %v390_v50 = vshrl.u32 (!%p142_p2), %v389_v45, 7 }
   0x8   : > { %521 = vmatprep.subr.bf16.mxu0 (!%p142_p2), %v568_v1  ;;  %544 = vmatprep.subr.bf16.mxu1 (!%p142_p2), %v568_v1 }
   0x9   : > { %vm392_vm0 = vcmp.eq.s32.totalorder (!%p142_p2), %v390_v50, 1  ;;  %vm391_vm1 = vcmp.eq.s32.totalorder (!%p142_p2), %v390_v50, 0 }
   0xb   : > { %522 = vmatpush3.bf16.msra.mxu0 (!%p142_p2), %v568_v1  ;;  %552 = vmatpush3.bf16.msra.mxu1 (!%p142_p2), %v568_v1 }
   0xc   : > { %523 = vmatprep.subr.bf16.mxu0 (!%p142_p2), %v569_v2  ;;  %545 = vmatprep.subr.bf16.mxu1 (!%p142_p2), %v569_v2 }
   0xd   : > { %s671_s16 = smov (!%p170_p3, %s488_s16), 15  ;;  %s673_s13 = smov (!%p181_p4, %s613_s13), 1 }
   0xe   : > { %s489_s21 = sshll.u32 %s671_s16, 2  ;;  %s491_s8 = sshll.u32 %s671_s16, 3 }
   0xf   : > { %s633_s24 = scalar_lea.vmem %s666_s0, %s489_s21  ;;  %524 = vmatpush3.bf16.msra.mxu0 %v569_v2  ;;  %553 = vmatpush3.bf16.msra.mxu1 %v569_v2  ;;  %s179_s11 = scalar_lea.vmem %s668_s2, %s491_s8 }
  0x10   : > { %v575_v4 = vld [vmem:[%s633_s24] sm:$0xff]   ;;  %v577_v5 = vld [vmem:[%s633_s24 + $0x10] sm:$0xff]   ;;  %525 = vmatprep.subr.bf16.mxu0 %v570_v3  ;;  %546 = vmatprep.subr.bf16.mxu1 %v570_v3  ;;  %v576_v10 = vld [vmem:[%s633_s24 + $0x8] sm:$0xff]   ;;  %s492_s14 = sshll.u32 %s673_s13, 3 }
  0x11   : > { %535 = vmatprep.mubr.bf16.mxu0 %v575_v4  ;;  %539 = vmatprep.mubr.bf16.mxu1 %v577_v5  ;;  %v578_v11 = vld [vmem:[%s633_s24 + $0x18] sm:$0xff]   ;;  %s184_s17 = scalar_lea.vmem %s669_s3, %s492_s14 }
  0x13   : > { %526 = vmatpush3.bf16.msra.mxu0 %v570_v3  ;;  %554 = vmatpush3.bf16.msra.mxu1 %v570_v3 }
  0x14   : > { %527 = vmatprep.subr.bf16.mxu0 %v571_v6  ;;  %547 = vmatprep.subr.bf16.mxu1 %v571_v6 }
  0x17   : > { %528 = vmatpush3.bf16.msra.mxu0 %v571_v6  ;;  %555 = vmatpush3.bf16.msra.mxu1 %v571_v6 }
  0x18   : > { %529 = vmatprep.subr.bf16.mxu0 %v572_v7  ;;  %548 = vmatprep.subr.bf16.mxu1 %v572_v7 }
  0x1b   : > { %530 = vmatpush3.bf16.msra.mxu0 %v572_v7  ;;  %556 = vmatpush3.bf16.msra.mxu1 %v572_v7 }
  0x1c   : > { %531 = vmatprep.subr.bf16.mxu0 %v573_v8  ;;  %549 = vmatprep.subr.bf16.mxu1 %v573_v8 }
  0x1f   : > { %532 = vmatpush3.bf16.msra.mxu0 %v573_v8  ;;  %557 = vmatpush3.bf16.msra.mxu1 %v573_v8 }
  0x20   : > { %533 = vmatprep.subr.bf16.mxu0 %v574_v9  ;;  %550 = vmatprep.subr.bf16.mxu1 %v574_v9 }
  0x23   : > { %534 = vmatpush3.bf16.msra.mxu0 %v574_v9  ;;  %558 = vmatpush3.bf16.msra.mxu1 %v574_v9 }
  0x26   : > { %536 = vmatmul.mubr.bf16.vlgmr.msra.gmra.mrb[0].mxu0 %v576_v10  ;;  %540 = vmatmul.mubr.bf16.vlgmr.msra.gmra.mrb[0].mxu1 %v578_v11 }
  0xf9   : > { %v537_v12 = vpop.f32.mrb[0].mxu0  ;;  %v541_v13 = vpop.f32.mrb[0].mxu1 }
  0xfa   : > { %349 = vst [vmem:[%s179_s11 + $0x10] sm:$0xff] %v537_v12  ;;  %v316_v14 = vpop.f32.mrb[1].mxu0  ;;  %353 = vst [vmem:[%s179_s11 + $0x30] sm:$0xff] %v541_v13  ;;  %v332_v15 = vpop.f32.mrb[1].mxu1  ;;  %v370_v23 = vmul.f32 %v537_v12, %v537_v12  ;;  %v374_v35 = vmul.f32 %v541_v13, %v541_v13 }
  0xfb   : > { %347 = vst [vmem:[%s179_s11] sm:$0xff] %v316_v14  ;;  %v538_v16 = vpop.f32.mrb[2].mxu0  ;;  %351 = vst [vmem:[%s179_s11 + $0x20] sm:$0xff] %v332_v15  ;;  %v542_v17 = vpop.f32.mrb[2].mxu1  ;;  %v368_v20 = vmul.f32 %v316_v14, %v316_v14  ;;  %v372_v29 = vmul.f32 %v332_v15, %v332_v15 }
  0xfc   : > { %350 = vst [vmem:[%s179_s11 + $0x18] sm:$0xff] %v538_v16  ;;  %v319_v18 = vpop.f32.mrb[3].mxu0  ;;  %354 = vst [vmem:[%s179_s11 + $0x38] sm:$0xff] %v542_v17  ;;  %v335_v19 = vpop.f32.mrb[3].mxu1  ;;  %v371_v26 = vmul.f32 %v538_v16, %v538_v16  ;;  %v375_v38 = vmul.f32 %v542_v17, %v542_v17 }
  0xfd   : > { %348 = vst [vmem:[%s179_s11 + $0x8] sm:$0xff] %v319_v18  ;;  %v355_v21 = vadd.f32 %v319_v18, %v316_v14  ;;  %v369_v22 = vmul.f32 %v319_v18, %v319_v18  ;;  %352 = vst [vmem:[%s179_s11 + $0x28] sm:$0xff] %v335_v19  ;;  %v373_v34 = vmul.f32 %v335_v19, %v335_v19 }
  0xff   : > { %v356_v24 = vadd.f32 %v537_v12, %v355_v21  ;;  %v376_v25 = vadd.f32 %v369_v22, %v368_v20 }
 0x101   : > { %v377_v27 = vadd.f32 %v376_v25, %v370_v23  ;;  %v357_v28 = vadd.f32 %v538_v16, %v356_v24 }
 0x103   : > { %v358_v30 = vadd.f32 %v357_v28, %v332_v15  ;;  %v378_v31 = vadd.f32 %v377_v27, %v371_v26 }
 0x105   : > { %v379_v32 = vadd.f32 %v378_v31, %v372_v29  ;;  %v359_v33 = vadd.f32 %v358_v30, %v335_v19 }
 0x107   : > { %v360_v36 = vadd.f32 %v541_v13, %v359_v33  ;;  %v380_v37 = vadd.f32 %v379_v32, %v373_v34 }
 0x109   : > { %v361_v39 = vadd.f32 %v542_v17, %v360_v36  ;;  %v381_v40 = vadd.f32 %v380_v37, %v374_v35 }
 0x10b   : > { %v362_v41 = vrot.slane %v361_v39, 4  ;;  %v382_v42 = vadd.f32 %v381_v40, %v375_v38 }
 0x10d   : > { %v363_v43 = vadd.f32 %v362_v41, %v361_v39  ;;  %v383_v44 = vrot.slane %v382_v42, 4 }
 0x10f   : > { %v364_v46 = vrot.slane %v363_v43, 2  ;;  %v384_v47 = vadd.f32 %v383_v44, %v382_v42 }
 0x111   : > { %v365_v48 = vadd.f32 %v364_v46, %v363_v43  ;;  %v385_v49 = vrot.slane %v384_v47, 2 }
 0x113   : > { %v386_v51 = vadd.f32 %v385_v49, %v384_v47  ;;  %v366_v52 = vrot.slane %v365_v48, 1 }
 0x115   : > { %v387_v53 = vrot.slane %v386_v51, 1  ;;  %v367_v55 = vadd.f32 %v366_v52, %v365_v48 }
 0x117   : > { %v388_v54 = vadd.f32 %v387_v53, %v386_v51 }
 0x119   : > { %v393_v56 = vsel %vm392_vm0, %v388_v54, 0.0 }
 0x11a   : > { %v394_v57 = vsel %vm391_vm1, %v367_v55, %v393_v56 }
 0x11b   : > { %395 = vst [vmem:[%s184_s17] sm:$0xff] %v394_v57 }
 0x11c PF: > { %s14_s12 = sadd.s32 1, %s585_s12  }
 0x11d   : > { %p11_p5 = scmp.ge.s32.totalorder %s14_s12, 4  }
 0x11f   :  { %13 = sbr.rel (!%p11_p5) target bundleno = 1 (0x1), region = 70 }

// kernel: _lambda_.53
= control target key start
LH: loop header
LB: loop body
LE: loop exit
PB: predicated region body
PF: predicated region fallthrough
CT: control target
= control target key end

     0   :  { %s420_s12 = smov 0   ;;  %s447_s0 = inlined_call_operand.vmem [shape: f32[128,128], index: 0, kind: input, shape index: {}]   ;;  %s448_s1 = inlined_call_operand.vmem [shape: f32[1,128], index: 1, kind: input, shape index: {}]   ;;  %s449_s2 = inlined_call_operand.vmem [shape: f32[1,128], index: 2, kind: input, shape index: {}]   ;;  %s450_s3 = inlined_call_operand.vmem [shape: bf16[128,128], index: 3, kind: output, shape index: {}]  }
   0x1 LB: > { %s332_s13 = sadd.s32 4294967295, %s398_s12   ;;  %p336_p0 = scmp.ge.s32.totalorder %s398_s12, 1  ;;  %s398_s12 = sphi %s420_s12, %s13_s12  }
   0x2   : > { %p138_p1 = scmp.lt.s32.totalorder %s398_s12, 3 }
   0x4   : > { %p139_p2 = pnand %p336_p0, %p138_p1 }
   0x5   : > { %s337_s14 = sshll.u32 (!%p139_p2), %s332_s13, 3  ;;  %v341_v0 = vld [vmem:[%s448_s1] ss:$0 sm:$0xff] (!%p139_p2) }
   0x6   : > { %142 = sbr.rel (%p139_p2) target bundleno = 34 (0x22), region = 32  ;;  %p163_p3 = scmp.lt.s32.totalorder (!%p139_p2), %s337_s14, 15  ;;  %v342_v1 = vld [vmem:[%s449_s2] ss:$0 sm:$0xff] (!%p139_p2) }
   0xd   : > { %s452_s14 = smov (!%p163_p3, %s337_s14), 15 }
   0xe   : > { %s338_s15 = sshll.u32 %s452_s14, 3  ;;  %s340_s23 = sshll.u32 %s452_s14, 2 }
   0xf   : > { %s166_s20 = scalar_lea.vmem %s447_s0, %s338_s15  ;;  %s172_s26 = scalar_lea.vmem %s450_s3, %s340_s23 }
  0x10   : > { %v174_v2 = vld [vmem:[%s166_s20] sm:$0xff]  ;;  %v175_v3 = vld [vmem:[%s166_s20 + $0x8] sm:$0xff]  ;;  %v176_v4 = vld [vmem:[%s166_s20 + $0x10] sm:$0xff] }
  0x11   : > { %v189_v5 = vmul.f32 %v341_v0, %v174_v2  ;;  %v190_v6 = vmul.f32 %v341_v0, %v175_v3  ;;  %v177_v7 = vld [vmem:[%s166_s20 + $0x18] sm:$0xff]  ;;  %v191_v8 = vmul.f32 %v341_v0, %v176_v4  ;;  %v178_v9 = vld [vmem:[%s166_s20 + $0x20] sm:$0xff]  ;;  %v179_v10 = vld [vmem:[%s166_s20 + $0x28] sm:$0xff] }
  0x12   : > { %v192_v11 = vmul.f32 %v341_v0, %v177_v7  ;;  %v193_v12 = vmul.f32 %v341_v0, %v178_v9  ;;  %v194_v13 = vmul.f32 %v341_v0, %v179_v10  ;;  %v180_v14 = vld [vmem:[%s166_s20 + $0x30] sm:$0xff]  ;;  %v181_v15 = vld [vmem:[%s166_s20 + $0x38] sm:$0xff] }
  0x13   : > { %v204_v16 = vadd.f32 %v342_v1, %v189_v5  ;;  %v205_v17 = vadd.f32 %v342_v1, %v190_v6  ;;  %v206_v18 = vadd.f32 %v342_v1, %v191_v8  ;;  %v195_v19 = vmul.f32 %v341_v0, %v180_v14 }
  0x14   : > { %v207_v20 = vadd.f32 %v342_v1, %v192_v11  ;;  %v208_v21 = vadd.f32 %v342_v1, %v193_v12  ;;  %v209_v22 = vadd.f32 %v342_v1, %v194_v13  ;;  %v196_v23 = vmul.f32 %v341_v0, %v181_v15 }
  0x15   : > { %vm212_vm0 = vcmp.ge.f32.partialorder %v204_v16, 0.0  ;;  %vm213_vm1 = vcmp.ge.f32.partialorder %v205_v17, 0.0  ;;  %v220_v24 = vmul.f32 0.0, %v204_v16  ;;  %v221_v25 = vmul.f32 0.0, %v205_v17 }
  0x16   : > { %vm214_vm2 = vcmp.ge.f32.partialorder %v206_v18, 0.0  ;;  %vm215_vm3 = vcmp.ge.f32.partialorder %v207_v20, 0.0  ;;  %v222_v26 = vmul.f32 0.0, %v206_v18  ;;  %v223_v27 = vmul.f32 0.0, %v207_v20 }
  0x17   : > { %v228_v28 = vsel %vm212_vm0, %v204_v16, %v220_v24  ;;  %v229_v29 = vsel %vm213_vm1, %v205_v17, %v221_v25  ;;  %vm216_vm4 = vcmp.ge.f32.partialorder %v208_v21, 0.0  ;;  %vm217_vm5 = vcmp.ge.f32.partialorder %v209_v22, 0.0 }
  0x18   : > { %v364_v30 = vpack.c.bf16 %v229_v29, %v228_v28  ;;  %v230_v31 = vsel %vm214_vm2, %v206_v18, %v222_v26  ;;  %v231_v32 = vsel %vm215_vm3, %v207_v20, %v223_v27  ;;  %v224_v33 = vmul.f32 0.0, %v208_v21 }
  0x19   : > { %v369_v34 = vpack.c.bf16 %v231_v32, %v230_v31  ;;  %v225_v35 = vmul.f32 0.0, %v209_v22  ;;  %v210_v36 = vadd.f32 %v342_v1, %v195_v19  ;;  %v211_v37 = vadd.f32 %v342_v1, %v196_v23 }
  0x1a   : > { %365 = vst [vmem:[%s172_s26] sm:$0xff] %v364_v30   ;;  %v232_v38 = vsel %vm216_vm4, %v208_v21, %v224_v33 }
  0x1b   : > { %381 = vst [vmem:[%s172_s26 + $0x8] sm:$0xff] %v369_v34   ;;  %v233_v39 = vsel %vm217_vm5, %v209_v22, %v225_v35  ;;  %vm218_vm6 = vcmp.ge.f32.partialorder %v210_v36, 0.0  ;;  %vm219_vm7 = vcmp.ge.f32.partialorder %v211_v37, 0.0  ;;  %v226_v40 = vmul.f32 0.0, %v210_v36 }
  0x1c   : > { %v374_v41 = vpack.c.bf16 %v233_v39, %v232_v38  ;;  %v227_v42 = vmul.f32 0.0, %v211_v37 }
  0x1d   : > { %v234_v43 = vsel %vm218_vm6, %v210_v36, %v226_v40 }
  0x1e   : > { %382 = vst [vmem:[%s172_s26 + $0x10] sm:$0xff] %v374_v41   ;;  %v235_v44 = vsel %vm219_vm7, %v211_v37, %v227_v42 }
  0x1f   : > { %v379_v45 = vpack.c.bf16 %v235_v44, %v234_v43 }
  0x21   : > { %383 = vst [vmem:[%s172_s26 + $0x18] sm:$0xff] %v379_v45  }
  0x22 PF: > { %s13_s12 = sadd.s32 1, %s398_s12  }
  0x23   : > { %p10_p4 = scmp.ge.s32.totalorder %s13_s12, 4  }
  0x25   :  { %12 = sbr.rel (!%p10_p4) target bundleno = 1 (0x1), region = 62 }

// kernel: _lambda_.55
= control target key start
LH: loop header
LB: loop body
LE: loop exit
PB: predicated region body
PF: predicated region fallthrough
CT: control target
= control target key end

     0   :  { %s141_s0 = inlined_call_operand.vmem [shape: f32[32,128], index: 0, kind: input, shape index: {}]   ;;  %s142_s1 = inlined_call_operand.vmem [shape: f32[1,128], index: 1, kind: input, shape index: {}]   ;;  %s143_s2 = inlined_call_operand.vmem [shape: f32[1,128], index: 2, kind: input, shape index: {}]   ;;  %s144_s3 = inlined_call_operand.vmem [shape: bf16[32,128], index: 3, kind: output, shape index: {}]  }
   0x1   :  { %v14_v0 = vld [vmem:[%s141_s0] sm:$0xff]  ;;  %v15_v1 = vld [vmem:[%s141_s0 + $0x8] sm:$0xff]  ;;  %v16_v6 = vld [vmem:[%s141_s0 + $0x10] sm:$0xff] }
   0x2   :  { %v76_v2 = vld [vmem:[%s142_s1] ss:$0 sm:$0xff]  ;;  %v17_v7 = vld [vmem:[%s141_s0 + $0x18] sm:$0xff] }
   0x3   :  { %v25_v3 = vmul.f32 %v76_v2, %v14_v0  ;;  %v26_v4 = vmul.f32 %v76_v2, %v15_v1  ;;  %v77_v5 = vld [vmem:[%s143_s2] ss:$0 sm:$0xff]  ;;  %v27_v8 = vmul.f32 %v76_v2, %v16_v6  ;;  %v28_v9 = vmul.f32 %v76_v2, %v17_v7 }
   0x5   :  { %v36_v10 = vadd.f32 %v77_v5, %v25_v3  ;;  %v37_v11 = vadd.f32 %v77_v5, %v26_v4  ;;  %v38_v12 = vadd.f32 %v77_v5, %v27_v8  ;;  %v39_v13 = vadd.f32 %v77_v5, %v28_v9 }
   0x7   :  { %vm40_vm0 = vcmp.ge.f32.partialorder %v36_v10, 0.0  ;;  %vm41_vm1 = vcmp.ge.f32.partialorder %v37_v11, 0.0  ;;  %v44_v14 = vmul.f32 0.0, %v36_v10  ;;  %v45_v15 = vmul.f32 0.0, %v37_v11 }
   0x8   :  { %vm42_vm2 = vcmp.ge.f32.partialorder %v38_v12, 0.0  ;;  %vm43_vm3 = vcmp.ge.f32.partialorder %v39_v13, 0.0  ;;  %v46_v16 = vmul.f32 0.0, %v38_v12  ;;  %v47_v17 = vmul.f32 0.0, %v39_v13 }
   0x9   :  { %v48_v18 = vsel %vm40_vm0, %v36_v10, %v44_v14  ;;  %v49_v19 = vsel %vm41_vm1, %v37_v11, %v45_v15 }
   0xa   :  { %v89_v20 = vpack.c.bf16 %v49_v19, %v48_v18  ;;  %v50_v21 = vsel %vm42_vm2, %v38_v12, %v46_v16  ;;  %v51_v22 = vsel %vm43_vm3, %v39_v13, %v47_v17 }
   0xb   :  { %v94_v23 = vpack.c.bf16 %v51_v22, %v50_v21 }
   0xc   :  { %90 = vst [vmem:[%s144_s3] sm:$0xff] %v89_v20  }
   0xd   :  { %96 = vst [vmem:[%s144_s3 + $0x8] sm:$0xff] %v94_v23  }

// kernel: _lambda_.54
= control target key start
LH: loop header
LB: loop body
LE: loop exit
PB: predicated region body
PF: predicated region fallthrough
CT: control target
= control target key end

     0   :  { %v169_v27 = vlaneseq  ;;  %s299_s1 = inlined_call_operand.vmem [shape: bf16[128,128], index: 1, kind: input, shape index: {}]   ;;  %s300_s0 = inlined_call_operand.vmem [shape: bf16[32,128], index: 0, kind: input, shape index: {}]   ;;  %s301_s2 = inlined_call_operand.vmem [shape: f32[32,128], index: 2, kind: output, shape index: {0}]   ;;  %s302_s3 = inlined_call_operand.vmem [shape: f32[1,8,128], index: 3, kind: output, shape index: {1}]  }
   0x1   :  { %v224_v0 = vld [vmem:[%s299_s1] sm:$0xff]   ;;  %v225_v1 = vld [vmem:[%s299_s1 + $0x8] sm:$0xff]   ;;  %v226_v2 = vld [vmem:[%s299_s1 + $0x10] sm:$0xff]  }
   0x2   :  { %204 = vmatprep.subr.bf16.mxu0 %v224_v0  ;;  %v227_v3 = vld [vmem:[%s299_s1 + $0x18] sm:$0xff]   ;;  %v232_v4 = vld [vmem:[%s300_s0] sm:$0xff]   ;;  %v229_v6 = vld [vmem:[%s299_s1 + $0x28] sm:$0xff]   ;;  %v170_v32 = vshrl.u32 %v169_v27, 7 }
   0x3   :  { %205 = vmatpush3.bf16.msra.mxu0 %v224_v0  ;;  %220 = vmatprep.mubr.bf16.mxu0 %v232_v4  ;;  %v228_v5 = vld [vmem:[%s299_s1 + $0x20] sm:$0xff]   ;;  %v230_v7 = vld [vmem:[%s299_s1 + $0x30] sm:$0xff]   ;;  %v231_v8 = vld [vmem:[%s299_s1 + $0x38] sm:$0xff]  }
   0x4   :  { %206 = vmatprep.subr.bf16.mxu0 %v225_v1  ;;  %v233_v9 = vld [vmem:[%s300_s0 + $0x8] sm:$0xff]   ;;  %vm172_vm0 = vcmp.eq.s32.totalorder %v170_v32, 1  ;;  %vm171_vm1 = vcmp.eq.s32.totalorder %v170_v32, 0 }
   0x7   :  { %207 = vmatpush3.bf16.msra.mxu0 %v225_v1 }
   0x8   :  { %208 = vmatprep.subr.bf16.mxu0 %v226_v2 }
   0xb   :  { %209 = vmatpush3.bf16.msra.mxu0 %v226_v2 }
   0xc   :  { %210 = vmatprep.subr.bf16.mxu0 %v227_v3 }
   0xf   :  { %211 = vmatpush3.bf16.msra.mxu0 %v227_v3 }
  0x10   :  { %212 = vmatprep.subr.bf16.mxu0 %v228_v5 }
  0x13   :  { %213 = vmatpush3.bf16.msra.mxu0 %v228_v5 }
  0x14   :  { %214 = vmatprep.subr.bf16.mxu0 %v229_v6 }
  0x17   :  { %215 = vmatpush3.bf16.msra.mxu0 %v229_v6 }
  0x18   :  { %216 = vmatprep.subr.bf16.mxu0 %v230_v7 }
  0x1b   :  { %217 = vmatpush3.bf16.msra.mxu0 %v230_v7 }
  0x1c   :  { %218 = vmatprep.subr.bf16.mxu0 %v231_v8 }
  0x1f   :  { %219 = vmatpush3.bf16.msra.mxu0 %v231_v8 }
  0x22   :  { %221 = vmatmul.mubr.bf16.vlgmr.msra.gmra.mrb[0].mxu0 %v233_v9 }
  0xf5   :  { %v222_v10 = vpop.f32.mrb[0].mxu0 }
  0xf6   :  { %145 = vst [vmem:[%s301_s2 + $0x10] sm:$0xff] %v222_v10  ;;  %v128_v11 = vpop.f32.mrb[1].mxu0  ;;  %v158_v17 = vmul.f32 %v222_v10, %v222_v10 }
  0xf7   :  { %143 = vst [vmem:[%s301_s2] sm:$0xff] %v128_v11  ;;  %v223_v12 = vpop.f32.mrb[2].mxu0  ;;  %v156_v14 = vmul.f32 %v128_v11, %v128_v11 }
  0xf8   :  { %146 = vst [vmem:[%s301_s2 + $0x18] sm:$0xff] %v223_v12  ;;  %v131_v13 = vpop.f32.mrb[3].mxu0  ;;  %v159_v20 = vmul.f32 %v223_v12, %v223_v12 }
  0xf9   :  { %144 = vst [vmem:[%s301_s2 + $0x8] sm:$0xff] %v131_v13  ;;  %v147_v15 = vadd.f32 %v131_v13, %v128_v11  ;;  %v157_v16 = vmul.f32 %v131_v13, %v131_v13 }
  0xfb   :  { %v148_v18 = vadd.f32 %v222_v10, %v147_v15  ;;  %v160_v19 = vadd.f32 %v157_v16, %v156_v14 }
  0xfd   :  { %v149_v21 = vadd.f32 %v223_v12, %v148_v18  ;;  %v161_v22 = vadd.f32 %v160_v19, %v158_v17 }
  0xff   :  { %v150_v23 = vrot.slane %v149_v21, 4  ;;  %v162_v24 = vadd.f32 %v161_v22, %v159_v20 }
 0x101   :  { %v151_v25 = vadd.f32 %v150_v23, %v149_v21  ;;  %v163_v26 = vrot.slane %v162_v24, 4 }
 0x103   :  { %v152_v28 = vrot.slane %v151_v25, 2  ;;  %v164_v29 = vadd.f32 %v163_v26, %v162_v24 }
 0x105   :  { %v153_v30 = vadd.f32 %v152_v28, %v151_v25  ;;  %v165_v31 = vrot.slane %v164_v29, 2 }
 0x107   :  { %v166_v33 = vadd.f32 %v165_v31, %v164_v29  ;;  %v154_v34 = vrot.slane %v153_v30, 1 }
 0x109   :  { %v167_v35 = vrot.slane %v166_v33, 1  ;;  %v155_v37 = vadd.f32 %v154_v34, %v153_v30 }
 0x10b   :  { %v168_v36 = vadd.f32 %v167_v35, %v166_v33 }
 0x10d   :  { %v173_v38 = vsel %vm172_vm0, %v168_v36, 0.0 }
 0x10e   :  { %v174_v39 = vsel %vm171_vm1, %v155_v37, %v173_v38 }
 0x10f   :  { %175 = vst [vmem:[%s302_s3] sm:$0xff] %v174_v39 }

// kernel: _lambda_.57
= control target key start
LH: loop header
LB: loop body
LE: loop exit
PB: predicated region body
PF: predicated region fallthrough
CT: control target
= control target key end

     0   :  { %s100_s0 = inlined_call_operand.vmem [shape: f32[16,128], index: 0, kind: input, shape index: {}]   ;;  %s101_s1 = inlined_call_operand.vmem [shape: f32[1,128], index: 1, kind: input, shape index: {}]   ;;  %s102_s2 = inlined_call_operand.vmem [shape: f32[1,128], index: 2, kind: input, shape index: {}]   ;;  %s103_s3 = inlined_call_operand.vmem [shape: bf16[16,128], index: 3, kind: output, shape index: {}]  }
   0x1   :  { %v14_v0 = vld [vmem:[%s100_s0] sm:$0xff]  ;;  %v15_v1 = vld [vmem:[%s100_s0 + $0x8] sm:$0xff] }
   0x2   :  { %v54_v2 = vld [vmem:[%s101_s1] ss:$0 sm:$0xff] }
   0x3   :  { %v23_v3 = vmul.f32 %v54_v2, %v14_v0  ;;  %v24_v4 = vmul.f32 %v54_v2, %v15_v1  ;;  %v55_v5 = vld [vmem:[%s102_s2] ss:$0 sm:$0xff] }
   0x5   :  { %v32_v6 = vadd.f32 %v55_v5, %v23_v3  ;;  %v33_v7 = vadd.f32 %v55_v5, %v24_v4 }
   0x7   :  { %vm34_vm0 = vcmp.ge.f32.partialorder %v32_v6, 0.0  ;;  %vm35_vm1 = vcmp.ge.f32.partialorder %v33_v7, 0.0  ;;  %v36_v8 = vmul.f32 0.0, %v32_v6  ;;  %v37_v9 = vmul.f32 0.0, %v33_v7 }
   0x9   :  { %v38_v10 = vsel %vm34_vm0, %v32_v6, %v36_v8  ;;  %v39_v11 = vsel %vm35_vm1, %v33_v7, %v37_v9 }
   0xa   :  { %v63_v12 = vpack.c.bf16 %v39_v11, %v38_v10 }
   0xc   :  { %64 = vst [vmem:[%s103_s3] sm:$0xff] %v63_v12  }

// kernel: _lambda_.56
= control target key start
LH: loop header
LB: loop body
LE: loop exit
PB: predicated region body
PF: predicated region fallthrough
CT: control target
= control target key end

     0   :  { %v209_v0 = vmov 0.0   ;;  %vm210_vm0 = vmmov 0   ;;  %v145_v21 = vlaneseq  ;;  %s267_s1 = inlined_call_operand.vmem [shape: bf16[128,128], index: 1, kind: input, shape index: {}]   ;;  %s268_s0 = inlined_call_operand.vmem [shape: bf16[16,128], index: 0, kind: input, shape index: {}]   ;;  %s269_s2 = inlined_call_operand.vmem [shape: f32[16,128], index: 2, kind: output, shape index: {0}]   ;;  %s270_s3 = inlined_call_operand.vmem [shape: f32[1,8,128], index: 3, kind: output, shape index: {1}]  }
   0x1   :  { %178 = vmatprep.subr.bf16.mxu0 %v209_v0  ;;  %v200_v1 = vld [vmem:[%s267_s1] sm:$0xff]   ;;  %194 = vmatprep.mubr.msk.bf16.mxu0 %vm210_vm0, %v209_v0  ;;  %v201_v2 = vld [vmem:[%s267_s1 + $0x8] sm:$0xff]   ;;  %v202_v3 = vld [vmem:[%s267_s1 + $0x10] sm:$0xff]  }
   0x2   :  { %179 = vmatpush3.bf16.msra.mxu0 %v200_v1  ;;  %v203_v4 = vld [vmem:[%s267_s1 + $0x18] sm:$0xff]   ;;  %v204_v5 = vld [vmem:[%s267_s1 + $0x20] sm:$0xff]   ;;  %v205_v6 = vld [vmem:[%s267_s1 + $0x28] sm:$0xff]   ;;  %v146_v26 = vshrl.u32 %v145_v21, 7 }
   0x3   :  { %180 = vmatprep.subr.bf16.mxu0 %v209_v0  ;;  %v206_v7 = vld [vmem:[%s267_s1 + $0x30] sm:$0xff]   ;;  %v207_v8 = vld [vmem:[%s267_s1 + $0x38] sm:$0xff]   ;;  %v208_v9 = vld [vmem:[%s268_s0] sm:$0xff]  }
   0x4   :  { %vm148_vm1 = vcmp.eq.s32.totalorder %v146_v26, 1  ;;  %vm147_vm2 = vcmp.eq.s32.totalorder %v146_v26, 0 }
   0x6   :  { %181 = vmatpush3.bf16.msra.mxu0 %v201_v2 }
   0x7   :  { %182 = vmatprep.subr.bf16.mxu0 %v209_v0 }
   0xa   :  { %183 = vmatpush3.bf16.msra.mxu0 %v202_v3 }
   0xb   :  { %184 = vmatprep.subr.bf16.mxu0 %v209_v0 }
   0xe   :  { %185 = vmatpush3.bf16.msra.mxu0 %v203_v4 }
   0xf   :  { %186 = vmatprep.subr.bf16.mxu0 %v209_v0 }
  0x12   :  { %187 = vmatpush3.bf16.msra.mxu0 %v204_v5 }
  0x13   :  { %188 = vmatprep.subr.bf16.mxu0 %v209_v0 }
  0x16   :  { %189 = vmatpush3.bf16.msra.mxu0 %v205_v6 }
  0x17   :  { %190 = vmatprep.subr.bf16.mxu0 %v209_v0 }
  0x1a   :  { %191 = vmatpush3.bf16.msra.mxu0 %v206_v7 }
  0x1b   :  { %192 = vmatprep.subr.bf16.mxu0 %v209_v0 }
  0x1e   :  { %193 = vmatpush3.bf16.msra.mxu0 %v207_v8 }
  0x21   :  { %195 = vmatmul.mubr.bf16.vlgmr.msra.gmra.mrb[0].mxu0 %v208_v9 }
  0xf4   :  { %v120_v10 = vpop.f32.mrb[0].mxu0 }
  0xf5   :  { %127 = vst [vmem:[%s269_s2] sm:$0xff] %v120_v10  ;;  %v196_v11 = vpop.f32.mrb[1].mxu0  ;;  %v136_v13 = vmul.f32 %v120_v10, %v120_v10 }
  0xf6   :  { %v123_v12 = vpop.f32.mrb[2].mxu0 }
  0xf7   :  { %128 = vst [vmem:[%s269_s2 + $0x8] sm:$0xff] %v123_v12  ;;  %v129_v14 = vadd.f32 %v123_v12, %v120_v10  ;;  %v137_v15 = vmul.f32 %v123_v12, %v123_v12  ;;  %v197_v16 = vpop.f32.mrb[3].mxu0 }
  0xf9   :  { %v130_v17 = vrot.slane %v129_v14, 4  ;;  %v138_v18 = vadd.f32 %v137_v15, %v136_v13 }
  0xfb   :  { %v131_v19 = vadd.f32 %v130_v17, %v129_v14  ;;  %v139_v20 = vrot.slane %v138_v18, 4 }
  0xfd   :  { %v132_v22 = vrot.slane %v131_v19, 2  ;;  %v140_v23 = vadd.f32 %v139_v20, %v138_v18 }
  0xff   :  { %v133_v24 = vadd.f32 %v132_v22, %v131_v19  ;;  %v141_v25 = vrot.slane %v140_v23, 2 }
 0x101   :  { %v142_v27 = vadd.f32 %v141_v25, %v140_v23  ;;  %v134_v28 = vrot.slane %v133_v24, 1 }
 0x103   :  { %v143_v29 = vrot.slane %v142_v27, 1  ;;  %v135_v31 = vadd.f32 %v134_v28, %v133_v24 }
 0x105   :  { %v144_v30 = vadd.f32 %v143_v29, %v142_v27 }
 0x107   :  { %v149_v32 = vsel %vm148_vm1, %v144_v30, 0.0 }
 0x108   :  { %v150_v33 = vsel %vm147_vm2, %v135_v31, %v149_v32 }
 0x109   :  { %151 = vst [vmem:[%s270_s3] sm:$0xff] %v150_v33 }

// kernel: _lambda_.95
= control target key start
LH: loop header
LB: loop body
LE: loop exit
PB: predicated region body
PF: predicated region fallthrough
CT: control target
= control target key end

     0   :  { %v364_v0 = vmov 0.0   ;;  %vm365_vm0 = vmmov 0   ;;  %v366_v3 = vmov 0   ;;  %s475_s1 = inlined_call_operand.vmem [shape: bf16[128,384], index: 1, kind: input, shape index: {}]   ;;  %s476_s0 = inlined_call_operand.vmem [shape: bf16[16,128], index: 0, kind: input, shape index: {}]   ;;  %s477_s2 = inlined_call_operand.vmem [shape: f32[16,384], index: 2, kind: output, shape index: {}]  }
   0x1   :  { %308 = vmatprep.subr.bf16.mxu1 %v364_v0  ;;  %v331_v1 = vld [vmem:[%s475_s1 + $0x4] ss:$12 sps:$4 sm:$0xff]   ;;  %324 = vmatprep.mubr.msk.bf16.mxu1 %vm365_vm0, %v364_v0  ;;  %v333_v2 = vld [vmem:[%s475_s1 + $0x8] ss:$12 sps:$4 sm:$0xff]   ;;  %v334_v4 = vld [vmem:[%s475_s1] ss:$12 sps:$4 sm:$0xff]  }
   0x2   :  { %212 = vmatprep.mubr.bf16.mxu0 %v366_v3  ;;  %180 = vmatprep.subr.bf16.mxu0 %v331_v1  ;;  %v335_v5 = vld [vmem:[%s475_s1 + $0x1c] ss:$12 sps:$4 sm:$0xff]   ;;  %v337_v6 = vld [vmem:[%s475_s1 + $0x20] ss:$12 sps:$4 sm:$0xff]   ;;  %v338_v7 = vld [vmem:[%s475_s1 + $0x18] ss:$12 sps:$4 sm:$0xff]  }
   0x3   :  { %309 = vmatpush3.bf16.msra.mxu1 %v333_v2  ;;  %181 = vmatpush1.bf16.msra.mxu0 %v334_v4  ;;  %v339_v8 = vld [vmem:[%s475_s1 + $0x34] ss:$12 sps:$4 sm:$0xff]   ;;  %v341_v9 = vld [vmem:[%s475_s1 + $0x38] ss:$12 sps:$4 sm:$0xff]   ;;  %v342_v10 = vld [vmem:[%s475_s1 + $0x30] ss:$12 sps:$4 sm:$0xff]  }
   0x4   :  { %310 = vmatprep.subr.bf16.mxu1 %v364_v0  ;;  %182 = vmatprep.subr.bf16.mxu0 %v335_v5  ;;  %v343_v11 = vld [vmem:[%s475_s1 + $0x4c] ss:$12 sps:$4 sm:$0xff]   ;;  %v345_v12 = vld [vmem:[%s475_s1 + $0x50] ss:$12 sps:$4 sm:$0xff]   ;;  %v346_v13 = vld [vmem:[%s475_s1 + $0x48] ss:$12 sps:$4 sm:$0xff]  }
   0x5   :  { %v347_v14 = vld [vmem:[%s475_s1 + $0x64] ss:$12 sps:$4 sm:$0xff]   ;;  %v349_v15 = vld [vmem:[%s475_s1 + $0x68] ss:$12 sps:$4 sm:$0xff]   ;;  %v350_v16 = vld [vmem:[%s475_s1 + $0x60] ss:$12 sps:$4 sm:$0xff]  }
   0x6   :  { %v351_v17 = vld [vmem:[%s475_s1 + $0x7c] ss:$12 sps:$4 sm:$0xff]   ;;  %v353_v18 = vld [vmem:[%s475_s1 + $0x80] ss:$12 sps:$4 sm:$0xff]   ;;  %v354_v19 = vld [vmem:[%s475_s1 + $0x78] ss:$12 sps:$4 sm:$0xff]  }
   0x7   :  { %311 = vmatpush3.bf16.msra.mxu1 %v337_v6  ;;  %183 = vmatpush1.bf16.msra.mxu0 %v338_v7  ;;  %v355_v20 = vld [vmem:[%s475_s1 + $0x94] ss:$12 sps:$4 sm:$0xff]   ;;  %v357_v21 = vld [vmem:[%s475_s1 + $0x98] ss:$12 sps:$4 sm:$0xff]   ;;  %v358_v22 = vld [vmem:[%s475_s1 + $0x90] ss:$12 sps:$4 sm:$0xff]  }
   0x8   :  { %312 = vmatprep.subr.bf16.mxu1 %v364_v0  ;;  %184 = vmatprep.subr.bf16.mxu0 %v339_v8  ;;  %v359_v23 = vld [vmem:[%s475_s1 + $0xac] ss:$12 sps:$4 sm:$0xff]   ;;  %v361_v24 = vld [vmem:[%s475_s1 + $0xb0] ss:$12 sps:$4 sm:$0xff]   ;;  %v362_v25 = vld [vmem:[%s475_s1 + $0xa8] ss:$12 sps:$4 sm:$0xff]  }
   0x9   :  { %v363_v26 = vld [vmem:[%s476_s0] sm:$0xff]  }
   0xb   :  { %313 = vmatpush3.bf16.msra.mxu1 %v341_v9  ;;  %185 = vmatpush1.bf16.msra.mxu0 %v342_v10 }
   0xc   :  { %314 = vmatprep.subr.bf16.mxu1 %v364_v0  ;;  %186 = vmatprep.subr.bf16.mxu0 %v343_v11 }
   0xf   :  { %315 = vmatpush3.bf16.msra.mxu1 %v345_v12  ;;  %187 = vmatpush1.bf16.msra.mxu0 %v346_v13 }
  0x10   :  { %316 = vmatprep.subr.bf16.mxu1 %v364_v0  ;;  %188 = vmatprep.subr.bf16.mxu0 %v347_v14 }
  0x13   :  { %317 = vmatpush3.bf16.msra.mxu1 %v349_v15  ;;  %189 = vmatpush1.bf16.msra.mxu0 %v350_v16 }
  0x14   :  { %318 = vmatprep.subr.bf16.mxu1 %v364_v0  ;;  %190 = vmatprep.subr.bf16.mxu0 %v351_v17 }
  0x17   :  { %319 = vmatpush3.bf16.msra.mxu1 %v353_v18  ;;  %191 = vmatpush1.bf16.msra.mxu0 %v354_v19 }
  0x18   :  { %320 = vmatprep.subr.bf16.mxu1 %v364_v0  ;;  %192 = vmatprep.subr.bf16.mxu0 %v355_v20 }
  0x1b   :  { %321 = vmatpush3.bf16.msra.mxu1 %v357_v21  ;;  %193 = vmatpush1.bf16.msra.mxu0 %v358_v22 }
  0x1c   :  { %322 = vmatprep.subr.bf16.mxu1 %v364_v0  ;;  %194 = vmatprep.subr.bf16.mxu0 %v359_v23 }
  0x1f   :  { %323 = vmatpush3.bf16.msra.mxu1 %v361_v24  ;;  %195 = vmatpush1.bf16.msra.mxu0 %v362_v25 }
  0x22   :  { %325 = vmatmul.mubr.bf16.vlgmr.msra.gmra.mrb[0].mxu1 %v363_v26  ;;  %213 = vmatmul.mubr.bf16.vlgmr.msra.gmra.mrb[0].mxu0 %v363_v26 }
  0xf5   :  { %v257_v27 = vpop.f32.mrb[0].mxu1  ;;  %v214_v28 = vpop.f32.mrb[0].mxu0 }
  0xf6   :  { %266 = vst [vmem:[%s477_s2 + $0x10] sm:$0xff] %v257_v27  ;;  %v326_v29 = vpop.f32.mrb[1].mxu1  ;;  %264 = vst [vmem:[%s477_s2] sm:$0xff] %v214_v28  ;;  %v216_v30 = vpop.f32.mrb[1].mxu0 }
  0xf7   :  { %v260_v31 = vpop.f32.mrb[2].mxu1  ;;  %265 = vst [vmem:[%s477_s2 + $0x8] sm:$0xff] %v216_v30  ;;  %v218_v32 = vpop.f32.mrb[2].mxu0 }
  0xf8   :  { %269 = vst [vmem:[%s477_s2 + $0x28] sm:$0xff] %v260_v31  ;;  %v327_v33 = vpop.f32.mrb[3].mxu1  ;;  %267 = vst [vmem:[%s477_s2 + $0x18] sm:$0xff] %v218_v32  ;;  %v220_v34 = vpop.f32.mrb[3].mxu0 }
  0xf9   :  { %268 = vst [vmem:[%s477_s2 + $0x20] sm:$0xff] %v220_v34 }

// kernel: _lambda_.93
= control target key start
LH: loop header
LB: loop body
LE: loop exit
PB: predicated region body
PF: predicated region fallthrough
CT: control target
= control target key end

     0   :  { %v689_v34 = vmov 0.0   ;;  %vm690_vm0 = vmmov 0   ;;  %s855_s1 = inlined_call_operand.vmem [shape: bf16[640,128], index: 1, kind: input, shape index: {}]   ;;  %s856_s0 = inlined_call_operand.vmem [shape: bf16[16,640], index: 0, kind: input, shape index: {}]   ;;  %s857_s2 = inlined_call_operand.vmem [shape: f32[16,128], index: 2, kind: output, shape index: {0}]   ;;  %s858_s3 = inlined_call_operand.vmem [shape: f32[1,8,128], index: 3, kind: output, shape index: {1}]  }
   0x1   :  { %v642_v0 = vld [vmem:[%s855_s1 + $0x40] sm:$0xff]   ;;  %v646_v4 = vld [vmem:[%s855_s1 + $0x48] sm:$0xff]   ;;  %v650_v8 = vld [vmem:[%s855_s1 + $0x50] sm:$0xff]  }
   0x2   :  { %v643_v1 = vld [vmem:[%s855_s1 + $0xc0] sm:$0xff]   ;;  %567 = vmatprep.subr.bf16.mxu0 %v642_v0  ;;  %v647_v5 = vld [vmem:[%s855_s1 + $0xc8] sm:$0xff]   ;;  %v651_v9 = vld [vmem:[%s855_s1 + $0xd0] sm:$0xff]  }
   0x3   :  { %v644_v2 = vld [vmem:[%s855_s1] sm:$0xff]   ;;  %589 = vmatprep.subr.bf16.mxu1 %v643_v1  ;;  %v648_v6 = vld [vmem:[%s855_s1 + $0x8] sm:$0xff]   ;;  %v652_v10 = vld [vmem:[%s855_s1 + $0x10] sm:$0xff]  }
   0x4   :  { %v645_v3 = vld [vmem:[%s855_s1 + $0x80] sm:$0xff]   ;;  %568 = vmatpush3.bf16.msra.mxu0 %v644_v2  ;;  %v649_v7 = vld [vmem:[%s855_s1 + $0x88] sm:$0xff]   ;;  %v653_v11 = vld [vmem:[%s855_s1 + $0x90] sm:$0xff]  }
   0x5   :  { %590 = vmatpush3.bf16.msra.mxu1 %v645_v3  ;;  %569 = vmatprep.subr.bf16.mxu0 %v646_v4  ;;  %v654_v12 = vld [vmem:[%s855_s1 + $0x58] sm:$0xff]   ;;  %v658_v16 = vld [vmem:[%s855_s1 + $0x60] sm:$0xff]   ;;  %v662_v20 = vld [vmem:[%s855_s1 + $0x68] sm:$0xff]  }
   0x6   :  { %591 = vmatprep.subr.bf16.mxu1 %v647_v5  ;;  %v655_v13 = vld [vmem:[%s855_s1 + $0xd8] sm:$0xff]   ;;  %v659_v17 = vld [vmem:[%s855_s1 + $0xe0] sm:$0xff]   ;;  %v663_v21 = vld [vmem:[%s855_s1 + $0xe8] sm:$0xff]  }
   0x7   :  { %v656_v14 = vld [vmem:[%s855_s1 + $0x18] sm:$0xff]   ;;  %v660_v18 = vld [vmem:[%s855_s1 + $0x20] sm:$0xff]   ;;  %v664_v22 = vld [vmem:[%s855_s1 + $0x28] sm:$0xff]  }
   0x8   :  { %570 = vmatpush3.bf16.msra.mxu0 %v648_v6  ;;  %v657_v15 = vld [vmem:[%s855_s1 + $0x98] sm:$0xff]   ;;  %v661_v19 = vld [vmem:[%s855_s1 + $0xa0] sm:$0xff]   ;;  %v665_v23 = vld [vmem:[%s855_s1 + $0xa8] sm:$0xff]  }
   0x9   :  { %592 = vmatpush3.bf16.msra.mxu1 %v649_v7  ;;  %571 = vmatprep.subr.bf16.mxu0 %v650_v8  ;;  %v666_v24 = vld [vmem:[%s855_s1 + $0x70] sm:$0xff]   ;;  %v670_v28 = vld [vmem:[%s855_s1 + $0x78] sm:$0xff]   ;;  %v679_v36 = vld [vmem:[%s856_s0 + $0xc] ss:$20 sps:$4 sm:$0xff]  }
   0xa   :  { %593 = vmatprep.subr.bf16.mxu1 %v651_v9  ;;  %v667_v25 = vld [vmem:[%s855_s1 + $0xf0] sm:$0xff]   ;;  %v671_v29 = vld [vmem:[%s855_s1 + $0xf8] sm:$0xff]   ;;  %v680_v37 = vld [vmem:[%s855_s1 + $0x100] sm:$0xff]   ;;  %439 = vmatprep.mubr.bf16.mxu1 %v679_v36  ;;  %v507_v9 = vlaneseq }
   0xb   :  { %v668_v26 = vld [vmem:[%s855_s1 + $0x30] sm:$0xff]   ;;  %v672_v30 = vld [vmem:[%s855_s1 + $0x38] sm:$0xff]   ;;  %v681_v38 = vld [vmem:[%s855_s1 + $0x108] sm:$0xff]  }
   0xc   :  { %572 = vmatpush3.bf16.msra.mxu0 %v652_v10  ;;  %v669_v27 = vld [vmem:[%s855_s1 + $0xb0] sm:$0xff]   ;;  %v673_v31 = vld [vmem:[%s855_s1 + $0xb8] sm:$0xff]   ;;  %v684_v41 = vld [vmem:[%s855_s1 + $0x120] sm:$0xff]  }
   0xd   :  { %594 = vmatpush3.bf16.msra.mxu1 %v653_v11  ;;  %573 = vmatprep.subr.bf16.mxu0 %v654_v12  ;;  %v674_v32 = vld [vmem:[%s856_s0] ss:$20 sps:$4 sm:$0xff]   ;;  %v676_v33 = vld [vmem:[%s856_s0 + $0x4] ss:$20 sps:$4 sm:$0xff]   ;;  %v677_v35 = vld [vmem:[%s856_s0 + $0x8] ss:$20 sps:$4 sm:$0xff]  }
   0xe   :  { %595 = vmatprep.subr.bf16.mxu1 %v655_v13  ;;  %398 = vmatprep.mubr.bf16.mxu0 %v676_v33  ;;  %v682_v39 = vld [vmem:[%s855_s1 + $0x110] sm:$0xff]   ;;  %v683_v40 = vld [vmem:[%s855_s1 + $0x118] sm:$0xff]   ;;  %v685_v42 = vld [vmem:[%s855_s1 + $0x128] sm:$0xff]  }
   0xf   :  { %v686_v43 = vld [vmem:[%s855_s1 + $0x130] sm:$0xff]   ;;  %v687_v44 = vld [vmem:[%s855_s1 + $0x138] sm:$0xff]  }
  0x10   :  { %574 = vmatpush3.bf16.msra.mxu0 %v656_v14  ;;  %v688_v45 = vld [vmem:[%s856_s0 + $0x10] ss:$20 sps:$4 sm:$0xff]   ;;  %v508_v14 = vshrl.u32 %v507_v9, 7 }
  0x11   :  { %596 = vmatpush3.bf16.msra.mxu1 %v657_v15  ;;  %575 = vmatprep.subr.bf16.mxu0 %v658_v16 }
  0x12   :  { %597 = vmatprep.subr.bf16.mxu1 %v659_v17  ;;  %vm510_vm1 = vcmp.eq.s32.totalorder %v508_v14, 1  ;;  %vm509_vm2 = vcmp.eq.s32.totalorder %v508_v14, 0 }
  0x14   :  { %576 = vmatpush3.bf16.msra.mxu0 %v660_v18 }
  0x15   :  { %598 = vmatpush3.bf16.msra.mxu1 %v661_v19  ;;  %577 = vmatprep.subr.bf16.mxu0 %v662_v20 }
  0x16   :  { %599 = vmatprep.subr.bf16.mxu1 %v663_v21 }
  0x18   :  { %578 = vmatpush3.bf16.msra.mxu0 %v664_v22 }
  0x19   :  { %600 = vmatpush3.bf16.msra.mxu1 %v665_v23  ;;  %579 = vmatprep.subr.bf16.mxu0 %v666_v24 }
  0x1a   :  { %601 = vmatprep.subr.bf16.mxu1 %v667_v25 }
  0x1c   :  { %580 = vmatpush3.bf16.msra.mxu0 %v668_v26 }
  0x1d   :  { %602 = vmatpush3.bf16.msra.mxu1 %v669_v27  ;;  %581 = vmatprep.subr.bf16.mxu0 %v670_v28 }
  0x1e   :  { %603 = vmatprep.subr.bf16.mxu1 %v671_v29 }
  0x20   :  { %582 = vmatpush3.bf16.msra.mxu0 %v672_v30 }
  0x21   :  { %604 = vmatpush3.bf16.msra.mxu1 %v673_v31  ;;  %620 = vmatprep.subr.bf16.mxu0 %v689_v34 }
  0x23   :  { %399 = vmatmul.mubr.bf16.vlgmr.msra.gmra.mrb[0].mxu0 %v674_v32 }
  0x24   :  { %440 = vmatmul.mubr.bf16.vlgmr.msra.gmra.mrb[0].mxu1 %v677_v35  ;;  %621 = vmatpush3.bf16.msra.mxu0 %v680_v37 }
  0x25   :  { %622 = vmatprep.subr.bf16.mxu0 %v689_v34  ;;  %636 = vmatprep.mubr.msk.bf16.mxu0 %vm690_vm0, %v689_v34 }
  0x28   :  { %623 = vmatpush3.bf16.msra.mxu0 %v681_v38 }
  0x29   :  { %624 = vmatprep.subr.bf16.mxu0 %v689_v34 }
  0x2c   :  { %625 = vmatpush3.bf16.msra.mxu0 %v682_v39 }
  0x2d   :  { %626 = vmatprep.subr.bf16.mxu0 %v689_v34 }
  0x30   :  { %627 = vmatpush3.bf16.msra.mxu0 %v683_v40 }
  0x31   :  { %628 = vmatprep.subr.bf16.mxu0 %v689_v34 }
  0x34   :  { %629 = vmatpush3.bf16.msra.mxu0 %v684_v41 }
  0x35   :  { %630 = vmatprep.subr.bf16.mxu0 %v689_v34 }
  0x38   :  { %631 = vmatpush3.bf16.msra.mxu0 %v685_v42 }
  0x39   :  { %632 = vmatprep.subr.bf16.mxu0 %v689_v34 }
  0x3c   :  { %633 = vmatpush3.bf16.msra.mxu0 %v686_v43 }
  0x3d   :  { %634 = vmatprep.subr.bf16.mxu0 %v689_v34 }
  0x40   :  { %635 = vmatpush3.bf16.msra.mxu0 %v687_v44 }
  0x43   :  { %637 = vmatmul.mubr.bf16.vlgmr.msra.gmra.mrb[4].mxu0 %v688_v45 }
  0xf6   :  { %v583_v46 = vpop.f32.mrb[0].mxu0 }
  0xf7   :  { %v605_v47 = vpop.f32.mrb[0].mxu1  ;;  %v584_v48 = vpop.f32.mrb[1].mxu0 }
  0xf8   :  { %v585_v49 = vadd.f32 %v584_v48, %v583_v46  ;;  %v606_v50 = vpop.f32.mrb[1].mxu1  ;;  %v586_v51 = vpop.f32.mrb[2].mxu0 }
  0xf9   :  { %v607_v52 = vadd.f32 %v606_v50, %v605_v47  ;;  %v608_v53 = vpop.f32.mrb[2].mxu1  ;;  %v587_v54 = vpop.f32.mrb[3].mxu0 }
  0xfa   :  { %v588_v55 = vadd.f32 %v587_v54, %v586_v51  ;;  %v609_v56 = vpop.f32.mrb[3].mxu1 }
  0xfb   :  { %v610_v57 = vadd.f32 %v609_v56, %v608_v53  ;;  %v442_v58 = vadd.f32 %v607_v52, %v585_v49 }
  0xfd   :  { %v445_v59 = vadd.f32 %v610_v57, %v588_v55 }
 0x116   :  { %v482_v60 = vpop.f32.mrb[4].mxu0 }
 0x117   :  { %v483_v61 = vadd.f32 %v482_v60, %v442_v58  ;;  %v638_v62 = vpop.f32.mrb[5].mxu0 }
 0x118   :  { %v485_v63 = vpop.f32.mrb[6].mxu0 }
 0x119   :  { %489 = vst [vmem:[%s857_s2] sm:$0xff] %v483_v61  ;;  %v486_v0 = vadd.f32 %v485_v63, %v445_v59  ;;  %v639_v1 = vpop.f32.mrb[7].mxu0  ;;  %v498_v2 = vmul.f32 %v483_v61, %v483_v61 }
 0x11b   :  { %490 = vst [vmem:[%s857_s2 + $0x8] sm:$0xff] %v486_v0  ;;  %v491_v3 = vadd.f32 %v486_v0, %v483_v61  ;;  %v499_v4 = vmul.f32 %v486_v0, %v486_v0 }
 0x11d   :  { %v492_v5 = vrot.slane %v491_v3, 4  ;;  %v500_v6 = vadd.f32 %v499_v4, %v498_v2 }
 0x11f   :  { %v493_v7 = vadd.f32 %v492_v5, %v491_v3  ;;  %v501_v8 = vrot.slane %v500_v6, 4 }
 0x121   :  { %v494_v10 = vrot.slane %v493_v7, 2  ;;  %v502_v11 = vadd.f32 %v501_v8, %v500_v6 }
 0x123   :  { %v495_v12 = vadd.f32 %v494_v10, %v493_v7  ;;  %v503_v13 = vrot.slane %v502_v11, 2 }
 0x125   :  { %v504_v15 = vadd.f32 %v503_v13, %v502_v11  ;;  %v496_v16 = vrot.slane %v495_v12, 1 }
 0x127   :  { %v505_v17 = vrot.slane %v504_v15, 1  ;;  %v497_v19 = vadd.f32 %v496_v16, %v495_v12 }
 0x129   :  { %v506_v18 = vadd.f32 %v505_v17, %v504_v15 }
 0x12b   :  { %v511_v20 = vsel %vm510_vm1, %v506_v18, 0.0 }
 0x12c   :  { %v512_v21 = vsel %vm509_vm2, %v497_v19, %v511_v20 }
 0x12d   :  { %513 = vst [vmem:[%s858_s3] sm:$0xff] %v512_v21 }

// kernel: _lambda_.97
= control target key start
LH: loop header
LB: loop body
LE: loop exit
PB: predicated region body
PF: predicated region fallthrough
CT: control target
= control target key end

     0   :  { %s141_s0 = inlined_call_operand.vmem [shape: f32[32,128], index: 0, kind: input, shape index: {}]   ;;  %s142_s1 = inlined_call_operand.vmem [shape: f32[1,128], index: 1, kind: input, shape index: {}]   ;;  %s143_s2 = inlined_call_operand.vmem [shape: f32[1,128], index: 2, kind: input, shape index: {}]   ;;  %s144_s3 = inlined_call_operand.vmem [shape: bf16[32,128], index: 3, kind: output, shape index: {}]  }
   0x1   :  { %v14_v0 = vld [vmem:[%s141_s0] sm:$0xff]  ;;  %v15_v1 = vld [vmem:[%s141_s0 + $0x8] sm:$0xff]  ;;  %v16_v6 = vld [vmem:[%s141_s0 + $0x10] sm:$0xff] }
   0x2   :  { %v76_v2 = vld [vmem:[%s142_s1] ss:$0 sm:$0xff]  ;;  %v17_v7 = vld [vmem:[%s141_s0 + $0x18] sm:$0xff] }
   0x3   :  { %v25_v3 = vmul.f32 %v76_v2, %v14_v0  ;;  %v26_v4 = vmul.f32 %v76_v2, %v15_v1  ;;  %v77_v5 = vld [vmem:[%s143_s2] ss:$0 sm:$0xff]  ;;  %v27_v8 = vmul.f32 %v76_v2, %v16_v6  ;;  %v28_v9 = vmul.f32 %v76_v2, %v17_v7 }
   0x5   :  { %v36_v10 = vadd.f32 %v77_v5, %v25_v3  ;;  %v37_v11 = vadd.f32 %v77_v5, %v26_v4  ;;  %v38_v12 = vadd.f32 %v77_v5, %v27_v8  ;;  %v39_v13 = vadd.f32 %v77_v5, %v28_v9 }
   0x7   :  { %vm40_vm0 = vcmp.ge.f32.partialorder %v36_v10, 0.0  ;;  %vm41_vm1 = vcmp.ge.f32.partialorder %v37_v11, 0.0  ;;  %v44_v14 = vmul.f32 0.2, %v36_v10  ;;  %v45_v15 = vmul.f32 0.2, %v37_v11 }
   0x8   :  { %vm42_vm2 = vcmp.ge.f32.partialorder %v38_v12, 0.0  ;;  %vm43_vm3 = vcmp.ge.f32.partialorder %v39_v13, 0.0  ;;  %v46_v16 = vmul.f32 0.2, %v38_v12  ;;  %v47_v17 = vmul.f32 0.2, %v39_v13 }
   0x9   :  { %v48_v18 = vsel %vm40_vm0, %v36_v10, %v44_v14  ;;  %v49_v19 = vsel %vm41_vm1, %v37_v11, %v45_v15 }
   0xa   :  { %v89_v20 = vpack.c.bf16 %v49_v19, %v48_v18  ;;  %v50_v21 = vsel %vm42_vm2, %v38_v12, %v46_v16  ;;  %v51_v22 = vsel %vm43_vm3, %v39_v13, %v47_v17 }
   0xb   :  { %v94_v23 = vpack.c.bf16 %v51_v22, %v50_v21 }
   0xc   :  { %90 = vst [vmem:[%s144_s3] sm:$0xff] %v89_v20  }
   0xd   :  { %96 = vst [vmem:[%s144_s3 + $0x8] sm:$0xff] %v94_v23  }

// kernel: _lambda_.96
= control target key start
LH: loop header
LB: loop body
LE: loop exit
PB: predicated region body
PF: predicated region fallthrough
CT: control target
= control target key end

     0   :  { %v34_v17 = vlaneseq  ;;  %s70_s0 = inlined_call_operand.vmem [shape: f32[32,128], index: 0, kind: input, shape index: {}]   ;;  %s71_s1 = inlined_call_operand.vmem [shape: f32[1,8,128], index: 1, kind: output, shape index: {}]  }
   0x1   :  { %v8_v0 = vld [vmem:[%s70_s0] sm:$0xff]  ;;  %v9_v1 = vld [vmem:[%s70_s0 + $0x8] sm:$0xff]  ;;  %v10_v2 = vld [vmem:[%s70_s0 + $0x10] sm:$0xff] }
   0x2   :  { %v11_v3 = vld [vmem:[%s70_s0 + $0x18] sm:$0xff]  ;;  %v12_v4 = vadd.f32 %v9_v1, %v8_v0  ;;  %v21_v5 = vmul.f32 %v8_v0, %v8_v0  ;;  %v22_v6 = vmul.f32 %v9_v1, %v9_v1  ;;  %v23_v7 = vmul.f32 %v10_v2, %v10_v2 }
   0x3   :  { %v24_v9 = vmul.f32 %v11_v3, %v11_v3  ;;  %v35_v22 = vshrl.u32 %v34_v17, 7 }
   0x4   :  { %v13_v8 = vadd.f32 %v12_v4, %v10_v2  ;;  %v25_v10 = vadd.f32 %v22_v6, %v21_v5 }
   0x5   :  { %vm37_vm0 = vcmp.eq.s32.totalorder %v35_v22, 1  ;;  %vm36_vm1 = vcmp.eq.s32.totalorder %v35_v22, 0 }
   0x6   :  { %v14_v11 = vadd.f32 %v13_v8, %v11_v3  ;;  %v26_v12 = vadd.f32 %v25_v10, %v23_v7 }
   0x8   :  { %v15_v13 = vrot.slane %v14_v11, 4  ;;  %v27_v14 = vadd.f32 %v26_v12, %v24_v9 }
   0xa   :  { %v16_v15 = vadd.f32 %v15_v13, %v14_v11  ;;  %v28_v16 = vrot.slane %v27_v14, 4 }
   0xc   :  { %v17_v18 = vrot.slane %v16_v15, 2  ;;  %v29_v19 = vadd.f32 %v28_v16, %v27_v14 }
   0xe   :  { %v18_v20 = vadd.f32 %v17_v18, %v16_v15  ;;  %v30_v21 = vrot.slane %v29_v19, 2 }
  0x10   :  { %v19_v23 = vrot.slane %v18_v20, 1  ;;  %v31_v24 = vadd.f32 %v30_v21, %v29_v19 }
  0x12   :  { %v32_v25 = vrot.slane %v31_v24, 1  ;;  %v20_v26 = vadd.f32 %v19_v23, %v18_v20 }
  0x14   :  { %v33_v27 = vadd.f32 %v32_v25, %v31_v24 }
  0x16   :  { %v38_v28 = vsel %vm37_vm0, %v33_v27, 0.0 }
  0x17   :  { %v39_v29 = vsel %vm36_vm1, %v20_v26, %v38_v28 }
  0x18   :  { %40 = vst [vmem:[%s71_s1] sm:$0xff] %v39_v29 }

// kernel: _lambda_.88
= control target key start
LH: loop header
LB: loop body
LE: loop exit
PB: predicated region body
PF: predicated region fallthrough
CT: control target
= control target key end

     0   :  { %v210_v1 = vmov 0   ;;  %s289_s1 = inlined_call_operand.vmem [shape: bf16[128,256], index: 1, kind: input, shape index: {}]   ;;  %s290_s0 = inlined_call_operand.vmem [shape: bf16[16,128], index: 0, kind: input, shape index: {}]   ;;  %s291_s2 = inlined_call_operand.vmem [shape: f32[16,256], index: 2, kind: output, shape index: {}]  }
   0x1   :  { %v185_v0 = vld [vmem:[%s289_s1 + $0x4] ss:$8 sps:$4 sm:$0xff]   ;;  %148 = vmatprep.mubr.bf16.mxu0 %v210_v1  ;;  %v187_v2 = vld [vmem:[%s289_s1] ss:$8 sps:$4 sm:$0xff]   ;;  %v188_v3 = vld [vmem:[%s289_s1 + $0x14] ss:$8 sps:$4 sm:$0xff]  }
   0x2   :  { %116 = vmatprep.subr.bf16.mxu0 %v185_v0  ;;  %v190_v4 = vld [vmem:[%s289_s1 + $0x10] ss:$8 sps:$4 sm:$0xff]   ;;  %v191_v5 = vld [vmem:[%s289_s1 + $0x24] ss:$8 sps:$4 sm:$0xff]   ;;  %v193_v6 = vld [vmem:[%s289_s1 + $0x20] ss:$8 sps:$4 sm:$0xff]  }
   0x3   :  { %117 = vmatpush1.bf16.msra.mxu0 %v187_v2  ;;  %v194_v7 = vld [vmem:[%s289_s1 + $0x34] ss:$8 sps:$4 sm:$0xff]   ;;  %v196_v8 = vld [vmem:[%s289_s1 + $0x30] ss:$8 sps:$4 sm:$0xff]   ;;  %v197_v9 = vld [vmem:[%s289_s1 + $0x44] ss:$8 sps:$4 sm:$0xff]  }
   0x4   :  { %118 = vmatprep.subr.bf16.mxu0 %v188_v3  ;;  %v199_v10 = vld [vmem:[%s289_s1 + $0x40] ss:$8 sps:$4 sm:$0xff]   ;;  %v200_v11 = vld [vmem:[%s289_s1 + $0x54] ss:$8 sps:$4 sm:$0xff]   ;;  %v202_v12 = vld [vmem:[%s289_s1 + $0x50] ss:$8 sps:$4 sm:$0xff]  }
   0x5   :  { %v203_v13 = vld [vmem:[%s289_s1 + $0x64] ss:$8 sps:$4 sm:$0xff]   ;;  %v205_v14 = vld [vmem:[%s289_s1 + $0x60] ss:$8 sps:$4 sm:$0xff]   ;;  %v206_v15 = vld [vmem:[%s289_s1 + $0x74] ss:$8 sps:$4 sm:$0xff]  }
   0x6   :  { %v208_v16 = vld [vmem:[%s289_s1 + $0x70] ss:$8 sps:$4 sm:$0xff]   ;;  %v209_v17 = vld [vmem:[%s290_s0] sm:$0xff]  }
   0x7   :  { %119 = vmatpush1.bf16.msra.mxu0 %v190_v4 }
   0x8   :  { %120 = vmatprep.subr.bf16.mxu0 %v191_v5 }
   0xb   :  { %121 = vmatpush1.bf16.msra.mxu0 %v193_v6 }
   0xc   :  { %122 = vmatprep.subr.bf16.mxu0 %v194_v7 }
   0xf   :  { %123 = vmatpush1.bf16.msra.mxu0 %v196_v8 }
  0x10   :  { %124 = vmatprep.subr.bf16.mxu0 %v197_v9 }
  0x13   :  { %125 = vmatpush1.bf16.msra.mxu0 %v199_v10 }
  0x14   :  { %126 = vmatprep.subr.bf16.mxu0 %v200_v11 }
  0x17   :  { %127 = vmatpush1.bf16.msra.mxu0 %v202_v12 }
  0x18   :  { %128 = vmatprep.subr.bf16.mxu0 %v203_v13 }
  0x1b   :  { %129 = vmatpush1.bf16.msra.mxu0 %v205_v14 }
  0x1c   :  { %130 = vmatprep.subr.bf16.mxu0 %v206_v15 }
  0x1f   :  { %131 = vmatpush1.bf16.msra.mxu0 %v208_v16 }
  0x22   :  { %149 = vmatmul.mubr.bf16.vlgmr.msra.gmra.mrb[0].mxu0 %v209_v17 }
  0xf5   :  { %v150_v18 = vpop.f32.mrb[0].mxu0 }
  0xf6   :  { %159 = vst [vmem:[%s291_s2] sm:$0xff] %v150_v18  ;;  %v152_v19 = vpop.f32.mrb[1].mxu0 }
  0xf7   :  { %160 = vst [vmem:[%s291_s2 + $0x8] sm:$0xff] %v152_v19  ;;  %v154_v20 = vpop.f32.mrb[2].mxu0 }
  0xf8   :  { %161 = vst [vmem:[%s291_s2 + $0x10] sm:$0xff] %v154_v20  ;;  %v156_v21 = vpop.f32.mrb[3].mxu0 }
  0xf9   :  { %162 = vst [vmem:[%s291_s2 + $0x18] sm:$0xff] %v156_v21 }

// kernel: _lambda_.80
= control target key start
LH: loop header
LB: loop body
LE: loop exit
PB: predicated region body
PF: predicated region fallthrough
CT: control target
= control target key end

     0   :  { %s961_s1 = inlined_call_operand.vmem [shape: bf16[640,128], index: 1, kind: input, shape index: {}]   ;;  %s962_s0 = inlined_call_operand.vmem [shape: bf16[32,640], index: 0, kind: input, shape index: {}]   ;;  %s963_s2 = inlined_call_operand.vmem [shape: f32[32,128], index: 2, kind: output, shape index: {0}]   ;;  %s964_s3 = inlined_call_operand.vmem [shape: f32[1,8,128], index: 3, kind: output, shape index: {1}]  }
   0x1   :  { %v722_v0 = vld [vmem:[%s961_s1 + $0x40] sm:$0xff]   ;;  %v726_v4 = vld [vmem:[%s961_s1 + $0x48] sm:$0xff]   ;;  %v730_v8 = vld [vmem:[%s961_s1 + $0x50] sm:$0xff]  }
   0x2   :  { %v723_v1 = vld [vmem:[%s961_s1 + $0xc0] sm:$0xff]   ;;  %636 = vmatprep.subr.bf16.mxu0 %v722_v0  ;;  %v727_v5 = vld [vmem:[%s961_s1 + $0xc8] sm:$0xff]   ;;  %v731_v9 = vld [vmem:[%s961_s1 + $0xd0] sm:$0xff]  }
   0x3   :  { %v724_v2 = vld [vmem:[%s961_s1] sm:$0xff]   ;;  %664 = vmatprep.subr.bf16.mxu1 %v723_v1  ;;  %v728_v6 = vld [vmem:[%s961_s1 + $0x8] sm:$0xff]   ;;  %v732_v10 = vld [vmem:[%s961_s1 + $0x10] sm:$0xff]  }
   0x4   :  { %v725_v3 = vld [vmem:[%s961_s1 + $0x80] sm:$0xff]   ;;  %637 = vmatpush3.bf16.msra.mxu0 %v724_v2  ;;  %v729_v7 = vld [vmem:[%s961_s1 + $0x88] sm:$0xff]   ;;  %v733_v11 = vld [vmem:[%s961_s1 + $0x90] sm:$0xff]  }
   0x5   :  { %665 = vmatpush3.bf16.msra.mxu1 %v725_v3  ;;  %638 = vmatprep.subr.bf16.mxu0 %v726_v4  ;;  %v734_v12 = vld [vmem:[%s961_s1 + $0x58] sm:$0xff]   ;;  %v738_v16 = vld [vmem:[%s961_s1 + $0x60] sm:$0xff]   ;;  %v742_v20 = vld [vmem:[%s961_s1 + $0x68] sm:$0xff]  }
   0x6   :  { %666 = vmatprep.subr.bf16.mxu1 %v727_v5  ;;  %v735_v13 = vld [vmem:[%s961_s1 + $0xd8] sm:$0xff]   ;;  %v739_v17 = vld [vmem:[%s961_s1 + $0xe0] sm:$0xff]   ;;  %v743_v21 = vld [vmem:[%s961_s1 + $0xe8] sm:$0xff]  }
   0x7   :  { %v736_v14 = vld [vmem:[%s961_s1 + $0x18] sm:$0xff]   ;;  %v740_v18 = vld [vmem:[%s961_s1 + $0x20] sm:$0xff]   ;;  %v744_v22 = vld [vmem:[%s961_s1 + $0x28] sm:$0xff]  }
   0x8   :  { %639 = vmatpush3.bf16.msra.mxu0 %v728_v6  ;;  %v737_v15 = vld [vmem:[%s961_s1 + $0x98] sm:$0xff]   ;;  %v741_v19 = vld [vmem:[%s961_s1 + $0xa0] sm:$0xff]   ;;  %v745_v23 = vld [vmem:[%s961_s1 + $0xa8] sm:$0xff]  }
   0x9   :  { %667 = vmatpush3.bf16.msra.mxu1 %v729_v7  ;;  %640 = vmatprep.subr.bf16.mxu0 %v730_v8  ;;  %v746_v24 = vld [vmem:[%s961_s1 + $0x70] sm:$0xff]   ;;  %v750_v28 = vld [vmem:[%s961_s1 + $0x78] sm:$0xff]   ;;  %v759_v35 = vld [vmem:[%s962_s0 + $0xc] ss:$20 sps:$4 sm:$0xff]  }
   0xa   :  { %668 = vmatprep.subr.bf16.mxu1 %v731_v9  ;;  %v747_v25 = vld [vmem:[%s961_s1 + $0xf0] sm:$0xff]   ;;  %v751_v29 = vld [vmem:[%s961_s1 + $0xf8] sm:$0xff]   ;;  %v760_v36 = vld [vmem:[%s961_s1 + $0x100] sm:$0xff]   ;;  %479 = vmatprep.mubr.bf16.mxu1 %v759_v35  ;;  %v571_v35 = vlaneseq }
   0xb   :  { %v748_v26 = vld [vmem:[%s961_s1 + $0x30] sm:$0xff]   ;;  %v752_v30 = vld [vmem:[%s961_s1 + $0x38] sm:$0xff]   ;;  %v761_v37 = vld [vmem:[%s961_s1 + $0x108] sm:$0xff]  }
   0xc   :  { %641 = vmatpush3.bf16.msra.mxu0 %v732_v10  ;;  %v749_v27 = vld [vmem:[%s961_s1 + $0xb0] sm:$0xff]   ;;  %v753_v31 = vld [vmem:[%s961_s1 + $0xb8] sm:$0xff]   ;;  %v765_v39 = vld [vmem:[%s962_s0 + $0x2c] ss:$20 sps:$4 sm:$0xff]  }
   0xd   :  { %669 = vmatpush3.bf16.msra.mxu1 %v733_v11  ;;  %642 = vmatprep.subr.bf16.mxu0 %v734_v12  ;;  %v754_v32 = vld [vmem:[%s962_s0] ss:$20 sps:$4 sm:$0xff]   ;;  %v756_v33 = vld [vmem:[%s962_s0 + $0x4] ss:$20 sps:$4 sm:$0xff]   ;;  %v757_v34 = vld [vmem:[%s962_s0 + $0x8] ss:$20 sps:$4 sm:$0xff]  }
   0xe   :  { %670 = vmatprep.subr.bf16.mxu1 %v735_v13  ;;  %430 = vmatprep.mubr.bf16.mxu0 %v756_v33  ;;  %v762_v38 = vld [vmem:[%s961_s1 + $0x110] sm:$0xff]   ;;  %v763_v41 = vld [vmem:[%s961_s1 + $0x118] sm:$0xff]   ;;  %v764_v45 = vld [vmem:[%s961_s1 + $0x120] sm:$0xff]  }
   0xf   :  { %v767_v40 = vld [vmem:[%s962_s0 + $0x34] ss:$20 sps:$4 sm:$0xff]   ;;  %v771_v43 = vld [vmem:[%s962_s0 + $0x30] ss:$20 sps:$4 sm:$0xff]   ;;  %v773_v48 = vld [vmem:[%s961_s1 + $0x138] sm:$0xff]  }
  0x10   :  { %643 = vmatpush3.bf16.msra.mxu0 %v736_v14  ;;  %v770_v42 = vld [vmem:[%s962_s0 + $0x28] ss:$20 sps:$4 sm:$0xff]   ;;  %v774_v44 = vld [vmem:[%s962_s0 + $0x10] ss:$20 sps:$4 sm:$0xff]   ;;  %v775_v49 = vld [vmem:[%s962_s0 + $0x38] ss:$20 sps:$4 sm:$0xff]  }
  0x11   :  { %671 = vmatpush3.bf16.msra.mxu1 %v737_v15  ;;  %644 = vmatprep.subr.bf16.mxu0 %v738_v16  ;;  %v769_v46 = vld [vmem:[%s961_s1 + $0x128] sm:$0xff]   ;;  %v772_v47 = vld [vmem:[%s961_s1 + $0x130] sm:$0xff]  }
  0x12   :  { %672 = vmatprep.subr.bf16.mxu1 %v739_v17 }
  0x14   :  { %645 = vmatpush3.bf16.msra.mxu0 %v740_v18 }
  0x15   :  { %673 = vmatpush3.bf16.msra.mxu1 %v741_v19  ;;  %646 = vmatprep.subr.bf16.mxu0 %v742_v20 }
  0x16   :  { %674 = vmatprep.subr.bf16.mxu1 %v743_v21 }
  0x18   :  { %647 = vmatpush3.bf16.msra.mxu0 %v744_v22 }
  0x19   :  { %675 = vmatpush3.bf16.msra.mxu1 %v745_v23  ;;  %648 = vmatprep.subr.bf16.mxu0 %v746_v24 }
  0x1a   :  { %676 = vmatprep.subr.bf16.mxu1 %v747_v25 }
  0x1c   :  { %649 = vmatpush3.bf16.msra.mxu0 %v748_v26 }
  0x1d   :  { %677 = vmatpush3.bf16.msra.mxu1 %v749_v27  ;;  %650 = vmatprep.subr.bf16.mxu0 %v750_v28 }
  0x1e   :  { %678 = vmatprep.subr.bf16.mxu1 %v751_v29 }
  0x20   :  { %651 = vmatpush3.bf16.msra.mxu0 %v752_v30 }
  0x21   :  { %679 = vmatpush3.bf16.msra.mxu1 %v753_v31  ;;  %702 = vmatprep.subr.bf16.mxu0 %v760_v36 }
  0x23   :  { %431 = vmatmul.mubr.bf16.vlgmr.msra.gmra.mrb[0].mxu0 %v754_v32 }
  0x24   :  { %480 = vmatmul.mubr.bf16.vlgmr.msra.gmra.mrb[0].mxu1 %v757_v34  ;;  %703 = vmatpush3.bf16.msra.mxu0 %v760_v36 }
  0x25   :  { %704 = vmatprep.subr.bf16.mxu0 %v761_v37  ;;  %438 = vmatprep.mubr.bf16.mxu0 %v765_v39 }
  0x26   :  { %487 = vmatprep.mubr.bf16.mxu1 %v767_v40  ;;  %v572_v40 = vshrl.u32 %v571_v35, 7 }
  0x28   :  { %705 = vmatpush3.bf16.msra.mxu0 %v761_v37  ;;  %vm574_vm0 = vcmp.eq.s32.totalorder %v572_v40, 1  ;;  %vm573_vm1 = vcmp.eq.s32.totalorder %v572_v40, 0 }
  0x29   :  { %706 = vmatprep.subr.bf16.mxu0 %v762_v38 }
  0x2b   :  { %439 = vmatmul.mubr.bf16.gmra.mrb[4].mxu0 %v770_v42 }
  0x2c   :  { %488 = vmatmul.mubr.bf16.gmra.mrb[4].mxu1 %v771_v43  ;;  %707 = vmatpush3.bf16.msra.mxu0 %v762_v38 }
  0x2d   :  { %708 = vmatprep.subr.bf16.mxu0 %v763_v41  ;;  %718 = vmatprep.mubr.bf16.mxu0 %v774_v44 }
  0x30   :  { %709 = vmatpush3.bf16.msra.mxu0 %v763_v41 }
  0x31   :  { %710 = vmatprep.subr.bf16.mxu0 %v764_v45 }
  0x34   :  { %711 = vmatpush3.bf16.msra.mxu0 %v764_v45 }
  0x35   :  { %712 = vmatprep.subr.bf16.mxu0 %v769_v46 }
  0x38   :  { %713 = vmatpush3.bf16.msra.mxu0 %v769_v46 }
  0x39   :  { %714 = vmatprep.subr.bf16.mxu0 %v772_v47 }
  0x3c   :  { %715 = vmatpush3.bf16.msra.mxu0 %v772_v47 }
  0x3d   :  { %716 = vmatprep.subr.bf16.mxu0 %v773_v48 }
  0x40   :  { %717 = vmatpush3.bf16.msra.mxu0 %v773_v48 }
  0x43   :  { %719 = vmatmul.mubr.bf16.vlgmr.msra.gmra.mrb[8].mxu0 %v775_v49 }
  0xf6   :  { %v652_v50 = vpop.f32.mrb[0].mxu0 }
  0xf7   :  { %v680_v51 = vpop.f32.mrb[0].mxu1  ;;  %v653_v52 = vpop.f32.mrb[1].mxu0 }
  0xf8   :  { %v654_v53 = vadd.f32 %v653_v52, %v652_v50  ;;  %v681_v54 = vpop.f32.mrb[1].mxu1  ;;  %v655_v55 = vpop.f32.mrb[2].mxu0 }
  0xf9   :  { %v682_v56 = vadd.f32 %v681_v54, %v680_v51  ;;  %v683_v57 = vpop.f32.mrb[2].mxu1  ;;  %v656_v58 = vpop.f32.mrb[3].mxu0 }
  0xfa   :  { %v657_v59 = vadd.f32 %v656_v58, %v655_v55  ;;  %v684_v60 = vpop.f32.mrb[3].mxu1 }
  0xfb   :  { %v685_v61 = vadd.f32 %v684_v60, %v683_v57  ;;  %v482_v62 = vadd.f32 %v682_v56, %v654_v53 }
  0xfd   :  { %v485_v63 = vadd.f32 %v685_v61, %v657_v59 }
  0xfe   :  { %v658_v0 = vpop.f32.mrb[4].mxu0 }
  0xff   :  { %v686_v1 = vpop.f32.mrb[4].mxu1  ;;  %v659_v2 = vpop.f32.mrb[5].mxu0 }
 0x100   :  { %v660_v3 = vadd.f32 %v659_v2, %v658_v0  ;;  %v687_v4 = vpop.f32.mrb[5].mxu1  ;;  %v661_v5 = vpop.f32.mrb[6].mxu0 }
 0x101   :  { %v688_v6 = vadd.f32 %v687_v4, %v686_v1  ;;  %v689_v7 = vpop.f32.mrb[6].mxu1  ;;  %v662_v8 = vpop.f32.mrb[7].mxu0 }
 0x102   :  { %v663_v9 = vadd.f32 %v662_v8, %v661_v5  ;;  %v690_v10 = vpop.f32.mrb[7].mxu1 }
 0x103   :  { %v691_v11 = vadd.f32 %v690_v10, %v689_v7  ;;  %v490_v12 = vadd.f32 %v688_v6, %v660_v3 }
 0x105   :  { %v493_v13 = vadd.f32 %v691_v11, %v663_v9 }
 0x116   :  { %v720_v14 = vpop.f32.mrb[8].mxu0 }
 0x117   :  { %v539_v15 = vadd.f32 %v720_v14, %v490_v12  ;;  %v530_v16 = vpop.f32.mrb[9].mxu0 }
 0x118   :  { %v531_v17 = vadd.f32 %v530_v16, %v482_v62  ;;  %v721_v18 = vpop.f32.mrb[10].mxu0 }
 0x119   :  { %547 = vst [vmem:[%s963_s2 + $0x10] sm:$0xff] %v539_v15  ;;  %v542_v19 = vadd.f32 %v721_v18, %v493_v13  ;;  %v533_v20 = vpop.f32.mrb[11].mxu0  ;;  %v560_v25 = vmul.f32 %v539_v15, %v539_v15 }
 0x11a   :  { %545 = vst [vmem:[%s963_s2] sm:$0xff] %v531_v17  ;;  %v534_v21 = vadd.f32 %v533_v20, %v485_v63  ;;  %v558_v22 = vmul.f32 %v531_v17, %v531_v17 }
 0x11b   :  { %548 = vst [vmem:[%s963_s2 + $0x18] sm:$0xff] %v542_v19  ;;  %v561_v28 = vmul.f32 %v542_v19, %v542_v19 }
 0x11c   :  { %546 = vst [vmem:[%s963_s2 + $0x8] sm:$0xff] %v534_v21  ;;  %v549_v23 = vadd.f32 %v534_v21, %v531_v17  ;;  %v559_v24 = vmul.f32 %v534_v21, %v534_v21 }
 0x11e   :  { %v550_v26 = vadd.f32 %v549_v23, %v539_v15  ;;  %v562_v27 = vadd.f32 %v559_v24, %v558_v22 }
 0x120   :  { %v551_v29 = vadd.f32 %v550_v26, %v542_v19  ;;  %v563_v30 = vadd.f32 %v562_v27, %v560_v25 }
 0x122   :  { %v552_v31 = vrot.slane %v551_v29, 4  ;;  %v564_v32 = vadd.f32 %v563_v30, %v561_v28 }
 0x124   :  { %v553_v33 = vadd.f32 %v552_v31, %v551_v29  ;;  %v565_v34 = vrot.slane %v564_v32, 4 }
 0x126   :  { %v554_v36 = vrot.slane %v553_v33, 2  ;;  %v566_v37 = vadd.f32 %v565_v34, %v564_v32 }
 0x128   :  { %v555_v38 = vadd.f32 %v554_v36, %v553_v33  ;;  %v567_v39 = vrot.slane %v566_v37, 2 }
 0x12a   :  { %v568_v41 = vadd.f32 %v567_v39, %v566_v37  ;;  %v556_v42 = vrot.slane %v555_v38, 1 }
 0x12c   :  { %v569_v43 = vrot.slane %v568_v41, 1  ;;  %v557_v45 = vadd.f32 %v556_v42, %v555_v38 }
 0x12e   :  { %v570_v44 = vadd.f32 %v569_v43, %v568_v41 }
 0x130   :  { %v575_v46 = vsel %vm574_vm0, %v570_v44, 0.0 }
 0x131   :  { %v576_v47 = vsel %vm573_vm1, %v557_v45, %v575_v46 }
 0x132   :  { %577 = vst [vmem:[%s964_s3] sm:$0xff] %v576_v47 }

// kernel: _lambda_.74
= control target key start
LH: loop header
LB: loop body
LE: loop exit
PB: predicated region body
PF: predicated region fallthrough
CT: control target
= control target key end

     0   :  { %s1390_s1 = inlined_call_operand.vmem [shape: bf16[1024,128], index: 1, kind: input, shape index: {}]   ;;  %s1391_s0 = inlined_call_operand.vmem [shape: bf16[32,1024], index: 0, kind: input, shape index: {}]   ;;  %s1392_s2 = inlined_call_operand.vmem [shape: f32[32,128], index: 2, kind: output, shape index: {0}]   ;;  %s1393_s3 = inlined_call_operand.vmem [shape: f32[1,8,128], index: 3, kind: output, shape index: {1}]  }
   0x1   :  { %v1051_v0 = vld [vmem:[%s1390_s1 + $0x40] sm:$0xff]   ;;  %v1055_v4 = vld [vmem:[%s1390_s1 + $0x48] sm:$0xff]   ;;  %v1059_v8 = vld [vmem:[%s1390_s1 + $0x50] sm:$0xff]  }
   0x2   :  { %v1052_v1 = vld [vmem:[%s1390_s1 + $0xc0] sm:$0xff]   ;;  %939 = vmatprep.subr.bf16.mxu0 %v1051_v0  ;;  %v1056_v5 = vld [vmem:[%s1390_s1 + $0xc8] sm:$0xff]   ;;  %v1060_v9 = vld [vmem:[%s1390_s1 + $0xd0] sm:$0xff]  }
   0x3   :  { %v1053_v2 = vld [vmem:[%s1390_s1] sm:$0xff]   ;;  %967 = vmatprep.subr.bf16.mxu1 %v1052_v1  ;;  %v1057_v6 = vld [vmem:[%s1390_s1 + $0x8] sm:$0xff]   ;;  %v1061_v10 = vld [vmem:[%s1390_s1 + $0x10] sm:$0xff]  }
   0x4   :  { %v1054_v3 = vld [vmem:[%s1390_s1 + $0x80] sm:$0xff]   ;;  %940 = vmatpush3.bf16.msra.mxu0 %v1053_v2  ;;  %v1058_v7 = vld [vmem:[%s1390_s1 + $0x88] sm:$0xff]   ;;  %v1062_v11 = vld [vmem:[%s1390_s1 + $0x90] sm:$0xff]  }
   0x5   :  { %968 = vmatpush3.bf16.msra.mxu1 %v1054_v3  ;;  %941 = vmatprep.subr.bf16.mxu0 %v1055_v4  ;;  %v1063_v12 = vld [vmem:[%s1390_s1 + $0x58] sm:$0xff]   ;;  %v1067_v16 = vld [vmem:[%s1390_s1 + $0x60] sm:$0xff]   ;;  %v1071_v20 = vld [vmem:[%s1390_s1 + $0x68] sm:$0xff]  }
   0x6   :  { %969 = vmatprep.subr.bf16.mxu1 %v1056_v5  ;;  %v1064_v13 = vld [vmem:[%s1390_s1 + $0xd8] sm:$0xff]   ;;  %v1068_v17 = vld [vmem:[%s1390_s1 + $0xe0] sm:$0xff]   ;;  %v1072_v21 = vld [vmem:[%s1390_s1 + $0xe8] sm:$0xff]  }
   0x7   :  { %v1065_v14 = vld [vmem:[%s1390_s1 + $0x18] sm:$0xff]   ;;  %v1069_v18 = vld [vmem:[%s1390_s1 + $0x20] sm:$0xff]   ;;  %v1073_v22 = vld [vmem:[%s1390_s1 + $0x28] sm:$0xff]  }
   0x8   :  { %942 = vmatpush3.bf16.msra.mxu0 %v1057_v6  ;;  %v1066_v15 = vld [vmem:[%s1390_s1 + $0x98] sm:$0xff]   ;;  %v1070_v19 = vld [vmem:[%s1390_s1 + $0xa0] sm:$0xff]   ;;  %v1074_v23 = vld [vmem:[%s1390_s1 + $0xa8] sm:$0xff]  }
   0x9   :  { %970 = vmatpush3.bf16.msra.mxu1 %v1058_v7  ;;  %943 = vmatprep.subr.bf16.mxu0 %v1059_v8  ;;  %v1075_v24 = vld [vmem:[%s1390_s1 + $0x70] sm:$0xff]   ;;  %v1079_v28 = vld [vmem:[%s1390_s1 + $0x78] sm:$0xff]   ;;  %v14_v32 = vld [vmem:[%s1391_s0] sm:$0xff] }
   0xa   :  { %971 = vmatprep.subr.bf16.mxu1 %v1060_v9  ;;  %v1076_v25 = vld [vmem:[%s1390_s1 + $0xf0] sm:$0xff]   ;;  %v1080_v29 = vld [vmem:[%s1390_s1 + $0xf8] sm:$0xff]   ;;  %v18_v33 = vld [vmem:[%s1391_s0 + $0x20] sm:$0xff] }
   0xb   :  { %v1077_v26 = vld [vmem:[%s1390_s1 + $0x30] sm:$0xff]   ;;  %v1081_v30 = vld [vmem:[%s1390_s1 + $0x38] sm:$0xff]   ;;  %v15_v34 = vld [vmem:[%s1391_s0 + $0x8] sm:$0xff]  ;;  %v859_v35 = vcombine.low %v14_v32, %v18_v33  ;;  %v860_v36 = vcombine.high %v14_v32, %v18_v33 }
   0xc   :  { %944 = vmatpush3.bf16.msra.mxu0 %v1061_v10  ;;  %v1078_v27 = vld [vmem:[%s1390_s1 + $0xb0] sm:$0xff]   ;;  %v1082_v31 = vld [vmem:[%s1390_s1 + $0xb8] sm:$0xff]   ;;  %v19_v37 = vld [vmem:[%s1391_s0 + $0x28] sm:$0xff] }
   0xd   :  { %972 = vmatpush3.bf16.msra.mxu1 %v1062_v11  ;;  %945 = vmatprep.subr.bf16.mxu0 %v1063_v12  ;;  %v861_v38 = vcombine.low %v15_v34, %v19_v37  ;;  %v862_v39 = vcombine.high %v15_v34, %v19_v37  ;;  %v1083_v40 = vld [vmem:[%s1390_s1 + $0x140] sm:$0xff]   ;;  %v1087_v44 = vld [vmem:[%s1390_s1 + $0x148] sm:$0xff]   ;;  %v1091_v48 = vld [vmem:[%s1390_s1 + $0x150] sm:$0xff]  }
   0xe   :  { %973 = vmatprep.subr.bf16.mxu1 %v1064_v13  ;;  %654 = vmatprep.mubr.bf16.mxu0 %v860_v36  ;;  %v1084_v41 = vld [vmem:[%s1390_s1 + $0x1c0] sm:$0xff]   ;;  %v1088_v45 = vld [vmem:[%s1390_s1 + $0x1c8] sm:$0xff]   ;;  %v1092_v49 = vld [vmem:[%s1390_s1 + $0x1d0] sm:$0xff]  }
   0xf   :  { %703 = vmatprep.mubr.bf16.mxu1 %v862_v39  ;;  %v1085_v42 = vld [vmem:[%s1390_s1 + $0x100] sm:$0xff]   ;;  %v1089_v46 = vld [vmem:[%s1390_s1 + $0x108] sm:$0xff]   ;;  %v1093_v50 = vld [vmem:[%s1390_s1 + $0x110] sm:$0xff]  }
  0x10   :  { %946 = vmatpush3.bf16.msra.mxu0 %v1065_v14  ;;  %v1086_v43 = vld [vmem:[%s1390_s1 + $0x180] sm:$0xff]   ;;  %v1090_v47 = vld [vmem:[%s1390_s1 + $0x188] sm:$0xff]   ;;  %v1094_v51 = vld [vmem:[%s1390_s1 + $0x190] sm:$0xff]  }
  0x11   :  { %974 = vmatpush3.bf16.msra.mxu1 %v1066_v15  ;;  %947 = vmatprep.subr.bf16.mxu0 %v1067_v16  ;;  %v1095_v52 = vld [vmem:[%s1390_s1 + $0x158] sm:$0xff]   ;;  %v1099_v56 = vld [vmem:[%s1390_s1 + $0x160] sm:$0xff]   ;;  %v23_v63 = vld [vmem:[%s1391_s0 + $0x48] sm:$0xff] }
  0x12   :  { %975 = vmatprep.subr.bf16.mxu1 %v1068_v17  ;;  %v1096_v53 = vld [vmem:[%s1390_s1 + $0x1d8] sm:$0xff]   ;;  %v1100_v57 = vld [vmem:[%s1390_s1 + $0x1e0] sm:$0xff]   ;;  %v27_v0 = vld [vmem:[%s1391_s0 + $0x68] sm:$0xff] }
  0x13   :  { %v1097_v54 = vld [vmem:[%s1390_s1 + $0x118] sm:$0xff]   ;;  %v1101_v58 = vld [vmem:[%s1390_s1 + $0x120] sm:$0xff]   ;;  %v870_v2 = vcombine.high %v23_v63, %v27_v0  ;;  %v1103_v3 = vld [vmem:[%s1390_s1 + $0x168] sm:$0xff]   ;;  %v869_v4 = vcombine.low %v23_v63, %v27_v0 }
  0x14   :  { %948 = vmatpush3.bf16.msra.mxu0 %v1069_v18  ;;  %v1098_v55 = vld [vmem:[%s1390_s1 + $0x198] sm:$0xff]   ;;  %v1102_v59 = vld [vmem:[%s1390_s1 + $0x1a0] sm:$0xff]   ;;  %v1104_v5 = vld [vmem:[%s1390_s1 + $0x1e8] sm:$0xff]  }
  0x15   :  { %976 = vmatpush3.bf16.msra.mxu1 %v1070_v19  ;;  %949 = vmatprep.subr.bf16.mxu0 %v1071_v20  ;;  %v22_v60 = vld [vmem:[%s1391_s0 + $0x40] sm:$0xff]  ;;  %v1105_v6 = vld [vmem:[%s1390_s1 + $0x128] sm:$0xff]   ;;  %v1107_v8 = vld [vmem:[%s1390_s1 + $0x170] sm:$0xff]  }
  0x16   :  { %977 = vmatprep.subr.bf16.mxu1 %v1072_v21  ;;  %v26_v61 = vld [vmem:[%s1391_s0 + $0x60] sm:$0xff]  ;;  %v1106_v7 = vld [vmem:[%s1390_s1 + $0x1a8] sm:$0xff]   ;;  %v1108_v9 = vld [vmem:[%s1390_s1 + $0x1f0] sm:$0xff]  }
  0x17   :  { %v868_v62 = vcombine.high %v22_v60, %v26_v61  ;;  %v867_v1 = vcombine.low %v22_v60, %v26_v61  ;;  %v1109_v10 = vld [vmem:[%s1390_s1 + $0x130] sm:$0xff]   ;;  %v1111_v12 = vld [vmem:[%s1390_s1 + $0x178] sm:$0xff]  }
  0x18   :  { %950 = vmatpush3.bf16.msra.mxu0 %v1073_v22  ;;  %v1110_v11 = vld [vmem:[%s1390_s1 + $0x1b0] sm:$0xff]   ;;  %v1112_v13 = vld [vmem:[%s1390_s1 + $0x1f8] sm:$0xff]  }
  0x19   :  { %978 = vmatpush3.bf16.msra.mxu1 %v1074_v23  ;;  %951 = vmatprep.subr.bf16.mxu0 %v1075_v24  ;;  %v1113_v14 = vld [vmem:[%s1390_s1 + $0x138] sm:$0xff]   ;;  %v16_v16 = vld [vmem:[%s1391_s0 + $0x10] sm:$0xff] }
  0x1a   :  { %979 = vmatprep.subr.bf16.mxu1 %v1076_v25  ;;  %v1114_v15 = vld [vmem:[%s1390_s1 + $0x1b8] sm:$0xff]   ;;  %v20_v17 = vld [vmem:[%s1391_s0 + $0x30] sm:$0xff] }
  0x1b   :  { %v17_v18 = vld [vmem:[%s1391_s0 + $0x18] sm:$0xff]  ;;  %v863_v20 = vcombine.low %v16_v16, %v20_v17  ;;  %v864_v21 = vcombine.high %v16_v16, %v20_v17  ;;  %v24_v24 = vld [vmem:[%s1391_s0 + $0x50] sm:$0xff] }
  0x1c   :  { %952 = vmatpush3.bf16.msra.mxu0 %v1077_v26  ;;  %v21_v19 = vld [vmem:[%s1391_s0 + $0x38] sm:$0xff]  ;;  %v28_v25 = vld [vmem:[%s1391_s0 + $0x70] sm:$0xff] }
  0x1d   :  { %980 = vmatpush3.bf16.msra.mxu1 %v1078_v27  ;;  %953 = vmatprep.subr.bf16.mxu0 %v1079_v28  ;;  %v865_v22 = vcombine.low %v17_v18, %v21_v19  ;;  %v866_v23 = vcombine.high %v17_v18, %v21_v19  ;;  %v25_v26 = vld [vmem:[%s1391_s0 + $0x58] sm:$0xff]  ;;  %v872_v27 = vcombine.high %v24_v24, %v28_v25 }
  0x1e   :  { %981 = vmatprep.subr.bf16.mxu1 %v1080_v29  ;;  %v29_v28 = vld [vmem:[%s1391_s0 + $0x78] sm:$0xff] }
  0x1f   :  { %v874_v29 = vcombine.high %v25_v26, %v29_v28 }
  0x20   :  { %954 = vmatpush3.bf16.msra.mxu0 %v1081_v30  ;;  %v871_v30 = vcombine.low %v24_v24, %v28_v25 }
  0x21   :  { %982 = vmatpush3.bf16.msra.mxu1 %v1082_v31  ;;  %995 = vmatprep.subr.bf16.mxu0 %v1083_v40  ;;  %v873_v31 = vcombine.low %v25_v26, %v29_v28 }
  0x22   :  { %1023 = vmatprep.subr.bf16.mxu1 %v1084_v41 }
  0x23   :  { %655 = vmatmul.mubr.bf16.vlgmr.msra.gmra.mrb[0].mxu0 %v859_v35 }
  0x24   :  { %704 = vmatmul.mubr.bf16.vlgmr.msra.gmra.mrb[0].mxu1 %v861_v38  ;;  %996 = vmatpush3.bf16.msra.mxu0 %v1085_v42 }
  0x25   :  { %1024 = vmatpush3.bf16.msra.mxu1 %v1086_v43  ;;  %997 = vmatprep.subr.bf16.mxu0 %v1087_v44 }
  0x26   :  { %1025 = vmatprep.subr.bf16.mxu1 %v1088_v45  ;;  %662 = vmatprep.mubr.bf16.mxu0 %v868_v62 }
  0x27   :  { %711 = vmatprep.mubr.bf16.mxu1 %v870_v2 }
  0x28   :  { %998 = vmatpush3.bf16.msra.mxu0 %v1089_v46 }
  0x29   :  { %1026 = vmatpush3.bf16.msra.mxu1 %v1090_v47  ;;  %999 = vmatprep.subr.bf16.mxu0 %v1091_v48 }
  0x2a   :  { %1027 = vmatprep.subr.bf16.mxu1 %v1092_v49 }
  0x2b   :  { %663 = vmatmul.mubr.bf16.gmra.mrb[4].mxu0 %v867_v1 }
  0x2c   :  { %1000 = vmatpush3.bf16.msra.mxu0 %v1093_v50  ;;  %712 = vmatmul.mubr.bf16.gmra.mrb[4].mxu1 %v869_v4 }
  0x2d   :  { %1028 = vmatpush3.bf16.msra.mxu1 %v1094_v51  ;;  %1001 = vmatprep.subr.bf16.mxu0 %v1095_v52 }
  0x2e   :  { %1029 = vmatprep.subr.bf16.mxu1 %v1096_v53  ;;  %752 = vmatprep.mubr.bf16.mxu0 %v864_v21 }
  0x2f   :  { %801 = vmatprep.mubr.bf16.mxu1 %v866_v23 }
  0x30   :  { %1002 = vmatpush3.bf16.msra.mxu0 %v1097_v54 }
  0x31   :  { %1030 = vmatpush3.bf16.msra.mxu1 %v1098_v55  ;;  %1003 = vmatprep.subr.bf16.mxu0 %v1099_v56 }
  0x32   :  { %1031 = vmatprep.subr.bf16.mxu1 %v1100_v57 }
  0x34   :  { %1004 = vmatpush3.bf16.msra.mxu0 %v1101_v58 }
  0x35   :  { %1032 = vmatpush3.bf16.msra.mxu1 %v1102_v59  ;;  %1005 = vmatprep.subr.bf16.mxu0 %v1103_v3 }
  0x36   :  { %1033 = vmatprep.subr.bf16.mxu1 %v1104_v5 }
  0x38   :  { %1006 = vmatpush3.bf16.msra.mxu0 %v1105_v6 }
  0x39   :  { %1034 = vmatpush3.bf16.msra.mxu1 %v1106_v7  ;;  %1007 = vmatprep.subr.bf16.mxu0 %v1107_v8 }
  0x3a   :  { %1035 = vmatprep.subr.bf16.mxu1 %v1108_v9 }
  0x3c   :  { %1008 = vmatpush3.bf16.msra.mxu0 %v1109_v10 }
  0x3d   :  { %1036 = vmatpush3.bf16.msra.mxu1 %v1110_v11  ;;  %1009 = vmatprep.subr.bf16.mxu0 %v1111_v12 }
  0x3e   :  { %1037 = vmatprep.subr.bf16.mxu1 %v1112_v13 }
  0x40   :  { %1010 = vmatpush3.bf16.msra.mxu0 %v1113_v14 }
  0x41   :  { %1038 = vmatpush3.bf16.msra.mxu1 %v1114_v15 }
  0x43   :  { %753 = vmatmul.mubr.bf16.vlgmr.msra.gmra.mrb[8].mxu0 %v863_v20 }
  0x44   :  { %802 = vmatmul.mubr.bf16.vlgmr.msra.gmra.mrb[8].mxu1 %v865_v22  ;;  %760 = vmatprep.mubr.bf16.mxu0 %v872_v27 }
  0x45   :  { %809 = vmatprep.mubr.bf16.mxu1 %v874_v29 }
  0x4b   :  { %761 = vmatmul.mubr.bf16.gmra.mrb[12].mxu0 %v871_v30 }
  0x4c   :  { %810 = vmatmul.mubr.bf16.gmra.mrb[12].mxu1 %v873_v31 }
  0xf6   :  { %v955_v32 = vpop.f32.mrb[0].mxu0 }
  0xf7   :  { %v983_v33 = vpop.f32.mrb[0].mxu1  ;;  %v956_v34 = vpop.f32.mrb[1].mxu0 }
  0xf8   :  { %v957_v35 = vadd.f32 %v956_v34, %v955_v32  ;;  %v984_v36 = vpop.f32.mrb[1].mxu1  ;;  %v958_v37 = vpop.f32.mrb[2].mxu0 }
  0xf9   :  { %v985_v38 = vadd.f32 %v984_v36, %v983_v33  ;;  %v986_v39 = vpop.f32.mrb[2].mxu1  ;;  %v959_v40 = vpop.f32.mrb[3].mxu0 }
  0xfa   :  { %v960_v41 = vadd.f32 %v959_v40, %v958_v37  ;;  %v987_v42 = vpop.f32.mrb[3].mxu1 }
  0xfb   :  { %v706_v43 = vadd.f32 %v985_v38, %v957_v35  ;;  %v988_v44 = vadd.f32 %v987_v42, %v986_v39 }
  0xfd   :  { %v709_v45 = vadd.f32 %v988_v44, %v960_v41  ;;  %v844_v41 = vlaneseq }
  0xfe   :  { %v961_v46 = vpop.f32.mrb[4].mxu0 }
  0xff   :  { %v989_v47 = vpop.f32.mrb[4].mxu1  ;;  %v962_v48 = vpop.f32.mrb[5].mxu0 }
 0x100   :  { %v963_v49 = vadd.f32 %v962_v48, %v961_v46  ;;  %v990_v50 = vpop.f32.mrb[5].mxu1  ;;  %v964_v51 = vpop.f32.mrb[6].mxu0  ;;  %v845_v46 = vshrl.u32 %v844_v41, 7 }
 0x101   :  { %v991_v52 = vadd.f32 %v990_v50, %v989_v47  ;;  %v992_v53 = vpop.f32.mrb[6].mxu1  ;;  %v965_v54 = vpop.f32.mrb[7].mxu0 }
 0x102   :  { %v966_v55 = vadd.f32 %v965_v54, %v964_v51  ;;  %v993_v56 = vpop.f32.mrb[7].mxu1  ;;  %vm847_vm0 = vcmp.eq.s32.totalorder %v845_v46, 1  ;;  %vm846_vm1 = vcmp.eq.s32.totalorder %v845_v46, 0 }
 0x103   :  { %v714_v57 = vadd.f32 %v991_v52, %v963_v49  ;;  %v994_v58 = vadd.f32 %v993_v56, %v992_v53 }
 0x105   :  { %v717_v59 = vadd.f32 %v994_v58, %v966_v55 }
 0x116   :  { %v1011_v60 = vpop.f32.mrb[8].mxu0 }
 0x117   :  { %v1039_v61 = vpop.f32.mrb[8].mxu1  ;;  %v1012_v62 = vpop.f32.mrb[9].mxu0 }
 0x118   :  { %v1040_v63 = vpop.f32.mrb[9].mxu1  ;;  %v1013_v0 = vadd.f32 %v1012_v62, %v1011_v60  ;;  %v1014_v2 = vpop.f32.mrb[10].mxu0 }
 0x119   :  { %v1041_v1 = vadd.f32 %v1040_v63, %v1039_v61  ;;  %v1042_v3 = vpop.f32.mrb[10].mxu1  ;;  %v1015_v4 = vpop.f32.mrb[11].mxu0 }
 0x11a   :  { %v1043_v5 = vpop.f32.mrb[11].mxu1  ;;  %v755_v6 = vadd.f32 %v1013_v0, %v706_v43  ;;  %v1016_v7 = vadd.f32 %v1015_v4, %v1014_v2 }
 0x11b   :  { %v1044_v8 = vadd.f32 %v1043_v5, %v1042_v3 }
 0x11c   :  { %v804_v9 = vadd.f32 %v1041_v1, %v755_v6  ;;  %v758_v10 = vadd.f32 %v1016_v7, %v709_v45 }
 0x11e   :  { %818 = vst [vmem:[%s1392_s2] sm:$0xff] %v804_v9  ;;  %v807_v11 = vadd.f32 %v1044_v8, %v758_v10  ;;  %v1017_v12 = vpop.f32.mrb[12].mxu0  ;;  %v831_v14 = vmul.f32 %v804_v9, %v804_v9 }
 0x11f   :  { %v1045_v13 = vpop.f32.mrb[12].mxu1  ;;  %v1018_v15 = vpop.f32.mrb[13].mxu0 }
 0x120   :  { %v1046_v16 = vpop.f32.mrb[13].mxu1  ;;  %819 = vst [vmem:[%s1392_s2 + $0x8] sm:$0xff] %v807_v11  ;;  %v822_v17 = vadd.f32 %v807_v11, %v804_v9  ;;  %v832_v18 = vmul.f32 %v807_v11, %v807_v11  ;;  %v1019_v19 = vadd.f32 %v1018_v15, %v1017_v12  ;;  %v1020_v21 = vpop.f32.mrb[14].mxu0 }
 0x121   :  { %v1047_v20 = vadd.f32 %v1046_v16, %v1045_v13  ;;  %v1048_v22 = vpop.f32.mrb[14].mxu1  ;;  %v1021_v23 = vpop.f32.mrb[15].mxu0 }
 0x122   :  { %v1049_v24 = vpop.f32.mrb[15].mxu1  ;;  %v835_v25 = vadd.f32 %v832_v18, %v831_v14  ;;  %v763_v26 = vadd.f32 %v1019_v19, %v714_v57  ;;  %v1022_v27 = vadd.f32 %v1021_v23, %v1020_v21 }
 0x123   :  { %v1050_v28 = vadd.f32 %v1049_v24, %v1048_v22 }
 0x124   :  { %v812_v29 = vadd.f32 %v1047_v20, %v763_v26  ;;  %v766_v30 = vadd.f32 %v1022_v27, %v717_v59 }
 0x126   :  { %820 = vst [vmem:[%s1392_s2 + $0x10] sm:$0xff] %v812_v29  ;;  %v823_v31 = vadd.f32 %v822_v17, %v812_v29  ;;  %v833_v32 = vmul.f32 %v812_v29, %v812_v29  ;;  %v815_v33 = vadd.f32 %v1050_v28, %v766_v30 }
 0x128   :  { %v836_v34 = vadd.f32 %v835_v25, %v833_v32  ;;  %821 = vst [vmem:[%s1392_s2 + $0x18] sm:$0xff] %v815_v33  ;;  %v824_v35 = vadd.f32 %v823_v31, %v815_v33  ;;  %v834_v36 = vmul.f32 %v815_v33, %v815_v33 }
 0x12a   :  { %v825_v37 = vrot.slane %v824_v35, 4  ;;  %v837_v38 = vadd.f32 %v836_v34, %v834_v36 }
 0x12c   :  { %v826_v39 = vadd.f32 %v825_v37, %v824_v35  ;;  %v838_v40 = vrot.slane %v837_v38, 4 }
 0x12e   :  { %v827_v42 = vrot.slane %v826_v39, 2  ;;  %v839_v43 = vadd.f32 %v838_v40, %v837_v38 }
 0x130   :  { %v828_v44 = vadd.f32 %v827_v42, %v826_v39  ;;  %v840_v45 = vrot.slane %v839_v43, 2 }
 0x132   :  { %v841_v47 = vadd.f32 %v840_v45, %v839_v43  ;;  %v829_v48 = vrot.slane %v828_v44, 1 }
 0x134   :  { %v842_v49 = vrot.slane %v841_v47, 1  ;;  %v830_v51 = vadd.f32 %v829_v48, %v828_v44 }
 0x136   :  { %v843_v50 = vadd.f32 %v842_v49, %v841_v47 }
 0x138   :  { %v848_v52 = vsel %vm847_vm0, %v843_v50, 0.0 }
 0x139   :  { %v849_v53 = vsel %vm846_vm1, %v830_v51, %v848_v52 }
 0x13a   :  { %850 = vst [vmem:[%s1393_s3] sm:$0xff] %v849_v53 }

// kernel: _lambda_.68
= control target key start
LH: loop header
LB: loop body
LE: loop exit
PB: predicated region body
PF: predicated region fallthrough
CT: control target
= control target key end

     0   :  { %s1659_s12 = smov 0   ;;  %s1942_s0 = inlined_call_operand.vmem [shape: bf16[128,1024], index: 0, kind: input, shape index: {}]   ;;  %s1943_s1 = inlined_call_operand.vmem [shape: bf16[1024,128], index: 1, kind: input, shape index: {}]   ;;  %s1944_s2 = inlined_call_operand.vmem [shape: f32[128,128], index: 2, kind: output, shape index: {0}]   ;;  %s1945_s3 = inlined_call_operand.vmem [shape: f32[2,8,128], index: 3, kind: output, shape index: {1}]  }
   0x1 LB: > { %s1665_s13 = sadd.s32 4294967295, %s1637_s12   ;;  %p1293_p0 = scmp.ge.s32.totalorder %s1637_s12, 1  ;;  %s1637_s12 = sphi %s1659_s12, %s14_s12  }
   0x2   : > { %p142_p1 = scmp.lt.s32.totalorder %s1637_s12, 3 }
   0x4   : > { %p143_p2 = pnand %p1293_p0, %p142_p1 }
   0x5   : > { %v1567_v0 = vld [vmem:[%s1943_s1 + $0x40] sm:$0xff] (!%p143_p2)   ;;  %v1571_v4 = vld [vmem:[%s1943_s1 + $0x48] sm:$0xff] (!%p143_p2)   ;;  %v1575_v8 = vld [vmem:[%s1943_s1 + $0x50] sm:$0xff] (!%p143_p2)   ;;  %s1294_s21 = sshll.u32 (!%p143_p2), %s1665_s13, 3  ;;  %p184_p4 = scmp.lt.s32.totalorder (!%p143_p2), %s1665_s13, 1 }
   0x6   : > { %146 = sbr.rel (%p143_p2) target bundleno = 335 (0x14f), region = 28  ;;  %v1568_v1 = vld [vmem:[%s1943_s1 + $0xc0] sm:$0xff] (!%p143_p2)   ;;  %1399 = vmatprep.subr.bf16.mxu0 (!%p143_p2), %v1567_v0  ;;  %v1572_v5 = vld [vmem:[%s1943_s1 + $0xc8] sm:$0xff] (!%p143_p2)   ;;  %v1576_v9 = vld [vmem:[%s1943_s1 + $0xd0] sm:$0xff] (!%p143_p2)   ;;  %p172_p3 = scmp.lt.s32.totalorder (!%p143_p2), %s1294_s21, 15 }
   0x7   : > { %v1569_v2 = vld [vmem:[%s1943_s1] sm:$0xff] (!%p143_p2)   ;;  %1439 = vmatprep.subr.bf16.mxu1 (!%p143_p2), %v1568_v1  ;;  %v1573_v6 = vld [vmem:[%s1943_s1 + $0x8] sm:$0xff] (!%p143_p2)   ;;  %v1577_v10 = vld [vmem:[%s1943_s1 + $0x10] sm:$0xff] (!%p143_p2)  }
   0x8   : > { %v1570_v3 = vld [vmem:[%s1943_s1 + $0x80] sm:$0xff] (!%p143_p2)   ;;  %1400 = vmatpush3.bf16.msra.mxu0 (!%p143_p2), %v1569_v2  ;;  %v1574_v7 = vld [vmem:[%s1943_s1 + $0x88] sm:$0xff] (!%p143_p2)   ;;  %v1578_v11 = vld [vmem:[%s1943_s1 + $0x90] sm:$0xff] (!%p143_p2)  }
   0x9   : > { %1440 = vmatpush3.bf16.msra.mxu1 (!%p143_p2), %v1570_v3  ;;  %1401 = vmatprep.subr.bf16.mxu0 (!%p143_p2), %v1571_v4  ;;  %v1579_v12 = vld [vmem:[%s1943_s1 + $0x58] sm:$0xff] (!%p143_p2)   ;;  %v1583_v16 = vld [vmem:[%s1943_s1 + $0x60] sm:$0xff] (!%p143_p2)   ;;  %v1587_v20 = vld [vmem:[%s1943_s1 + $0x68] sm:$0xff] (!%p143_p2)  }
   0xa   : > { %1441 = vmatprep.subr.bf16.mxu1 (!%p143_p2), %v1572_v5  ;;  %v1580_v13 = vld [vmem:[%s1943_s1 + $0xd8] sm:$0xff] (!%p143_p2)   ;;  %v1584_v17 = vld [vmem:[%s1943_s1 + $0xe0] sm:$0xff] (!%p143_p2)   ;;  %v1588_v21 = vld [vmem:[%s1943_s1 + $0xe8] sm:$0xff] (!%p143_p2)  }
   0xb   : > { %v1581_v14 = vld [vmem:[%s1943_s1 + $0x18] sm:$0xff] (!%p143_p2)   ;;  %v1585_v18 = vld [vmem:[%s1943_s1 + $0x20] sm:$0xff] (!%p143_p2)   ;;  %v1589_v22 = vld [vmem:[%s1943_s1 + $0x28] sm:$0xff] (!%p143_p2)  }
   0xc   : > { %1402 = vmatpush3.bf16.msra.mxu0 (!%p143_p2), %v1573_v6  ;;  %v1582_v15 = vld [vmem:[%s1943_s1 + $0x98] sm:$0xff] (!%p143_p2)   ;;  %v1586_v19 = vld [vmem:[%s1943_s1 + $0xa0] sm:$0xff] (!%p143_p2)   ;;  %v1590_v23 = vld [vmem:[%s1943_s1 + $0xa8] sm:$0xff] (!%p143_p2)  }
   0xd   : > { %1442 = vmatpush3.bf16.msra.mxu1 %v1574_v7  ;;  %1403 = vmatprep.subr.bf16.mxu0 %v1575_v8  ;;  %s1947_s21 = smov (!%p172_p3, %s1294_s21), 15  ;;  %v1591_v24 = vld [vmem:[%s1943_s1 + $0x70] sm:$0xff]   ;;  %v1595_v28 = vld [vmem:[%s1943_s1 + $0x78] sm:$0xff]   ;;  %v1599_v40 = vld [vmem:[%s1943_s1 + $0x140] sm:$0xff]   ;;  %s1949_s13 = smov (!%p184_p4, %s1665_s13), 1 }
   0xe   : > { %1443 = vmatprep.subr.bf16.mxu1 %v1576_v9  ;;  %v1592_v25 = vld [vmem:[%s1943_s1 + $0xf0] sm:$0xff]   ;;  %s1398_s19 = sshll.u32 %s1947_s21, 5  ;;  %v1596_v29 = vld [vmem:[%s1943_s1 + $0xf8] sm:$0xff]   ;;  %v1600_v41 = vld [vmem:[%s1943_s1 + $0x1c0] sm:$0xff]  }
   0xf   : > { %v1593_v26 = vld [vmem:[%s1943_s1 + $0x30] sm:$0xff]   ;;  %s1766_s29 = scalar_lea.vmem %s1942_s0, %s1398_s19  ;;  %v1597_v30 = vld [vmem:[%s1943_s1 + $0x38] sm:$0xff]   ;;  %v1601_v42 = vld [vmem:[%s1943_s1 + $0x100] sm:$0xff]  }
  0x10   : > { %1404 = vmatpush3.bf16.msra.mxu0 %v1577_v10  ;;  %v1594_v27 = vld [vmem:[%s1943_s1 + $0xb0] sm:$0xff]   ;;  %v1598_v31 = vld [vmem:[%s1943_s1 + $0xb8] sm:$0xff]   ;;  %v189_v32 = vld [vmem:[%s1766_s29] sm:$0xff] }
  0x11   : > { %1444 = vmatpush3.bf16.msra.mxu1 %v1578_v11  ;;  %1405 = vmatprep.subr.bf16.mxu0 %v1579_v12  ;;  %v193_v33 = vld [vmem:[%s1766_s29 + $0x20] sm:$0xff]  ;;  %v190_v34 = vld [vmem:[%s1766_s29 + $0x8] sm:$0xff]  ;;  %v1607_v56 = vld [vmem:[%s1943_s1 + $0x150] sm:$0xff]  }
  0x12   : > { %1445 = vmatprep.subr.bf16.mxu1 %v1580_v13  ;;  %v1300_v35 = vcombine.low %v189_v32, %v193_v33  ;;  %v1301_v36 = vcombine.high %v189_v32, %v193_v33  ;;  %v194_v37 = vld [vmem:[%s1766_s29 + $0x28] sm:$0xff]  ;;  %v1602_v43 = vld [vmem:[%s1943_s1 + $0x180] sm:$0xff]   ;;  %v1608_v57 = vld [vmem:[%s1943_s1 + $0x1d0] sm:$0xff]  }
  0x13   : > { %v1302_v38 = vcombine.low %v190_v34, %v194_v37  ;;  %v1303_v39 = vcombine.high %v190_v34, %v194_v37  ;;  %v1603_v44 = vld [vmem:[%s1943_s1 + $0x148] sm:$0xff]   ;;  %v197_v48 = vld [vmem:[%s1766_s29 + $0x40] sm:$0xff]  ;;  %v1609_v58 = vld [vmem:[%s1943_s1 + $0x110] sm:$0xff]  }
  0x14   : > { %1406 = vmatpush3.bf16.msra.mxu0 %v1581_v14  ;;  %925 = vmatprep.mubr.bf16.mxu0 %v1301_v36  ;;  %v1604_v45 = vld [vmem:[%s1943_s1 + $0x1c8] sm:$0xff]   ;;  %v201_v49 = vld [vmem:[%s1766_s29 + $0x60] sm:$0xff]  ;;  %v1610_v59 = vld [vmem:[%s1943_s1 + $0x190] sm:$0xff]  }
  0x15   : > { %1446 = vmatpush3.bf16.msra.mxu1 %v1582_v15  ;;  %1407 = vmatprep.subr.bf16.mxu0 %v1583_v16  ;;  %v1605_v46 = vld [vmem:[%s1943_s1 + $0x108] sm:$0xff]   ;;  %v1309_v50 = vcombine.high %v197_v48, %v201_v49  ;;  %v1308_v53 = vcombine.low %v197_v48, %v201_v49  ;;  %v1611_v60 = vld [vmem:[%s1943_s1 + $0x158] sm:$0xff]   ;;  %v205_v0 = vld [vmem:[%s1766_s29 + $0x80] sm:$0xff] }
  0x16   : > { %1447 = vmatprep.subr.bf16.mxu1 %v1584_v17  ;;  %990 = vmatprep.mubr.bf16.mxu1 %v1303_v39  ;;  %v1606_v47 = vld [vmem:[%s1943_s1 + $0x188] sm:$0xff]   ;;  %v1612_v61 = vld [vmem:[%s1943_s1 + $0x1d8] sm:$0xff]   ;;  %v209_v1 = vld [vmem:[%s1766_s29 + $0xa0] sm:$0xff] }
  0x17   : > { %v198_v51 = vld [vmem:[%s1766_s29 + $0x48] sm:$0xff]  ;;  %v1613_v62 = vld [vmem:[%s1943_s1 + $0x118] sm:$0xff]   ;;  %v1317_v4 = vcombine.high %v205_v0, %v209_v1  ;;  %v1316_v6 = vcombine.low %v205_v0, %v209_v1  ;;  %v1615_v8 = vld [vmem:[%s1943_s1 + $0x160] sm:$0xff]  }
  0x18   : > { %1408 = vmatpush3.bf16.msra.mxu0 %v1585_v18  ;;  %v202_v52 = vld [vmem:[%s1766_s29 + $0x68] sm:$0xff]  ;;  %v1614_v63 = vld [vmem:[%s1943_s1 + $0x198] sm:$0xff]   ;;  %v1616_v9 = vld [vmem:[%s1943_s1 + $0x1e0] sm:$0xff]  }
  0x19   : > { %1448 = vmatpush3.bf16.msra.mxu1 %v1586_v19  ;;  %1409 = vmatprep.subr.bf16.mxu0 %v1587_v20  ;;  %v1311_v54 = vcombine.high %v198_v51, %v202_v52  ;;  %v1310_v55 = vcombine.low %v198_v51, %v202_v52  ;;  %v206_v2 = vld [vmem:[%s1766_s29 + $0x88] sm:$0xff]  ;;  %v1617_v10 = vld [vmem:[%s1943_s1 + $0x120] sm:$0xff]   ;;  %v191_v32 = vld [vmem:[%s1766_s29 + $0x10] sm:$0xff] }
  0x1a   : > { %1449 = vmatprep.subr.bf16.mxu1 %v1588_v21  ;;  %v210_v3 = vld [vmem:[%s1766_s29 + $0xa8] sm:$0xff]  ;;  %v1618_v11 = vld [vmem:[%s1943_s1 + $0x1a0] sm:$0xff]   ;;  %v195_v33 = vld [vmem:[%s1766_s29 + $0x30] sm:$0xff] }
  0x1b   : > { %v1319_v5 = vcombine.high %v206_v2, %v210_v3  ;;  %v1318_v7 = vcombine.low %v206_v2, %v210_v3  ;;  %v1619_v12 = vld [vmem:[%s1943_s1 + $0x168] sm:$0xff]   ;;  %v213_v16 = vld [vmem:[%s1766_s29 + $0xc0] sm:$0xff]  ;;  %v1304_v34 = vcombine.low %v191_v32, %v195_v33  ;;  %v192_v36 = vld [vmem:[%s1766_s29 + $0x18] sm:$0xff] }
  0x1c   : > { %1410 = vmatpush3.bf16.msra.mxu0 %v1589_v22  ;;  %v1620_v13 = vld [vmem:[%s1943_s1 + $0x1e8] sm:$0xff]   ;;  %v217_v17 = vld [vmem:[%s1766_s29 + $0xe0] sm:$0xff]  ;;  %v196_v37 = vld [vmem:[%s1766_s29 + $0x38] sm:$0xff] }
  0x1d   : > { %1450 = vmatpush3.bf16.msra.mxu1 %v1590_v23  ;;  %1411 = vmatprep.subr.bf16.mxu0 %v1591_v24  ;;  %v1621_v14 = vld [vmem:[%s1943_s1 + $0x128] sm:$0xff]   ;;  %v1325_v19 = vcombine.high %v213_v16, %v217_v17  ;;  %v1324_v21 = vcombine.low %v213_v16, %v217_v17  ;;  %v1623_v24 = vld [vmem:[%s1943_s1 + $0x170] sm:$0xff]   ;;  %v1306_v39 = vcombine.low %v192_v36, %v196_v37  ;;  %v208_v48 = vld [vmem:[%s1766_s29 + $0x98] sm:$0xff] }
  0x1e   : > { %1451 = vmatprep.subr.bf16.mxu1 %v1592_v25  ;;  %v1622_v15 = vld [vmem:[%s1943_s1 + $0x1a8] sm:$0xff]   ;;  %v1624_v25 = vld [vmem:[%s1943_s1 + $0x1f0] sm:$0xff]   ;;  %v212_v49 = vld [vmem:[%s1766_s29 + $0xb8] sm:$0xff] }
  0x1f   : > { %v214_v18 = vld [vmem:[%s1766_s29 + $0xc8] sm:$0xff] }
  0x20   : > { %1412 = vmatpush3.bf16.msra.mxu0 %v1593_v26  ;;  %v218_v20 = vld [vmem:[%s1766_s29 + $0xe8] sm:$0xff]  ;;  %v1625_v26 = vld [vmem:[%s1943_s1 + $0x130] sm:$0xff]  }
  0x21   : > { %1452 = vmatpush3.bf16.msra.mxu1 %v1594_v27  ;;  %1413 = vmatprep.subr.bf16.mxu0 %v1595_v28  ;;  %v1327_v22 = vcombine.high %v214_v18, %v218_v20  ;;  %v1326_v23 = vcombine.low %v214_v18, %v218_v20  ;;  %v1626_v27 = vld [vmem:[%s1943_s1 + $0x1b0] sm:$0xff]   ;;  %v1627_v28 = vld [vmem:[%s1943_s1 + $0x178] sm:$0xff]  }
  0x22   : > { %1453 = vmatprep.subr.bf16.mxu1 %v1596_v29  ;;  %v1628_v29 = vld [vmem:[%s1943_s1 + $0x1f8] sm:$0xff]  }
  0x24   : > { %1414 = vmatpush3.bf16.msra.mxu0 %v1597_v30  ;;  %v1629_v30 = vld [vmem:[%s1943_s1 + $0x138] sm:$0xff]  }
  0x25   : > { %1454 = vmatpush3.bf16.msra.mxu1 %v1598_v31  ;;  %1479 = vmatprep.subr.bf16.mxu0 %v1599_v40  ;;  %v1630_v31 = vld [vmem:[%s1943_s1 + $0x1b8] sm:$0xff]   ;;  %v1307_v40 = vcombine.high %v192_v36, %v196_v37 }
  0x26   : > { %1519 = vmatprep.subr.bf16.mxu1 %v1600_v41  ;;  %v203_v41 = vld [vmem:[%s1766_s29 + $0x70] sm:$0xff] }
  0x27   : > { %926 = vmatmul.mubr.bf16.vlgmr.msra.gmra.mrb[0].mxu0 %v1300_v35  ;;  %v1305_v35 = vcombine.high %v191_v32, %v195_v33 }
  0x28   : > { %991 = vmatmul.mubr.bf16.vlgmr.msra.gmra.mrb[0].mxu1 %v1302_v38  ;;  %1480 = vmatpush3.bf16.msra.mxu0 %v1601_v42  ;;  %v199_v38 = vld [vmem:[%s1766_s29 + $0x50] sm:$0xff]  ;;  %v200_v42 = vld [vmem:[%s1766_s29 + $0x58] sm:$0xff] }
  0x29   : > { %1520 = vmatpush3.bf16.msra.mxu1 %v1602_v43  ;;  %1481 = vmatprep.subr.bf16.mxu0 %v1603_v44  ;;  %v204_v43 = vld [vmem:[%s1766_s29 + $0x78] sm:$0xff]  ;;  %v1313_v44 = vcombine.high %v199_v38, %v203_v41 }
  0x2a   : > { %1521 = vmatprep.subr.bf16.mxu1 %v1604_v45  ;;  %933 = vmatprep.mubr.bf16.mxu0 %v1309_v50  ;;  %v1315_v45 = vcombine.high %v200_v42, %v204_v43  ;;  %v1312_v50 = vcombine.low %v199_v38, %v203_v41  ;;  %v1314_v51 = vcombine.low %v200_v42, %v204_v43 }
  0x2b   : > { %998 = vmatprep.mubr.bf16.mxu1 %v1311_v54  ;;  %v215_v54 = vld [vmem:[%s1766_s29 + $0xd0] sm:$0xff] }
  0x2c   : > { %1482 = vmatpush3.bf16.msra.mxu0 %v1605_v46  ;;  %v207_v46 = vld [vmem:[%s1766_s29 + $0x90] sm:$0xff] }
  0x2d   : > { %1522 = vmatpush3.bf16.msra.mxu1 %v1606_v47  ;;  %1483 = vmatprep.subr.bf16.mxu0 %v1607_v56  ;;  %v211_v47 = vld [vmem:[%s1766_s29 + $0xb0] sm:$0xff]  ;;  %v216_v56 = vld [vmem:[%s1766_s29 + $0xd8] sm:$0xff] }
  0x2e   : > { %1523 = vmatprep.subr.bf16.mxu1 %v1608_v57  ;;  %v1321_v52 = vcombine.high %v207_v46, %v211_v47  ;;  %v220_v57 = vld [vmem:[%s1766_s29 + $0xf8] sm:$0xff] }
  0x2f   : > { %934 = vmatmul.mubr.bf16.gmra.mrb[4].mxu0 %v1308_v53  ;;  %v1323_v53 = vcombine.high %v208_v48, %v212_v49 }
  0x30   : > { %999 = vmatmul.mubr.bf16.gmra.mrb[4].mxu1 %v1310_v55  ;;  %1484 = vmatpush3.bf16.msra.mxu0 %v1609_v58  ;;  %v219_v55 = vld [vmem:[%s1766_s29 + $0xf0] sm:$0xff]  ;;  %v1320_v58 = vcombine.low %v207_v46, %v211_v47  ;;  %s1298_s29 = sshll.u32 %s1947_s21, 3  ;;  %s1299_s21 = sshll.u32 %s1949_s13, 3 }
  0x31   : > { %1524 = vmatpush3.bf16.msra.mxu1 %v1610_v59  ;;  %1485 = vmatprep.subr.bf16.mxu0 %v1611_v60  ;;  %v1322_v59 = vcombine.low %v208_v48, %v212_v49  ;;  %v1329_v60 = vcombine.high %v215_v54, %v219_v55  ;;  %s1918_s4 = scalar_lea.vmem %s1944_s2, %s1298_s29  ;;  %s187_s7 = scalar_lea.vmem %s1945_s3, %s1299_s21 }
  0x32   : > { %1525 = vmatprep.subr.bf16.mxu1 %v1612_v61  ;;  %941 = vmatprep.mubr.bf16.mxu0 %v1317_v4  ;;  %v1331_v61 = vcombine.high %v216_v56, %v220_v57 }
  0x33   : > { %1006 = vmatprep.mubr.bf16.mxu1 %v1319_v5 }
  0x34   : > { %1486 = vmatpush3.bf16.msra.mxu0 %v1613_v62  ;;  %v1328_v62 = vcombine.low %v215_v54, %v219_v55 }
  0x35   : > { %1526 = vmatpush3.bf16.msra.mxu1 %v1614_v63  ;;  %1487 = vmatprep.subr.bf16.mxu0 %v1615_v8  ;;  %v1330_v63 = vcombine.low %v216_v56, %v220_v57 }
  0x36   : > { %1527 = vmatprep.subr.bf16.mxu1 %v1616_v9 }
  0x37   : > { %942 = vmatmul.mubr.bf16.gmra.mrb[8].mxu0 %v1316_v6 }
  0x38   : > { %1007 = vmatmul.mubr.bf16.gmra.mrb[8].mxu1 %v1318_v7  ;;  %1488 = vmatpush3.bf16.msra.mxu0 %v1617_v10 }
  0x39   : > { %1528 = vmatpush3.bf16.msra.mxu1 %v1618_v11  ;;  %1489 = vmatprep.subr.bf16.mxu0 %v1619_v12 }
  0x3a   : > { %1529 = vmatprep.subr.bf16.mxu1 %v1620_v13  ;;  %949 = vmatprep.mubr.bf16.mxu0 %v1325_v19 }
  0x3b   : > { %1014 = vmatprep.mubr.bf16.mxu1 %v1327_v22 }
  0x3c   : > { %1490 = vmatpush3.bf16.msra.mxu0 %v1621_v14 }
  0x3d   : > { %1530 = vmatpush3.bf16.msra.mxu1 %v1622_v15  ;;  %1491 = vmatprep.subr.bf16.mxu0 %v1623_v24 }
  0x3e   : > { %1531 = vmatprep.subr.bf16.mxu1 %v1624_v25 }
  0x3f   : > { %950 = vmatmul.mubr.bf16.gmra.mrb[12].mxu0 %v1324_v21 }
  0x40   : > { %1015 = vmatmul.mubr.bf16.gmra.mrb[12].mxu1 %v1326_v23  ;;  %1492 = vmatpush3.bf16.msra.mxu0 %v1625_v26 }
  0x41   : > { %1532 = vmatpush3.bf16.msra.mxu1 %v1626_v27  ;;  %1493 = vmatprep.subr.bf16.mxu0 %v1627_v28 }
  0x42   : > { %1533 = vmatprep.subr.bf16.mxu1 %v1628_v29  ;;  %1055 = vmatprep.mubr.bf16.mxu0 %v1305_v35 }
  0x43   : > { %1120 = vmatprep.mubr.bf16.mxu1 %v1307_v40 }
  0x44   : > { %1494 = vmatpush3.bf16.msra.mxu0 %v1629_v30 }
  0x45   : > { %1534 = vmatpush3.bf16.msra.mxu1 %v1630_v31 }
  0x47   : > { %1056 = vmatmul.mubr.bf16.vlgmr.msra.gmra.mrb[16].mxu0 %v1304_v34 }
  0x48   : > { %1121 = vmatmul.mubr.bf16.vlgmr.msra.gmra.mrb[16].mxu1 %v1306_v39  ;;  %1063 = vmatprep.mubr.bf16.mxu0 %v1313_v44 }
  0x49   : > { %1128 = vmatprep.mubr.bf16.mxu1 %v1315_v45 }
  0x4f   : > { %1064 = vmatmul.mubr.bf16.gmra.mrb[20].mxu0 %v1312_v50 }
  0x50   : > { %1129 = vmatmul.mubr.bf16.gmra.mrb[20].mxu1 %v1314_v51  ;;  %1071 = vmatprep.mubr.bf16.mxu0 %v1321_v52 }
  0x51   : > { %1136 = vmatprep.mubr.bf16.mxu1 %v1323_v53 }
  0x57   : > { %1072 = vmatmul.mubr.bf16.gmra.mrb[24].mxu0 %v1320_v58 }
  0x58   : > { %1137 = vmatmul.mubr.bf16.gmra.mrb[24].mxu1 %v1322_v59  ;;  %1079 = vmatprep.mubr.bf16.mxu0 %v1329_v60 }
  0x59   : > { %1144 = vmatprep.mubr.bf16.mxu1 %v1331_v61 }
  0x5f   : > { %1080 = vmatmul.mubr.bf16.gmra.mrb[28].mxu0 %v1328_v62 }
  0x60   : > { %1145 = vmatmul.mubr.bf16.gmra.mrb[28].mxu1 %v1330_v63 }
  0xfa   : > { %v1415_v0 = vpop.f32.mrb[0].mxu0 }
  0xfb   : > { %v1455_v1 = vpop.f32.mrb[0].mxu1  ;;  %v1416_v2 = vpop.f32.mrb[1].mxu0 }
  0xfc   : > { %v1417_v3 = vadd.f32 %v1416_v2, %v1415_v0  ;;  %v1456_v4 = vpop.f32.mrb[1].mxu1  ;;  %v1418_v5 = vpop.f32.mrb[2].mxu0 }
  0xfd   : > { %v1457_v6 = vadd.f32 %v1456_v4, %v1455_v1  ;;  %v1458_v7 = vpop.f32.mrb[2].mxu1  ;;  %v1419_v8 = vpop.f32.mrb[3].mxu0 }
  0xfe   : > { %v1420_v9 = vadd.f32 %v1419_v8, %v1418_v5  ;;  %v1459_v10 = vpop.f32.mrb[3].mxu1 }
  0xff   : > { %v993_v11 = vadd.f32 %v1457_v6, %v1417_v3  ;;  %v1460_v12 = vadd.f32 %v1459_v10, %v1458_v7 }
 0x101   : > { %v996_v13 = vadd.f32 %v1460_v12, %v1420_v9 }
 0x102   : > { %v1421_v14 = vpop.f32.mrb[4].mxu0 }
 0x103   : > { %v1461_v15 = vpop.f32.mrb[4].mxu1  ;;  %v1422_v16 = vpop.f32.mrb[5].mxu0 }
 0x104   : > { %v1423_v17 = vadd.f32 %v1422_v16, %v1421_v14  ;;  %v1462_v18 = vpop.f32.mrb[5].mxu1  ;;  %v1424_v19 = vpop.f32.mrb[6].mxu0 }
 0x105   : > { %v1463_v20 = vadd.f32 %v1462_v18, %v1461_v15  ;;  %v1464_v21 = vpop.f32.mrb[6].mxu1  ;;  %v1425_v22 = vpop.f32.mrb[7].mxu0 }
 0x106   : > { %v1426_v23 = vadd.f32 %v1425_v22, %v1424_v19  ;;  %v1465_v24 = vpop.f32.mrb[7].mxu1 }
 0x107   : > { %v1902_v25 = vadd.f32 %v1463_v20, %v1423_v17  ;;  %v1466_v26 = vadd.f32 %v1465_v24, %v1464_v21 }
 0x109   : > { %v1904_v27 = vadd.f32 %v1466_v26, %v1426_v23 }
 0x10a   : > { %v1427_v28 = vpop.f32.mrb[8].mxu0 }
 0x10b   : > { %v1467_v29 = vpop.f32.mrb[8].mxu1  ;;  %v1428_v30 = vpop.f32.mrb[9].mxu0 }
 0x10c   : > { %v1468_v31 = vpop.f32.mrb[9].mxu1  ;;  %v1429_v32 = vadd.f32 %v1428_v30, %v1427_v28  ;;  %v1430_v34 = vpop.f32.mrb[10].mxu0 }
 0x10d   : > { %v1469_v33 = vadd.f32 %v1468_v31, %v1467_v29  ;;  %v1470_v35 = vpop.f32.mrb[10].mxu1  ;;  %v1431_v36 = vpop.f32.mrb[11].mxu0 }
 0x10e   : > { %v1471_v37 = vpop.f32.mrb[11].mxu1  ;;  %v1432_v39 = vadd.f32 %v1431_v36, %v1430_v34 }
 0x10f   : > { %v1906_v38 = vadd.f32 %v1469_v33, %v1429_v32  ;;  %v1472_v40 = vadd.f32 %v1471_v37, %v1470_v35 }
 0x111   : > { %v1908_v41 = vadd.f32 %v1472_v40, %v1432_v39 }
 0x112   : > { %v1433_v42 = vpop.f32.mrb[12].mxu0 }
 0x113   : > { %v1473_v43 = vpop.f32.mrb[12].mxu1  ;;  %v1434_v44 = vpop.f32.mrb[13].mxu0 }
 0x114   : > { %v1435_v45 = vadd.f32 %v1434_v44, %v1433_v42  ;;  %v1474_v46 = vpop.f32.mrb[13].mxu1  ;;  %v1436_v47 = vpop.f32.mrb[14].mxu0 }
 0x115   : > { %v1475_v48 = vadd.f32 %v1474_v46, %v1473_v43  ;;  %v1476_v49 = vpop.f32.mrb[14].mxu1  ;;  %v1437_v50 = vpop.f32.mrb[15].mxu0 }
 0x116   : > { %v1438_v51 = vadd.f32 %v1437_v50, %v1436_v47  ;;  %v1477_v52 = vpop.f32.mrb[15].mxu1 }
 0x117   : > { %v1910_v53 = vadd.f32 %v1475_v48, %v1435_v45  ;;  %v1478_v54 = vadd.f32 %v1477_v52, %v1476_v49 }
 0x119   : > { %v1912_v55 = vadd.f32 %v1478_v54, %v1438_v51 }
 0x11a   : > { %v1495_v56 = vpop.f32.mrb[16].mxu0 }
 0x11b   : > { %v1535_v57 = vpop.f32.mrb[16].mxu1  ;;  %v1496_v58 = vpop.f32.mrb[17].mxu0 }
 0x11c   : > { %v1497_v59 = vadd.f32 %v1496_v58, %v1495_v56  ;;  %v1536_v60 = vpop.f32.mrb[17].mxu1  ;;  %v1498_v61 = vpop.f32.mrb[18].mxu0 }
 0x11d   : > { %v1537_v62 = vadd.f32 %v1536_v60, %v1535_v57  ;;  %v1538_v63 = vpop.f32.mrb[18].mxu1  ;;  %v1499_v0 = vpop.f32.mrb[19].mxu0 }
 0x11e   : > { %v1058_v1 = vadd.f32 %v1497_v59, %v993_v11  ;;  %v1500_v2 = vadd.f32 %v1499_v0, %v1498_v61  ;;  %v1539_v3 = vpop.f32.mrb[19].mxu1 }
 0x11f   : > { %v1540_v4 = vadd.f32 %v1539_v3, %v1538_v63 }
 0x120   : > { %v1123_v5 = vadd.f32 %v1537_v62, %v1058_v1  ;;  %v1061_v6 = vadd.f32 %v1500_v2, %v996_v13 }
 0x122   : > { %1153 = vst [vmem:[%s1918_s4] sm:$0xff] %v1123_v5  ;;  %v1126_v7 = vadd.f32 %v1540_v4, %v1061_v6  ;;  %v1501_v8 = vpop.f32.mrb[20].mxu0  ;;  %v1174_v12 = vmul.f32 %v1123_v5, %v1123_v5 }
 0x123   : > { %v1541_v9 = vpop.f32.mrb[20].mxu1  ;;  %v1502_v10 = vpop.f32.mrb[21].mxu0 }
 0x124   : > { %1154 = vst [vmem:[%s1918_s4 + $0x8] sm:$0xff] %v1126_v7  ;;  %v1161_v11 = vadd.f32 %v1126_v7, %v1123_v5  ;;  %v1175_v14 = vmul.f32 %v1126_v7, %v1126_v7  ;;  %v1503_v15 = vadd.f32 %v1502_v10, %v1501_v8  ;;  %v1542_v16 = vpop.f32.mrb[21].mxu1  ;;  %v1504_v17 = vpop.f32.mrb[22].mxu0 }
 0x125   : > { %v1543_v18 = vadd.f32 %v1542_v16, %v1541_v9  ;;  %v1544_v19 = vpop.f32.mrb[22].mxu1  ;;  %v1505_v20 = vpop.f32.mrb[23].mxu0 }
 0x126   : > { %v1182_v21 = vadd.f32 %v1175_v14, %v1174_v12  ;;  %v1066_v13 = vadd.f32 %v1503_v15, %v1902_v25  ;;  %v1506_v22 = vadd.f32 %v1505_v20, %v1504_v17  ;;  %v1545_v23 = vpop.f32.mrb[23].mxu1 }
 0x127   : > { %v1546_v24 = vadd.f32 %v1545_v23, %v1544_v19  ;;  %v1195_v19 = vlaneseq }
 0x128   : > { %v1131_v26 = vadd.f32 %v1543_v18, %v1066_v13  ;;  %v1069_v28 = vadd.f32 %v1506_v22, %v1904_v27 }
 0x129   : > { %v1196_v22 = vshrl.u32 %v1195_v19, 7 }
 0x12a   : > { %1155 = vst [vmem:[%s1918_s4 + $0x10] sm:$0xff] %v1131_v26  ;;  %v1162_v29 = vadd.f32 %v1161_v11, %v1131_v26  ;;  %v1176_v30 = vmul.f32 %v1131_v26, %v1131_v26  ;;  %v1134_v31 = vadd.f32 %v1546_v24, %v1069_v28  ;;  %v1507_v32 = vpop.f32.mrb[24].mxu0 }
 0x12b   : > { %v1547_v33 = vpop.f32.mrb[24].mxu1  ;;  %v1508_v34 = vpop.f32.mrb[25].mxu0  ;;  %vm1198_vm0 = vcmp.eq.s32.totalorder %v1196_v22, 1  ;;  %vm1197_vm1 = vcmp.eq.s32.totalorder %v1196_v22, 0 }
 0x12c   : > { %v1183_v35 = vadd.f32 %v1182_v21, %v1176_v30  ;;  %1156 = vst [vmem:[%s1918_s4 + $0x18] sm:$0xff] %v1134_v31  ;;  %v1163_v36 = vadd.f32 %v1162_v29, %v1134_v31  ;;  %v1177_v37 = vmul.f32 %v1134_v31, %v1134_v31  ;;  %v1509_v39 = vadd.f32 %v1508_v34, %v1507_v32  ;;  %v1548_v25 = vpop.f32.mrb[25].mxu1  ;;  %v1510_v40 = vpop.f32.mrb[26].mxu0 }
 0x12d   : > { %v1549_v42 = vadd.f32 %v1548_v25, %v1547_v33  ;;  %v1550_v43 = vpop.f32.mrb[26].mxu1  ;;  %v1511_v44 = vpop.f32.mrb[27].mxu0 }
 0x12e   : > { %v1184_v27 = vadd.f32 %v1183_v35, %v1177_v37  ;;  %v1074_v45 = vadd.f32 %v1509_v39, %v1906_v38  ;;  %v1512_v46 = vadd.f32 %v1511_v44, %v1510_v40  ;;  %v1551_v47 = vpop.f32.mrb[27].mxu1 }
 0x12f   : > { %v1552_v48 = vadd.f32 %v1551_v47, %v1550_v43 }
 0x130   : > { %v1139_v49 = vadd.f32 %v1549_v42, %v1074_v45  ;;  %v1077_v50 = vadd.f32 %v1512_v46, %v1908_v41 }
 0x132   : > { %1157 = vst [vmem:[%s1918_s4 + $0x20] sm:$0xff] %v1139_v49  ;;  %v1164_v51 = vadd.f32 %v1163_v36, %v1139_v49  ;;  %v1178_v52 = vmul.f32 %v1139_v49, %v1139_v49  ;;  %v1142_v54 = vadd.f32 %v1552_v48, %v1077_v50  ;;  %v1513_v56 = vpop.f32.mrb[28].mxu0 }
 0x133   : > { %v1553_v57 = vpop.f32.mrb[28].mxu1  ;;  %v1514_v58 = vpop.f32.mrb[29].mxu0 }
 0x134   : > { %v1185_v59 = vadd.f32 %v1184_v27, %v1178_v52  ;;  %1158 = vst [vmem:[%s1918_s4 + $0x28] sm:$0xff] %v1142_v54  ;;  %v1165_v60 = vadd.f32 %v1164_v51, %v1142_v54  ;;  %v1179_v61 = vmul.f32 %v1142_v54, %v1142_v54  ;;  %v1515_v62 = vadd.f32 %v1514_v58, %v1513_v56  ;;  %v1554_v38 = vpop.f32.mrb[29].mxu1  ;;  %v1516_v63 = vpop.f32.mrb[30].mxu0 }
 0x135   : > { %v1555_v0 = vadd.f32 %v1554_v38, %v1553_v57  ;;  %v1556_v1 = vpop.f32.mrb[30].mxu1  ;;  %v1517_v2 = vpop.f32.mrb[31].mxu0 }
 0x136   : > { %v1186_v41 = vadd.f32 %v1185_v59, %v1179_v61  ;;  %v1082_v3 = vadd.f32 %v1515_v62, %v1910_v53  ;;  %v1518_v4 = vadd.f32 %v1517_v2, %v1516_v63  ;;  %v1557_v5 = vpop.f32.mrb[31].mxu1 }
 0x137   : > { %v1558_v6 = vadd.f32 %v1557_v5, %v1556_v1 }
 0x138   : > { %v1147_v7 = vadd.f32 %v1555_v0, %v1082_v3  ;;  %v1085_v8 = vadd.f32 %v1518_v4, %v1912_v55 }
 0x13a   : > { %1159 = vst [vmem:[%s1918_s4 + $0x30] sm:$0xff] %v1147_v7  ;;  %v1166_v9 = vadd.f32 %v1165_v60, %v1147_v7  ;;  %v1180_v10 = vmul.f32 %v1147_v7, %v1147_v7  ;;  %v1150_v12 = vadd.f32 %v1558_v6, %v1085_v8 }
 0x13c   : > { %v1187_v11 = vadd.f32 %v1186_v41, %v1180_v10  ;;  %1160 = vst [vmem:[%s1918_s4 + $0x38] sm:$0xff] %v1150_v12  ;;  %v1167_v14 = vadd.f32 %v1166_v9, %v1150_v12  ;;  %v1181_v15 = vmul.f32 %v1150_v12, %v1150_v12 }
 0x13e   : > { %v1168_v16 = vrot.slane %v1167_v14, 4  ;;  %v1188_v17 = vadd.f32 %v1187_v11, %v1181_v15 }
 0x140   : > { %v1169_v53 = vadd.f32 %v1168_v16, %v1167_v14  ;;  %v1189_v18 = vrot.slane %v1188_v17, 4 }
 0x142   : > { %v1170_v20 = vrot.slane %v1169_v53, 2  ;;  %v1190_v21 = vadd.f32 %v1189_v18, %v1188_v17 }
 0x144   : > { %v1171_v13 = vadd.f32 %v1170_v20, %v1169_v53  ;;  %v1191_v55 = vrot.slane %v1190_v21, 2 }
 0x146   : > { %v1192_v23 = vadd.f32 %v1191_v55, %v1190_v21  ;;  %v1172_v24 = vrot.slane %v1171_v13, 1 }
 0x148   : > { %v1193_v26 = vrot.slane %v1192_v23, 1  ;;  %v1173_v29 = vadd.f32 %v1172_v24, %v1171_v13 }
 0x14a   : > { %v1194_v28 = vadd.f32 %v1193_v26, %v1192_v23 }
 0x14c   : > { %v1199_v30 = vsel %vm1198_vm0, %v1194_v28, 0.0 }
 0x14d   : > { %v1200_v31 = vsel %vm1197_vm1, %v1173_v29, %v1199_v30 }
 0x14e   : > { %1201 = vst [vmem:[%s187_s7] sm:$0xff] %v1200_v31 }
 0x14f PF: > { %s14_s12 = sadd.s32 1, %s1637_s12  }
 0x150   : > { %p11_p5 = scmp.ge.s32.totalorder %s14_s12, 4  }
 0x152   :  { %13 = sbr.rel (!%p11_p5) target bundleno = 1 (0x1), region = 70 }

// kernel: _lambda_.60
= control target key start
LH: loop header
LB: loop body
LE: loop exit
PB: predicated region body
PF: predicated region fallthrough
CT: control target
= control target key end

     0   :  { %s1419_s12 = smov 0   ;;  %s1764_s0 = inlined_call_operand.vmem [shape: bf16[2048,128], index: 0, kind: input, shape index: {}]   ;;  %s1765_s1 = inlined_call_operand.vmem [shape: bf16[128,128], index: 1, kind: input, shape index: {}]   ;;  %s1766_s2 = inlined_call_operand.vmem [shape: f32[2048,128], index: 2, kind: output, shape index: {0}]   ;;  %s1767_s3 = inlined_call_operand.vmem [shape: f32[4,8,128], index: 3, kind: output, shape index: {1}]  }
   0x1 LB: > { %s1425_s13 = sadd.s32 4294967295, %s1397_s12   ;;  %p1159_p0 = scmp.ge.s32.totalorder %s1397_s12, 1  ;;  %s1397_s12 = sphi %s1419_s12, %s14_s12  }
   0x2   : > { %p141_p1 = scmp.lt.s32.totalorder %s1397_s12, 5 }
   0x4   : > { %p142_p2 = pnand %p1159_p0, %p141_p1 }
   0x5   : > { %v1351_v0 = vld [vmem:[%s1765_s1] sm:$0xff] (!%p142_p2)   ;;  %s1160_s16 = sshll.u32 (!%p142_p2), %s1425_s13, 6  ;;  %v1352_v1 = vld [vmem:[%s1765_s1 + $0x8] sm:$0xff] (!%p142_p2)   ;;  %v1353_v2 = vld [vmem:[%s1765_s1 + $0x10] sm:$0xff] (!%p142_p2)   ;;  %p181_p4 = scmp.lt.s32.totalorder (!%p142_p2), %s1425_s13, 3 }
   0x6   : > { %145 = sbr.rel (%p142_p2) target bundleno = 396 (0x18c), region = 28  ;;  %p170_p3 = scmp.lt.s32.totalorder (!%p142_p2), %s1160_s16, 255  ;;  %1247 = vmatprep.subr.bf16.mxu0 (!%p142_p2), %v1351_v0  ;;  %1327 = vmatprep.subr.bf16.mxu1 (!%p142_p2), %v1351_v0  ;;  %v1354_v3 = vld [vmem:[%s1765_s1 + $0x18] sm:$0xff] (!%p142_p2)   ;;  %v1355_v5 = vld [vmem:[%s1765_s1 + $0x20] sm:$0xff] (!%p142_p2)   ;;  %v1356_v6 = vld [vmem:[%s1765_s1 + $0x28] sm:$0xff] (!%p142_p2)  }
   0x7   : > { %1248 = vmatpush3.bf16.msra.mxu0 (!%p142_p2), %v1351_v0  ;;  %1335 = vmatpush3.bf16.msra.mxu1 (!%p142_p2), %v1351_v0  ;;  %v1357_v7 = vld [vmem:[%s1765_s1 + $0x30] sm:$0xff] (!%p142_p2)   ;;  %v1358_v8 = vld [vmem:[%s1765_s1 + $0x38] sm:$0xff] (!%p142_p2)  }
   0x8   : > { %1249 = vmatprep.subr.bf16.mxu0 (!%p142_p2), %v1352_v1  ;;  %1328 = vmatprep.subr.bf16.mxu1 (!%p142_p2), %v1352_v1 }
   0xb   : > { %1250 = vmatpush3.bf16.msra.mxu0 (!%p142_p2), %v1352_v1  ;;  %1336 = vmatpush3.bf16.msra.mxu1 (!%p142_p2), %v1352_v1 }
   0xc   : > { %1251 = vmatprep.subr.bf16.mxu0 (!%p142_p2), %v1353_v2  ;;  %1329 = vmatprep.subr.bf16.mxu1 (!%p142_p2), %v1353_v2 }
   0xd   : > { %s1769_s16 = smov (!%p170_p3, %s1160_s16), 255  ;;  %s1771_s13 = smov (!%p181_p4, %s1425_s13), 3 }
   0xe   : > { %s1161_s21 = sshll.u32 %s1769_s16, 2  ;;  %s1163_s8 = sshll.u32 %s1769_s16, 3 }
   0xf   : > { %s1445_s24 = scalar_lea.vmem %s1764_s0, %s1161_s21  ;;  %1252 = vmatpush3.bf16.msra.mxu0 %v1353_v2  ;;  %1337 = vmatpush3.bf16.msra.mxu1 %v1353_v2  ;;  %s1498_s11 = scalar_lea.vmem %s1766_s2, %s1163_s8 }
  0x10   : > { %v1359_v4 = vld [vmem:[%s1445_s24] sm:$0xff]   ;;  %1253 = vmatprep.subr.bf16.mxu0 %v1354_v3  ;;  %1330 = vmatprep.subr.bf16.mxu1 %v1354_v3  ;;  %v1360_v10 = vld [vmem:[%s1445_s24 + $0x8] sm:$0xff]   ;;  %v1361_v11 = vld [vmem:[%s1445_s24 + $0x10] sm:$0xff]   ;;  %s1164_s14 = sshll.u32 %s1771_s13, 3 }
  0x11   : > { %1263 = vmatprep.mubr.bf16.mxu0 %v1359_v4  ;;  %v1375_v9 = vld [vmem:[%s1445_s24 + $0x80] sm:$0xff]   ;;  %v1376_v12 = vld [vmem:[%s1445_s24 + $0x88] sm:$0xff]   ;;  %v1377_v13 = vld [vmem:[%s1445_s24 + $0x90] sm:$0xff]   ;;  %s184_s17 = scalar_lea.vmem %s1767_s3, %s1164_s14 }
  0x12   : > { %1295 = vmatprep.mubr.bf16.mxu1 %v1375_v9  ;;  %v1362_v14 = vld [vmem:[%s1445_s24 + $0x18] sm:$0xff]   ;;  %v1363_v15 = vld [vmem:[%s1445_s24 + $0x20] sm:$0xff]   ;;  %v1364_v18 = vld [vmem:[%s1445_s24 + $0x28] sm:$0xff]  }
  0x13   : > { %1254 = vmatpush3.bf16.msra.mxu0 %v1354_v3  ;;  %1338 = vmatpush3.bf16.msra.mxu1 %v1354_v3  ;;  %v1378_v16 = vld [vmem:[%s1445_s24 + $0x98] sm:$0xff]   ;;  %v1379_v17 = vld [vmem:[%s1445_s24 + $0xa0] sm:$0xff]   ;;  %v1380_v19 = vld [vmem:[%s1445_s24 + $0xa8] sm:$0xff]  }
  0x14   : > { %1255 = vmatprep.subr.bf16.mxu0 %v1355_v5  ;;  %1331 = vmatprep.subr.bf16.mxu1 %v1355_v5  ;;  %v1365_v20 = vld [vmem:[%s1445_s24 + $0x30] sm:$0xff]   ;;  %v1366_v22 = vld [vmem:[%s1445_s24 + $0x38] sm:$0xff]   ;;  %v1367_v24 = vld [vmem:[%s1445_s24 + $0x40] sm:$0xff]  }
  0x15   : > { %v1381_v21 = vld [vmem:[%s1445_s24 + $0xb0] sm:$0xff]   ;;  %v1382_v23 = vld [vmem:[%s1445_s24 + $0xb8] sm:$0xff]   ;;  %v1383_v25 = vld [vmem:[%s1445_s24 + $0xc0] sm:$0xff]  }
  0x16   : > { %v1368_v26 = vld [vmem:[%s1445_s24 + $0x48] sm:$0xff]   ;;  %v1369_v28 = vld [vmem:[%s1445_s24 + $0x50] sm:$0xff]   ;;  %v1370_v30 = vld [vmem:[%s1445_s24 + $0x58] sm:$0xff]  }
  0x17   : > { %1256 = vmatpush3.bf16.msra.mxu0 %v1355_v5  ;;  %1339 = vmatpush3.bf16.msra.mxu1 %v1355_v5  ;;  %v1384_v27 = vld [vmem:[%s1445_s24 + $0xc8] sm:$0xff]   ;;  %v1385_v29 = vld [vmem:[%s1445_s24 + $0xd0] sm:$0xff]   ;;  %v1386_v31 = vld [vmem:[%s1445_s24 + $0xd8] sm:$0xff]  }
  0x18   : > { %1257 = vmatprep.subr.bf16.mxu0 %v1356_v6  ;;  %1332 = vmatprep.subr.bf16.mxu1 %v1356_v6  ;;  %v1371_v32 = vld [vmem:[%s1445_s24 + $0x60] sm:$0xff]   ;;  %v1372_v34 = vld [vmem:[%s1445_s24 + $0x68] sm:$0xff]   ;;  %v1373_v36 = vld [vmem:[%s1445_s24 + $0x70] sm:$0xff]  }
  0x19   : > { %v1387_v33 = vld [vmem:[%s1445_s24 + $0xe0] sm:$0xff]   ;;  %v1388_v35 = vld [vmem:[%s1445_s24 + $0xe8] sm:$0xff]   ;;  %v1389_v37 = vld [vmem:[%s1445_s24 + $0xf0] sm:$0xff]  }
  0x1a   : > { %v1374_v38 = vld [vmem:[%s1445_s24 + $0x78] sm:$0xff]  }
  0x1b   : > { %1258 = vmatpush3.bf16.msra.mxu0 %v1356_v6  ;;  %1340 = vmatpush3.bf16.msra.mxu1 %v1356_v6  ;;  %v1390_v39 = vld [vmem:[%s1445_s24 + $0xf8] sm:$0xff]  }
  0x1c   : > { %1259 = vmatprep.subr.bf16.mxu0 %v1357_v7  ;;  %1333 = vmatprep.subr.bf16.mxu1 %v1357_v7 }
  0x1f   : > { %1260 = vmatpush3.bf16.msra.mxu0 %v1357_v7  ;;  %1341 = vmatpush3.bf16.msra.mxu1 %v1357_v7 }
  0x20   : > { %1261 = vmatprep.subr.bf16.mxu0 %v1358_v8  ;;  %1334 = vmatprep.subr.bf16.mxu1 %v1358_v8 }
  0x23   : > { %1262 = vmatpush3.bf16.msra.mxu0 %v1358_v8  ;;  %1342 = vmatpush3.bf16.msra.mxu1 %v1358_v8 }
  0x26   : > { %1264 = vmatmul.mubr.bf16.vlgmr.msra.gmra.mrb[0].mxu0 %v1360_v10  ;;  %1296 = vmatmul.mubr.bf16.vlgmr.msra.gmra.mrb[0].mxu1 %v1376_v12 }
  0x27   : > { %1267 = vmatprep.mubr.bf16.mxu0 %v1361_v11  ;;  %1299 = vmatprep.mubr.bf16.mxu1 %v1377_v13 }
  0x2e   : > { %1268 = vmatmul.mubr.bf16.gmra.mrb[4].mxu0 %v1362_v14  ;;  %1300 = vmatmul.mubr.bf16.gmra.mrb[4].mxu1 %v1378_v16 }
  0x2f   : > { %1271 = vmatprep.mubr.bf16.mxu0 %v1363_v15  ;;  %1303 = vmatprep.mubr.bf16.mxu1 %v1379_v17 }
  0x36   : > { %1272 = vmatmul.mubr.bf16.gmra.mrb[8].mxu0 %v1364_v18  ;;  %1304 = vmatmul.mubr.bf16.gmra.mrb[8].mxu1 %v1380_v19 }
  0x37   : > { %1275 = vmatprep.mubr.bf16.mxu0 %v1365_v20  ;;  %1307 = vmatprep.mubr.bf16.mxu1 %v1381_v21 }
  0x3e   : > { %1276 = vmatmul.mubr.bf16.gmra.mrb[12].mxu0 %v1366_v22  ;;  %1308 = vmatmul.mubr.bf16.gmra.mrb[12].mxu1 %v1382_v23 }
  0x3f   : > { %1279 = vmatprep.mubr.bf16.mxu0 %v1367_v24  ;;  %1311 = vmatprep.mubr.bf16.mxu1 %v1383_v25 }
  0x46   : > { %1280 = vmatmul.mubr.bf16.gmra.mrb[16].mxu0 %v1368_v26  ;;  %1312 = vmatmul.mubr.bf16.gmra.mrb[16].mxu1 %v1384_v27 }
  0x47   : > { %1283 = vmatprep.mubr.bf16.mxu0 %v1369_v28  ;;  %1315 = vmatprep.mubr.bf16.mxu1 %v1385_v29 }
  0x4e   : > { %1284 = vmatmul.mubr.bf16.gmra.mrb[20].mxu0 %v1370_v30  ;;  %1316 = vmatmul.mubr.bf16.gmra.mrb[20].mxu1 %v1386_v31 }
  0x4f   : > { %1287 = vmatprep.mubr.bf16.mxu0 %v1371_v32  ;;  %1319 = vmatprep.mubr.bf16.mxu1 %v1387_v33 }
  0x56   : > { %1288 = vmatmul.mubr.bf16.gmra.mrb[24].mxu0 %v1372_v34  ;;  %1320 = vmatmul.mubr.bf16.gmra.mrb[24].mxu1 %v1388_v35 }
  0x57   : > { %1291 = vmatprep.mubr.bf16.mxu0 %v1373_v36  ;;  %1323 = vmatprep.mubr.bf16.mxu1 %v1389_v37 }
  0x5e   : > { %1292 = vmatmul.mubr.bf16.gmra.mrb[28].mxu0 %v1374_v38  ;;  %1324 = vmatmul.mubr.bf16.gmra.mrb[28].mxu1 %v1390_v39 }
  0xf9   : > { %v1265_v40 = vpop.f32.mrb[0].mxu0  ;;  %v1500_v41 = vpop.f32.mrb[0].mxu1 }
  0xfa   : > { %797 = vst [vmem:[%s1498_s11 + $0x10] sm:$0xff] %v1265_v40  ;;  %v540_v42 = vpop.f32.mrb[1].mxu0  ;;  %829 = vst [vmem:[%s1498_s11 + $0x110] sm:$0xff] %v1500_v41  ;;  %v1505_v43 = vpop.f32.mrb[1].mxu1  ;;  %v930_v51 = vmul.f32 %v1265_v40, %v1265_v40 }
  0xfb   : > { %795 = vst [vmem:[%s1498_s11] sm:$0xff] %v540_v42  ;;  %v1266_v44 = vpop.f32.mrb[2].mxu0  ;;  %827 = vst [vmem:[%s1498_s11 + $0x100] sm:$0xff] %v1505_v43  ;;  %v1510_v45 = vpop.f32.mrb[2].mxu1  ;;  %v928_v48 = vmul.f32 %v540_v42, %v540_v42 }
  0xfc   : > { %798 = vst [vmem:[%s1498_s11 + $0x18] sm:$0xff] %v1266_v44  ;;  %v543_v46 = vpop.f32.mrb[3].mxu0  ;;  %830 = vst [vmem:[%s1498_s11 + $0x118] sm:$0xff] %v1510_v45  ;;  %v1515_v47 = vpop.f32.mrb[3].mxu1  ;;  %v931_v54 = vmul.f32 %v1266_v44, %v1266_v44 }
  0xfd   : > { %796 = vst [vmem:[%s1498_s11 + $0x8] sm:$0xff] %v543_v46  ;;  %v859_v49 = vadd.f32 %v543_v46, %v540_v42  ;;  %v929_v50 = vmul.f32 %v543_v46, %v543_v46  ;;  %828 = vst [vmem:[%s1498_s11 + $0x108] sm:$0xff] %v1515_v47 }
  0xff   : > { %v860_v52 = vadd.f32 %v1265_v40, %v859_v49  ;;  %v992_v53 = vadd.f32 %v929_v50, %v928_v48 }
 0x101   : > { %v993_v55 = vadd.f32 %v992_v53, %v930_v51  ;;  %v1269_v56 = vpop.f32.mrb[4].mxu0  ;;  %v861_v57 = vadd.f32 %v1266_v44, %v860_v52  ;;  %v1520_v58 = vpop.f32.mrb[4].mxu1 }
 0x102   : > { %801 = vst [vmem:[%s1498_s11 + $0x30] sm:$0xff] %v1269_v56  ;;  %v556_v59 = vpop.f32.mrb[5].mxu0  ;;  %833 = vst [vmem:[%s1498_s11 + $0x130] sm:$0xff] %v1520_v58  ;;  %v1525_v60 = vpop.f32.mrb[5].mxu1  ;;  %v934_v7 = vmul.f32 %v1269_v56, %v1269_v56 }
 0x103   : > { %799 = vst [vmem:[%s1498_s11 + $0x20] sm:$0xff] %v556_v59  ;;  %v862_v61 = vadd.f32 %v861_v57, %v556_v59  ;;  %v932_v62 = vmul.f32 %v556_v59, %v556_v59  ;;  %v994_v63 = vadd.f32 %v993_v55, %v931_v54  ;;  %v1270_v0 = vpop.f32.mrb[6].mxu0  ;;  %831 = vst [vmem:[%s1498_s11 + $0x120] sm:$0xff] %v1525_v60  ;;  %v1530_v1 = vpop.f32.mrb[6].mxu1 }
 0x104   : > { %802 = vst [vmem:[%s1498_s11 + $0x38] sm:$0xff] %v1270_v0  ;;  %v559_v2 = vpop.f32.mrb[7].mxu0  ;;  %834 = vst [vmem:[%s1498_s11 + $0x138] sm:$0xff] %v1530_v1  ;;  %v1535_v3 = vpop.f32.mrb[7].mxu1  ;;  %v935_v10 = vmul.f32 %v1270_v0, %v1270_v0 }
 0x105   : > { %v995_v4 = vadd.f32 %v994_v63, %v932_v62  ;;  %800 = vst [vmem:[%s1498_s11 + $0x28] sm:$0xff] %v559_v2  ;;  %v863_v5 = vadd.f32 %v862_v61, %v559_v2  ;;  %v933_v6 = vmul.f32 %v559_v2, %v559_v2  ;;  %832 = vst [vmem:[%s1498_s11 + $0x128] sm:$0xff] %v1535_v3 }
 0x107   : > { %v864_v8 = vadd.f32 %v1269_v56, %v863_v5  ;;  %v996_v9 = vadd.f32 %v995_v4, %v933_v6 }
 0x109   : > { %v997_v11 = vadd.f32 %v996_v9, %v934_v7  ;;  %v1273_v12 = vpop.f32.mrb[8].mxu0  ;;  %v865_v13 = vadd.f32 %v1270_v0, %v864_v8  ;;  %v1540_v14 = vpop.f32.mrb[8].mxu1 }
 0x10a   : > { %805 = vst [vmem:[%s1498_s11 + $0x50] sm:$0xff] %v1273_v12  ;;  %v572_v15 = vpop.f32.mrb[9].mxu0  ;;  %837 = vst [vmem:[%s1498_s11 + $0x150] sm:$0xff] %v1540_v14  ;;  %v1545_v16 = vpop.f32.mrb[9].mxu1  ;;  %v938_v27 = vmul.f32 %v1273_v12, %v1273_v12 }
 0x10b   : > { %803 = vst [vmem:[%s1498_s11 + $0x40] sm:$0xff] %v572_v15  ;;  %v866_v17 = vadd.f32 %v865_v13, %v572_v15  ;;  %v936_v18 = vmul.f32 %v572_v15, %v572_v15  ;;  %v998_v19 = vadd.f32 %v997_v11, %v935_v10  ;;  %v1274_v20 = vpop.f32.mrb[10].mxu0  ;;  %835 = vst [vmem:[%s1498_s11 + $0x140] sm:$0xff] %v1545_v16  ;;  %v1550_v21 = vpop.f32.mrb[10].mxu1 }
 0x10c   : > { %806 = vst [vmem:[%s1498_s11 + $0x58] sm:$0xff] %v1274_v20  ;;  %v575_v22 = vpop.f32.mrb[11].mxu0  ;;  %838 = vst [vmem:[%s1498_s11 + $0x158] sm:$0xff] %v1550_v21  ;;  %v1555_v23 = vpop.f32.mrb[11].mxu1  ;;  %v939_v30 = vmul.f32 %v1274_v20, %v1274_v20 }
 0x10d   : > { %v999_v24 = vadd.f32 %v998_v19, %v936_v18  ;;  %804 = vst [vmem:[%s1498_s11 + $0x48] sm:$0xff] %v575_v22  ;;  %v867_v25 = vadd.f32 %v866_v17, %v575_v22  ;;  %v937_v26 = vmul.f32 %v575_v22, %v575_v22  ;;  %836 = vst [vmem:[%s1498_s11 + $0x148] sm:$0xff] %v1555_v23 }
 0x10f   : > { %v868_v28 = vadd.f32 %v1273_v12, %v867_v25  ;;  %v1000_v29 = vadd.f32 %v999_v24, %v937_v26 }
 0x111   : > { %v1001_v31 = vadd.f32 %v1000_v29, %v938_v27  ;;  %v1277_v32 = vpop.f32.mrb[12].mxu0  ;;  %v869_v33 = vadd.f32 %v1274_v20, %v868_v28  ;;  %v1560_v34 = vpop.f32.mrb[12].mxu1 }
 0x112   : > { %809 = vst [vmem:[%s1498_s11 + $0x70] sm:$0xff] %v1277_v32  ;;  %v588_v35 = vpop.f32.mrb[13].mxu0  ;;  %841 = vst [vmem:[%s1498_s11 + $0x170] sm:$0xff] %v1560_v34  ;;  %v1565_v36 = vpop.f32.mrb[13].mxu1  ;;  %v942_v51 = vmul.f32 %v1277_v32, %v1277_v32 }
 0x113   : > { %807 = vst [vmem:[%s1498_s11 + $0x60] sm:$0xff] %v588_v35  ;;  %v870_v37 = vadd.f32 %v869_v33, %v588_v35  ;;  %v940_v38 = vmul.f32 %v588_v35, %v588_v35  ;;  %v1002_v39 = vadd.f32 %v1001_v31, %v939_v30  ;;  %v1278_v40 = vpop.f32.mrb[14].mxu0  ;;  %839 = vst [vmem:[%s1498_s11 + $0x160] sm:$0xff] %v1565_v36  ;;  %v1570_v42 = vpop.f32.mrb[14].mxu1 }
 0x114   : > { %810 = vst [vmem:[%s1498_s11 + $0x78] sm:$0xff] %v1278_v40  ;;  %v591_v44 = vpop.f32.mrb[15].mxu0  ;;  %842 = vst [vmem:[%s1498_s11 + $0x178] sm:$0xff] %v1570_v42  ;;  %v1575_v46 = vpop.f32.mrb[15].mxu1  ;;  %v943_v54 = vmul.f32 %v1278_v40, %v1278_v40 }
 0x115   : > { %v1003_v48 = vadd.f32 %v1002_v39, %v940_v38  ;;  %808 = vst [vmem:[%s1498_s11 + $0x68] sm:$0xff] %v591_v44  ;;  %v871_v49 = vadd.f32 %v870_v37, %v591_v44  ;;  %v941_v50 = vmul.f32 %v591_v44, %v591_v44  ;;  %840 = vst [vmem:[%s1498_s11 + $0x168] sm:$0xff] %v1575_v46 }
 0x117   : > { %v872_v52 = vadd.f32 %v1277_v32, %v871_v49  ;;  %v1004_v53 = vadd.f32 %v1003_v48, %v941_v50 }
 0x119   : > { %v1005_v55 = vadd.f32 %v1004_v53, %v942_v51  ;;  %v1281_v56 = vpop.f32.mrb[16].mxu0  ;;  %v873_v57 = vadd.f32 %v1278_v40, %v872_v52  ;;  %v1580_v59 = vpop.f32.mrb[16].mxu1 }
 0x11a   : > { %813 = vst [vmem:[%s1498_s11 + $0x90] sm:$0xff] %v1281_v56  ;;  %v604_v61 = vpop.f32.mrb[17].mxu0  ;;  %845 = vst [vmem:[%s1498_s11 + $0x190] sm:$0xff] %v1580_v59  ;;  %v1585_v62 = vpop.f32.mrb[17].mxu1  ;;  %v946_v11 = vmul.f32 %v1281_v56, %v1281_v56 }
 0x11b   : > { %811 = vst [vmem:[%s1498_s11 + $0x80] sm:$0xff] %v604_v61  ;;  %v874_v63 = vadd.f32 %v873_v57, %v604_v61  ;;  %v944_v0 = vmul.f32 %v604_v61, %v604_v61  ;;  %v1006_v2 = vadd.f32 %v1005_v55, %v943_v54  ;;  %v1282_v4 = vpop.f32.mrb[18].mxu0  ;;  %843 = vst [vmem:[%s1498_s11 + $0x180] sm:$0xff] %v1585_v62  ;;  %v1590_v5 = vpop.f32.mrb[18].mxu1 }
 0x11c   : > { %814 = vst [vmem:[%s1498_s11 + $0x98] sm:$0xff] %v1282_v4  ;;  %v607_v6 = vpop.f32.mrb[19].mxu0  ;;  %846 = vst [vmem:[%s1498_s11 + $0x198] sm:$0xff] %v1590_v5  ;;  %v1595_v7 = vpop.f32.mrb[19].mxu1  ;;  %v947_v15 = vmul.f32 %v1282_v4, %v1282_v4 }
 0x11d   : > { %v1007_v8 = vadd.f32 %v1006_v2, %v944_v0  ;;  %812 = vst [vmem:[%s1498_s11 + $0x88] sm:$0xff] %v607_v6  ;;  %v875_v9 = vadd.f32 %v874_v63, %v607_v6  ;;  %v945_v10 = vmul.f32 %v607_v6, %v607_v6  ;;  %844 = vst [vmem:[%s1498_s11 + $0x188] sm:$0xff] %v1595_v7 }
 0x11f   : > { %v876_v12 = vadd.f32 %v1281_v56, %v875_v9  ;;  %v1008_v13 = vadd.f32 %v1007_v8, %v945_v10 }
 0x121   : > { %v1009_v17 = vadd.f32 %v1008_v13, %v946_v11  ;;  %v1285_v18 = vpop.f32.mrb[20].mxu0  ;;  %v877_v19 = vadd.f32 %v1282_v4, %v876_v12  ;;  %v1600_v20 = vpop.f32.mrb[20].mxu1 }
 0x122   : > { %817 = vst [vmem:[%s1498_s11 + $0xb0] sm:$0xff] %v1285_v18  ;;  %v620_v22 = vpop.f32.mrb[21].mxu0  ;;  %849 = vst [vmem:[%s1498_s11 + $0x1b0] sm:$0xff] %v1600_v20  ;;  %v1605_v24 = vpop.f32.mrb[21].mxu1  ;;  %v950_v37 = vmul.f32 %v1285_v18, %v1285_v18 }
 0x123   : > { %815 = vst [vmem:[%s1498_s11 + $0xa0] sm:$0xff] %v620_v22  ;;  %v878_v25 = vadd.f32 %v877_v19, %v620_v22  ;;  %v948_v26 = vmul.f32 %v620_v22, %v620_v22  ;;  %v1010_v27 = vadd.f32 %v1009_v17, %v947_v15  ;;  %v1286_v28 = vpop.f32.mrb[22].mxu0  ;;  %847 = vst [vmem:[%s1498_s11 + $0x1a0] sm:$0xff] %v1605_v24  ;;  %v1610_v29 = vpop.f32.mrb[22].mxu1 }
 0x124   : > { %818 = vst [vmem:[%s1498_s11 + $0xb8] sm:$0xff] %v1286_v28  ;;  %v623_v30 = vpop.f32.mrb[23].mxu0  ;;  %850 = vst [vmem:[%s1498_s11 + $0x1b8] sm:$0xff] %v1610_v29  ;;  %v1615_v31 = vpop.f32.mrb[23].mxu1  ;;  %v951_v40 = vmul.f32 %v1286_v28, %v1286_v28 }
 0x125   : > { %v1011_v32 = vadd.f32 %v1010_v27, %v948_v26  ;;  %816 = vst [vmem:[%s1498_s11 + $0xa8] sm:$0xff] %v623_v30  ;;  %v879_v33 = vadd.f32 %v878_v25, %v623_v30  ;;  %v949_v35 = vmul.f32 %v623_v30, %v623_v30  ;;  %848 = vst [vmem:[%s1498_s11 + $0x1a8] sm:$0xff] %v1615_v31 }
 0x127   : > { %v880_v38 = vadd.f32 %v1285_v18, %v879_v33  ;;  %v1012_v39 = vadd.f32 %v1011_v32, %v949_v35 }
 0x129   : > { %v1013_v44 = vadd.f32 %v1012_v39, %v950_v37  ;;  %v1289_v48 = vpop.f32.mrb[24].mxu0  ;;  %v881_v49 = vadd.f32 %v1286_v28, %v880_v38  ;;  %v1620_v50 = vpop.f32.mrb[24].mxu1 }
 0x12a   : > { %821 = vst [vmem:[%s1498_s11 + $0xd0] sm:$0xff] %v1289_v48  ;;  %v636_v51 = vpop.f32.mrb[25].mxu0  ;;  %853 = vst [vmem:[%s1498_s11 + $0x1d0] sm:$0xff] %v1620_v50  ;;  %v1625_v52 = vpop.f32.mrb[25].mxu1  ;;  %v954_v6 = vmul.f32 %v1289_v48, %v1289_v48 }
 0x12b   : > { %819 = vst [vmem:[%s1498_s11 + $0xc0] sm:$0xff] %v636_v51  ;;  %v882_v53 = vadd.f32 %v881_v49, %v636_v51  ;;  %v952_v54 = vmul.f32 %v636_v51, %v636_v51  ;;  %v1014_v55 = vadd.f32 %v1013_v44, %v951_v40  ;;  %v1290_v56 = vpop.f32.mrb[26].mxu0  ;;  %851 = vst [vmem:[%s1498_s11 + $0x1c0] sm:$0xff] %v1625_v52  ;;  %v1630_v57 = vpop.f32.mrb[26].mxu1 }
 0x12c   : > { %822 = vst [vmem:[%s1498_s11 + $0xd8] sm:$0xff] %v1290_v56  ;;  %v639_v61 = vpop.f32.mrb[27].mxu0  ;;  %854 = vst [vmem:[%s1498_s11 + $0x1d8] sm:$0xff] %v1630_v57  ;;  %v1635_v63 = vpop.f32.mrb[27].mxu1  ;;  %v955_v10 = vmul.f32 %v1290_v56, %v1290_v56  ;;  %v960_v49 = vmul.f32 %v1505_v43, %v1505_v43 }
 0x12d   : > { %v1015_v0 = vadd.f32 %v1014_v55, %v952_v54  ;;  %820 = vst [vmem:[%s1498_s11 + $0xc8] sm:$0xff] %v639_v61  ;;  %v883_v2 = vadd.f32 %v882_v53, %v639_v61  ;;  %v953_v4 = vmul.f32 %v639_v61, %v639_v61  ;;  %852 = vst [vmem:[%s1498_s11 + $0x1c8] sm:$0xff] %v1635_v63 }
 0x12e   : > { %v962_v61 = vmul.f32 %v1500_v41, %v1500_v41 }
 0x12f   : > { %v884_v8 = vadd.f32 %v1289_v48, %v883_v2  ;;  %v1016_v9 = vadd.f32 %v1015_v0, %v953_v4  ;;  %v963_v4 = vmul.f32 %v1510_v45, %v1510_v45 }
 0x131   : > { %v1017_v11 = vadd.f32 %v1016_v9, %v954_v6  ;;  %v1293_v12 = vpop.f32.mrb[28].mxu0  ;;  %v885_v13 = vadd.f32 %v1290_v56, %v884_v8  ;;  %v1640_v15 = vpop.f32.mrb[28].mxu1  ;;  %v961_v56 = vmul.f32 %v1515_v47, %v1515_v47 }
 0x132   : > { %825 = vst [vmem:[%s1498_s11 + $0xf0] sm:$0xff] %v1293_v12  ;;  %v652_v17 = vpop.f32.mrb[29].mxu0  ;;  %857 = vst [vmem:[%s1498_s11 + $0x1f0] sm:$0xff] %v1640_v15  ;;  %v1645_v18 = vpop.f32.mrb[29].mxu1  ;;  %v958_v37 = vmul.f32 %v1293_v12, %v1293_v12 }
 0x133   : > { %823 = vst [vmem:[%s1498_s11 + $0xe0] sm:$0xff] %v652_v17  ;;  %v886_v19 = vadd.f32 %v885_v13, %v652_v17  ;;  %v956_v22 = vmul.f32 %v652_v17, %v652_v17  ;;  %v1018_v25 = vadd.f32 %v1017_v11, %v955_v10  ;;  %v1294_v26 = vpop.f32.mrb[30].mxu0  ;;  %855 = vst [vmem:[%s1498_s11 + $0x1e0] sm:$0xff] %v1645_v18  ;;  %v1650_v27 = vpop.f32.mrb[30].mxu1 }
 0x134   : > { %826 = vst [vmem:[%s1498_s11 + $0xf8] sm:$0xff] %v1294_v26  ;;  %v655_v28 = vpop.f32.mrb[31].mxu0  ;;  %858 = vst [vmem:[%s1498_s11 + $0x1f8] sm:$0xff] %v1650_v27  ;;  %v1655_v30 = vpop.f32.mrb[31].mxu1  ;;  %v959_v40 = vmul.f32 %v1294_v26, %v1294_v26 }
 0x135   : > { %v1019_v32 = vadd.f32 %v1018_v25, %v956_v22  ;;  %824 = vst [vmem:[%s1498_s11 + $0xe8] sm:$0xff] %v655_v28  ;;  %v887_v33 = vadd.f32 %v886_v19, %v655_v28  ;;  %v957_v35 = vmul.f32 %v655_v28, %v655_v28  ;;  %856 = vst [vmem:[%s1498_s11 + $0x1e8] sm:$0xff] %v1655_v30 }
 0x137   : > { %v888_v38 = vadd.f32 %v1293_v12, %v887_v33  ;;  %v1020_v39 = vadd.f32 %v1019_v32, %v957_v35  ;;  %v965_v12 = vmul.f32 %v1535_v3, %v1535_v3  ;;  %v969_v32 = vmul.f32 %v1555_v23, %v1555_v23 }
 0x139   : > { %v1021_v44 = vadd.f32 %v1020_v39, %v958_v37  ;;  %v889_v48 = vadd.f32 %v1294_v26, %v888_v38 }
 0x13b   : > { %v890_v51 = vadd.f32 %v889_v48, %v1505_v43  ;;  %v1022_v53 = vadd.f32 %v1021_v44, %v959_v40  ;;  %v964_v43 = vmul.f32 %v1525_v60, %v1525_v60  ;;  %v973_v48 = vmul.f32 %v1575_v46, %v1575_v46 }
 0x13d   : > { %v1023_v54 = vadd.f32 %v1022_v53, %v960_v49  ;;  %v891_v55 = vadd.f32 %v890_v51, %v1515_v47 }
 0x13f   : > { %v892_v0 = vadd.f32 %v1500_v41, %v891_v55  ;;  %v1024_v2 = vadd.f32 %v1023_v54, %v961_v56  ;;  %v966_v41 = vmul.f32 %v1520_v58, %v1520_v58 }
 0x141   : > { %v1025_v6 = vadd.f32 %v1024_v2, %v962_v61  ;;  %v893_v8 = vadd.f32 %v1510_v45, %v892_v0  ;;  %v967_v45 = vmul.f32 %v1530_v1, %v1530_v1  ;;  %v977_v0 = vmul.f32 %v1595_v7, %v1595_v7 }
 0x143   : > { %v894_v9 = vadd.f32 %v893_v8, %v1525_v60  ;;  %v1026_v10 = vadd.f32 %v1025_v6, %v963_v4  ;;  %v968_v60 = vmul.f32 %v1545_v16, %v1545_v16 }
 0x145   : > { %v1027_v11 = vadd.f32 %v1026_v10, %v964_v43  ;;  %v895_v47 = vadd.f32 %v894_v9, %v1535_v3 }
 0x147   : > { %v896_v13 = vadd.f32 %v1520_v58, %v895_v47  ;;  %v1028_v17 = vadd.f32 %v1027_v11, %v965_v12  ;;  %v970_v58 = vmul.f32 %v1540_v14, %v1540_v14  ;;  %v981_v11 = vmul.f32 %v1615_v31, %v1615_v31 }
 0x149   : > { %v1029_v19 = vadd.f32 %v1028_v17, %v966_v41  ;;  %v897_v22 = vadd.f32 %v1530_v1, %v896_v13  ;;  %v971_v1 = vmul.f32 %v1550_v21, %v1550_v21 }
 0x14b   : > { %v898_v25 = vadd.f32 %v897_v22, %v1545_v16  ;;  %v1030_v26 = vadd.f32 %v1029_v19, %v967_v45  ;;  %v972_v16 = vmul.f32 %v1565_v36, %v1565_v36  ;;  %v985_v22 = vmul.f32 %v1635_v63, %v1635_v63 }
 0x14d   : > { %v1031_v28 = vadd.f32 %v1030_v26, %v968_v60  ;;  %v899_v3 = vadd.f32 %v898_v25, %v1555_v23 }
 0x14f   : > { %v900_v33 = vadd.f32 %v1540_v14, %v899_v3  ;;  %v1032_v35 = vadd.f32 %v1031_v28, %v969_v32  ;;  %v974_v14 = vmul.f32 %v1560_v34, %v1560_v34  ;;  %v988_v28 = vmul.f32 %v1645_v18, %v1645_v18 }
 0x151   : > { %v1033_v37 = vadd.f32 %v1032_v35, %v970_v58  ;;  %v901_v38 = vadd.f32 %v1550_v21, %v900_v33  ;;  %v975_v21 = vmul.f32 %v1570_v42, %v1570_v42  ;;  %v990_v33 = vmul.f32 %v1640_v15, %v1640_v15 }
 0x153   : > { %v902_v39 = vadd.f32 %v901_v38, %v1565_v36  ;;  %v1034_v40 = vadd.f32 %v1033_v37, %v971_v1  ;;  %v976_v36 = vmul.f32 %v1585_v62, %v1585_v62 }
 0x155   : > { %v1035_v44 = vadd.f32 %v1034_v40, %v972_v16  ;;  %v903_v23 = vadd.f32 %v902_v39, %v1575_v46 }
 0x157   : > { %v904_v49 = vadd.f32 %v1560_v34, %v903_v23  ;;  %v1036_v51 = vadd.f32 %v1035_v44, %v973_v48  ;;  %v978_v34 = vmul.f32 %v1580_v59, %v1580_v59  ;;  %v1061_v44 = vlaneseq }
 0x159   : > { %v1037_v53 = vadd.f32 %v1036_v51, %v974_v14  ;;  %v905_v54 = vadd.f32 %v1570_v42, %v904_v49  ;;  %v979_v42 = vmul.f32 %v1590_v5, %v1590_v5  ;;  %v1062_v49 = vshrl.u32 %v1061_v44, 7 }
 0x15b   : > { %v906_v55 = vadd.f32 %v905_v54, %v1585_v62  ;;  %v1038_v56 = vadd.f32 %v1037_v53, %v975_v21  ;;  %v980_v62 = vmul.f32 %v1605_v24, %v1605_v24  ;;  %vm1064_vm0 = vcmp.eq.s32.totalorder %v1062_v49, 1 }
 0x15c   : > { %vm1063_vm1 = vcmp.eq.s32.totalorder %v1062_v49, 0 }
 0x15d   : > { %v1039_v61 = vadd.f32 %v1038_v56, %v976_v36  ;;  %v907_v46 = vadd.f32 %v906_v55, %v1595_v7 }
 0x15f   : > { %v908_v2 = vadd.f32 %v1580_v59, %v907_v46  ;;  %v1040_v4 = vadd.f32 %v1039_v61, %v977_v0  ;;  %v982_v59 = vmul.f32 %v1600_v20, %v1600_v20 }
 0x161   : > { %v1041_v6 = vadd.f32 %v1040_v4, %v978_v34  ;;  %v909_v8 = vadd.f32 %v1590_v5, %v908_v2  ;;  %v983_v5 = vmul.f32 %v1610_v29, %v1610_v29 }
 0x163   : > { %v910_v43 = vadd.f32 %v909_v8, %v1605_v24  ;;  %v1042_v9 = vadd.f32 %v1041_v6, %v979_v42  ;;  %v984_v24 = vmul.f32 %v1625_v52, %v1625_v52 }
 0x165   : > { %v1043_v10 = vadd.f32 %v1042_v9, %v980_v62  ;;  %v911_v7 = vadd.f32 %v910_v43, %v1615_v31 }
 0x167   : > { %v912_v47 = vadd.f32 %v1600_v20, %v911_v7  ;;  %v1044_v12 = vadd.f32 %v1043_v10, %v981_v11  ;;  %v986_v20 = vmul.f32 %v1620_v50, %v1620_v50 }
 0x169   : > { %v1045_v41 = vadd.f32 %v1044_v12, %v982_v59  ;;  %v913_v13 = vadd.f32 %v1610_v29, %v912_v47  ;;  %v987_v29 = vmul.f32 %v1630_v57, %v1630_v57 }
 0x16b   : > { %v914_v17 = vadd.f32 %v913_v13, %v1625_v52  ;;  %v1046_v45 = vadd.f32 %v1045_v41, %v983_v5 }
 0x16d   : > { %v1047_v19 = vadd.f32 %v1046_v45, %v984_v24  ;;  %v915_v31 = vadd.f32 %v914_v17, %v1635_v63 }
 0x16f   : > { %v916_v60 = vadd.f32 %v1620_v50, %v915_v31  ;;  %v1048_v25 = vadd.f32 %v1047_v19, %v985_v22  ;;  %v989_v50 = vmul.f32 %v1655_v30, %v1655_v30 }
 0x171   : > { %v1049_v26 = vadd.f32 %v1048_v25, %v986_v20  ;;  %v917_v52 = vadd.f32 %v1630_v57, %v916_v60  ;;  %v991_v57 = vmul.f32 %v1650_v27, %v1650_v27 }
 0x173   : > { %v918_v3 = vadd.f32 %v917_v52, %v1645_v18  ;;  %v1050_v32 = vadd.f32 %v1049_v26, %v987_v29 }
 0x175   : > { %v1051_v63 = vadd.f32 %v1050_v32, %v988_v28  ;;  %v919_v58 = vadd.f32 %v918_v3, %v1655_v30 }
 0x177   : > { %v920_v35 = vadd.f32 %v1640_v15, %v919_v58  ;;  %v1052_v1 = vadd.f32 %v1051_v63, %v989_v50 }
 0x179   : > { %v921_v37 = vadd.f32 %v1650_v27, %v920_v35  ;;  %v1053_v18 = vadd.f32 %v1052_v1, %v990_v33 }
 0x17b   : > { %v922_v38 = vrot.slane %v921_v37, 4  ;;  %v1054_v16 = vadd.f32 %v1053_v18, %v991_v57 }
 0x17d   : > { %v923_v39 = vadd.f32 %v922_v38, %v921_v37  ;;  %v1055_v40 = vrot.slane %v1054_v16, 4 }
 0x17f   : > { %v924_v23 = vrot.slane %v923_v39, 2  ;;  %v1056_v30 = vadd.f32 %v1055_v40, %v1054_v16 }
 0x181   : > { %v925_v48 = vadd.f32 %v924_v23, %v923_v39  ;;  %v1057_v14 = vrot.slane %v1056_v30, 2 }
 0x183   : > { %v1058_v15 = vadd.f32 %v1057_v14, %v1056_v30  ;;  %v926_v51 = vrot.slane %v925_v48, 1 }
 0x185   : > { %v1059_v21 = vrot.slane %v1058_v15, 1  ;;  %v927_v27 = vadd.f32 %v926_v51, %v925_v48 }
 0x187   : > { %v1060_v53 = vadd.f32 %v1059_v21, %v1058_v15 }
 0x189   : > { %v1065_v54 = vsel %vm1064_vm0, %v1060_v53, 0.0 }
 0x18a   : > { %v1066_v36 = vsel %vm1063_vm1, %v927_v27, %v1065_v54 }
 0x18b   : > { %1067 = vst [vmem:[%s184_s17] sm:$0xff] %v1066_v36 }
 0x18c PF: > { %s14_s12 = sadd.s32 1, %s1397_s12  }
 0x18d   : > { %p11_p5 = scmp.ge.s32.totalorder %s14_s12, 6  }
 0x18f   :  { %13 = sbr.rel (!%p11_p5) target bundleno = 1 (0x1), region = 70 }

// kernel: _lambda_.61
= control target key start
LH: loop header
LB: loop body
LE: loop exit
PB: predicated region body
PF: predicated region fallthrough
CT: control target
= control target key end

     0   :  { %s1316_s12 = smov 0   ;;  %s1576_s0 = inlined_call_operand.vmem [shape: f32[2048,128], index: 0, kind: input, shape index: {}]   ;;  %s1577_s1 = inlined_call_operand.vmem [shape: f32[1,128], index: 1, kind: input, shape index: {}]   ;;  %s1578_s2 = inlined_call_operand.vmem [shape: f32[1,128], index: 2, kind: input, shape index: {}]   ;;  %s1579_s3 = inlined_call_operand.vmem [shape: bf16[2048,128], index: 3, kind: output, shape index: {}]  }
   0x1 LB: > { %s948_s13 = sadd.s32 4294967295, %s1294_s12   ;;  %p952_p0 = scmp.ge.s32.totalorder %s1294_s12, 1  ;;  %s1294_s12 = sphi %s1316_s12, %s13_s12  }
   0x2   : > { %p138_p1 = scmp.lt.s32.totalorder %s1294_s12, 5 }
   0x4   : > { %p139_p2 = pnand %p952_p0, %p138_p1 }
   0x5   : > { %s953_s14 = sshll.u32 (!%p139_p2), %s948_s13, 6  ;;  %v1330_v0 = vld [vmem:[%s1577_s1] ss:$0 sm:$0xff] (!%p139_p2) }
   0x6   : > { %142 = sbr.rel (%p139_p2) target bundleno = 111 (0x6f), region = 32  ;;  %p163_p3 = scmp.lt.s32.totalorder (!%p139_p2), %s953_s14, 255  ;;  %v1340_v1 = vld [vmem:[%s1578_s2] ss:$0 sm:$0xff] (!%p139_p2) }
   0xd   : > { %s1581_s14 = smov (!%p163_p3, %s953_s14), 255 }
   0xe   : > { %s954_s15 = sshll.u32 %s1581_s14, 3  ;;  %s956_s23 = sshll.u32 %s1581_s14, 2 }
   0xf   : > { %s1335_s20 = scalar_lea.vmem %s1576_s0, %s954_s15  ;;  %s1368_s26 = scalar_lea.vmem %s1579_s3, %s956_s23 }
  0x10   : > { %v174_v2 = vld [vmem:[%s1335_s20] sm:$0xff]  ;;  %v175_v3 = vld [vmem:[%s1335_s20 + $0x8] sm:$0xff]  ;;  %v176_v4 = vld [vmem:[%s1335_s20 + $0x10] sm:$0xff] }
  0x11   : > { %v245_v5 = vmul.f32 %v1330_v0, %v174_v2  ;;  %v246_v6 = vmul.f32 %v1330_v0, %v175_v3  ;;  %v177_v7 = vld [vmem:[%s1335_s20 + $0x18] sm:$0xff]  ;;  %v247_v8 = vmul.f32 %v1330_v0, %v176_v4  ;;  %v178_v9 = vld [vmem:[%s1335_s20 + $0x20] sm:$0xff]  ;;  %v179_v10 = vld [vmem:[%s1335_s20 + $0x28] sm:$0xff] }
  0x12   : > { %v248_v11 = vmul.f32 %v1330_v0, %v177_v7  ;;  %v249_v12 = vmul.f32 %v1330_v0, %v178_v9  ;;  %v250_v13 = vmul.f32 %v1330_v0, %v179_v10  ;;  %v180_v14 = vld [vmem:[%s1335_s20 + $0x30] sm:$0xff]  ;;  %v181_v15 = vld [vmem:[%s1335_s20 + $0x38] sm:$0xff]  ;;  %v182_v30 = vld [vmem:[%s1335_s20 + $0x40] sm:$0xff] }
  0x13   : > { %v316_v16 = vadd.f32 %v1340_v1, %v245_v5  ;;  %v317_v17 = vadd.f32 %v1340_v1, %v246_v6  ;;  %v318_v18 = vadd.f32 %v1340_v1, %v247_v8  ;;  %v251_v19 = vmul.f32 %v1330_v0, %v180_v14  ;;  %v183_v31 = vld [vmem:[%s1335_s20 + $0x48] sm:$0xff]  ;;  %v184_v32 = vld [vmem:[%s1335_s20 + $0x50] sm:$0xff]  ;;  %v185_v44 = vld [vmem:[%s1335_s20 + $0x58] sm:$0xff] }
  0x14   : > { %v319_v20 = vadd.f32 %v1340_v1, %v248_v11  ;;  %v320_v21 = vadd.f32 %v1340_v1, %v249_v12  ;;  %v321_v22 = vadd.f32 %v1340_v1, %v250_v13  ;;  %v252_v23 = vmul.f32 %v1330_v0, %v181_v15  ;;  %v186_v46 = vld [vmem:[%s1335_s20 + $0x60] sm:$0xff]  ;;  %v187_v56 = vld [vmem:[%s1335_s20 + $0x68] sm:$0xff]  ;;  %v188_v60 = vld [vmem:[%s1335_s20 + $0x70] sm:$0xff] }
  0x15   : > { %vm380_vm0 = vcmp.ge.f32.partialorder %v316_v16, 0.0  ;;  %vm381_vm1 = vcmp.ge.f32.partialorder %v317_v17, 0.0  ;;  %v444_v24 = vmul.f32 0.0, %v316_v16  ;;  %v445_v25 = vmul.f32 0.0, %v317_v17  ;;  %v189_v6 = vld [vmem:[%s1335_s20 + $0x78] sm:$0xff]  ;;  %v190_v10 = vld [vmem:[%s1335_s20 + $0x80] sm:$0xff] }
  0x16   : > { %vm382_vm2 = vcmp.ge.f32.partialorder %v318_v18, 0.0  ;;  %vm383_vm3 = vcmp.ge.f32.partialorder %v319_v20, 0.0  ;;  %v446_v26 = vmul.f32 0.0, %v318_v18  ;;  %v447_v27 = vmul.f32 0.0, %v319_v20 }
  0x17   : > { %v508_v28 = vsel %vm380_vm0, %v316_v16, %v444_v24  ;;  %v509_v29 = vsel %vm381_vm1, %v317_v17, %v445_v25  ;;  %vm384_vm4 = vcmp.ge.f32.partialorder %v320_v21, 0.0  ;;  %vm385_vm5 = vcmp.ge.f32.partialorder %v321_v22, 0.0 }
  0x18   : > { %v1092_v33 = vpack.c.bf16 %v509_v29, %v508_v28  ;;  %v510_v34 = vsel %vm382_vm2, %v318_v18, %v446_v26  ;;  %v511_v35 = vsel %vm383_vm3, %v319_v20, %v447_v27  ;;  %v448_v36 = vmul.f32 0.0, %v320_v21  ;;  %v191_v18 = vld [vmem:[%s1335_s20 + $0x88] sm:$0xff]  ;;  %v193_v26 = vld [vmem:[%s1335_s20 + $0x98] sm:$0xff] }
  0x19   : > { %v1097_v37 = vpack.c.bf16 %v511_v35, %v510_v34  ;;  %v449_v38 = vmul.f32 0.0, %v321_v22  ;;  %v322_v39 = vadd.f32 %v1340_v1, %v251_v19  ;;  %v323_v40 = vadd.f32 %v1340_v1, %v252_v23  ;;  %v192_v19 = vld [vmem:[%s1335_s20 + $0x90] sm:$0xff] }
  0x1a   : > { %1093 = vst [vmem:[%s1368_s26] sm:$0xff] %v1092_v33   ;;  %v512_v41 = vsel %vm384_vm4, %v320_v21, %v448_v36  ;;  %v253_v42 = vmul.f32 %v1330_v0, %v182_v30  ;;  %v254_v43 = vmul.f32 %v1330_v0, %v183_v31  ;;  %v255_v45 = vmul.f32 %v1330_v0, %v184_v32  ;;  %v194_v31 = vld [vmem:[%s1335_s20 + $0xa0] sm:$0xff]  ;;  %v195_v32 = vld [vmem:[%s1335_s20 + $0xa8] sm:$0xff] }
  0x1b   : > { %1249 = vst [vmem:[%s1368_s26 + $0x8] sm:$0xff] %v1097_v37   ;;  %v513_v47 = vsel %vm385_vm5, %v321_v22, %v449_v38  ;;  %vm386_vm6 = vcmp.ge.f32.partialorder %v322_v39, 0.0  ;;  %vm387_vm7 = vcmp.ge.f32.partialorder %v323_v40, 0.0  ;;  %v450_v48 = vmul.f32 0.0, %v322_v39 }
  0x1c   : > { %v1102_v49 = vpack.c.bf16 %v513_v47, %v512_v41  ;;  %v451_v50 = vmul.f32 0.0, %v323_v40  ;;  %v324_v51 = vadd.f32 %v1340_v1, %v253_v42  ;;  %v325_v52 = vadd.f32 %v1340_v1, %v254_v43  ;;  %v196_v43 = vld [vmem:[%s1335_s20 + $0xb0] sm:$0xff] }
  0x1d   : > { %v514_v53 = vsel %vm386_vm6, %v322_v39, %v450_v48  ;;  %v256_v54 = vmul.f32 %v1330_v0, %v185_v44  ;;  %v326_v55 = vadd.f32 %v1340_v1, %v255_v45  ;;  %v257_v57 = vmul.f32 %v1330_v0, %v186_v46  ;;  %v197_v44 = vld [vmem:[%s1335_s20 + $0xb8] sm:$0xff] }
  0x1e   : > { %1250 = vst [vmem:[%s1368_s26 + $0x10] sm:$0xff] %v1102_v49   ;;  %v515_v58 = vsel %vm387_vm7, %v323_v40, %v451_v50  ;;  %vm388_vm8 = vcmp.ge.f32.partialorder %v324_v51, 0.0  ;;  %vm389_vm9 = vcmp.ge.f32.partialorder %v325_v52, 0.0  ;;  %v452_v59 = vmul.f32 0.0, %v324_v51 }
  0x1f   : > { %v1107_v61 = vpack.c.bf16 %v515_v58, %v514_v53  ;;  %v453_v62 = vmul.f32 0.0, %v325_v52  ;;  %v327_v63 = vadd.f32 %v1340_v1, %v256_v54  ;;  %vm390_vm10 = vcmp.ge.f32.partialorder %v326_v55, 0.0 }
  0x20   : > { %v516_v2 = vsel %vm388_vm8, %v324_v51, %v452_v59  ;;  %v454_v3 = vmul.f32 0.0, %v326_v55  ;;  %v258_v4 = vmul.f32 %v1330_v0, %v187_v56  ;;  %v328_v5 = vadd.f32 %v1340_v1, %v257_v57  ;;  %v199_v59 = vld [vmem:[%s1335_s20 + $0xc8] sm:$0xff] }
  0x21   : > { %1251 = vst [vmem:[%s1368_s26 + $0x18] sm:$0xff] %v1107_v61   ;;  %v517_v7 = vsel %vm389_vm9, %v325_v52, %v453_v62  ;;  %vm391_vm11 = vcmp.ge.f32.partialorder %v327_v63, 0.0  ;;  %v455_v8 = vmul.f32 0.0, %v327_v63  ;;  %v259_v9 = vmul.f32 %v1330_v0, %v188_v60 }
  0x22   : > { %v1112_v11 = vpack.c.bf16 %v517_v7, %v516_v2  ;;  %v518_v12 = vsel %vm390_vm10, %v326_v55, %v454_v3  ;;  %v329_v13 = vadd.f32 %v1340_v1, %v258_v4  ;;  %vm392_vm12 = vcmp.ge.f32.partialorder %v328_v5, 0.0  ;;  %v198_v55 = vld [vmem:[%s1335_s20 + $0xc0] sm:$0xff]  ;;  %v200_v4 = vld [vmem:[%s1335_s20 + $0xd0] sm:$0xff] }
  0x23   : > { %v519_v14 = vsel %vm391_vm11, %v327_v63, %v455_v8  ;;  %v456_v15 = vmul.f32 0.0, %v328_v5  ;;  %v260_v16 = vmul.f32 %v1330_v0, %v189_v6  ;;  %v330_v17 = vadd.f32 %v1340_v1, %v259_v9  ;;  %v201_v9 = vld [vmem:[%s1335_s20 + $0xd8] sm:$0xff] }
  0x24   : > { %1252 = vst [vmem:[%s1368_s26 + $0x20] sm:$0xff] %v1112_v11   ;;  %v1117_v20 = vpack.c.bf16 %v519_v14, %v518_v12  ;;  %vm393_vm13 = vcmp.ge.f32.partialorder %v329_v13, 0.0  ;;  %v457_v21 = vmul.f32 0.0, %v329_v13  ;;  %v261_v22 = vmul.f32 %v1330_v0, %v190_v10  ;;  %v202_v10 = vld [vmem:[%s1335_s20 + $0xe0] sm:$0xff]  ;;  %v203_v11 = vld [vmem:[%s1335_s20 + $0xe8] sm:$0xff] }
  0x25   : > { %v520_v23 = vsel %vm392_vm12, %v328_v5, %v456_v15  ;;  %v331_v24 = vadd.f32 %v1340_v1, %v260_v16  ;;  %vm394_vm14 = vcmp.ge.f32.partialorder %v330_v17, 0.0  ;;  %v458_v25 = vmul.f32 0.0, %v330_v17 }
  0x26   : > { %1253 = vst [vmem:[%s1368_s26 + $0x28] sm:$0xff] %v1117_v20   ;;  %v521_v27 = vsel %vm393_vm13, %v329_v13, %v457_v21  ;;  %v262_v28 = vmul.f32 %v1330_v0, %v191_v18  ;;  %v332_v29 = vadd.f32 %v1340_v1, %v261_v22  ;;  %v263_v30 = vmul.f32 %v1330_v0, %v192_v19  ;;  %v204_v22 = vld [vmem:[%s1335_s20 + $0xf0] sm:$0xff] }
  0x27   : > { %v1122_v33 = vpack.c.bf16 %v521_v27, %v520_v23  ;;  %vm395_vm15 = vcmp.ge.f32.partialorder %v331_v24, 0.0  ;;  %v459_v34 = vmul.f32 0.0, %v331_v24  ;;  %v522_v35 = vsel %vm394_vm14, %v330_v17, %v458_v25 }
  0x28   : > { %v333_v36 = vadd.f32 %v1340_v1, %v262_v28  ;;  %vm396_vm0 = vcmp.ge.f32.partialorder %v332_v29, 0.0  ;;  %v460_v37 = vmul.f32 0.0, %v332_v29  ;;  %v264_v38 = vmul.f32 %v1330_v0, %v193_v26 }
  0x29   : > { %1254 = vst [vmem:[%s1368_s26 + $0x30] sm:$0xff] %v1122_v33   ;;  %v523_v39 = vsel %vm395_vm15, %v331_v24, %v459_v34  ;;  %v334_v40 = vadd.f32 %v1340_v1, %v263_v30  ;;  %v265_v41 = vmul.f32 %v1330_v0, %v194_v31  ;;  %v266_v42 = vmul.f32 %v1330_v0, %v195_v32  ;;  %v205_v32 = vld [vmem:[%s1335_s20 + $0xf8] sm:$0xff] }
  0x2a   : > { %v1127_v45 = vpack.c.bf16 %v523_v39, %v522_v35  ;;  %vm397_vm1 = vcmp.ge.f32.partialorder %v333_v36, 0.0  ;;  %v461_v46 = vmul.f32 0.0, %v333_v36  ;;  %v524_v47 = vsel %vm396_vm0, %v332_v29, %v460_v37  ;;  %v207_v37 = vld [vmem:[%s1335_s20 + $0x108] sm:$0xff] }
  0x2b   : > { %v335_v48 = vadd.f32 %v1340_v1, %v264_v38  ;;  %vm398_vm2 = vcmp.ge.f32.partialorder %v334_v40, 0.0  ;;  %v462_v49 = vmul.f32 0.0, %v334_v40  ;;  %v336_v50 = vadd.f32 %v1340_v1, %v265_v41 }
  0x2c   : > { %1255 = vst [vmem:[%s1368_s26 + $0x38] sm:$0xff] %v1127_v45   ;;  %v525_v51 = vsel %vm397_vm1, %v333_v36, %v461_v46  ;;  %v337_v52 = vadd.f32 %v1340_v1, %v266_v42  ;;  %v267_v53 = vmul.f32 %v1330_v0, %v196_v43  ;;  %v268_v54 = vmul.f32 %v1330_v0, %v197_v44  ;;  %v206_v36 = vld [vmem:[%s1335_s20 + $0x100] sm:$0xff] }
  0x2d   : > { %v1132_v56 = vpack.c.bf16 %v525_v51, %v524_v47  ;;  %vm399_vm3 = vcmp.ge.f32.partialorder %v335_v48, 0.0  ;;  %v463_v57 = vmul.f32 0.0, %v335_v48  ;;  %v526_v58 = vsel %vm398_vm2, %v334_v40, %v462_v49 }
  0x2e   : > { %vm400_vm4 = vcmp.ge.f32.partialorder %v336_v50, 0.0  ;;  %vm401_vm5 = vcmp.ge.f32.partialorder %v337_v52, 0.0  ;;  %v464_v60 = vmul.f32 0.0, %v336_v50  ;;  %v465_v61 = vmul.f32 0.0, %v337_v52 }
  0x2f   : > { %1256 = vst [vmem:[%s1368_s26 + $0x40] sm:$0xff] %v1132_v56   ;;  %v527_v62 = vsel %vm399_vm3, %v335_v48, %v463_v57  ;;  %v338_v63 = vadd.f32 %v1340_v1, %v267_v53  ;;  %v339_v2 = vadd.f32 %v1340_v1, %v268_v54  ;;  %v269_v3 = vmul.f32 %v1330_v0, %v198_v55  ;;  %v208_v48 = vld [vmem:[%s1335_s20 + $0x110] sm:$0xff]  ;;  %v209_v53 = vld [vmem:[%s1335_s20 + $0x118] sm:$0xff] }
  0x30   : > { %v1137_v5 = vpack.c.bf16 %v527_v62, %v526_v58  ;;  %v528_v6 = vsel %vm400_vm4, %v336_v50, %v464_v60  ;;  %v529_v7 = vsel %vm401_vm5, %v337_v52, %v465_v61  ;;  %v270_v8 = vmul.f32 %v1330_v0, %v199_v59  ;;  %v210_v60 = vld [vmem:[%s1335_s20 + $0x120] sm:$0xff] }
  0x31   : > { %v1142_v12 = vpack.c.bf16 %v529_v7, %v528_v6  ;;  %vm402_vm6 = vcmp.ge.f32.partialorder %v338_v63, 0.0  ;;  %vm403_vm7 = vcmp.ge.f32.partialorder %v339_v2, 0.0  ;;  %v466_v13 = vmul.f32 0.0, %v338_v63 }
  0x32   : > { %1257 = vst [vmem:[%s1368_s26 + $0x48] sm:$0xff] %v1137_v5   ;;  %v467_v14 = vmul.f32 0.0, %v339_v2  ;;  %v340_v15 = vadd.f32 %v1340_v1, %v269_v3  ;;  %v341_v16 = vadd.f32 %v1340_v1, %v270_v8  ;;  %v271_v17 = vmul.f32 %v1330_v0, %v200_v4 }
  0x33   : > { %1258 = vst [vmem:[%s1368_s26 + $0x50] sm:$0xff] %v1142_v12   ;;  %v530_v18 = vsel %vm402_vm6, %v338_v63, %v466_v13  ;;  %v272_v19 = vmul.f32 %v1330_v0, %v201_v9  ;;  %v273_v20 = vmul.f32 %v1330_v0, %v202_v10  ;;  %v274_v21 = vmul.f32 %v1330_v0, %v203_v11  ;;  %v212_v10 = vld [vmem:[%s1335_s20 + $0x130] sm:$0xff]  ;;  %v213_v11 = vld [vmem:[%s1335_s20 + $0x138] sm:$0xff] }
  0x34   : > { %v531_v23 = vsel %vm403_vm7, %v339_v2, %v467_v14  ;;  %vm404_vm8 = vcmp.ge.f32.partialorder %v340_v15, 0.0  ;;  %vm405_vm9 = vcmp.ge.f32.partialorder %v341_v16, 0.0  ;;  %v468_v24 = vmul.f32 0.0, %v340_v15  ;;  %v211_v2 = vld [vmem:[%s1335_s20 + $0x128] sm:$0xff] }
  0x35   : > { %v1147_v25 = vpack.c.bf16 %v531_v23, %v530_v18  ;;  %v469_v26 = vmul.f32 0.0, %v341_v16  ;;  %v342_v27 = vadd.f32 %v1340_v1, %v271_v17  ;;  %v343_v28 = vadd.f32 %v1340_v1, %v272_v19  ;;  %v215_v23 = vld [vmem:[%s1335_s20 + $0x148] sm:$0xff] }
  0x36   : > { %v532_v29 = vsel %vm404_vm8, %v340_v15, %v468_v24  ;;  %v344_v30 = vadd.f32 %v1340_v1, %v273_v20  ;;  %v345_v31 = vadd.f32 %v1340_v1, %v274_v21  ;;  %v275_v33 = vmul.f32 %v1330_v0, %v204_v22  ;;  %v214_v15 = vld [vmem:[%s1335_s20 + $0x140] sm:$0xff] }
  0x37   : > { %1259 = vst [vmem:[%s1368_s26 + $0x58] sm:$0xff] %v1147_v25   ;;  %v533_v34 = vsel %vm405_vm9, %v341_v16, %v469_v26  ;;  %vm406_vm10 = vcmp.ge.f32.partialorder %v342_v27, 0.0  ;;  %vm407_vm11 = vcmp.ge.f32.partialorder %v343_v28, 0.0  ;;  %v470_v35 = vmul.f32 0.0, %v342_v27 }
  0x38   : > { %v1152_v38 = vpack.c.bf16 %v533_v34, %v532_v29  ;;  %v471_v39 = vmul.f32 0.0, %v343_v28  ;;  %vm408_vm12 = vcmp.ge.f32.partialorder %v344_v30, 0.0  ;;  %vm409_vm13 = vcmp.ge.f32.partialorder %v345_v31, 0.0 }
  0x39   : > { %v534_v40 = vsel %vm406_vm10, %v342_v27, %v470_v35  ;;  %v472_v41 = vmul.f32 0.0, %v344_v30  ;;  %v473_v42 = vmul.f32 0.0, %v345_v31  ;;  %v276_v43 = vmul.f32 %v1330_v0, %v205_v32  ;;  %v216_v27 = vld [vmem:[%s1335_s20 + $0x150] sm:$0xff]  ;;  %v217_v35 = vld [vmem:[%s1335_s20 + $0x158] sm:$0xff] }
  0x3a   : > { %1260 = vst [vmem:[%s1368_s26 + $0x60] sm:$0xff] %v1152_v38   ;;  %v535_v44 = vsel %vm407_vm11, %v343_v28, %v471_v39  ;;  %v346_v45 = vadd.f32 %v1340_v1, %v275_v33  ;;  %v277_v46 = vmul.f32 %v1330_v0, %v206_v36  ;;  %v278_v47 = vmul.f32 %v1330_v0, %v207_v37 }
  0x3b   : > { %v1157_v49 = vpack.c.bf16 %v535_v44, %v534_v40  ;;  %v536_v50 = vsel %vm408_vm12, %v344_v30, %v472_v41  ;;  %v537_v51 = vsel %vm409_vm13, %v345_v31, %v473_v42  ;;  %v347_v52 = vadd.f32 %v1340_v1, %v276_v43  ;;  %v218_v42 = vld [vmem:[%s1335_s20 + $0x160] sm:$0xff] }
  0x3c   : > { %v1162_v54 = vpack.c.bf16 %v537_v51, %v536_v50  ;;  %vm410_vm14 = vcmp.ge.f32.partialorder %v346_v45, 0.0  ;;  %v474_v55 = vmul.f32 0.0, %v346_v45  ;;  %v348_v56 = vadd.f32 %v1340_v1, %v277_v46  ;;  %v219_v46 = vld [vmem:[%s1335_s20 + $0x168] sm:$0xff] }
  0x3d   : > { %1261 = vst [vmem:[%s1368_s26 + $0x68] sm:$0xff] %v1157_v49   ;;  %vm411_vm15 = vcmp.ge.f32.partialorder %v347_v52, 0.0  ;;  %v475_v57 = vmul.f32 0.0, %v347_v52  ;;  %v349_v58 = vadd.f32 %v1340_v1, %v278_v47  ;;  %v279_v59 = vmul.f32 %v1330_v0, %v208_v48 }
  0x3e   : > { %1262 = vst [vmem:[%s1368_s26 + $0x70] sm:$0xff] %v1162_v54   ;;  %v538_v61 = vsel %vm410_vm14, %v346_v45, %v474_v55  ;;  %vm412_vm0 = vcmp.ge.f32.partialorder %v348_v56, 0.0  ;;  %v476_v62 = vmul.f32 0.0, %v348_v56  ;;  %v280_v63 = vmul.f32 %v1330_v0, %v209_v53  ;;  %v220_v54 = vld [vmem:[%s1335_s20 + $0x170] sm:$0xff]  ;;  %v221_v55 = vld [vmem:[%s1335_s20 + $0x178] sm:$0xff] }
  0x3f   : > { %v539_v3 = vsel %vm411_vm15, %v347_v52, %v475_v57  ;;  %vm413_vm1 = vcmp.ge.f32.partialorder %v349_v58, 0.0  ;;  %v477_v4 = vmul.f32 0.0, %v349_v58  ;;  %v350_v5 = vadd.f32 %v1340_v1, %v279_v59  ;;  %v222_v59 = vld [vmem:[%s1335_s20 + $0x180] sm:$0xff] }
  0x40   : > { %v1167_v6 = vpack.c.bf16 %v539_v3, %v538_v61  ;;  %v540_v7 = vsel %vm412_vm0, %v348_v56, %v476_v62  ;;  %v351_v8 = vadd.f32 %v1340_v1, %v280_v63  ;;  %v281_v9 = vmul.f32 %v1330_v0, %v210_v60 }
  0x41   : > { %v541_v12 = vsel %vm413_vm1, %v349_v58, %v477_v4  ;;  %vm414_vm2 = vcmp.ge.f32.partialorder %v350_v5, 0.0  ;;  %v478_v13 = vmul.f32 0.0, %v350_v5  ;;  %v282_v14 = vmul.f32 %v1330_v0, %v211_v2 }
  0x42   : > { %1263 = vst [vmem:[%s1368_s26 + $0x78] sm:$0xff] %v1167_v6   ;;  %v1172_v16 = vpack.c.bf16 %v541_v12, %v540_v7  ;;  %vm415_vm3 = vcmp.ge.f32.partialorder %v351_v8, 0.0  ;;  %v479_v17 = vmul.f32 0.0, %v351_v8  ;;  %v352_v18 = vadd.f32 %v1340_v1, %v281_v9  ;;  %v224_v9 = vld [vmem:[%s1335_s20 + $0x190] sm:$0xff] }
  0x43   : > { %v542_v19 = vsel %vm414_vm2, %v350_v5, %v478_v13  ;;  %v353_v20 = vadd.f32 %v1340_v1, %v282_v14  ;;  %v283_v21 = vmul.f32 %v1330_v0, %v212_v10  ;;  %v284_v22 = vmul.f32 %v1330_v0, %v213_v11  ;;  %v223_v5 = vld [vmem:[%s1335_s20 + $0x188] sm:$0xff] }
  0x44   : > { %1264 = vst [vmem:[%s1368_s26 + $0x80] sm:$0xff] %v1172_v16   ;;  %v543_v24 = vsel %vm415_vm3, %v351_v8, %v479_v17  ;;  %vm416_vm4 = vcmp.ge.f32.partialorder %v352_v18, 0.0  ;;  %v480_v25 = vmul.f32 0.0, %v352_v18  ;;  %v285_v26 = vmul.f32 %v1330_v0, %v214_v15  ;;  %v225_v17 = vld [vmem:[%s1335_s20 + $0x198] sm:$0xff] }
  0x45   : > { %v1177_v28 = vpack.c.bf16 %v543_v24, %v542_v19  ;;  %vm417_vm5 = vcmp.ge.f32.partialorder %v353_v20, 0.0  ;;  %v481_v29 = vmul.f32 0.0, %v353_v20  ;;  %v354_v30 = vadd.f32 %v1340_v1, %v283_v21  ;;  %v226_v24 = vld [vmem:[%s1335_s20 + $0x1a0] sm:$0xff] }
  0x46   : > { %v544_v31 = vsel %vm416_vm4, %v352_v18, %v480_v25  ;;  %v355_v32 = vadd.f32 %v1340_v1, %v284_v22  ;;  %v286_v33 = vmul.f32 %v1330_v0, %v215_v23  ;;  %v356_v34 = vadd.f32 %v1340_v1, %v285_v26 }
  0x47   : > { %1265 = vst [vmem:[%s1368_s26 + $0x88] sm:$0xff] %v1177_v28   ;;  %v545_v36 = vsel %vm417_vm5, %v353_v20, %v481_v29  ;;  %vm418_vm6 = vcmp.ge.f32.partialorder %v354_v30, 0.0  ;;  %v482_v37 = vmul.f32 0.0, %v354_v30  ;;  %v287_v38 = vmul.f32 %v1330_v0, %v216_v27  ;;  %v227_v28 = vld [vmem:[%s1335_s20 + $0x1a8] sm:$0xff] }
  0x48   : > { %v1182_v39 = vpack.c.bf16 %v545_v36, %v544_v31  ;;  %vm419_vm7 = vcmp.ge.f32.partialorder %v355_v32, 0.0  ;;  %v483_v40 = vmul.f32 0.0, %v355_v32  ;;  %v357_v41 = vadd.f32 %v1340_v1, %v286_v33  ;;  %v228_v36 = vld [vmem:[%s1335_s20 + $0x1b0] sm:$0xff] }
  0x49   : > { %v546_v43 = vsel %vm418_vm6, %v354_v30, %v482_v37  ;;  %vm420_vm8 = vcmp.ge.f32.partialorder %v356_v34, 0.0  ;;  %v484_v44 = vmul.f32 0.0, %v356_v34  ;;  %v288_v45 = vmul.f32 %v1330_v0, %v217_v35  ;;  %v229_v37 = vld [vmem:[%s1335_s20 + $0x1b8] sm:$0xff] }
  0x4a   : > { %1266 = vst [vmem:[%s1368_s26 + $0x90] sm:$0xff] %v1182_v39   ;;  %v547_v47 = vsel %vm419_vm7, %v355_v32, %v483_v40  ;;  %vm421_vm9 = vcmp.ge.f32.partialorder %v357_v41, 0.0  ;;  %v485_v48 = vmul.f32 0.0, %v357_v41  ;;  %v358_v49 = vadd.f32 %v1340_v1, %v287_v38 }
  0x4b   : > { %v1187_v50 = vpack.c.bf16 %v547_v47, %v546_v43  ;;  %v548_v51 = vsel %vm420_vm8, %v356_v34, %v484_v44  ;;  %v359_v52 = vadd.f32 %v1340_v1, %v288_v45  ;;  %v289_v53 = vmul.f32 %v1330_v0, %v218_v42 }
  0x4c   : > { %v549_v56 = vsel %vm421_vm9, %v357_v41, %v485_v48  ;;  %vm422_vm10 = vcmp.ge.f32.partialorder %v358_v49, 0.0  ;;  %v486_v57 = vmul.f32 0.0, %v358_v49  ;;  %v290_v58 = vmul.f32 %v1330_v0, %v219_v46  ;;  %v230_v41 = vld [vmem:[%s1335_s20 + $0x1c0] sm:$0xff] }
  0x4d   : > { %1267 = vst [vmem:[%s1368_s26 + $0x98] sm:$0xff] %v1187_v50   ;;  %v1192_v60 = vpack.c.bf16 %v549_v56, %v548_v51  ;;  %vm423_vm11 = vcmp.ge.f32.partialorder %v359_v52, 0.0  ;;  %v487_v61 = vmul.f32 0.0, %v359_v52  ;;  %v360_v62 = vadd.f32 %v1340_v1, %v289_v53  ;;  %v232_v53 = vld [vmem:[%s1335_s20 + $0x1d0] sm:$0xff] }
  0x4e   : > { %v550_v63 = vsel %vm422_vm10, %v358_v49, %v486_v57  ;;  %v361_v2 = vadd.f32 %v1340_v1, %v290_v58  ;;  %v291_v3 = vmul.f32 %v1330_v0, %v220_v54  ;;  %v292_v4 = vmul.f32 %v1330_v0, %v221_v55  ;;  %v231_v49 = vld [vmem:[%s1335_s20 + $0x1c8] sm:$0xff] }
  0x4f   : > { %1268 = vst [vmem:[%s1368_s26 + $0xa0] sm:$0xff] %v1192_v60   ;;  %v551_v6 = vsel %vm423_vm11, %v359_v52, %v487_v61  ;;  %vm424_vm12 = vcmp.ge.f32.partialorder %v360_v62, 0.0  ;;  %v488_v7 = vmul.f32 0.0, %v360_v62  ;;  %v293_v8 = vmul.f32 %v1330_v0, %v222_v59  ;;  %v233_v61 = vld [vmem:[%s1335_s20 + $0x1d8] sm:$0xff] }
  0x50   : > { %v1197_v10 = vpack.c.bf16 %v551_v6, %v550_v63  ;;  %vm425_vm13 = vcmp.ge.f32.partialorder %v361_v2, 0.0  ;;  %v489_v11 = vmul.f32 0.0, %v361_v2  ;;  %v362_v12 = vadd.f32 %v1340_v1, %v291_v3  ;;  %v234_v6 = vld [vmem:[%s1335_s20 + $0x1e0] sm:$0xff] }
  0x51   : > { %v552_v13 = vsel %vm424_vm12, %v360_v62, %v488_v7  ;;  %v363_v14 = vadd.f32 %v1340_v1, %v292_v4  ;;  %v294_v15 = vmul.f32 %v1330_v0, %v223_v5  ;;  %v364_v16 = vadd.f32 %v1340_v1, %v293_v8 }
  0x52   : > { %1269 = vst [vmem:[%s1368_s26 + $0xa8] sm:$0xff] %v1197_v10   ;;  %v553_v18 = vsel %vm425_vm13, %v361_v2, %v489_v11  ;;  %vm426_vm14 = vcmp.ge.f32.partialorder %v362_v12, 0.0  ;;  %v490_v19 = vmul.f32 0.0, %v362_v12  ;;  %v295_v20 = vmul.f32 %v1330_v0, %v224_v9  ;;  %v235_v10 = vld [vmem:[%s1335_s20 + $0x1e8] sm:$0xff] }
  0x53   : > { %v1202_v21 = vpack.c.bf16 %v553_v18, %v552_v13  ;;  %vm427_vm15 = vcmp.ge.f32.partialorder %v363_v14, 0.0  ;;  %v491_v22 = vmul.f32 0.0, %v363_v14  ;;  %v365_v23 = vadd.f32 %v1340_v1, %v294_v15  ;;  %v236_v18 = vld [vmem:[%s1335_s20 + $0x1f0] sm:$0xff] }
  0x54   : > { %v554_v25 = vsel %vm426_vm14, %v362_v12, %v490_v19  ;;  %vm428_vm0 = vcmp.ge.f32.partialorder %v364_v16, 0.0  ;;  %v492_v26 = vmul.f32 0.0, %v364_v16  ;;  %v296_v27 = vmul.f32 %v1330_v0, %v225_v17  ;;  %v237_v19 = vld [vmem:[%s1335_s20 + $0x1f8] sm:$0xff] }
  0x55   : > { %1270 = vst [vmem:[%s1368_s26 + $0xb0] sm:$0xff] %v1202_v21   ;;  %v555_v29 = vsel %vm427_vm15, %v363_v14, %v491_v22  ;;  %vm429_vm1 = vcmp.ge.f32.partialorder %v365_v23, 0.0  ;;  %v493_v30 = vmul.f32 0.0, %v365_v23  ;;  %v366_v31 = vadd.f32 %v1340_v1, %v295_v20 }
  0x56   : > { %v1207_v32 = vpack.c.bf16 %v555_v29, %v554_v25  ;;  %v556_v33 = vsel %vm428_vm0, %v364_v16, %v492_v26  ;;  %v367_v34 = vadd.f32 %v1340_v1, %v296_v27  ;;  %v297_v35 = vmul.f32 %v1330_v0, %v226_v24 }
  0x57   : > { %v557_v38 = vsel %vm429_vm1, %v365_v23, %v493_v30  ;;  %vm430_vm2 = vcmp.ge.f32.partialorder %v366_v31, 0.0  ;;  %v494_v39 = vmul.f32 0.0, %v366_v31  ;;  %v298_v40 = vmul.f32 %v1330_v0, %v227_v28 }
  0x58   : > { %1271 = vst [vmem:[%s1368_s26 + $0xb8] sm:$0xff] %v1207_v32   ;;  %v1212_v42 = vpack.c.bf16 %v557_v38, %v556_v33  ;;  %vm431_vm3 = vcmp.ge.f32.partialorder %v367_v34, 0.0  ;;  %v495_v43 = vmul.f32 0.0, %v367_v34  ;;  %v368_v44 = vadd.f32 %v1340_v1, %v297_v35 }
  0x59   : > { %v558_v45 = vsel %vm430_vm2, %v366_v31, %v494_v39  ;;  %v369_v46 = vadd.f32 %v1340_v1, %v298_v40  ;;  %v299_v47 = vmul.f32 %v1330_v0, %v228_v36  ;;  %v300_v48 = vmul.f32 %v1330_v0, %v229_v37 }
  0x5a   : > { %1272 = vst [vmem:[%s1368_s26 + $0xc0] sm:$0xff] %v1212_v42   ;;  %v559_v50 = vsel %vm431_vm3, %v367_v34, %v495_v43  ;;  %vm432_vm4 = vcmp.ge.f32.partialorder %v368_v44, 0.0  ;;  %v496_v51 = vmul.f32 0.0, %v368_v44  ;;  %v301_v52 = vmul.f32 %v1330_v0, %v230_v41 }
  0x5b   : > { %v1217_v54 = vpack.c.bf16 %v559_v50, %v558_v45  ;;  %vm433_vm5 = vcmp.ge.f32.partialorder %v369_v46, 0.0  ;;  %v497_v55 = vmul.f32 0.0, %v369_v46  ;;  %v370_v56 = vadd.f32 %v1340_v1, %v299_v47 }
  0x5c   : > { %v560_v57 = vsel %vm432_vm4, %v368_v44, %v496_v51  ;;  %v371_v58 = vadd.f32 %v1340_v1, %v300_v48  ;;  %v302_v59 = vmul.f32 %v1330_v0, %v231_v49  ;;  %v372_v60 = vadd.f32 %v1340_v1, %v301_v52 }
  0x5d   : > { %1273 = vst [vmem:[%s1368_s26 + $0xc8] sm:$0xff] %v1217_v54   ;;  %v561_v62 = vsel %vm433_vm5, %v369_v46, %v497_v55  ;;  %vm434_vm6 = vcmp.ge.f32.partialorder %v370_v56, 0.0  ;;  %v498_v63 = vmul.f32 0.0, %v370_v56  ;;  %v303_v2 = vmul.f32 %v1330_v0, %v232_v53 }
  0x5e   : > { %v1222_v3 = vpack.c.bf16 %v561_v62, %v560_v57  ;;  %vm435_vm7 = vcmp.ge.f32.partialorder %v371_v58, 0.0  ;;  %v499_v4 = vmul.f32 0.0, %v371_v58  ;;  %v373_v5 = vadd.f32 %v1340_v1, %v302_v59 }
  0x5f   : > { %v562_v7 = vsel %vm434_vm6, %v370_v56, %v498_v63  ;;  %vm436_vm8 = vcmp.ge.f32.partialorder %v372_v60, 0.0  ;;  %v500_v8 = vmul.f32 0.0, %v372_v60  ;;  %v304_v9 = vmul.f32 %v1330_v0, %v233_v61 }
  0x60   : > { %1274 = vst [vmem:[%s1368_s26 + $0xd0] sm:$0xff] %v1222_v3   ;;  %v563_v11 = vsel %vm435_vm7, %v371_v58, %v499_v4  ;;  %vm437_vm9 = vcmp.ge.f32.partialorder %v373_v5, 0.0  ;;  %v501_v12 = vmul.f32 0.0, %v373_v5  ;;  %v374_v13 = vadd.f32 %v1340_v1, %v303_v2 }
  0x61   : > { %v1227_v14 = vpack.c.bf16 %v563_v11, %v562_v7  ;;  %v564_v15 = vsel %vm436_vm8, %v372_v60, %v500_v8  ;;  %v375_v16 = vadd.f32 %v1340_v1, %v304_v9  ;;  %v305_v17 = vmul.f32 %v1330_v0, %v234_v6 }
  0x62   : > { %v565_v20 = vsel %vm437_vm9, %v373_v5, %v501_v12  ;;  %vm438_vm10 = vcmp.ge.f32.partialorder %v374_v13, 0.0  ;;  %v502_v21 = vmul.f32 0.0, %v374_v13  ;;  %v306_v22 = vmul.f32 %v1330_v0, %v235_v10 }
  0x63   : > { %1275 = vst [vmem:[%s1368_s26 + $0xd8] sm:$0xff] %v1227_v14   ;;  %v1232_v23 = vpack.c.bf16 %v565_v20, %v564_v15  ;;  %vm439_vm11 = vcmp.ge.f32.partialorder %v375_v16, 0.0  ;;  %v503_v24 = vmul.f32 0.0, %v375_v16  ;;  %v376_v25 = vadd.f32 %v1340_v1, %v305_v17 }
  0x64   : > { %v566_v26 = vsel %vm438_vm10, %v374_v13, %v502_v21  ;;  %v377_v27 = vadd.f32 %v1340_v1, %v306_v22  ;;  %v307_v28 = vmul.f32 %v1330_v0, %v236_v18  ;;  %v308_v29 = vmul.f32 %v1330_v0, %v237_v19 }
  0x65   : > { %1276 = vst [vmem:[%s1368_s26 + $0xe0] sm:$0xff] %v1232_v23   ;;  %v567_v30 = vsel %vm439_vm11, %v375_v16, %v503_v24  ;;  %vm440_vm12 = vcmp.ge.f32.partialorder %v376_v25, 0.0  ;;  %v504_v31 = vmul.f32 0.0, %v376_v25 }
  0x66   : > { %v1237_v32 = vpack.c.bf16 %v567_v30, %v566_v26  ;;  %vm441_vm13 = vcmp.ge.f32.partialorder %v377_v27, 0.0  ;;  %v505_v33 = vmul.f32 0.0, %v377_v27  ;;  %v378_v34 = vadd.f32 %v1340_v1, %v307_v28 }
  0x67   : > { %v568_v35 = vsel %vm440_vm12, %v376_v25, %v504_v31  ;;  %v379_v36 = vadd.f32 %v1340_v1, %v308_v29 }
  0x68   : > { %1277 = vst [vmem:[%s1368_s26 + $0xe8] sm:$0xff] %v1237_v32   ;;  %v569_v37 = vsel %vm441_vm13, %v377_v27, %v505_v33  ;;  %vm442_vm14 = vcmp.ge.f32.partialorder %v378_v34, 0.0  ;;  %v506_v38 = vmul.f32 0.0, %v378_v34 }
  0x69   : > { %v1242_v39 = vpack.c.bf16 %v569_v37, %v568_v35  ;;  %vm443_vm15 = vcmp.ge.f32.partialorder %v379_v36, 0.0  ;;  %v507_v0 = vmul.f32 0.0, %v379_v36 }
  0x6a   : > { %v570_v40 = vsel %vm442_vm14, %v378_v34, %v506_v38 }
  0x6b   : > { %1278 = vst [vmem:[%s1368_s26 + $0xf0] sm:$0xff] %v1242_v39   ;;  %v571_v41 = vsel %vm443_vm15, %v379_v36, %v507_v0 }
  0x6c   : > { %v1247_v42 = vpack.c.bf16 %v571_v41, %v570_v40 }
  0x6e   : > { %1279 = vst [vmem:[%s1368_s26 + $0xf8] sm:$0xff] %v1247_v42  }
  0x6f PF: > { %s13_s12 = sadd.s32 1, %s1294_s12  }
  0x70   : > { %p10_p4 = scmp.ge.s32.totalorder %s13_s12, 6  }
  0x72   :  { %12 = sbr.rel (!%p10_p4) target bundleno = 1 (0x1), region = 62 }

// kernel: _lambda_.62
= control target key start
LH: loop header
LB: loop body
LE: loop exit
PB: predicated region body
PF: predicated region fallthrough
CT: control target
= control target key end

     0   :  { %s5727_s12 = smov 0   ;;  %s6776_s0 = inlined_call_operand.vmem [shape: bf16[512,2048], index: 0, kind: input, shape index: {}]   ;;  %s6777_s1 = inlined_call_operand.vmem [shape: bf16[2048,128], index: 1, kind: input, shape index: {}]   ;;  %s6778_s2 = inlined_call_operand.vmem [shape: f32[512,128], index: 2, kind: output, shape index: {0}]   ;;  %s6779_s3 = inlined_call_operand.vmem [shape: f32[2,8,128], index: 3, kind: output, shape index: {1}]  }
   0x1 LB: > { %s5733_s13 = sadd.s32 4294967295, %s5705_s12   ;;  %p4273_p0 = scmp.ge.s32.totalorder %s5705_s12, 1  ;;  %s5705_s12 = sphi %s5727_s12, %s14_s12  }
   0x2   : > { %p142_p1 = scmp.lt.s32.totalorder %s5705_s12, 3 }
   0x4   : > { %p143_p2 = pnand %p4273_p0, %p142_p1 }
   0x5   : > { %v5571_v0 = vld [vmem:[%s6777_s1 + $0x40] sm:$0xff] (!%p143_p2)   ;;  %v5575_v4 = vld [vmem:[%s6777_s1 + $0x48] sm:$0xff] (!%p143_p2)   ;;  %v5579_v8 = vld [vmem:[%s6777_s1 + $0x50] sm:$0xff] (!%p143_p2)   ;;  %s4274_s21 = sshll.u32 (!%p143_p2), %s5733_s13, 5  ;;  %p184_p4 = scmp.lt.s32.totalorder (!%p143_p2), %s5733_s13, 1 }
   0x6   : > { %146 = sbr.rel (%p143_p2) target bundleno = 783 (0x30f), region = 28  ;;  %v5572_v1 = vld [vmem:[%s6777_s1 + $0xc0] sm:$0xff] (!%p143_p2)   ;;  %4667 = vmatprep.subr.bf16.mxu0 (!%p143_p2), %v5571_v0  ;;  %v5576_v5 = vld [vmem:[%s6777_s1 + $0xc8] sm:$0xff] (!%p143_p2)   ;;  %v5580_v9 = vld [vmem:[%s6777_s1 + $0xd0] sm:$0xff] (!%p143_p2)   ;;  %p172_p3 = scmp.lt.s32.totalorder (!%p143_p2), %s4274_s21, 63 }
   0x7   : > { %v5573_v2 = vld [vmem:[%s6777_s1] sm:$0xff] (!%p143_p2)   ;;  %4779 = vmatprep.subr.bf16.mxu1 (!%p143_p2), %v5572_v1  ;;  %v5577_v6 = vld [vmem:[%s6777_s1 + $0x8] sm:$0xff] (!%p143_p2)   ;;  %v5581_v10 = vld [vmem:[%s6777_s1 + $0x10] sm:$0xff] (!%p143_p2)  }
   0x8   : > { %v5574_v3 = vld [vmem:[%s6777_s1 + $0x80] sm:$0xff] (!%p143_p2)   ;;  %4668 = vmatpush3.bf16.msra.mxu0 (!%p143_p2), %v5573_v2  ;;  %v5578_v7 = vld [vmem:[%s6777_s1 + $0x88] sm:$0xff] (!%p143_p2)   ;;  %v5582_v11 = vld [vmem:[%s6777_s1 + $0x90] sm:$0xff] (!%p143_p2)  }
   0x9   : > { %4780 = vmatpush3.bf16.msra.mxu1 (!%p143_p2), %v5574_v3  ;;  %4669 = vmatprep.subr.bf16.mxu0 (!%p143_p2), %v5575_v4  ;;  %v5583_v12 = vld [vmem:[%s6777_s1 + $0x58] sm:$0xff] (!%p143_p2)   ;;  %v5587_v16 = vld [vmem:[%s6777_s1 + $0x60] sm:$0xff] (!%p143_p2)   ;;  %v5591_v20 = vld [vmem:[%s6777_s1 + $0x68] sm:$0xff] (!%p143_p2)  }
   0xa   : > { %4781 = vmatprep.subr.bf16.mxu1 (!%p143_p2), %v5576_v5  ;;  %v5584_v13 = vld [vmem:[%s6777_s1 + $0xd8] sm:$0xff] (!%p143_p2)   ;;  %v5588_v17 = vld [vmem:[%s6777_s1 + $0xe0] sm:$0xff] (!%p143_p2)   ;;  %v5592_v21 = vld [vmem:[%s6777_s1 + $0xe8] sm:$0xff] (!%p143_p2)  }
   0xb   : > { %v5585_v14 = vld [vmem:[%s6777_s1 + $0x18] sm:$0xff] (!%p143_p2)   ;;  %v5589_v18 = vld [vmem:[%s6777_s1 + $0x20] sm:$0xff] (!%p143_p2)   ;;  %v5593_v22 = vld [vmem:[%s6777_s1 + $0x28] sm:$0xff] (!%p143_p2)  }
   0xc   : > { %4670 = vmatpush3.bf16.msra.mxu0 (!%p143_p2), %v5577_v6  ;;  %v5586_v15 = vld [vmem:[%s6777_s1 + $0x98] sm:$0xff] (!%p143_p2)   ;;  %v5590_v19 = vld [vmem:[%s6777_s1 + $0xa0] sm:$0xff] (!%p143_p2)   ;;  %v5594_v23 = vld [vmem:[%s6777_s1 + $0xa8] sm:$0xff] (!%p143_p2)  }
   0xd   : > { %4782 = vmatpush3.bf16.msra.mxu1 %v5578_v7  ;;  %4671 = vmatprep.subr.bf16.mxu0 %v5579_v8  ;;  %s6781_s21 = smov (!%p172_p3, %s4274_s21), 63  ;;  %v5595_v24 = vld [vmem:[%s6777_s1 + $0x70] sm:$0xff]   ;;  %v5599_v28 = vld [vmem:[%s6777_s1 + $0x78] sm:$0xff]   ;;  %v5603_v40 = vld [vmem:[%s6777_s1 + $0x140] sm:$0xff]   ;;  %s6783_s13 = smov (!%p184_p4, %s5733_s13), 1 }
   0xe   : > { %4783 = vmatprep.subr.bf16.mxu1 %v5580_v9  ;;  %v5596_v25 = vld [vmem:[%s6777_s1 + $0xf0] sm:$0xff]   ;;  %s4666_s19 = sshll.u32 %s6781_s21, 6  ;;  %v5600_v29 = vld [vmem:[%s6777_s1 + $0xf8] sm:$0xff]   ;;  %v5604_v41 = vld [vmem:[%s6777_s1 + $0x100] sm:$0xff]  }
   0xf   : > { %v5597_v26 = vld [vmem:[%s6777_s1 + $0x30] sm:$0xff]   ;;  %s5834_s29 = scalar_lea.vmem %s6776_s0, %s4666_s19  ;;  %v5601_v30 = vld [vmem:[%s6777_s1 + $0x38] sm:$0xff]   ;;  %v5605_v42 = vld [vmem:[%s6777_s1 + $0x1c0] sm:$0xff]  }
  0x10   : > { %4672 = vmatpush3.bf16.msra.mxu0 %v5581_v10  ;;  %v5598_v27 = vld [vmem:[%s6777_s1 + $0xb0] sm:$0xff]   ;;  %v5602_v31 = vld [vmem:[%s6777_s1 + $0xb8] sm:$0xff]   ;;  %v189_v32 = vld [vmem:[%s5834_s29] sm:$0xff] }
  0x11   : > { %4784 = vmatpush3.bf16.msra.mxu1 %v5582_v11  ;;  %4673 = vmatprep.subr.bf16.mxu0 %v5583_v12  ;;  %v197_v33 = vld [vmem:[%s5834_s29 + $0x40] sm:$0xff]  ;;  %v190_v34 = vld [vmem:[%s5834_s29 + $0x8] sm:$0xff]  ;;  %v5611_v2 = vld [vmem:[%s6777_s1 + $0x150] sm:$0xff]  }
  0x12   : > { %4785 = vmatprep.subr.bf16.mxu1 %v5584_v13  ;;  %v4280_v35 = vcombine.low %v189_v32, %v197_v33  ;;  %v4281_v36 = vcombine.high %v189_v32, %v197_v33  ;;  %v198_v37 = vld [vmem:[%s5834_s29 + $0x48] sm:$0xff]  ;;  %v5606_v43 = vld [vmem:[%s6777_s1 + $0x180] sm:$0xff]   ;;  %v5612_v4 = vld [vmem:[%s6777_s1 + $0x110] sm:$0xff]  }
  0x13   : > { %v4282_v38 = vcombine.low %v190_v34, %v198_v37  ;;  %v4283_v39 = vcombine.high %v190_v34, %v198_v37  ;;  %v205_v44 = vld [vmem:[%s5834_s29 + $0x80] sm:$0xff]  ;;  %v206_v47 = vld [vmem:[%s5834_s29 + $0x88] sm:$0xff]  ;;  %v5613_v7 = vld [vmem:[%s6777_s1 + $0x1d0] sm:$0xff]  }
  0x14   : > { %4674 = vmatpush3.bf16.msra.mxu0 %v5585_v14  ;;  %2781 = vmatprep.mubr.bf16.mxu0 %v4281_v36  ;;  %v213_v45 = vld [vmem:[%s5834_s29 + $0xc0] sm:$0xff]  ;;  %v214_v48 = vld [vmem:[%s5834_s29 + $0xc8] sm:$0xff]  ;;  %v5614_v9 = vld [vmem:[%s6777_s1 + $0x190] sm:$0xff]  }
  0x15   : > { %4786 = vmatpush3.bf16.msra.mxu1 %v5586_v15  ;;  %4675 = vmatprep.subr.bf16.mxu0 %v5587_v16  ;;  %v4297_v46 = vcombine.high %v205_v44, %v213_v45  ;;  %v221_v49 = vld [vmem:[%s5834_s29 + $0x100] sm:$0xff]  ;;  %v4299_v50 = vcombine.high %v206_v47, %v214_v48  ;;  %v222_v52 = vld [vmem:[%s5834_s29 + $0x108] sm:$0xff]  ;;  %v4296_v54 = vcombine.low %v205_v44, %v213_v45  ;;  %v5615_v14 = vld [vmem:[%s6777_s1 + $0x158] sm:$0xff]  }
  0x16   : > { %4787 = vmatprep.subr.bf16.mxu1 %v5588_v17  ;;  %2942 = vmatprep.mubr.bf16.mxu1 %v4283_v39  ;;  %v229_v51 = vld [vmem:[%s5834_s29 + $0x140] sm:$0xff]  ;;  %v230_v53 = vld [vmem:[%s5834_s29 + $0x148] sm:$0xff]  ;;  %v4298_v56 = vcombine.low %v206_v47, %v214_v48  ;;  %v5616_v15 = vld [vmem:[%s6777_s1 + $0x118] sm:$0xff]  }
  0x17   : > { %v5607_v55 = vld [vmem:[%s6777_s1 + $0x148] sm:$0xff]   ;;  %v4313_v57 = vcombine.high %v221_v49, %v229_v51  ;;  %v4315_v59 = vcombine.high %v222_v52, %v230_v53  ;;  %v237_v62 = vld [vmem:[%s5834_s29 + $0x180] sm:$0xff]  ;;  %v4312_v3 = vcombine.low %v221_v49, %v229_v51  ;;  %v4314_v5 = vcombine.low %v222_v52, %v230_v53  ;;  %v5617_v17 = vld [vmem:[%s6777_s1 + $0x1d8] sm:$0xff]  }
  0x18   : > { %4676 = vmatpush3.bf16.msra.mxu0 %v5589_v18  ;;  %v5608_v58 = vld [vmem:[%s6777_s1 + $0x108] sm:$0xff]   ;;  %v245_v63 = vld [vmem:[%s5834_s29 + $0x1c0] sm:$0xff]  ;;  %v5628_v47 = vld [vmem:[%s6777_s1 + $0x130] sm:$0xff]  }
  0x19   : > { %4788 = vmatpush3.bf16.msra.mxu1 %v5590_v19  ;;  %4677 = vmatprep.subr.bf16.mxu0 %v5591_v20  ;;  %v5609_v60 = vld [vmem:[%s6777_s1 + $0x1c8] sm:$0xff]   ;;  %v4329_v6 = vcombine.high %v237_v62, %v245_v63  ;;  %v253_v10 = vld [vmem:[%s5834_s29 + $0x200] sm:$0xff]  ;;  %v4328_v16 = vcombine.low %v237_v62, %v245_v63  ;;  %v5618_v20 = vld [vmem:[%s6777_s1 + $0x198] sm:$0xff]  }
  0x1a   : > { %4789 = vmatprep.subr.bf16.mxu1 %v5592_v21  ;;  %v5610_v61 = vld [vmem:[%s6777_s1 + $0x188] sm:$0xff]   ;;  %v261_v11 = vld [vmem:[%s5834_s29 + $0x240] sm:$0xff]  ;;  %v5629_v48 = vld [vmem:[%s6777_s1 + $0x1f0] sm:$0xff]  }
  0x1b   : > { %v238_v0 = vld [vmem:[%s5834_s29 + $0x188] sm:$0xff]  ;;  %v4345_v19 = vcombine.high %v253_v10, %v261_v11  ;;  %v5630_v49 = vld [vmem:[%s6777_s1 + $0x1b0] sm:$0xff]   ;;  %v309_v51 = vld [vmem:[%s5834_s29 + $0x3c0] sm:$0xff] }
  0x1c   : > { %4678 = vmatpush3.bf16.msra.mxu0 %v5593_v22  ;;  %v246_v1 = vld [vmem:[%s5834_s29 + $0x1c8] sm:$0xff]  ;;  %v269_v22 = vld [vmem:[%s5834_s29 + $0x280] sm:$0xff] }
  0x1d   : > { %4790 = vmatpush3.bf16.msra.mxu1 %v5594_v23  ;;  %4679 = vmatprep.subr.bf16.mxu0 %v5595_v24  ;;  %v4331_v8 = vcombine.high %v238_v0, %v246_v1  ;;  %v254_v12 = vld [vmem:[%s5834_s29 + $0x208] sm:$0xff]  ;;  %v4330_v18 = vcombine.low %v238_v0, %v246_v1  ;;  %v277_v23 = vld [vmem:[%s5834_s29 + $0x2c0] sm:$0xff] }
  0x1e   : > { %4791 = vmatprep.subr.bf16.mxu1 %v5596_v25  ;;  %v262_v13 = vld [vmem:[%s5834_s29 + $0x248] sm:$0xff]  ;;  %v5619_v24 = vld [vmem:[%s6777_s1 + $0x160] sm:$0xff]   ;;  %v4361_v32 = vcombine.high %v269_v22, %v277_v23 }
  0x1f   : > { %v4347_v21 = vcombine.high %v254_v12, %v262_v13  ;;  %v270_v25 = vld [vmem:[%s5834_s29 + $0x288] sm:$0xff]  ;;  %v317_v62 = vld [vmem:[%s5834_s29 + $0x400] sm:$0xff] }
  0x20   : > { %4680 = vmatpush3.bf16.msra.mxu0 %v5597_v26  ;;  %v278_v26 = vld [vmem:[%s5834_s29 + $0x2c8] sm:$0xff]  ;;  %v325_v63 = vld [vmem:[%s5834_s29 + $0x440] sm:$0xff] }
  0x21   : > { %4792 = vmatpush3.bf16.msra.mxu1 %v5598_v27  ;;  %4681 = vmatprep.subr.bf16.mxu0 %v5599_v28  ;;  %v5620_v27 = vld [vmem:[%s6777_s1 + $0x120] sm:$0xff]   ;;  %v4363_v33 = vcombine.high %v270_v25, %v278_v26  ;;  %v5623_v34 = vld [vmem:[%s6777_s1 + $0x168] sm:$0xff]  }
  0x22   : > { %4793 = vmatprep.subr.bf16.mxu1 %v5600_v29  ;;  %v5621_v28 = vld [vmem:[%s6777_s1 + $0x1e0] sm:$0xff]   ;;  %v5624_v36 = vld [vmem:[%s6777_s1 + $0x128] sm:$0xff]  }
  0x23   : > { %v5622_v29 = vld [vmem:[%s6777_s1 + $0x1a0] sm:$0xff]   ;;  %v5625_v37 = vld [vmem:[%s6777_s1 + $0x1e8] sm:$0xff]  }
  0x24   : > { %4682 = vmatpush3.bf16.msra.mxu0 %v5601_v30  ;;  %v4344_v30 = vcombine.low %v253_v10, %v261_v11  ;;  %v5626_v39 = vld [vmem:[%s6777_s1 + $0x1a8] sm:$0xff]  }
  0x25   : > { %4794 = vmatpush3.bf16.msra.mxu1 %v5602_v31  ;;  %4891 = vmatprep.subr.bf16.mxu0 %v5603_v40  ;;  %v4346_v31 = vcombine.low %v254_v12, %v262_v13  ;;  %v286_v40 = vld [vmem:[%s5834_s29 + $0x308] sm:$0xff]  ;;  %v4408_v12 = vcombine.low %v317_v62, %v325_v63 }
  0x26   : > { %5003 = vmatprep.subr.bf16.mxu1 %v5605_v42  ;;  %v4360_v42 = vcombine.low %v269_v22, %v277_v23  ;;  %v302_v52 = vld [vmem:[%s5834_s29 + $0x388] sm:$0xff] }
  0x27   : > { %2782 = vmatmul.mubr.bf16.vlgmr.msra.gmra.mrb[0].mxu0 %v4280_v35  ;;  %v285_v35 = vld [vmem:[%s5834_s29 + $0x300] sm:$0xff]  ;;  %v310_v53 = vld [vmem:[%s5834_s29 + $0x3c8] sm:$0xff] }
  0x28   : > { %2943 = vmatmul.mubr.bf16.vlgmr.msra.gmra.mrb[0].mxu1 %v4282_v38  ;;  %4892 = vmatpush3.bf16.msra.mxu0 %v5604_v41  ;;  %v293_v38 = vld [vmem:[%s5834_s29 + $0x340] sm:$0xff]  ;;  %v294_v41 = vld [vmem:[%s5834_s29 + $0x348] sm:$0xff] }
  0x29   : > { %5004 = vmatpush3.bf16.msra.mxu1 %v5606_v43  ;;  %2789 = vmatprep.mubr.bf16.mxu0 %v4297_v46  ;;  %v4362_v43 = vcombine.low %v270_v25, %v278_v26  ;;  %v4377_v44 = vcombine.high %v285_v35, %v293_v38  ;;  %v4379_v45 = vcombine.high %v286_v40, %v294_v41  ;;  %v5627_v46 = vld [vmem:[%s6777_s1 + $0x170] sm:$0xff]   ;;  %v318_v0 = vld [vmem:[%s5834_s29 + $0x408] sm:$0xff]  ;;  %v373_v25 = vld [vmem:[%s5834_s29 + $0x5c0] sm:$0xff] }
  0x2a   : > { %2950 = vmatprep.mubr.bf16.mxu1 %v4299_v50  ;;  %4893 = vmatprep.subr.bf16.mxu0 %v5607_v55  ;;  %v301_v50 = vld [vmem:[%s5834_s29 + $0x380] sm:$0xff]  ;;  %v5631_v55 = vld [vmem:[%s6777_s1 + $0x178] sm:$0xff]   ;;  %v326_v1 = vld [vmem:[%s5834_s29 + $0x448] sm:$0xff] }
  0x2b   : > { %5005 = vmatprep.subr.bf16.mxu1 %v5609_v60  ;;  %v5633_v60 = vld [vmem:[%s6777_s1 + $0x1f8] sm:$0xff]   ;;  %v334_v10 = vld [vmem:[%s5834_s29 + $0x488] sm:$0xff]  ;;  %v4410_v13 = vcombine.low %v318_v0, %v326_v1 }
  0x2c   : > { %4894 = vmatpush3.bf16.msra.mxu0 %v5608_v58  ;;  %v5632_v58 = vld [vmem:[%s6777_s1 + $0x138] sm:$0xff]   ;;  %v342_v11 = vld [vmem:[%s5834_s29 + $0x4c8] sm:$0xff] }
  0x2d   : > { %5006 = vmatpush3.bf16.msra.mxu1 %v5610_v61  ;;  %4895 = vmatprep.subr.bf16.mxu0 %v5611_v2  ;;  %v5634_v61 = vld [vmem:[%s6777_s1 + $0x1b8] sm:$0xff]   ;;  %v5635_v2 = vld [vmem:[%s6777_s1 + $0x240] sm:$0xff]   ;;  %v366_v26 = vld [vmem:[%s5834_s29 + $0x588] sm:$0xff] }
  0x2e   : > { %5007 = vmatprep.subr.bf16.mxu1 %v5613_v7  ;;  %v4411_v7 = vcombine.high %v318_v0, %v326_v1  ;;  %v191_v0 = vld [vmem:[%s5834_s29 + $0x10] sm:$0xff] }
  0x2f   : > { %2790 = vmatmul.mubr.bf16.gmra.mrb[4].mxu0 %v4296_v54  ;;  %v4376_v54 = vcombine.low %v285_v35, %v293_v38  ;;  %v390_v35 = vld [vmem:[%s5834_s29 + $0x648] sm:$0xff]  ;;  %v199_v1 = vld [vmem:[%s5834_s29 + $0x50] sm:$0xff] }
  0x30   : > { %2951 = vmatmul.mubr.bf16.gmra.mrb[4].mxu1 %v4298_v56  ;;  %2797 = vmatprep.mubr.bf16.mxu0 %v4313_v57  ;;  %v4378_v56 = vcombine.low %v286_v40, %v294_v41  ;;  %v4393_v57 = vcombine.high %v301_v50, %v309_v51  ;;  %v397_v40 = vld [vmem:[%s5834_s29 + $0x680] sm:$0xff] }
  0x31   : > { %2958 = vmatprep.mubr.bf16.mxu1 %v4315_v59  ;;  %4896 = vmatpush3.bf16.msra.mxu0 %v5612_v4  ;;  %v4395_v59 = vcombine.high %v302_v52, %v310_v53  ;;  %v4394_v4 = vcombine.low %v302_v52, %v310_v53  ;;  %v405_v41 = vld [vmem:[%s5834_s29 + $0x6c0] sm:$0xff] }
  0x32   : > { %5008 = vmatpush3.bf16.msra.mxu1 %v5614_v9  ;;  %4897 = vmatprep.subr.bf16.mxu0 %v5615_v14  ;;  %v341_v9 = vld [vmem:[%s5834_s29 + $0x4c0] sm:$0xff]  ;;  %v4488_v52 = vcombine.low %v397_v40, %v405_v41 }
  0x33   : > { %5009 = vmatprep.subr.bf16.mxu1 %v5617_v17  ;;  %v357_v17 = vld [vmem:[%s5834_s29 + $0x540] sm:$0xff] }
  0x35   : > { %4898 = vmatpush3.bf16.msra.mxu0 %v5616_v15  ;;  %v4427_v15 = vcombine.high %v334_v10, %v342_v11 }
  0x36   : > { %5010 = vmatpush3.bf16.msra.mxu1 %v5618_v20  ;;  %4899 = vmatprep.subr.bf16.mxu0 %v5619_v24  ;;  %v365_v24 = vld [vmem:[%s5834_s29 + $0x580] sm:$0xff] }
  0x37   : > { %2798 = vmatmul.mubr.bf16.gmra.mrb[8].mxu0 %v4312_v3  ;;  %5011 = vmatprep.subr.bf16.mxu1 %v5621_v28  ;;  %v4392_v3 = vcombine.low %v301_v50, %v309_v51  ;;  %v414_v50 = vld [vmem:[%s5834_s29 + $0x708] sm:$0xff] }
  0x38   : > { %2959 = vmatmul.mubr.bf16.gmra.mrb[8].mxu1 %v4314_v5  ;;  %2805 = vmatprep.mubr.bf16.mxu0 %v4329_v6  ;;  %v4409_v5 = vcombine.high %v317_v62, %v325_v63  ;;  %v5637_v6 = vld [vmem:[%s6777_s1 + $0x2c0] sm:$0xff]   ;;  %v422_v51 = vld [vmem:[%s5834_s29 + $0x748] sm:$0xff] }
  0x39   : > { %2966 = vmatprep.mubr.bf16.mxu1 %v4331_v8  ;;  %4900 = vmatpush3.bf16.msra.mxu0 %v5620_v27  ;;  %v333_v8 = vld [vmem:[%s5834_s29 + $0x480] sm:$0xff]  ;;  %v374_v27 = vld [vmem:[%s5834_s29 + $0x5c8] sm:$0xff] }
  0x3a   : > { %5012 = vmatpush3.bf16.msra.mxu1 %v5622_v29  ;;  %4901 = vmatprep.subr.bf16.mxu0 %v5623_v34  ;;  %v4425_v14 = vcombine.high %v333_v8, %v341_v9  ;;  %v4424_v20 = vcombine.low %v333_v8, %v341_v9  ;;  %v382_v34 = vld [vmem:[%s5834_s29 + $0x608] sm:$0xff]  ;;  %v207_v8 = vld [vmem:[%s5834_s29 + $0x90] sm:$0xff] }
  0x3b   : > { %5013 = vmatprep.subr.bf16.mxu1 %v5625_v37  ;;  %v4458_v37 = vcombine.low %v366_v26, %v374_v27  ;;  %v215_v9 = vld [vmem:[%s5834_s29 + $0xd0] sm:$0xff] }
  0x3d   : > { %4902 = vmatpush3.bf16.msra.mxu0 %v5624_v36  ;;  %v4456_v36 = vcombine.low %v365_v24, %v373_v25 }
  0x3e   : > { %5014 = vmatpush3.bf16.msra.mxu1 %v5626_v39  ;;  %4903 = vmatprep.subr.bf16.mxu0 %v5627_v46  ;;  %v4475_v39 = vcombine.high %v382_v34, %v390_v35  ;;  %v4489_v46 = vcombine.high %v397_v40, %v405_v41  ;;  %v248_v40 = vld [vmem:[%s5834_s29 + $0x1d8] sm:$0xff] }
  0x3f   : > { %2806 = vmatmul.mubr.bf16.gmra.mrb[12].mxu0 %v4328_v16  ;;  %5015 = vmatprep.subr.bf16.mxu1 %v5629_v48  ;;  %v349_v16 = vld [vmem:[%s5834_s29 + $0x500] sm:$0xff]  ;;  %v5650_v41 = vld [vmem:[%s6777_s1 + $0x298] sm:$0xff]  }
  0x40   : > { %2967 = vmatmul.mubr.bf16.gmra.mrb[12].mxu1 %v4330_v18  ;;  %2813 = vmatprep.mubr.bf16.mxu0 %v4345_v19  ;;  %v350_v18 = vld [vmem:[%s5834_s29 + $0x508] sm:$0xff]  ;;  %v4441_v22 = vcombine.high %v349_v16, %v357_v17  ;;  %v4440_v28 = vcombine.low %v349_v16, %v357_v17  ;;  %v413_v48 = vld [vmem:[%s5834_s29 + $0x700] sm:$0xff]  ;;  %v4301_v16 = vcombine.high %v207_v8, %v215_v9 }
  0x41   : > { %2974 = vmatprep.mubr.bf16.mxu1 %v4347_v21  ;;  %4904 = vmatpush3.bf16.msra.mxu0 %v5628_v47  ;;  %v358_v19 = vld [vmem:[%s5834_s29 + $0x548] sm:$0xff]  ;;  %v4426_v21 = vcombine.low %v334_v10, %v342_v11  ;;  %v4284_v10 = vcombine.low %v191_v0, %v199_v1  ;;  %v208_v11 = vld [vmem:[%s5834_s29 + $0x98] sm:$0xff] }
  0x42   : > { %5016 = vmatpush3.bf16.msra.mxu1 %v5630_v49  ;;  %4905 = vmatprep.subr.bf16.mxu0 %v5631_v55  ;;  %v4443_v23 = vcombine.high %v350_v18, %v358_v19  ;;  %v4442_v29 = vcombine.low %v350_v18, %v358_v19  ;;  %v421_v49 = vld [vmem:[%s5834_s29 + $0x740] sm:$0xff]  ;;  %v4507_v55 = vcombine.high %v414_v50, %v422_v51  ;;  %v5639_v18 = vld [vmem:[%s6777_s1 + $0x248] sm:$0xff]  }
  0x43   : > { %5017 = vmatprep.subr.bf16.mxu1 %v5633_v60  ;;  %v4504_v60 = vcombine.low %v413_v48, %v421_v49  ;;  %v5641_v19 = vld [vmem:[%s6777_s1 + $0x2c8] sm:$0xff]  }
  0x45   : > { %4906 = vmatpush3.bf16.msra.mxu0 %v5632_v58  ;;  %v430_v58 = vld [vmem:[%s5834_s29 + $0x788] sm:$0xff] }
  0x46   : > { %5018 = vmatpush3.bf16.msra.mxu1 %v5634_v61  ;;  %5115 = vmatprep.subr.bf16.mxu0 %v5635_v2  ;;  %v4506_v61 = vcombine.low %v414_v50, %v422_v51  ;;  %v192_v2 = vld [vmem:[%s5834_s29 + $0x18] sm:$0xff]  ;;  %v5655_v50 = vld [vmem:[%s6777_s1 + $0x268] sm:$0xff]  }
  0x47   : > { %2814 = vmatmul.mubr.bf16.gmra.mrb[16].mxu0 %v4344_v30  ;;  %5227 = vmatprep.subr.bf16.mxu1 %v5637_v6  ;;  %v4457_v30 = vcombine.high %v365_v24, %v373_v25  ;;  %v4285_v6 = vcombine.high %v191_v0, %v199_v1  ;;  %v5643_v24 = vld [vmem:[%s6777_s1 + $0x250] sm:$0xff]   ;;  %v224_v25 = vld [vmem:[%s5834_s29 + $0x118] sm:$0xff]  ;;  %v5657_v51 = vld [vmem:[%s6777_s1 + $0x2e8] sm:$0xff]  }
  0x48   : > { %2975 = vmatmul.mubr.bf16.gmra.mrb[16].mxu1 %v4346_v31  ;;  %2821 = vmatprep.mubr.bf16.mxu0 %v4361_v32  ;;  %v4459_v31 = vcombine.high %v366_v26, %v374_v27  ;;  %v381_v32 = vld [vmem:[%s5834_s29 + $0x600] sm:$0xff]  ;;  %v232_v26 = vld [vmem:[%s5834_s29 + $0x158] sm:$0xff]  ;;  %v5645_v27 = vld [vmem:[%s6777_s1 + $0x2d0] sm:$0xff]  }
  0x49   : > { %2982 = vmatprep.mubr.bf16.mxu1 %v4363_v33  ;;  %v389_v33 = vld [vmem:[%s5834_s29 + $0x640] sm:$0xff]  ;;  %v5660_v0 = vld [vmem:[%s6777_s1 + $0x230] sm:$0xff]  }
  0x4a   : > { %v4473_v38 = vcombine.high %v381_v32, %v389_v33  ;;  %v5662_v1 = vld [vmem:[%s6777_s1 + $0x2b0] sm:$0xff]  }
  0x4f   : > { %2822 = vmatmul.mubr.bf16.gmra.mrb[20].mxu0 %v4360_v42  ;;  %v398_v42 = vld [vmem:[%s5834_s29 + $0x688] sm:$0xff] }
  0x50   : > { %2983 = vmatmul.mubr.bf16.gmra.mrb[20].mxu1 %v4362_v43  ;;  %2829 = vmatprep.mubr.bf16.mxu0 %v4377_v44  ;;  %v406_v43 = vld [vmem:[%s5834_s29 + $0x6c8] sm:$0xff]  ;;  %v4472_v44 = vcombine.low %v381_v32, %v389_v33  ;;  %v5644_v32 = vld [vmem:[%s6777_s1 + $0x210] sm:$0xff]  }
  0x51   : > { %2990 = vmatprep.mubr.bf16.mxu1 %v4379_v45  ;;  %v4474_v45 = vcombine.low %v382_v34, %v390_v35  ;;  %v4491_v47 = vcombine.high %v398_v42, %v406_v43  ;;  %v4490_v53 = vcombine.low %v398_v42, %v406_v43  ;;  %v5646_v33 = vld [vmem:[%s6777_s1 + $0x290] sm:$0xff]   ;;  %v5647_v34 = vld [vmem:[%s6777_s1 + $0x258] sm:$0xff]   ;;  %v5651_v42 = vld [vmem:[%s6777_s1 + $0x260] sm:$0xff]  }
  0x52   : > { %v5649_v35 = vld [vmem:[%s6777_s1 + $0x2d8] sm:$0xff]  }
  0x57   : > { %2830 = vmatmul.mubr.bf16.gmra.mrb[24].mxu0 %v4376_v54  ;;  %v4505_v54 = vcombine.high %v413_v48, %v421_v49  ;;  %v5652_v48 = vld [vmem:[%s6777_s1 + $0x220] sm:$0xff]  }
  0x58   : > { %2991 = vmatmul.mubr.bf16.gmra.mrb[24].mxu1 %v4378_v56  ;;  %2837 = vmatprep.mubr.bf16.mxu0 %v4393_v57  ;;  %v429_v56 = vld [vmem:[%s5834_s29 + $0x780] sm:$0xff] }
  0x59   : > { %2998 = vmatprep.mubr.bf16.mxu1 %v4395_v59  ;;  %v437_v57 = vld [vmem:[%s5834_s29 + $0x7c0] sm:$0xff]  ;;  %v438_v59 = vld [vmem:[%s5834_s29 + $0x7c8] sm:$0xff] }
  0x5a   : > { %v4521_v62 = vcombine.high %v429_v56, %v437_v57  ;;  %v4523_v63 = vcombine.high %v430_v58, %v438_v59  ;;  %v5654_v49 = vld [vmem:[%s6777_s1 + $0x2a0] sm:$0xff]  }
  0x5f   : > { %2838 = vmatmul.mubr.bf16.gmra.mrb[28].mxu0 %v4392_v3  ;;  %v200_v3 = vld [vmem:[%s5834_s29 + $0x58] sm:$0xff] }
  0x60   : > { %2999 = vmatmul.mubr.bf16.gmra.mrb[28].mxu1 %v4394_v4  ;;  %2845 = vmatprep.mubr.bf16.mxu0 %v4409_v5  ;;  %v4520_v4 = vcombine.low %v429_v56, %v437_v57  ;;  %v4522_v5 = vcombine.low %v430_v58, %v438_v59  ;;  %v264_v56 = vld [vmem:[%s5834_s29 + $0x258] sm:$0xff]  ;;  %v5658_v57 = vld [vmem:[%s6777_s1 + $0x2a8] sm:$0xff]   ;;  %v5659_v58 = vld [vmem:[%s6777_s1 + $0x270] sm:$0xff]  }
  0x61   : > { %3006 = vmatprep.mubr.bf16.mxu1 %v4411_v7  ;;  %v4287_v7 = vcombine.high %v192_v2, %v200_v3 }
  0x67   : > { %2846 = vmatmul.mubr.bf16.gmra.mrb[32].mxu0 %v4408_v12  ;;  %v216_v12 = vld [vmem:[%s5834_s29 + $0xd8] sm:$0xff] }
  0x68   : > { %3007 = vmatmul.mubr.bf16.gmra.mrb[32].mxu1 %v4410_v13  ;;  %2853 = vmatprep.mubr.bf16.mxu0 %v4425_v14  ;;  %v4286_v13 = vcombine.low %v192_v2, %v200_v3  ;;  %v5636_v14 = vld [vmem:[%s6777_s1 + $0x200] sm:$0xff]   ;;  %v4303_v17 = vcombine.high %v208_v11, %v216_v12  ;;  %v5663_v2 = vld [vmem:[%s6777_s1 + $0x278] sm:$0xff]  }
  0x69   : > { %3014 = vmatprep.mubr.bf16.mxu1 %v4427_v15  ;;  %v5638_v15 = vld [vmem:[%s6777_s1 + $0x280] sm:$0xff]   ;;  %v5665_v3 = vld [vmem:[%s6777_s1 + $0x2f8] sm:$0xff]  }
  0x6f   : > { %2854 = vmatmul.mubr.bf16.gmra.mrb[36].mxu0 %v4424_v20  ;;  %v223_v20 = vld [vmem:[%s5834_s29 + $0x110] sm:$0xff] }
  0x70   : > { %3015 = vmatmul.mubr.bf16.gmra.mrb[36].mxu1 %v4426_v21  ;;  %2861 = vmatprep.mubr.bf16.mxu0 %v4441_v22  ;;  %v5640_v21 = vld [vmem:[%s6777_s1 + $0x208] sm:$0xff]   ;;  %v231_v22 = vld [vmem:[%s5834_s29 + $0x150] sm:$0xff] }
  0x71   : > { %3022 = vmatprep.mubr.bf16.mxu1 %v4443_v23  ;;  %v5642_v23 = vld [vmem:[%s6777_s1 + $0x288] sm:$0xff]   ;;  %v4316_v43 = vcombine.low %v223_v20, %v231_v22 }
  0x77   : > { %2862 = vmatmul.mubr.bf16.gmra.mrb[40].mxu0 %v4440_v28  ;;  %v4300_v28 = vcombine.low %v207_v8, %v215_v9  ;;  %v280_v8 = vld [vmem:[%s5834_s29 + $0x2d8] sm:$0xff] }
  0x78   : > { %3023 = vmatmul.mubr.bf16.gmra.mrb[40].mxu1 %v4442_v29  ;;  %2869 = vmatprep.mubr.bf16.mxu0 %v4457_v30  ;;  %v4302_v29 = vcombine.low %v208_v11, %v216_v12  ;;  %v4317_v30 = vcombine.high %v223_v20, %v231_v22  ;;  %v5666_v9 = vld [vmem:[%s6777_s1 + $0x2b8] sm:$0xff]   ;;  %v5669_v12 = vld [vmem:[%s6777_s1 + $0x3c0] sm:$0xff]  }
  0x79   : > { %3030 = vmatprep.mubr.bf16.mxu1 %v4459_v31  ;;  %v4319_v31 = vcombine.high %v224_v25, %v232_v26 }
  0x7f   : > { %2870 = vmatmul.mubr.bf16.gmra.mrb[44].mxu0 %v4456_v36  ;;  %v239_v36 = vld [vmem:[%s5834_s29 + $0x190] sm:$0xff] }
  0x80   : > { %3031 = vmatmul.mubr.bf16.gmra.mrb[44].mxu1 %v4458_v37  ;;  %2877 = vmatprep.mubr.bf16.mxu0 %v4473_v38  ;;  %v247_v37 = vld [vmem:[%s5834_s29 + $0x1d0] sm:$0xff]  ;;  %v240_v38 = vld [vmem:[%s5834_s29 + $0x198] sm:$0xff] }
  0x81   : > { %3038 = vmatprep.mubr.bf16.mxu1 %v4475_v39  ;;  %v5648_v39 = vld [vmem:[%s6777_s1 + $0x218] sm:$0xff]   ;;  %v4332_v59 = vcombine.low %v239_v36, %v247_v37 }
  0x87   : > { %2878 = vmatmul.mubr.bf16.gmra.mrb[48].mxu0 %v4472_v44  ;;  %v5653_v44 = vld [vmem:[%s6777_s1 + $0x2e0] sm:$0xff]  }
  0x88   : > { %3039 = vmatmul.mubr.bf16.gmra.mrb[48].mxu1 %v4474_v45  ;;  %2885 = vmatprep.mubr.bf16.mxu0 %v4489_v46  ;;  %v4318_v45 = vcombine.low %v224_v25, %v232_v26  ;;  %v4333_v46 = vcombine.high %v239_v36, %v247_v37  ;;  %v311_v25 = vld [vmem:[%s5834_s29 + $0x3d0] sm:$0xff]  ;;  %v304_v26 = vld [vmem:[%s5834_s29 + $0x398] sm:$0xff] }
  0x89   : > { %3046 = vmatprep.mubr.bf16.mxu1 %v4491_v47  ;;  %v4335_v47 = vcombine.high %v240_v38, %v248_v40 }
  0x8f   : > { %2886 = vmatmul.mubr.bf16.gmra.mrb[52].mxu0 %v4488_v52  ;;  %v255_v52 = vld [vmem:[%s5834_s29 + $0x210] sm:$0xff] }
  0x90   : > { %3047 = vmatmul.mubr.bf16.gmra.mrb[52].mxu1 %v4490_v53  ;;  %2893 = vmatprep.mubr.bf16.mxu0 %v4505_v54  ;;  %v263_v53 = vld [vmem:[%s5834_s29 + $0x250] sm:$0xff]  ;;  %v256_v54 = vld [vmem:[%s5834_s29 + $0x218] sm:$0xff] }
  0x91   : > { %3054 = vmatprep.mubr.bf16.mxu1 %v4507_v55  ;;  %v5656_v55 = vld [vmem:[%s6777_s1 + $0x228] sm:$0xff]   ;;  %v4348_v11 = vcombine.low %v255_v52, %v263_v53 }
  0x97   : > { %2894 = vmatmul.mubr.bf16.gmra.mrb[56].mxu0 %v4504_v60  ;;  %v5661_v60 = vld [vmem:[%s6777_s1 + $0x2f0] sm:$0xff]  }
  0x98   : > { %3055 = vmatmul.mubr.bf16.gmra.mrb[56].mxu1 %v4506_v61  ;;  %2901 = vmatprep.mubr.bf16.mxu0 %v4521_v62  ;;  %v4334_v61 = vcombine.low %v240_v38, %v248_v40  ;;  %v4349_v62 = vcombine.high %v255_v52, %v263_v53  ;;  %v335_v40 = vld [vmem:[%s5834_s29 + $0x490] sm:$0xff] }
  0x99   : > { %3062 = vmatprep.mubr.bf16.mxu1 %v4523_v63  ;;  %v4351_v63 = vcombine.high %v256_v54, %v264_v56 }
  0x9f   : > { %2902 = vmatmul.mubr.bf16.gmra.mrb[60].mxu0 %v4520_v4  ;;  %v271_v4 = vld [vmem:[%s5834_s29 + $0x290] sm:$0xff] }
  0xa0   : > { %3063 = vmatmul.mubr.bf16.gmra.mrb[60].mxu1 %v4522_v5  ;;  %3103 = vmatprep.mubr.bf16.mxu0 %v4285_v6  ;;  %v279_v5 = vld [vmem:[%s5834_s29 + $0x2d0] sm:$0xff]  ;;  %v272_v6 = vld [vmem:[%s5834_s29 + $0x298] sm:$0xff] }
  0xa1   : > { %3264 = vmatprep.mubr.bf16.mxu1 %v4287_v7  ;;  %v5664_v7 = vld [vmem:[%s6777_s1 + $0x238] sm:$0xff]   ;;  %v4364_v20 = vcombine.low %v271_v4, %v279_v5 }
  0xa7   : > { %3104 = vmatmul.mubr.bf16.vlgmr.msra.gmra.mrb[64].mxu0 %v4284_v10  ;;  %v5667_v10 = vld [vmem:[%s6777_s1 + $0x340] sm:$0xff]  }
  0xa8   : > { %3265 = vmatmul.mubr.bf16.vlgmr.msra.gmra.mrb[64].mxu1 %v4286_v13  ;;  %5116 = vmatpush3.bf16.msra.mxu0 %v5636_v14  ;;  %v4350_v13 = vcombine.low %v256_v54, %v264_v56  ;;  %v4365_v14 = vcombine.high %v271_v4, %v279_v5  ;;  %v367_v56 = vld [vmem:[%s5834_s29 + $0x590] sm:$0xff]  ;;  %v392_v4 = vld [vmem:[%s5834_s29 + $0x658] sm:$0xff] }
  0xa9   : > { %5228 = vmatpush3.bf16.msra.mxu1 %v5638_v15  ;;  %3111 = vmatprep.mubr.bf16.mxu0 %v4301_v16  ;;  %v4367_v15 = vcombine.high %v272_v6, %v280_v8  ;;  %v287_v16 = vld [vmem:[%s5834_s29 + $0x310] sm:$0xff] }
  0xaa   : > { %3272 = vmatprep.mubr.bf16.mxu1 %v4303_v17  ;;  %5117 = vmatprep.subr.bf16.mxu0 %v5639_v18  ;;  %v295_v17 = vld [vmem:[%s5834_s29 + $0x350] sm:$0xff]  ;;  %v288_v18 = vld [vmem:[%s5834_s29 + $0x318] sm:$0xff] }
  0xab   : > { %5229 = vmatprep.subr.bf16.mxu1 %v5641_v19  ;;  %v296_v19 = vld [vmem:[%s5834_s29 + $0x358] sm:$0xff]  ;;  %v4381_v22 = vcombine.high %v287_v16, %v295_v17 }
  0xac   : > { %5118 = vmatpush3.bf16.msra.mxu0 %v5640_v21  ;;  %v4366_v21 = vcombine.low %v272_v6, %v280_v8 }
  0xad   : > { %5230 = vmatpush3.bf16.msra.mxu1 %v5642_v23  ;;  %5119 = vmatprep.subr.bf16.mxu0 %v5643_v24  ;;  %v4383_v23 = vcombine.high %v288_v18, %v296_v19  ;;  %v303_v24 = vld [vmem:[%s5834_s29 + $0x390] sm:$0xff] }
  0xae   : > { %5231 = vmatprep.subr.bf16.mxu1 %v5645_v27  ;;  %v312_v27 = vld [vmem:[%s5834_s29 + $0x3d8] sm:$0xff]  ;;  %v4396_v36 = vcombine.low %v303_v24, %v311_v25 }
  0xaf   : > { %3112 = vmatmul.mubr.bf16.gmra.mrb[68].mxu0 %v4300_v28  ;;  %v4380_v28 = vcombine.low %v287_v16, %v295_v17  ;;  %v4398_v37 = vcombine.low %v304_v26, %v312_v27 }
  0xb0   : > { %3273 = vmatmul.mubr.bf16.gmra.mrb[68].mxu1 %v4302_v29  ;;  %3119 = vmatprep.mubr.bf16.mxu0 %v4317_v30  ;;  %v4382_v29 = vcombine.low %v288_v18, %v296_v19  ;;  %v4397_v30 = vcombine.high %v303_v24, %v311_v25  ;;  %v400_v25 = vld [vmem:[%s5834_s29 + $0x698] sm:$0xff] }
  0xb1   : > { %3280 = vmatprep.mubr.bf16.mxu1 %v4319_v31  ;;  %5120 = vmatpush3.bf16.msra.mxu0 %v5644_v32  ;;  %v4399_v31 = vcombine.high %v304_v26, %v312_v27  ;;  %v319_v32 = vld [vmem:[%s5834_s29 + $0x410] sm:$0xff]  ;;  %v408_v26 = vld [vmem:[%s5834_s29 + $0x6d8] sm:$0xff] }
  0xb2   : > { %5232 = vmatpush3.bf16.msra.mxu1 %v5646_v33  ;;  %5121 = vmatprep.subr.bf16.mxu0 %v5647_v34  ;;  %v327_v33 = vld [vmem:[%s5834_s29 + $0x450] sm:$0xff]  ;;  %v320_v34 = vld [vmem:[%s5834_s29 + $0x418] sm:$0xff] }
  0xb3   : > { %5233 = vmatprep.subr.bf16.mxu1 %v5649_v35  ;;  %v328_v35 = vld [vmem:[%s5834_s29 + $0x458] sm:$0xff]  ;;  %v4413_v38 = vcombine.high %v319_v32, %v327_v33 }
  0xb5   : > { %5122 = vmatpush3.bf16.msra.mxu0 %v5648_v39  ;;  %v4415_v39 = vcombine.high %v320_v34, %v328_v35 }
  0xb6   : > { %5234 = vmatpush3.bf16.msra.mxu1 %v5650_v41  ;;  %5123 = vmatprep.subr.bf16.mxu0 %v5651_v42  ;;  %v343_v41 = vld [vmem:[%s5834_s29 + $0x4d0] sm:$0xff]  ;;  %v336_v42 = vld [vmem:[%s5834_s29 + $0x498] sm:$0xff] }
  0xb7   : > { %3120 = vmatmul.mubr.bf16.gmra.mrb[72].mxu0 %v4316_v43  ;;  %5235 = vmatprep.subr.bf16.mxu1 %v5653_v44  ;;  %v344_v43 = vld [vmem:[%s5834_s29 + $0x4d8] sm:$0xff]  ;;  %v4412_v44 = vcombine.low %v319_v32, %v327_v33  ;;  %v4428_v52 = vcombine.low %v335_v40, %v343_v41 }
  0xb8   : > { %3281 = vmatmul.mubr.bf16.gmra.mrb[72].mxu1 %v4318_v45  ;;  %3127 = vmatprep.mubr.bf16.mxu0 %v4333_v46  ;;  %v4414_v45 = vcombine.low %v320_v34, %v328_v35  ;;  %v4429_v46 = vcombine.high %v335_v40, %v343_v41  ;;  %v4430_v53 = vcombine.low %v336_v42, %v344_v43 }
  0xb9   : > { %3288 = vmatprep.mubr.bf16.mxu1 %v4335_v47  ;;  %5124 = vmatpush3.bf16.msra.mxu0 %v5652_v48  ;;  %v4431_v47 = vcombine.high %v336_v42, %v344_v43  ;;  %v351_v48 = vld [vmem:[%s5834_s29 + $0x510] sm:$0xff] }
  0xba   : > { %5236 = vmatpush3.bf16.msra.mxu1 %v5654_v49  ;;  %5125 = vmatprep.subr.bf16.mxu0 %v5655_v50  ;;  %v359_v49 = vld [vmem:[%s5834_s29 + $0x550] sm:$0xff]  ;;  %v352_v50 = vld [vmem:[%s5834_s29 + $0x518] sm:$0xff] }
  0xbb   : > { %5237 = vmatprep.subr.bf16.mxu1 %v5657_v51  ;;  %v360_v51 = vld [vmem:[%s5834_s29 + $0x558] sm:$0xff]  ;;  %v4445_v54 = vcombine.high %v351_v48, %v359_v49 }
  0xbd   : > { %5126 = vmatpush3.bf16.msra.mxu0 %v5656_v55  ;;  %v4447_v55 = vcombine.high %v352_v50, %v360_v51 }
  0xbe   : > { %5238 = vmatpush3.bf16.msra.mxu1 %v5658_v57  ;;  %5127 = vmatprep.subr.bf16.mxu0 %v5659_v58  ;;  %v375_v57 = vld [vmem:[%s5834_s29 + $0x5d0] sm:$0xff]  ;;  %v368_v58 = vld [vmem:[%s5834_s29 + $0x598] sm:$0xff] }
  0xbf   : > { %3128 = vmatmul.mubr.bf16.gmra.mrb[76].mxu0 %v4332_v59  ;;  %5239 = vmatprep.subr.bf16.mxu1 %v5661_v60  ;;  %v376_v59 = vld [vmem:[%s5834_s29 + $0x5d8] sm:$0xff]  ;;  %v4444_v60 = vcombine.low %v351_v48, %v359_v49 }
  0xc0   : > { %3289 = vmatmul.mubr.bf16.gmra.mrb[76].mxu1 %v4334_v61  ;;  %3135 = vmatprep.mubr.bf16.mxu0 %v4349_v62  ;;  %v4446_v61 = vcombine.low %v352_v50, %v360_v51  ;;  %v4461_v62 = vcombine.high %v367_v56, %v375_v57  ;;  %v424_v48 = vld [vmem:[%s5834_s29 + $0x758] sm:$0xff] }
  0xc1   : > { %3296 = vmatprep.mubr.bf16.mxu1 %v4351_v63  ;;  %5128 = vmatpush3.bf16.msra.mxu0 %v5660_v0  ;;  %v4463_v63 = vcombine.high %v368_v58, %v376_v59  ;;  %v383_v0 = vld [vmem:[%s5834_s29 + $0x610] sm:$0xff] }
  0xc2   : > { %5240 = vmatpush3.bf16.msra.mxu1 %v5662_v1  ;;  %5129 = vmatprep.subr.bf16.mxu0 %v5663_v2  ;;  %v391_v1 = vld [vmem:[%s5834_s29 + $0x650] sm:$0xff] }
  0xc3   : > { %5241 = vmatprep.subr.bf16.mxu1 %v5665_v3  ;;  %v384_v3 = vld [vmem:[%s5834_s29 + $0x618] sm:$0xff] }
  0xc4   : > { %v4479_v16 = vcombine.high %v384_v3, %v392_v4  ;;  %v4478_v33 = vcombine.low %v384_v3, %v392_v4  ;;  %v439_v3 = vld [vmem:[%s5834_s29 + $0x7d0] sm:$0xff] }
  0xc5   : > { %5130 = vmatpush3.bf16.msra.mxu0 %v5664_v7  ;;  %v4460_v7 = vcombine.low %v367_v56, %v375_v57 }
  0xc6   : > { %5242 = vmatpush3.bf16.msra.mxu1 %v5666_v9  ;;  %5339 = vmatprep.subr.bf16.mxu0 %v5667_v10 }
  0xc7   : > { %3136 = vmatmul.mubr.bf16.gmra.mrb[80].mxu0 %v4348_v11  ;;  %5451 = vmatprep.subr.bf16.mxu1 %v5669_v12  ;;  %v4462_v11 = vcombine.low %v368_v58, %v376_v59  ;;  %v4477_v12 = vcombine.high %v383_v0, %v391_v1 }
  0xc8   : > { %3297 = vmatmul.mubr.bf16.gmra.mrb[80].mxu1 %v4350_v13  ;;  %3143 = vmatprep.mubr.bf16.mxu0 %v4365_v14 }
  0xc9   : > { %3304 = vmatprep.mubr.bf16.mxu1 %v4367_v15 }
  0xcf   : > { %3144 = vmatmul.mubr.bf16.gmra.mrb[84].mxu0 %v4364_v20 }
  0xd0   : > { %3305 = vmatmul.mubr.bf16.gmra.mrb[84].mxu1 %v4366_v21  ;;  %3151 = vmatprep.mubr.bf16.mxu0 %v4381_v22  ;;  %v399_v22 = vld [vmem:[%s5834_s29 + $0x690] sm:$0xff] }
  0xd1   : > { %3312 = vmatprep.mubr.bf16.mxu1 %v4383_v23  ;;  %v407_v23 = vld [vmem:[%s5834_s29 + $0x6d0] sm:$0xff] }
  0xd2   : > { %v4493_v34 = vcombine.high %v399_v22, %v407_v23  ;;  %v4492_v51 = vcombine.low %v399_v22, %v407_v23 }
  0xd7   : > { %3152 = vmatmul.mubr.bf16.gmra.mrb[88].mxu0 %v4380_v28 }
  0xd8   : > { %3313 = vmatmul.mubr.bf16.gmra.mrb[88].mxu1 %v4382_v29  ;;  %3159 = vmatprep.mubr.bf16.mxu0 %v4397_v30  ;;  %v4476_v29 = vcombine.low %v383_v0, %v391_v1 }
  0xd9   : > { %3320 = vmatprep.mubr.bf16.mxu1 %v4399_v31 }
  0xdf   : > { %3160 = vmatmul.mubr.bf16.gmra.mrb[92].mxu0 %v4396_v36 }
  0xe0   : > { %3321 = vmatmul.mubr.bf16.gmra.mrb[92].mxu1 %v4398_v37  ;;  %3167 = vmatprep.mubr.bf16.mxu0 %v4413_v38  ;;  %v4495_v38 = vcombine.high %v400_v25, %v408_v26 }
  0xe1   : > { %3328 = vmatprep.mubr.bf16.mxu1 %v4415_v39 }
  0xe7   : > { %3168 = vmatmul.mubr.bf16.gmra.mrb[96].mxu0 %v4412_v44  ;;  %v415_v44 = vld [vmem:[%s5834_s29 + $0x710] sm:$0xff] }
  0xe8   : > { %3329 = vmatmul.mubr.bf16.gmra.mrb[96].mxu1 %v4414_v45  ;;  %3175 = vmatprep.mubr.bf16.mxu0 %v4429_v46  ;;  %v423_v45 = vld [vmem:[%s5834_s29 + $0x750] sm:$0xff] }
  0xe9   : > { %3336 = vmatprep.mubr.bf16.mxu1 %v4431_v47  ;;  %v416_v47 = vld [vmem:[%s5834_s29 + $0x718] sm:$0xff]  ;;  %v4509_v56 = vcombine.high %v415_v44, %v423_v45 }
  0xef   : > { %3176 = vmatmul.mubr.bf16.gmra.mrb[100].mxu0 %v4428_v52 }
  0xf0   : > { %3337 = vmatmul.mubr.bf16.gmra.mrb[100].mxu1 %v4430_v53  ;;  %3183 = vmatprep.mubr.bf16.mxu0 %v4445_v54 }
  0xf1   : > { %3344 = vmatprep.mubr.bf16.mxu1 %v4447_v55  ;;  %v4494_v55 = vcombine.low %v400_v25, %v408_v26  ;;  %v193_v26 = vld [vmem:[%s5834_s29 + $0x20] sm:$0xff] }
  0xf7   : > { %3184 = vmatmul.mubr.bf16.gmra.mrb[104].mxu0 %v4444_v60  ;;  %v4511_v60 = vcombine.high %v416_v47, %v424_v48 }
  0xf8   : > { %3345 = vmatmul.mubr.bf16.gmra.mrb[104].mxu1 %v4446_v61  ;;  %3191 = vmatprep.mubr.bf16.mxu0 %v4461_v62 }
  0xf9   : > { %3352 = vmatprep.mubr.bf16.mxu1 %v4463_v63 }
  0xfa   : > { %v4683_v2 = vpop.f32.mrb[0].mxu0 }
  0xfb   : > { %v4795_v5 = vpop.f32.mrb[0].mxu1  ;;  %v4684_v6 = vpop.f32.mrb[1].mxu0 }
  0xfc   : > { %v4685_v8 = vadd.f32 %v4684_v6, %v4683_v2  ;;  %v4796_v9 = vpop.f32.mrb[1].mxu1  ;;  %v4686_v10 = vpop.f32.mrb[2].mxu0  ;;  %v431_v2 = vld [vmem:[%s5834_s29 + $0x790] sm:$0xff]  ;;  %v440_v6 = vld [vmem:[%s5834_s29 + $0x7d8] sm:$0xff] }
  0xfd   : > { %v4797_v13 = vadd.f32 %v4796_v9, %v4795_v5  ;;  %v4798_v14 = vpop.f32.mrb[2].mxu1  ;;  %v4687_v15 = vpop.f32.mrb[3].mxu0  ;;  %v432_v5 = vld [vmem:[%s5834_s29 + $0x798] sm:$0xff]  ;;  %v4508_v9 = vcombine.low %v415_v44, %v423_v45 }
  0xfe   : > { %v4688_v17 = vadd.f32 %v4687_v15, %v4686_v10  ;;  %v4799_v18 = vpop.f32.mrb[3].mxu1 }
  0xff   : > { %v6156_v19 = vadd.f32 %v4797_v13, %v4685_v8  ;;  %v4800_v20 = vadd.f32 %v4799_v18, %v4798_v14  ;;  %3192 = vmatmul.mubr.bf16.gmra.mrb[108].mxu0 %v4460_v7  ;;  %v4510_v13 = vcombine.low %v416_v47, %v424_v48  ;;  %v4525_v14 = vcombine.high %v431_v2, %v439_v3 }
 0x100   : > { %3353 = vmatmul.mubr.bf16.gmra.mrb[108].mxu1 %v4462_v11  ;;  %3199 = vmatprep.mubr.bf16.mxu0 %v4477_v12  ;;  %v4527_v18 = vcombine.high %v432_v5, %v440_v6 }
 0x101   : > { %v6158_v21 = vadd.f32 %v4800_v20, %v4688_v17  ;;  %3360 = vmatprep.mubr.bf16.mxu1 %v4479_v16 }
 0x102   : > { %v4689_v24 = vpop.f32.mrb[4].mxu0 }
 0x103   : > { %v4801_v27 = vpop.f32.mrb[4].mxu1  ;;  %v4690_v28 = vpop.f32.mrb[5].mxu0 }
 0x104   : > { %v4691_v30 = vadd.f32 %v4690_v28, %v4689_v24  ;;  %v4802_v31 = vpop.f32.mrb[5].mxu1  ;;  %v4692_v32 = vpop.f32.mrb[6].mxu0 }
 0x105   : > { %v4803_v35 = vadd.f32 %v4802_v31, %v4801_v27  ;;  %v4804_v36 = vpop.f32.mrb[6].mxu1  ;;  %v4693_v37 = vpop.f32.mrb[7].mxu0  ;;  %v201_v27 = vld [vmem:[%s5834_s29 + $0x60] sm:$0xff] }
 0x106   : > { %v4694_v39 = vadd.f32 %v4693_v37, %v4692_v32  ;;  %v4805_v40 = vpop.f32.mrb[7].mxu1  ;;  %v4526_v37 = vcombine.low %v432_v5, %v440_v6 }
 0x107   : > { %v6164_v41 = vadd.f32 %v4803_v35, %v4691_v30  ;;  %v4806_v42 = vadd.f32 %v4805_v40, %v4804_v36  ;;  %3200 = vmatmul.mubr.bf16.gmra.mrb[112].mxu0 %v4476_v29  ;;  %v194_v29 = vld [vmem:[%s5834_s29 + $0x28] sm:$0xff] }
 0x108   : > { %3361 = vmatmul.mubr.bf16.gmra.mrb[112].mxu1 %v4478_v33  ;;  %3207 = vmatprep.mubr.bf16.mxu0 %v4493_v34  ;;  %v202_v30 = vld [vmem:[%s5834_s29 + $0x68] sm:$0xff]  ;;  %v4524_v33 = vcombine.low %v431_v2, %v439_v3 }
 0x109   : > { %v6166_v43 = vadd.f32 %v4806_v42, %v4694_v39  ;;  %3368 = vmatprep.mubr.bf16.mxu1 %v4495_v38  ;;  %v4289_v38 = vcombine.high %v193_v26, %v201_v27  ;;  %v4291_v44 = vcombine.high %v194_v29, %v202_v30 }
 0x10a   : > { %v4695_v46 = vpop.f32.mrb[8].mxu0 }
 0x10b   : > { %v4807_v49 = vpop.f32.mrb[8].mxu1  ;;  %v4696_v50 = vpop.f32.mrb[9].mxu0 }
 0x10c   : > { %v4697_v52 = vadd.f32 %v4696_v50, %v4695_v46  ;;  %v4808_v53 = vpop.f32.mrb[9].mxu1  ;;  %v4698_v54 = vpop.f32.mrb[10].mxu0 }
 0x10d   : > { %v4809_v57 = vadd.f32 %v4808_v53, %v4807_v49  ;;  %v4810_v58 = vpop.f32.mrb[10].mxu1  ;;  %v4699_v59 = vpop.f32.mrb[11].mxu0 }
 0x10e   : > { %v4700_v61 = vadd.f32 %v4699_v59, %v4698_v54  ;;  %v4811_v62 = vpop.f32.mrb[11].mxu1 }
 0x10f   : > { %v6172_v63 = vadd.f32 %v4809_v57, %v4697_v52  ;;  %v4812_v0 = vadd.f32 %v4811_v62, %v4810_v58  ;;  %3208 = vmatmul.mubr.bf16.gmra.mrb[116].mxu0 %v4492_v51  ;;  %v6193_v51 = vld [vmem:[%s5834_s29 + $0xa0] sm:$0xff]  ;;  %v218_v57 = vld [vmem:[%s5834_s29 + $0xe8] sm:$0xff] }
 0x110   : > { %3369 = vmatmul.mubr.bf16.gmra.mrb[116].mxu1 %v4494_v55  ;;  %3215 = vmatprep.mubr.bf16.mxu0 %v4509_v56  ;;  %v6196_v52 = vld [vmem:[%s5834_s29 + $0xe0] sm:$0xff]  ;;  %v4288_v55 = vcombine.low %v193_v26, %v201_v27  ;;  %v210_v56 = vld [vmem:[%s5834_s29 + $0xa8] sm:$0xff]  ;;  %v5677_v26 = vld [vmem:[%s6777_s1 + $0x3d0] sm:$0xff]  }
 0x111   : > { %v6174_v1 = vadd.f32 %v4812_v0, %v4700_v61  ;;  %3376 = vmatprep.mubr.bf16.mxu1 %v4511_v60  ;;  %v4290_v61 = vcombine.low %v194_v29, %v202_v30  ;;  %v5668_v62 = vld [vmem:[%s6777_s1 + $0x300] sm:$0xff]   ;;  %v4305_v5 = vcombine.high %v6193_v51, %v6196_v52  ;;  %v4304_v29 = vcombine.low %v6193_v51, %v6196_v52 }
 0x112   : > { %v4701_v4 = vpop.f32.mrb[12].mxu0  ;;  %v6263_v51 = vld [vmem:[%s5834_s29 + $0x1a0] sm:$0xff] }
 0x113   : > { %v4813_v7 = vpop.f32.mrb[12].mxu1  ;;  %v4702_v8 = vpop.f32.mrb[13].mxu0 }
 0x114   : > { %v4703_v10 = vadd.f32 %v4702_v8, %v4701_v4  ;;  %v4814_v11 = vpop.f32.mrb[13].mxu1  ;;  %v4704_v12 = vpop.f32.mrb[14].mxu0  ;;  %v5670_v4 = vld [vmem:[%s6777_s1 + $0x380] sm:$0xff]   ;;  %v4307_v8 = vcombine.high %v210_v56, %v218_v57 }
 0x115   : > { %v4815_v15 = vadd.f32 %v4814_v11, %v4813_v7  ;;  %v4816_v16 = vpop.f32.mrb[14].mxu1  ;;  %v4705_v17 = vpop.f32.mrb[15].mxu0 }
 0x116   : > { %v4706_v20 = vadd.f32 %v4705_v17, %v4704_v12  ;;  %v4817_v22 = vpop.f32.mrb[15].mxu1  ;;  %v5673_v12 = vld [vmem:[%s6777_s1 + $0x3c8] sm:$0xff]  }
 0x117   : > { %v6180_v23 = vadd.f32 %v4815_v15, %v4703_v10  ;;  %v4818_v24 = vadd.f32 %v4817_v22, %v4816_v16  ;;  %3216 = vmatmul.mubr.bf16.gmra.mrb[120].mxu0 %v4508_v9  ;;  %v5671_v9 = vld [vmem:[%s6777_s1 + $0x348] sm:$0xff]   ;;  %v6225_v16 = vld [vmem:[%s5834_s29 + $0x160] sm:$0xff] }
 0x118   : > { %3377 = vmatmul.mubr.bf16.gmra.mrb[120].mxu1 %v4510_v13  ;;  %3223 = vmatprep.mubr.bf16.mxu0 %v4525_v14  ;;  %v6217_v13 = vld [vmem:[%s5834_s29 + $0x120] sm:$0xff]  ;;  %v5672_v14 = vld [vmem:[%s6777_s1 + $0x308] sm:$0xff]  }
 0x119   : > { %v6182_v25 = vadd.f32 %v4818_v24, %v4706_v20  ;;  %3384 = vmatprep.mubr.bf16.mxu1 %v4527_v18  ;;  %v5674_v17 = vld [vmem:[%s6777_s1 + $0x388] sm:$0xff]   ;;  %v5675_v18 = vld [vmem:[%s6777_s1 + $0x350] sm:$0xff]  }
 0x11a   : > { %v4707_v28 = vpop.f32.mrb[16].mxu0  ;;  %v6234_v22 = vld [vmem:[%s5834_s29 + $0x128] sm:$0xff] }
 0x11b   : > { %v4819_v31 = vpop.f32.mrb[16].mxu1  ;;  %v4708_v32 = vpop.f32.mrb[17].mxu0  ;;  %v6237_v24 = vld [vmem:[%s5834_s29 + $0x168] sm:$0xff] }
 0x11c   : > { %v4709_v34 = vadd.f32 %v4708_v32, %v4707_v28  ;;  %v4820_v35 = vpop.f32.mrb[17].mxu1  ;;  %v4710_v36 = vpop.f32.mrb[18].mxu0 }
 0x11d   : > { %v4821_v39 = vadd.f32 %v4820_v35, %v4819_v31  ;;  %v4822_v40 = vpop.f32.mrb[18].mxu1  ;;  %v4711_v42 = vpop.f32.mrb[19].mxu0 }
 0x11e   : > { %v4712_v45 = vadd.f32 %v4711_v42, %v4710_v36  ;;  %v4823_v46 = vpop.f32.mrb[19].mxu1 }
 0x11f   : > { %v6188_v47 = vadd.f32 %v4821_v39, %v4709_v34  ;;  %v4824_v48 = vadd.f32 %v4823_v46, %v4822_v40  ;;  %3224 = vmatmul.mubr.bf16.gmra.mrb[124].mxu0 %v4524_v33  ;;  %v4306_v33 = vcombine.low %v210_v56, %v218_v57  ;;  %v4321_v34 = vcombine.high %v6217_v13, %v6225_v16  ;;  %v5676_v39 = vld [vmem:[%s6777_s1 + $0x310] sm:$0xff]   ;;  %v6277_v57 = vld [vmem:[%s5834_s29 + $0x1e8] sm:$0xff] }
 0x120   : > { %3385 = vmatmul.mubr.bf16.gmra.mrb[124].mxu1 %v4526_v37  ;;  %3425 = vmatprep.mubr.bf16.mxu0 %v4289_v38  ;;  %v4323_v38 = vcombine.high %v6234_v22, %v6237_v24 }
 0x121   : > { %v6190_v49 = vadd.f32 %v4824_v48, %v4712_v45  ;;  %3586 = vmatprep.mubr.bf16.mxu1 %v4291_v44  ;;  %v5678_v44 = vld [vmem:[%s6777_s1 + $0x390] sm:$0xff]   ;;  %v5679_v45 = vld [vmem:[%s6777_s1 + $0x358] sm:$0xff]  }
 0x122   : > { %v4713_v50 = vpop.f32.mrb[20].mxu0 }
 0x123   : > { %v4825_v53 = vpop.f32.mrb[20].mxu1  ;;  %v4714_v54 = vpop.f32.mrb[21].mxu0 }
 0x124   : > { %v4715_v58 = vadd.f32 %v4714_v54, %v4713_v50  ;;  %v4826_v59 = vpop.f32.mrb[21].mxu1  ;;  %v4716_v60 = vpop.f32.mrb[22].mxu0  ;;  %v5681_v50 = vld [vmem:[%s6777_s1 + $0x3d8] sm:$0xff]   ;;  %v6271_v54 = vld [vmem:[%s5834_s29 + $0x1a8] sm:$0xff] }
 0x125   : > { %v4827_v0 = vadd.f32 %v4826_v59, %v4825_v53  ;;  %v4828_v2 = vpop.f32.mrb[22].mxu1  ;;  %v4717_v3 = vpop.f32.mrb[23].mxu0  ;;  %v6268_v53 = vld [vmem:[%s5834_s29 + $0x1e0] sm:$0xff] }
 0x126   : > { %v4718_v6 = vadd.f32 %v4717_v3, %v4716_v60  ;;  %v4829_v7 = vpop.f32.mrb[23].mxu1  ;;  %v5683_v59 = vld [vmem:[%s6777_s1 + $0x360] sm:$0xff]  }
 0x127   : > { %v6211_v10 = vadd.f32 %v4827_v0, %v4715_v58  ;;  %v4830_v11 = vadd.f32 %v4829_v7, %v4828_v2  ;;  %3426 = vmatmul.mubr.bf16.vlgmr.msra.gmra.mrb[128].mxu0 %v4288_v55  ;;  %v5680_v55 = vld [vmem:[%s6777_s1 + $0x318] sm:$0xff]   ;;  %v5685_v0 = vld [vmem:[%s6777_s1 + $0x3e0] sm:$0xff]  }
 0x128   : > { %3587 = vmatmul.mubr.bf16.vlgmr.msra.gmra.mrb[128].mxu1 %v4290_v61  ;;  %5340 = vmatpush3.bf16.msra.mxu0 %v5668_v62  ;;  %v5682_v58 = vld [vmem:[%s6777_s1 + $0x398] sm:$0xff]   ;;  %v4320_v62 = vcombine.low %v6217_v13, %v6225_v16  ;;  %v5686_v16 = vld [vmem:[%s6777_s1 + $0x3a0] sm:$0xff]  }
 0x129   : > { %v6222_v15 = vadd.f32 %v4830_v11, %v4718_v6  ;;  %5452 = vmatpush3.bf16.msra.mxu1 %v5670_v4  ;;  %3433 = vmatprep.mubr.bf16.mxu0 %v4305_v5  ;;  %v4322_v5 = vcombine.low %v6234_v22, %v6237_v24  ;;  %v4337_v6 = vcombine.high %v6263_v51, %v6268_v53  ;;  %v5689_v22 = vld [vmem:[%s6777_s1 + $0x3e8] sm:$0xff]   ;;  %v6311_v24 = vld [vmem:[%s5834_s29 + $0x220] sm:$0xff] }
 0x12a   : > { %v4719_v20 = vpop.f32.mrb[24].mxu0  ;;  %3594 = vmatprep.mubr.bf16.mxu1 %v4307_v8  ;;  %5341 = vmatprep.subr.bf16.mxu0 %v5671_v9  ;;  %v4339_v11 = vcombine.high %v6271_v54, %v6277_v57 }
 0x12b   : > { %v4831_v27 = vpop.f32.mrb[24].mxu1  ;;  %v4720_v28 = vpop.f32.mrb[25].mxu0  ;;  %5453 = vmatprep.subr.bf16.mxu1 %v5673_v12  ;;  %v5684_v12 = vld [vmem:[%s6777_s1 + $0x320] sm:$0xff]  }
 0x12c   : > { %v4721_v30 = vadd.f32 %v4720_v28, %v4719_v20  ;;  %v4832_v31 = vpop.f32.mrb[25].mxu1  ;;  %v4722_v32 = vpop.f32.mrb[26].mxu0  ;;  %5342 = vmatpush3.bf16.msra.mxu0 %v5672_v14  ;;  %v6319_v28 = vld [vmem:[%s5834_s29 + $0x228] sm:$0xff] }
 0x12d   : > { %v4833_v35 = vadd.f32 %v4832_v31, %v4831_v27  ;;  %v4834_v36 = vpop.f32.mrb[26].mxu1  ;;  %v4723_v37 = vpop.f32.mrb[27].mxu0  ;;  %5454 = vmatpush3.bf16.msra.mxu1 %v5674_v17  ;;  %5343 = vmatprep.subr.bf16.mxu0 %v5675_v18  ;;  %v5687_v17 = vld [vmem:[%s6777_s1 + $0x368] sm:$0xff]   ;;  %v6316_v27 = vld [vmem:[%s5834_s29 + $0x260] sm:$0xff] }
 0x12e   : > { %v4724_v40 = vadd.f32 %v4723_v37, %v4722_v32  ;;  %v4835_v42 = vpop.f32.mrb[27].mxu1  ;;  %5455 = vmatprep.subr.bf16.mxu1 %v5677_v26  ;;  %v6325_v31 = vld [vmem:[%s5834_s29 + $0x268] sm:$0xff]  ;;  %v5693_v37 = vld [vmem:[%s6777_s1 + $0x3f0] sm:$0xff]  }
 0x12f   : > { %v6257_v46 = vadd.f32 %v4833_v35, %v4721_v30  ;;  %v4836_v48 = vadd.f32 %v4835_v42, %v4834_v36  ;;  %3434 = vmatmul.mubr.bf16.gmra.mrb[132].mxu0 %v4304_v29  ;;  %v5688_v29 = vld [vmem:[%s6777_s1 + $0x328] sm:$0xff]   ;;  %v4336_v36 = vcombine.low %v6263_v51, %v6268_v53  ;;  %v4338_v42 = vcombine.low %v6271_v54, %v6277_v57  ;;  %v5692_v53 = vld [vmem:[%s6777_s1 + $0x330] sm:$0xff]   ;;  %v5695_v57 = vld [vmem:[%s6777_s1 + $0x378] sm:$0xff]  }
 0x130   : > { %3595 = vmatmul.mubr.bf16.gmra.mrb[132].mxu1 %v4306_v33  ;;  %3441 = vmatprep.mubr.bf16.mxu0 %v4321_v34  ;;  %v5690_v32 = vld [vmem:[%s6777_s1 + $0x3a8] sm:$0xff]   ;;  %v5691_v33 = vld [vmem:[%s6777_s1 + $0x370] sm:$0xff]   ;;  %v4355_v51 = vcombine.high %v6319_v28, %v6325_v31 }
 0x131   : > { %v6265_v52 = vadd.f32 %v4836_v48, %v4724_v40  ;;  %3602 = vmatprep.mubr.bf16.mxu1 %v4323_v38  ;;  %5344 = vmatpush3.bf16.msra.mxu0 %v5676_v39  ;;  %v5694_v54 = vld [vmem:[%s6777_s1 + $0x3b0] sm:$0xff]  }
 0x132   : > { %v4725_v56 = vpop.f32.mrb[28].mxu0  ;;  %5456 = vmatpush3.bf16.msra.mxu1 %v5678_v44  ;;  %5345 = vmatprep.subr.bf16.mxu0 %v5679_v45  ;;  %v4353_v44 = vcombine.high %v6311_v24, %v6316_v27 }
 0x133   : > { %v4837_v60 = vpop.f32.mrb[28].mxu1  ;;  %v4726_v61 = vpop.f32.mrb[29].mxu0  ;;  %5457 = vmatprep.subr.bf16.mxu1 %v5681_v50 }
 0x134   : > { %v4727_v2 = vadd.f32 %v4726_v61, %v4725_v56  ;;  %v4838_v3 = vpop.f32.mrb[29].mxu1  ;;  %v4728_v4 = vpop.f32.mrb[30].mxu0 }
 0x135   : > { %v4839_v7 = vadd.f32 %v4838_v3, %v4837_v60  ;;  %v4840_v8 = vpop.f32.mrb[30].mxu1  ;;  %v4729_v9 = vpop.f32.mrb[31].mxu0  ;;  %5346 = vmatpush3.bf16.msra.mxu0 %v5680_v55  ;;  %v5697_v60 = vld [vmem:[%s6777_s1 + $0x3f8] sm:$0xff]  }
 0x136   : > { %v4730_v13 = vadd.f32 %v4729_v9, %v4728_v4  ;;  %v4841_v14 = vpop.f32.mrb[31].mxu1  ;;  %5458 = vmatpush3.bf16.msra.mxu1 %v5682_v58  ;;  %5347 = vmatprep.subr.bf16.mxu0 %v5683_v59  ;;  %v274_v4 = vld [vmem:[%s5834_s29 + $0x2a8] sm:$0xff]  ;;  %v4352_v9 = vcombine.low %v6311_v24, %v6316_v27 }
 0x137   : > { %v6305_v18 = vadd.f32 %v4839_v7, %v4727_v2  ;;  %v4842_v20 = vadd.f32 %v4841_v14, %v4840_v8  ;;  %3442 = vmatmul.mubr.bf16.gmra.mrb[136].mxu0 %v4320_v62  ;;  %5459 = vmatprep.subr.bf16.mxu1 %v5685_v0  ;;  %v273_v62 = vld [vmem:[%s5834_s29 + $0x2a0] sm:$0xff]  ;;  %v5696_v2 = vld [vmem:[%s6777_s1 + $0x338] sm:$0xff]   ;;  %v4354_v14 = vcombine.low %v6319_v28, %v6325_v31 }
 0x138   : > { %3603 = vmatmul.mubr.bf16.gmra.mrb[136].mxu1 %v4322_v5  ;;  %3449 = vmatprep.mubr.bf16.mxu0 %v4337_v6  ;;  %v281_v0 = vld [vmem:[%s5834_s29 + $0x2e0] sm:$0xff]  ;;  %v282_v5 = vld [vmem:[%s5834_s29 + $0x2e8] sm:$0xff]  ;;  %v5698_v6 = vld [vmem:[%s6777_s1 + $0x3b8] sm:$0xff]  }
 0x139   : > { %v6313_v26 = vadd.f32 %v4842_v20, %v4730_v13  ;;  %3610 = vmatprep.mubr.bf16.mxu1 %v4339_v11  ;;  %5348 = vmatpush3.bf16.msra.mxu0 %v5684_v12  ;;  %v289_v31 = vld [vmem:[%s5834_s29 + $0x320] sm:$0xff] }
 0x13a   : > { %v4731_v30 = vpop.f32.mrb[32].mxu0  ;;  %5460 = vmatpush3.bf16.msra.mxu1 %v5686_v16  ;;  %5349 = vmatprep.subr.bf16.mxu0 %v5687_v17  ;;  %v4369_v16 = vcombine.high %v273_v62, %v281_v0 }
 0x13b   : > { %v4843_v34 = vpop.f32.mrb[32].mxu1  ;;  %v4732_v35 = vpop.f32.mrb[33].mxu0  ;;  %5461 = vmatprep.subr.bf16.mxu1 %v5689_v22 }
 0x13c   : > { %v4733_v38 = vadd.f32 %v4732_v35, %v4731_v30  ;;  %v4844_v39 = vpop.f32.mrb[33].mxu1  ;;  %v4734_v40 = vpop.f32.mrb[34].mxu0  ;;  %v290_v35 = vld [vmem:[%s5834_s29 + $0x328] sm:$0xff] }
 0x13d   : > { %v4845_v45 = vadd.f32 %v4844_v39, %v4843_v34  ;;  %v4846_v48 = vpop.f32.mrb[34].mxu1  ;;  %v4735_v50 = vpop.f32.mrb[35].mxu0  ;;  %5350 = vmatpush3.bf16.msra.mxu0 %v5688_v29  ;;  %v4371_v29 = vcombine.high %v274_v4, %v282_v5  ;;  %v4368_v39 = vcombine.low %v273_v62, %v281_v0  ;;  %v305_v62 = vld [vmem:[%s5834_s29 + $0x3a0] sm:$0xff] }
 0x13e   : > { %v4736_v55 = vadd.f32 %v4735_v50, %v4734_v40  ;;  %v4847_v56 = vpop.f32.mrb[35].mxu1  ;;  %5462 = vmatpush3.bf16.msra.mxu1 %v5690_v32  ;;  %5351 = vmatprep.subr.bf16.mxu0 %v5691_v33  ;;  %v297_v33 = vld [vmem:[%s5834_s29 + $0x360] sm:$0xff] }
 0x13f   : > { %v6353_v58 = vadd.f32 %v4845_v45, %v4733_v38  ;;  %v4848_v59 = vadd.f32 %v4847_v56, %v4846_v48  ;;  %3450 = vmatmul.mubr.bf16.gmra.mrb[140].mxu0 %v4336_v36  ;;  %5463 = vmatprep.subr.bf16.mxu1 %v5693_v37  ;;  %v298_v36 = vld [vmem:[%s5834_s29 + $0x368] sm:$0xff]  ;;  %v4370_v45 = vcombine.low %v274_v4, %v282_v5  ;;  %v313_v0 = vld [vmem:[%s5834_s29 + $0x3e0] sm:$0xff] }
 0x140   : > { %3611 = vmatmul.mubr.bf16.gmra.mrb[140].mxu1 %v4338_v42  ;;  %3457 = vmatprep.mubr.bf16.mxu0 %v4353_v44  ;;  %v4385_v48 = vcombine.high %v289_v31, %v297_v33  ;;  %v314_v4 = vld [vmem:[%s5834_s29 + $0x3e8] sm:$0xff] }
 0x141   : > { %v6358_v61 = vadd.f32 %v4848_v59, %v4736_v55  ;;  %3618 = vmatprep.mubr.bf16.mxu1 %v4355_v51  ;;  %5352 = vmatpush3.bf16.msra.mxu0 %v5692_v53  ;;  %v4387_v55 = vcombine.high %v290_v35, %v298_v36 }
 0x142   : > { %v4737_v3 = vpop.f32.mrb[36].mxu0  ;;  %5464 = vmatpush3.bf16.msra.mxu1 %v5694_v54  ;;  %5353 = vmatprep.subr.bf16.mxu0 %v5695_v57 }
 0x143   : > { %v4849_v7 = vpop.f32.mrb[36].mxu1  ;;  %v4738_v8 = vpop.f32.mrb[37].mxu0  ;;  %5465 = vmatprep.subr.bf16.mxu1 %v5697_v60 }
 0x144   : > { %v4739_v11 = vadd.f32 %v4738_v8, %v4737_v3  ;;  %v4850_v12 = vpop.f32.mrb[37].mxu1  ;;  %v4740_v13 = vpop.f32.mrb[38].mxu0  ;;  %v306_v3 = vld [vmem:[%s5834_s29 + $0x3a8] sm:$0xff] }
 0x145   : > { %v4851_v17 = vadd.f32 %v4850_v12, %v4849_v7  ;;  %v4852_v20 = vpop.f32.mrb[38].mxu1  ;;  %v4741_v22 = vpop.f32.mrb[39].mxu0  ;;  %5354 = vmatpush3.bf16.msra.mxu0 %v5696_v2  ;;  %v4384_v7 = vcombine.low %v289_v31, %v297_v33  ;;  %v4386_v12 = vcombine.low %v290_v35, %v298_v36  ;;  %v321_v31 = vld [vmem:[%s5834_s29 + $0x420] sm:$0xff]  ;;  %v322_v35 = vld [vmem:[%s5834_s29 + $0x428] sm:$0xff] }
 0x146   : > { %v4742_v30 = vadd.f32 %v4741_v22, %v4740_v13  ;;  %v4853_v32 = vpop.f32.mrb[39].mxu1  ;;  %5466 = vmatpush3.bf16.msra.mxu1 %v5698_v6  ;;  %v4401_v13 = vcombine.high %v305_v62, %v313_v0  ;;  %v329_v33 = vld [vmem:[%s5834_s29 + $0x460] sm:$0xff]  ;;  %v330_v36 = vld [vmem:[%s5834_s29 + $0x468] sm:$0xff] }
 0x147   : > { %v6374_v24 = vadd.f32 %v4851_v17, %v4739_v11  ;;  %v4854_v27 = vadd.f32 %v4853_v32, %v4852_v20  ;;  %3458 = vmatmul.mubr.bf16.gmra.mrb[144].mxu0 %v4352_v9  ;;  %v4403_v20 = vcombine.high %v306_v3, %v314_v4 }
 0x148   : > { %3619 = vmatmul.mubr.bf16.gmra.mrb[144].mxu1 %v4354_v14  ;;  %3465 = vmatprep.mubr.bf16.mxu0 %v4369_v16 }
 0x149   : > { %v6376_v28 = vadd.f32 %v4854_v27, %v4742_v30  ;;  %3626 = vmatprep.mubr.bf16.mxu1 %v4371_v29 }
 0x14a   : > { %v4743_v34 = vpop.f32.mrb[40].mxu0 }
 0x14b   : > { %v4855_v37 = vpop.f32.mrb[40].mxu1  ;;  %v4744_v38 = vpop.f32.mrb[41].mxu0 }
 0x14c   : > { %v4745_v40 = vadd.f32 %v4744_v38, %v4743_v34  ;;  %v4856_v42 = vpop.f32.mrb[41].mxu1  ;;  %v4746_v44 = vpop.f32.mrb[42].mxu0 }
 0x14d   : > { %v4857_v50 = vadd.f32 %v4856_v42, %v4855_v37  ;;  %v4858_v51 = vpop.f32.mrb[42].mxu1  ;;  %v4747_v53 = vpop.f32.mrb[43].mxu0 }
 0x14e   : > { %v4748_v56 = vadd.f32 %v4747_v53, %v4746_v44  ;;  %v4859_v54 = vpop.f32.mrb[43].mxu1 }
 0x14f   : > { %v6382_v57 = vadd.f32 %v4857_v50, %v4745_v40  ;;  %v4860_v59 = vadd.f32 %v4859_v54, %v4858_v51  ;;  %3466 = vmatmul.mubr.bf16.gmra.mrb[148].mxu0 %v4368_v39  ;;  %v4400_v39 = vcombine.low %v305_v62, %v313_v0  ;;  %v337_v0 = vld [vmem:[%s5834_s29 + $0x4a0] sm:$0xff] }
 0x150   : > { %3627 = vmatmul.mubr.bf16.gmra.mrb[148].mxu1 %v4370_v45  ;;  %3473 = vmatprep.mubr.bf16.mxu0 %v4385_v48  ;;  %v4402_v45 = vcombine.low %v306_v3, %v314_v4  ;;  %v4417_v48 = vcombine.high %v321_v31, %v329_v33  ;;  %v345_v3 = vld [vmem:[%s5834_s29 + $0x4e0] sm:$0xff] }
 0x151   : > { %v6384_v60 = vadd.f32 %v4860_v59, %v4748_v56  ;;  %3634 = vmatprep.mubr.bf16.mxu1 %v4387_v55  ;;  %v4419_v55 = vcombine.high %v322_v35, %v330_v36 }
 0x152   : > { %v4749_v2 = vpop.f32.mrb[44].mxu0 }
 0x153   : > { %v4861_v5 = vpop.f32.mrb[44].mxu1  ;;  %v4750_v6 = vpop.f32.mrb[45].mxu0 }
 0x154   : > { %v4751_v8 = vadd.f32 %v4750_v6, %v4749_v2  ;;  %v4862_v9 = vpop.f32.mrb[45].mxu1  ;;  %v4752_v11 = vpop.f32.mrb[46].mxu0  ;;  %v346_v6 = vld [vmem:[%s5834_s29 + $0x4e8] sm:$0xff] }
 0x155   : > { %v4863_v14 = vadd.f32 %v4862_v9, %v4861_v5  ;;  %v4864_v16 = vpop.f32.mrb[46].mxu1  ;;  %v4753_v17 = vpop.f32.mrb[47].mxu0  ;;  %v338_v5 = vld [vmem:[%s5834_s29 + $0x4a8] sm:$0xff]  ;;  %v4416_v9 = vcombine.low %v321_v31, %v329_v33  ;;  %v353_v33 = vld [vmem:[%s5834_s29 + $0x520] sm:$0xff] }
 0x156   : > { %v4754_v22 = vadd.f32 %v4753_v17, %v4752_v11  ;;  %v4865_v29 = vpop.f32.mrb[47].mxu1 }
 0x157   : > { %v6390_v30 = vadd.f32 %v4863_v14, %v4751_v8  ;;  %v4866_v32 = vadd.f32 %v4865_v29, %v4864_v16  ;;  %3474 = vmatmul.mubr.bf16.gmra.mrb[152].mxu0 %v4384_v7  ;;  %v4418_v14 = vcombine.low %v322_v35, %v330_v36  ;;  %v4433_v16 = vcombine.high %v337_v0, %v345_v3  ;;  %v361_v35 = vld [vmem:[%s5834_s29 + $0x560] sm:$0xff] }
 0x158   : > { %3635 = vmatmul.mubr.bf16.gmra.mrb[152].mxu1 %v4386_v12  ;;  %3481 = vmatprep.mubr.bf16.mxu0 %v4401_v13  ;;  %v4435_v29 = vcombine.high %v338_v5, %v346_v6 }
 0x159   : > { %v6392_v27 = vadd.f32 %v4866_v32, %v4754_v22  ;;  %3642 = vmatprep.mubr.bf16.mxu1 %v4403_v20 }
 0x15a   : > { %v4755_v34 = vpop.f32.mrb[48].mxu0 }
 0x15b   : > { %v4867_v37 = vpop.f32.mrb[48].mxu1  ;;  %v4756_v38 = vpop.f32.mrb[49].mxu0 }
 0x15c   : > { %v4757_v40 = vadd.f32 %v4756_v38, %v4755_v34  ;;  %v4868_v42 = vpop.f32.mrb[49].mxu1  ;;  %v4758_v44 = vpop.f32.mrb[50].mxu0 }
 0x15d   : > { %v4869_v50 = vadd.f32 %v4868_v42, %v4867_v37  ;;  %v4870_v51 = vpop.f32.mrb[50].mxu1  ;;  %v4759_v53 = vpop.f32.mrb[51].mxu0 }
 0x15e   : > { %v4760_v56 = vadd.f32 %v4759_v53, %v4758_v44  ;;  %v4871_v54 = vpop.f32.mrb[51].mxu1  ;;  %v4434_v53 = vcombine.low %v338_v5, %v346_v6  ;;  %v377_v5 = vld [vmem:[%s5834_s29 + $0x5e0] sm:$0xff] }
 0x15f   : > { %v6398_v59 = vadd.f32 %v4869_v50, %v4757_v40  ;;  %v4872_v2 = vadd.f32 %v4871_v54, %v4870_v51  ;;  %3482 = vmatmul.mubr.bf16.gmra.mrb[156].mxu0 %v4400_v39  ;;  %v354_v39 = vld [vmem:[%s5834_s29 + $0x528] sm:$0xff] }
 0x160   : > { %3643 = vmatmul.mubr.bf16.gmra.mrb[156].mxu1 %v4402_v45  ;;  %3489 = vmatprep.mubr.bf16.mxu0 %v4417_v48  ;;  %v362_v40 = vld [vmem:[%s5834_s29 + $0x568] sm:$0xff]  ;;  %v4432_v45 = vcombine.low %v337_v0, %v345_v3  ;;  %v369_v3 = vld [vmem:[%s5834_s29 + $0x5a0] sm:$0xff] }
 0x161   : > { %v6400_v62 = vadd.f32 %v4872_v2, %v4760_v56  ;;  %3650 = vmatprep.mubr.bf16.mxu1 %v4419_v55  ;;  %v4449_v55 = vcombine.high %v353_v33, %v361_v35 }
 0x162   : > { %v4761_v4 = vpop.f32.mrb[52].mxu0 }
 0x163   : > { %v4873_v7 = vpop.f32.mrb[52].mxu1  ;;  %v4762_v8 = vpop.f32.mrb[53].mxu0 }
 0x164   : > { %v4763_v11 = vadd.f32 %v4762_v8, %v4761_v4  ;;  %v4874_v12 = vpop.f32.mrb[53].mxu1  ;;  %v4764_v13 = vpop.f32.mrb[54].mxu0  ;;  %v4451_v4 = vcombine.high %v354_v39, %v362_v40 }
 0x165   : > { %v4875_v17 = vadd.f32 %v4874_v12, %v4873_v7  ;;  %v4876_v20 = vpop.f32.mrb[54].mxu1  ;;  %v4765_v22 = vpop.f32.mrb[55].mxu0  ;;  %v370_v12 = vld [vmem:[%s5834_s29 + $0x5a8] sm:$0xff] }
 0x166   : > { %v4766_v32 = vadd.f32 %v4765_v22, %v4764_v13  ;;  %v4877_v34 = vpop.f32.mrb[55].mxu1  ;;  %v378_v13 = vld [vmem:[%s5834_s29 + $0x5e8] sm:$0xff] }
 0x167   : > { %v6406_v37 = vadd.f32 %v4875_v17, %v4763_v11  ;;  %v4878_v38 = vadd.f32 %v4877_v34, %v4876_v20  ;;  %3490 = vmatmul.mubr.bf16.gmra.mrb[160].mxu0 %v4416_v9  ;;  %v4448_v17 = vcombine.low %v353_v33, %v361_v35  ;;  %v4465_v34 = vcombine.high %v369_v3, %v377_v5  ;;  %v385_v35 = vld [vmem:[%s5834_s29 + $0x620] sm:$0xff] }
 0x168   : > { %3651 = vmatmul.mubr.bf16.gmra.mrb[160].mxu1 %v4418_v14  ;;  %3497 = vmatprep.mubr.bf16.mxu0 %v4433_v16 }
 0x169   : > { %v6408_v31 = vadd.f32 %v4878_v38, %v4766_v32  ;;  %3658 = vmatprep.mubr.bf16.mxu1 %v4435_v29  ;;  %v4450_v32 = vcombine.low %v354_v39, %v362_v40  ;;  %v393_v39 = vld [vmem:[%s5834_s29 + $0x660] sm:$0xff] }
 0x16a   : > { %v4767_v36 = vpop.f32.mrb[56].mxu0 }
 0x16b   : > { %v4879_v42 = vpop.f32.mrb[56].mxu1  ;;  %v4768_v44 = vpop.f32.mrb[57].mxu0 }
 0x16c   : > { %v4769_v48 = vadd.f32 %v4768_v44, %v4767_v36  ;;  %v4880_v50 = vpop.f32.mrb[57].mxu1  ;;  %v4770_v51 = vpop.f32.mrb[58].mxu0  ;;  %v4467_v44 = vcombine.high %v370_v12, %v378_v13 }
 0x16d   : > { %v4881_v56 = vadd.f32 %v4880_v50, %v4879_v42  ;;  %v4882_v54 = vpop.f32.mrb[58].mxu1  ;;  %v4771_v2 = vpop.f32.mrb[59].mxu0 }
 0x16e   : > { %v4772_v7 = vadd.f32 %v4771_v2, %v4770_v51  ;;  %v4883_v8 = vpop.f32.mrb[59].mxu1  ;;  %v4464_v2 = vcombine.low %v369_v3, %v377_v5 }
 0x16f   : > { %v6414_v9 = vadd.f32 %v4881_v56, %v4769_v48  ;;  %v4884_v11 = vadd.f32 %v4883_v8, %v4882_v54  ;;  %3498 = vmatmul.mubr.bf16.gmra.mrb[164].mxu0 %v4432_v45 }
 0x170   : > { %3659 = vmatmul.mubr.bf16.gmra.mrb[164].mxu1 %v4434_v53  ;;  %3505 = vmatprep.mubr.bf16.mxu0 %v4449_v55  ;;  %v386_v53 = vld [vmem:[%s5834_s29 + $0x628] sm:$0xff] }
 0x171   : > { %v6416_v0 = vadd.f32 %v4884_v11, %v4772_v7  ;;  %3666 = vmatprep.mubr.bf16.mxu1 %v4451_v4  ;;  %v394_v55 = vld [vmem:[%s5834_s29 + $0x668] sm:$0xff]  ;;  %v4466_v11 = vcombine.low %v370_v12, %v378_v13  ;;  %v401_v12 = vld [vmem:[%s5834_s29 + $0x6a0] sm:$0xff] }
 0x172   : > { %v4773_v6 = vpop.f32.mrb[60].mxu0  ;;  %v409_v13 = vld [vmem:[%s5834_s29 + $0x6e0] sm:$0xff] }
 0x173   : > { %v4885_v14 = vpop.f32.mrb[60].mxu1  ;;  %v4774_v16 = vpop.f32.mrb[61].mxu0 }
 0x174   : > { %v4775_v20 = vadd.f32 %v4774_v16, %v4773_v6  ;;  %v4886_v22 = vpop.f32.mrb[61].mxu1  ;;  %v4776_v29 = vpop.f32.mrb[62].mxu0  ;;  %v4481_v6 = vcombine.high %v385_v35, %v393_v39 }
 0x175   : > { %v4887_v38 = vadd.f32 %v4886_v22, %v4885_v14  ;;  %v4888_v36 = vpop.f32.mrb[62].mxu1  ;;  %v4777_v42 = vpop.f32.mrb[63].mxu0 }
 0x176   : > { %v4778_v45 = vadd.f32 %v4777_v42, %v4776_v29  ;;  %v4889_v48 = vpop.f32.mrb[63].mxu1  ;;  %v402_v42 = vld [vmem:[%s5834_s29 + $0x6a8] sm:$0xff] }
 0x177   : > { %v6422_v50 = vadd.f32 %v4887_v38, %v4775_v20  ;;  %v4890_v51 = vadd.f32 %v4889_v48, %v4888_v36  ;;  %3506 = vmatmul.mubr.bf16.gmra.mrb[168].mxu0 %v4448_v17  ;;  %v4483_v20 = vcombine.high %v386_v53, %v394_v55  ;;  %v4480_v48 = vcombine.low %v385_v35, %v393_v39 }
 0x178   : > { %3667 = vmatmul.mubr.bf16.gmra.mrb[168].mxu1 %v4450_v32  ;;  %3513 = vmatprep.mubr.bf16.mxu0 %v4465_v34 }
 0x179   : > { %v6424_v33 = vadd.f32 %v4890_v51, %v4778_v45  ;;  %3674 = vmatprep.mubr.bf16.mxu1 %v4467_v44  ;;  %v410_v44 = vld [vmem:[%s5834_s29 + $0x6e8] sm:$0xff] }
 0x17a   : > { %v4907_v40 = vpop.f32.mrb[64].mxu0 }
 0x17b   : > { %v5019_v56 = vpop.f32.mrb[64].mxu1  ;;  %v4908_v54 = vpop.f32.mrb[65].mxu0 }
 0x17c   : > { %v4909_v4 = vadd.f32 %v4908_v54, %v4907_v40  ;;  %v5020_v7 = vpop.f32.mrb[65].mxu1  ;;  %v4910_v8 = vpop.f32.mrb[66].mxu0  ;;  %v4482_v54 = vcombine.low %v386_v53, %v394_v55  ;;  %v417_v53 = vld [vmem:[%s5834_s29 + $0x720] sm:$0xff] }
 0x17d   : > { %v5021_v14 = vadd.f32 %v5020_v7, %v5019_v56  ;;  %v5022_v16 = vpop.f32.mrb[66].mxu1  ;;  %v4911_v17 = vpop.f32.mrb[67].mxu0  ;;  %v425_v55 = vld [vmem:[%s5834_s29 + $0x760] sm:$0xff] }
 0x17e   : > { %v3106_v22 = vadd.f32 %v4909_v4, %v6156_v19  ;;  %v4912_v29 = vadd.f32 %v4911_v17, %v4910_v8  ;;  %v5023_v32 = vpop.f32.mrb[67].mxu1  ;;  %v4499_v8 = vcombine.high %v402_v42, %v410_v44 }
 0x17f   : > { %v5024_v34 = vadd.f32 %v5023_v32, %v5022_v16  ;;  %3514 = vmatmul.mubr.bf16.gmra.mrb[172].mxu0 %v4464_v2  ;;  %v4497_v2 = vcombine.high %v401_v12, %v409_v13 }
 0x180   : > { %v6431_v3 = vadd.f32 %v5021_v14, %v3106_v22  ;;  %v3109_v5 = vadd.f32 %v4912_v29, %v6158_v21  ;;  %3675 = vmatmul.mubr.bf16.gmra.mrb[172].mxu1 %v4466_v11  ;;  %3521 = vmatprep.mubr.bf16.mxu0 %v4481_v6  ;;  %v418_v22 = vld [vmem:[%s5834_s29 + $0x728] sm:$0xff] }
 0x181   : > { %3682 = vmatprep.mubr.bf16.mxu1 %v4483_v20  ;;  %v426_v29 = vld [vmem:[%s5834_s29 + $0x768] sm:$0xff] }
 0x182   : > { %v6436_v38 = vadd.f32 %v5024_v34, %v3109_v5  ;;  %v4913_v36 = vpop.f32.mrb[68].mxu0  ;;  %v4496_v34 = vcombine.low %v401_v12, %v409_v13 }
 0x183   : > { %v5025_v45 = vpop.f32.mrb[68].mxu1  ;;  %v4914_v19 = vpop.f32.mrb[69].mxu0 }
 0x184   : > { %v4915_v51 = vadd.f32 %v4914_v19, %v4913_v36  ;;  %v5026_v40 = vpop.f32.mrb[69].mxu1  ;;  %v4916_v56 = vpop.f32.mrb[70].mxu0  ;;  %v4498_v19 = vcombine.low %v402_v42, %v410_v44  ;;  %v433_v42 = vld [vmem:[%s5834_s29 + $0x7a0] sm:$0xff] }
 0x185   : > { %v5027_v21 = vadd.f32 %v5026_v40, %v5025_v45  ;;  %v5028_v4 = vpop.f32.mrb[70].mxu1  ;;  %v4917_v7 = vpop.f32.mrb[71].mxu0  ;;  %v441_v44 = vld [vmem:[%s5834_s29 + $0x7e0] sm:$0xff] }
 0x186   : > { %v3114_v11 = vadd.f32 %v4915_v51, %v6164_v41  ;;  %v4918_v6 = vadd.f32 %v4917_v7, %v4916_v56  ;;  %v5029_v14 = vpop.f32.mrb[71].mxu1  ;;  %v4515_v56 = vcombine.high %v418_v22, %v426_v29 }
 0x187   : > { %v5030_v16 = vadd.f32 %v5029_v14, %v5028_v4  ;;  %3522 = vmatmul.mubr.bf16.gmra.mrb[176].mxu0 %v4480_v48  ;;  %v4513_v48 = vcombine.high %v417_v53, %v425_v55 }
 0x188   : > { %v6441_v35 = vadd.f32 %v5027_v21, %v3114_v11  ;;  %v3117_v39 = vadd.f32 %v4918_v6, %v6166_v43  ;;  %3683 = vmatmul.mubr.bf16.gmra.mrb[176].mxu1 %v4482_v54  ;;  %3529 = vmatprep.mubr.bf16.mxu0 %v4497_v2  ;;  %v434_v11 = vld [vmem:[%s5834_s29 + $0x7a8] sm:$0xff] }
 0x189   : > { %3690 = vmatprep.mubr.bf16.mxu1 %v4499_v8  ;;  %v442_v6 = vld [vmem:[%s5834_s29 + $0x7e8] sm:$0xff] }
 0x18a   : > { %v6446_v17 = vadd.f32 %v5030_v16, %v3117_v39  ;;  %v4919_v20 = vpop.f32.mrb[72].mxu0  ;;  %v4512_v16 = vcombine.low %v417_v53, %v425_v55 }
 0x18b   : > { %v5031_v32 = vpop.f32.mrb[72].mxu1  ;;  %v4920_v41 = vpop.f32.mrb[73].mxu0 }
 0x18c   : > { %v4921_v5 = vadd.f32 %v4920_v41, %v4919_v20  ;;  %v5032_v36 = vpop.f32.mrb[73].mxu1  ;;  %v4922_v45 = vpop.f32.mrb[74].mxu0  ;;  %v4514_v41 = vcombine.low %v418_v22, %v426_v29  ;;  %v195_v22 = vld [vmem:[%s5834_s29 + $0x30] sm:$0xff] }
 0x18d   : > { %v5033_v43 = vadd.f32 %v5032_v36, %v5031_v32  ;;  %v5034_v51 = vpop.f32.mrb[74].mxu1  ;;  %v4923_v40 = vpop.f32.mrb[75].mxu0  ;;  %v203_v29 = vld [vmem:[%s5834_s29 + $0x70] sm:$0xff] }
 0x18e   : > { %v3122_v54 = vadd.f32 %v4921_v5, %v6172_v63  ;;  %v4924_v2 = vadd.f32 %v4923_v40, %v4922_v45  ;;  %v5035_v21 = vpop.f32.mrb[75].mxu1  ;;  %v4531_v45 = vcombine.high %v434_v11, %v442_v6 }
 0x18f   : > { %v5036_v4 = vadd.f32 %v5035_v21, %v5034_v51  ;;  %3530 = vmatmul.mubr.bf16.gmra.mrb[180].mxu0 %v4496_v34  ;;  %v4529_v34 = vcombine.high %v433_v42, %v441_v44 }
 0x190   : > { %v6451_v12 = vadd.f32 %v5033_v43, %v3122_v54  ;;  %v3125_v13 = vadd.f32 %v4924_v2, %v6174_v1  ;;  %3691 = vmatmul.mubr.bf16.gmra.mrb[180].mxu1 %v4498_v19  ;;  %3537 = vmatprep.mubr.bf16.mxu0 %v4513_v48  ;;  %v196_v54 = vld [vmem:[%s5834_s29 + $0x38] sm:$0xff] }
 0x191   : > { %3698 = vmatprep.mubr.bf16.mxu1 %v4515_v56  ;;  %v204_v2 = vld [vmem:[%s5834_s29 + $0x78] sm:$0xff] }
 0x192   : > { %v6456_v7 = vadd.f32 %v5036_v4, %v3125_v13  ;;  %v4925_v8 = vpop.f32.mrb[76].mxu0  ;;  %v4528_v4 = vcombine.low %v433_v42, %v441_v44 }
 0x193   : > { %v5037_v14 = vpop.f32.mrb[76].mxu1  ;;  %v4926_v63 = vpop.f32.mrb[77].mxu0 }
 0x194   : > { %v4927_v39 = vadd.f32 %v4926_v63, %v4925_v8  ;;  %v5038_v20 = vpop.f32.mrb[77].mxu1  ;;  %v4928_v32 = vpop.f32.mrb[78].mxu0  ;;  %v4530_v63 = vcombine.low %v434_v11, %v442_v6  ;;  %v211_v11 = vld [vmem:[%s5834_s29 + $0xb0] sm:$0xff] }
 0x195   : > { %v5039_v1 = vadd.f32 %v5038_v20, %v5037_v14  ;;  %v5040_v5 = vpop.f32.mrb[78].mxu1  ;;  %v4929_v36 = vpop.f32.mrb[79].mxu0  ;;  %v219_v6 = vld [vmem:[%s5834_s29 + $0xf0] sm:$0xff] }
 0x196   : > { %v3130_v19 = vadd.f32 %v4927_v39, %v6180_v23  ;;  %v4930_v48 = vadd.f32 %v4929_v36, %v4928_v32  ;;  %v5041_v43 = vpop.f32.mrb[79].mxu1  ;;  %v4295_v32 = vcombine.high %v196_v54, %v204_v2 }
 0x197   : > { %v5042_v51 = vadd.f32 %v5041_v43, %v5040_v5  ;;  %3538 = vmatmul.mubr.bf16.gmra.mrb[184].mxu0 %v4512_v16  ;;  %v4293_v16 = vcombine.high %v195_v22, %v203_v29 }
 0x198   : > { %v6461_v53 = vadd.f32 %v5039_v1, %v3130_v19  ;;  %v3133_v55 = vadd.f32 %v4930_v48, %v6182_v25  ;;  %3699 = vmatmul.mubr.bf16.gmra.mrb[184].mxu1 %v4514_v41  ;;  %3545 = vmatprep.mubr.bf16.mxu0 %v4529_v34  ;;  %v212_v19 = vld [vmem:[%s5834_s29 + $0xb8] sm:$0xff] }
 0x199   : > { %3706 = vmatprep.mubr.bf16.mxu1 %v4531_v45  ;;  %v220_v48 = vld [vmem:[%s5834_s29 + $0xf8] sm:$0xff] }
 0x19a   : > { %v6466_v40 = vadd.f32 %v5042_v51, %v3133_v55  ;;  %v4931_v56 = vpop.f32.mrb[80].mxu0  ;;  %v4292_v51 = vcombine.low %v195_v22, %v203_v29 }
 0x19b   : > { %v5043_v21 = vpop.f32.mrb[80].mxu1  ;;  %v4932_v23 = vpop.f32.mrb[81].mxu0 }
 0x19c   : > { %v4933_v13 = vadd.f32 %v4932_v23, %v4931_v56  ;;  %v5044_v8 = vpop.f32.mrb[81].mxu1  ;;  %v4934_v14 = vpop.f32.mrb[82].mxu0  ;;  %v4294_v23 = vcombine.low %v196_v54, %v204_v2  ;;  %v227_v54 = vld [vmem:[%s5834_s29 + $0x130] sm:$0xff] }
 0x19d   : > { %v5045_v25 = vadd.f32 %v5044_v8, %v5043_v21  ;;  %v5046_v39 = vpop.f32.mrb[82].mxu1  ;;  %v4935_v20 = vpop.f32.mrb[83].mxu0  ;;  %v235_v2 = vld [vmem:[%s5834_s29 + $0x170] sm:$0xff] }
 0x19e   : > { %v3138_v41 = vadd.f32 %v4933_v13, %v6188_v47  ;;  %v4936_v34 = vadd.f32 %v4935_v20, %v4934_v14  ;;  %v5047_v1 = vpop.f32.mrb[83].mxu1  ;;  %v4311_v14 = vcombine.high %v212_v19, %v220_v48 }
 0x19f   : > { %v5048_v5 = vadd.f32 %v5047_v1, %v5046_v39  ;;  %3546 = vmatmul.mubr.bf16.gmra.mrb[188].mxu0 %v4528_v4  ;;  %v4309_v4 = vcombine.high %v211_v11, %v219_v6 }
 0x1a0   : > { %v6471_v42 = vadd.f32 %v5045_v25, %v3138_v41  ;;  %v3141_v44 = vadd.f32 %v4936_v34, %v6190_v49  ;;  %3707 = vmatmul.mubr.bf16.gmra.mrb[188].mxu1 %v4530_v63  ;;  %3747 = vmatprep.mubr.bf16.mxu0 %v4293_v16  ;;  %v228_v41 = vld [vmem:[%s5834_s29 + $0x138] sm:$0xff] }
 0x1a1   : > { %3908 = vmatprep.mubr.bf16.mxu1 %v4295_v32  ;;  %v236_v34 = vld [vmem:[%s5834_s29 + $0x178] sm:$0xff] }
 0x1a2   : > { %v6476_v36 = vadd.f32 %v5048_v5, %v3141_v44  ;;  %v4937_v45 = vpop.f32.mrb[84].mxu0  ;;  %v4308_v5 = vcombine.low %v211_v11, %v219_v6 }
 0x1a3   : > { %v5049_v43 = vpop.f32.mrb[84].mxu1  ;;  %v4938_v47 = vpop.f32.mrb[85].mxu0 }
 0x1a4   : > { %v4939_v55 = vadd.f32 %v4938_v47, %v4937_v45  ;;  %v5050_v56 = vpop.f32.mrb[85].mxu1  ;;  %v4940_v21 = vpop.f32.mrb[86].mxu0  ;;  %v4310_v47 = vcombine.low %v212_v19, %v220_v48  ;;  %v243_v19 = vld [vmem:[%s5834_s29 + $0x1b0] sm:$0xff] }
 0x1a5   : > { %v5051_v49 = vadd.f32 %v5050_v56, %v5049_v43  ;;  %v5052_v13 = vpop.f32.mrb[86].mxu1  ;;  %v4941_v8 = vpop.f32.mrb[87].mxu0  ;;  %v251_v48 = vld [vmem:[%s5834_s29 + $0x1f0] sm:$0xff] }
 0x1a6   : > { %v3146_v63 = vadd.f32 %v4939_v55, %v6211_v10  ;;  %v4942_v16 = vadd.f32 %v4941_v8, %v4940_v21  ;;  %v5053_v25 = vpop.f32.mrb[87].mxu1  ;;  %v4327_v21 = vcombine.high %v228_v41, %v236_v34 }
 0x1a7   : > { %v5054_v39 = vadd.f32 %v5053_v25, %v5052_v13  ;;  %3748 = vmatmul.mubr.bf16.vlgmr.msra.gmra.mrb[192].mxu0 %v4292_v51  ;;  %v4325_v51 = vcombine.high %v227_v54, %v235_v2 }
 0x1a8   : > { %v6481_v22 = vadd.f32 %v5051_v49, %v3146_v63  ;;  %v3149_v29 = vadd.f32 %v4942_v16, %v6222_v15  ;;  %3909 = vmatmul.mubr.bf16.vlgmr.msra.gmra.mrb[192].mxu1 %v4294_v23  ;;  %3755 = vmatprep.mubr.bf16.mxu0 %v4309_v4  ;;  %v244_v63 = vld [vmem:[%s5834_s29 + $0x1b8] sm:$0xff] }
 0x1a9   : > { %3916 = vmatprep.mubr.bf16.mxu1 %v4311_v14  ;;  %v252_v16 = vld [vmem:[%s5834_s29 + $0x1f8] sm:$0xff] }
 0x1aa   : > { %v6486_v20 = vadd.f32 %v5054_v39, %v3149_v29  ;;  %v4943_v32 = vpop.f32.mrb[88].mxu0  ;;  %v4324_v39 = vcombine.low %v227_v54, %v235_v2 }
 0x1ab   : > { %v5055_v1 = vpop.f32.mrb[88].mxu1  ;;  %v4944_v10 = vpop.f32.mrb[89].mxu0 }
 0x1ac   : > { %v4945_v44 = vadd.f32 %v4944_v10, %v4943_v32  ;;  %v5056_v45 = vpop.f32.mrb[89].mxu1  ;;  %v4946_v43 = vpop.f32.mrb[90].mxu0  ;;  %v4326_v10 = vcombine.low %v228_v41, %v236_v34  ;;  %v259_v41 = vld [vmem:[%s5834_s29 + $0x230] sm:$0xff] }
 0x1ad   : > { %v5057_v15 = vadd.f32 %v5056_v45, %v5055_v1  ;;  %v5058_v55 = vpop.f32.mrb[90].mxu1  ;;  %v4947_v56 = vpop.f32.mrb[91].mxu0  ;;  %v267_v34 = vld [vmem:[%s5834_s29 + $0x270] sm:$0xff] }
 0x1ae   : > { %v3154_v23 = vadd.f32 %v4945_v44, %v6257_v46  ;;  %v4948_v4 = vadd.f32 %v4947_v56, %v4946_v43  ;;  %v5059_v49 = vpop.f32.mrb[91].mxu1  ;;  %v4343_v43 = vcombine.high %v244_v63, %v252_v16 }
 0x1af   : > { %v5060_v13 = vadd.f32 %v5059_v49, %v5058_v55  ;;  %3756 = vmatmul.mubr.bf16.gmra.mrb[196].mxu0 %v4308_v5  ;;  %v4341_v5 = vcombine.high %v243_v19, %v251_v48 }
 0x1b0   : > { %v6491_v11 = vadd.f32 %v5057_v15, %v3154_v23  ;;  %v3157_v6 = vadd.f32 %v4948_v4, %v6265_v52  ;;  %3917 = vmatmul.mubr.bf16.gmra.mrb[196].mxu1 %v4310_v47  ;;  %3763 = vmatprep.mubr.bf16.mxu0 %v4325_v51  ;;  %v260_v23 = vld [vmem:[%s5834_s29 + $0x238] sm:$0xff] }
 0x1b1   : > { %3924 = vmatprep.mubr.bf16.mxu1 %v4327_v21  ;;  %v268_v4 = vld [vmem:[%s5834_s29 + $0x278] sm:$0xff] }
 0x1b2   : > { %v6496_v8 = vadd.f32 %v5060_v13, %v3157_v6  ;;  %v4949_v14 = vpop.f32.mrb[92].mxu0  ;;  %v4340_v13 = vcombine.low %v243_v19, %v251_v48 }
 0x1b3   : > { %v5061_v25 = vpop.f32.mrb[92].mxu1  ;;  %v4950_v46 = vpop.f32.mrb[93].mxu0 }
 0x1b4   : > { %v4951_v29 = vadd.f32 %v4950_v46, %v4949_v14  ;;  %v5062_v32 = vpop.f32.mrb[93].mxu1  ;;  %v4952_v1 = vpop.f32.mrb[94].mxu0  ;;  %v4342_v46 = vcombine.low %v244_v63, %v252_v16  ;;  %v275_v63 = vld [vmem:[%s5834_s29 + $0x2b0] sm:$0xff] }
 0x1b5   : > { %v5063_v52 = vadd.f32 %v5062_v32, %v5061_v25  ;;  %v5064_v44 = vpop.f32.mrb[94].mxu1  ;;  %v4953_v45 = vpop.f32.mrb[95].mxu0  ;;  %v283_v16 = vld [vmem:[%s5834_s29 + $0x2f0] sm:$0xff] }
 0x1b6   : > { %v3162_v47 = vadd.f32 %v4951_v29, %v6305_v18  ;;  %v4954_v51 = vadd.f32 %v4953_v45, %v4952_v1  ;;  %v5065_v15 = vpop.f32.mrb[95].mxu1  ;;  %v4359_v1 = vcombine.high %v260_v23, %v268_v4 }
 0x1b7   : > { %v5066_v55 = vadd.f32 %v5065_v15, %v5064_v44  ;;  %3764 = vmatmul.mubr.bf16.gmra.mrb[200].mxu0 %v4324_v39  ;;  %v4357_v39 = vcombine.high %v259_v41, %v267_v34 }
 0x1b8   : > { %v6501_v54 = vadd.f32 %v5063_v52, %v3162_v47  ;;  %v3165_v2 = vadd.f32 %v4954_v51, %v6313_v26  ;;  %3925 = vmatmul.mubr.bf16.gmra.mrb[200].mxu1 %v4326_v10  ;;  %3771 = vmatprep.mubr.bf16.mxu0 %v4341_v5  ;;  %v276_v47 = vld [vmem:[%s5834_s29 + $0x2b8] sm:$0xff] }
 0x1b9   : > { %3932 = vmatprep.mubr.bf16.mxu1 %v4343_v43  ;;  %v284_v51 = vld [vmem:[%s5834_s29 + $0x2f8] sm:$0xff] }
 0x1ba   : > { %v6506_v56 = vadd.f32 %v5066_v55, %v3165_v2  ;;  %v4955_v21 = vpop.f32.mrb[96].mxu0  ;;  %v4356_v55 = vcombine.low %v259_v41, %v267_v34 }
 0x1bb   : > { %v5067_v49 = vpop.f32.mrb[96].mxu1  ;;  %v4956_v18 = vpop.f32.mrb[97].mxu0 }
 0x1bc   : > { %v4957_v6 = vadd.f32 %v4956_v18, %v4955_v21  ;;  %v5068_v14 = vpop.f32.mrb[97].mxu1  ;;  %v4958_v25 = vpop.f32.mrb[98].mxu0  ;;  %v4358_v18 = vcombine.low %v260_v23, %v268_v4  ;;  %v291_v23 = vld [vmem:[%s5834_s29 + $0x330] sm:$0xff] }
 0x1bd   : > { %v5069_v26 = vadd.f32 %v5068_v14, %v5067_v49  ;;  %v5070_v29 = vpop.f32.mrb[98].mxu1  ;;  %v4959_v32 = vpop.f32.mrb[99].mxu0  ;;  %v299_v4 = vld [vmem:[%s5834_s29 + $0x370] sm:$0xff] }
 0x1be   : > { %v3170_v10 = vadd.f32 %v4957_v6, %v6353_v58  ;;  %v4960_v5 = vadd.f32 %v4959_v32, %v4958_v25  ;;  %v5071_v52 = vpop.f32.mrb[99].mxu1  ;;  %v4375_v25 = vcombine.high %v276_v47, %v284_v51 }
 0x1bf   : > { %v5072_v44 = vadd.f32 %v5071_v52, %v5070_v29  ;;  %3772 = vmatmul.mubr.bf16.gmra.mrb[204].mxu0 %v4340_v13  ;;  %v4373_v13 = vcombine.high %v275_v63, %v283_v16 }
 0x1c0   : > { %v6511_v19 = vadd.f32 %v5069_v26, %v3170_v10  ;;  %v3173_v48 = vadd.f32 %v4960_v5, %v6358_v61  ;;  %3933 = vmatmul.mubr.bf16.gmra.mrb[204].mxu1 %v4342_v46  ;;  %3779 = vmatprep.mubr.bf16.mxu0 %v4357_v39  ;;  %v292_v10 = vld [vmem:[%s5834_s29 + $0x338] sm:$0xff] }
 0x1c1   : > { %3940 = vmatprep.mubr.bf16.mxu1 %v4359_v1  ;;  %v300_v5 = vld [vmem:[%s5834_s29 + $0x378] sm:$0xff] }
 0x1c2   : > { %v6516_v45 = vadd.f32 %v5072_v44, %v3173_v48  ;;  %v4961_v43 = vpop.f32.mrb[100].mxu0  ;;  %v4372_v44 = vcombine.low %v275_v63, %v283_v16 }
 0x1c3   : > { %v5073_v15 = vpop.f32.mrb[100].mxu1  ;;  %v4962_v58 = vpop.f32.mrb[101].mxu0 }
 0x1c4   : > { %v4963_v2 = vadd.f32 %v4962_v58, %v4961_v43  ;;  %v5074_v21 = vpop.f32.mrb[101].mxu1  ;;  %v4964_v49 = vpop.f32.mrb[102].mxu0  ;;  %v4374_v58 = vcombine.low %v276_v47, %v284_v51  ;;  %v307_v47 = vld [vmem:[%s5834_s29 + $0x3b0] sm:$0xff] }
 0x1c5   : > { %v5075_v61 = vadd.f32 %v5074_v21, %v5073_v15  ;;  %v5076_v6 = vpop.f32.mrb[102].mxu1  ;;  %v4965_v14 = vpop.f32.mrb[103].mxu0  ;;  %v315_v51 = vld [vmem:[%s5834_s29 + $0x3f0] sm:$0xff] }
 0x1c6   : > { %v3178_v46 = vadd.f32 %v4963_v2, %v6374_v24  ;;  %v4966_v39 = vadd.f32 %v4965_v14, %v4964_v49  ;;  %v5077_v26 = vpop.f32.mrb[103].mxu1  ;;  %v4391_v49 = vcombine.high %v292_v10, %v300_v5 }
 0x1c7   : > { %v5078_v29 = vadd.f32 %v5077_v26, %v5076_v6  ;;  %3780 = vmatmul.mubr.bf16.gmra.mrb[208].mxu0 %v4356_v55  ;;  %v4389_v55 = vcombine.high %v291_v23, %v299_v4 }
 0x1c8   : > { %v6521_v41 = vadd.f32 %v5075_v61, %v3178_v46  ;;  %v3181_v34 = vadd.f32 %v4966_v39, %v6376_v28  ;;  %3941 = vmatmul.mubr.bf16.gmra.mrb[208].mxu1 %v4358_v18  ;;  %3787 = vmatprep.mubr.bf16.mxu0 %v4373_v13  ;;  %v308_v46 = vld [vmem:[%s5834_s29 + $0x3b8] sm:$0xff] }
 0x1c9   : > { %3948 = vmatprep.mubr.bf16.mxu1 %v4375_v25  ;;  %v316_v39 = vld [vmem:[%s5834_s29 + $0x3f8] sm:$0xff] }
 0x1ca   : > { %v6526_v32 = vadd.f32 %v5078_v29, %v3181_v34  ;;  %v4967_v1 = vpop.f32.mrb[104].mxu0  ;;  %v4388_v29 = vcombine.low %v291_v23, %v299_v4 }
 0x1cb   : > { %v5079_v52 = vpop.f32.mrb[104].mxu1  ;;  %v4968_v24 = vpop.f32.mrb[105].mxu0 }
 0x1cc   : > { %v4969_v48 = vadd.f32 %v4968_v24, %v4967_v1  ;;  %v5080_v43 = vpop.f32.mrb[105].mxu1  ;;  %v4970_v15 = vpop.f32.mrb[106].mxu0  ;;  %v4390_v24 = vcombine.low %v292_v10, %v300_v5  ;;  %v323_v10 = vld [vmem:[%s5834_s29 + $0x430] sm:$0xff] }
 0x1cd   : > { %v5081_v28 = vadd.f32 %v5080_v43, %v5079_v52  ;;  %v5082_v2 = vpop.f32.mrb[106].mxu1  ;;  %v4971_v21 = vpop.f32.mrb[107].mxu0  ;;  %v331_v5 = vld [vmem:[%s5834_s29 + $0x470] sm:$0xff] }
 0x1ce   : > { %v3186_v18 = vadd.f32 %v4969_v48, %v6382_v57  ;;  %v4972_v13 = vadd.f32 %v4971_v21, %v4970_v15  ;;  %v5083_v61 = vpop.f32.mrb[107].mxu1  ;;  %v4407_v15 = vcombine.high %v308_v46, %v316_v39 }
 0x1cf   : > { %v5084_v6 = vadd.f32 %v5083_v61, %v5082_v2  ;;  %3788 = vmatmul.mubr.bf16.gmra.mrb[212].mxu0 %v4372_v44  ;;  %v4405_v44 = vcombine.high %v307_v47, %v315_v51 }
 0x1d0   : > { %v6531_v63 = vadd.f32 %v5081_v28, %v3186_v18  ;;  %v3189_v16 = vadd.f32 %v4972_v13, %v6384_v60  ;;  %3949 = vmatmul.mubr.bf16.gmra.mrb[212].mxu1 %v4374_v58  ;;  %3795 = vmatprep.mubr.bf16.mxu0 %v4389_v55  ;;  %v324_v18 = vld [vmem:[%s5834_s29 + $0x438] sm:$0xff] }
 0x1d1   : > { %3956 = vmatprep.mubr.bf16.mxu1 %v4391_v49  ;;  %v332_v13 = vld [vmem:[%s5834_s29 + $0x478] sm:$0xff] }
 0x1d2   : > { %v6536_v14 = vadd.f32 %v5084_v6, %v3189_v16  ;;  %v4973_v25 = vpop.f32.mrb[108].mxu0  ;;  %v4404_v6 = vcombine.low %v307_v47, %v315_v51 }
 0x1d3   : > { %v5085_v26 = vpop.f32.mrb[108].mxu1  ;;  %v4974_v57 = vpop.f32.mrb[109].mxu0 }
 0x1d4   : > { %v4975_v34 = vadd.f32 %v4974_v57, %v4973_v25  ;;  %v5086_v1 = vpop.f32.mrb[109].mxu1  ;;  %v4976_v52 = vpop.f32.mrb[110].mxu0  ;;  %v4406_v57 = vcombine.low %v308_v46, %v316_v39  ;;  %v339_v46 = vld [vmem:[%s5834_s29 + $0x4b0] sm:$0xff] }
 0x1d5   : > { %v5087_v60 = vadd.f32 %v5086_v1, %v5085_v26  ;;  %v5088_v48 = vpop.f32.mrb[110].mxu1  ;;  %v4977_v43 = vpop.f32.mrb[111].mxu0  ;;  %v347_v39 = vld [vmem:[%s5834_s29 + $0x4f0] sm:$0xff] }
 0x1d6   : > { %v3194_v58 = vadd.f32 %v4975_v34, %v6390_v30  ;;  %v4978_v55 = vadd.f32 %v4977_v43, %v4976_v52  ;;  %v5089_v28 = vpop.f32.mrb[111].mxu1  ;;  %v4423_v52 = vcombine.high %v324_v18, %v332_v13 }
 0x1d7   : > { %v5090_v2 = vadd.f32 %v5089_v28, %v5088_v48  ;;  %3796 = vmatmul.mubr.bf16.gmra.mrb[216].mxu0 %v4388_v29  ;;  %v4421_v29 = vcombine.high %v323_v10, %v331_v5 }
 0x1d8   : > { %v6541_v23 = vadd.f32 %v5087_v60, %v3194_v58  ;;  %v3197_v4 = vadd.f32 %v4978_v55, %v6392_v27  ;;  %3957 = vmatmul.mubr.bf16.gmra.mrb[216].mxu1 %v4390_v24  ;;  %3803 = vmatprep.mubr.bf16.mxu0 %v4405_v44  ;;  %v340_v58 = vld [vmem:[%s5834_s29 + $0x4b8] sm:$0xff] }
 0x1d9   : > { %3964 = vmatprep.mubr.bf16.mxu1 %v4407_v15  ;;  %v348_v55 = vld [vmem:[%s5834_s29 + $0x4f8] sm:$0xff] }
 0x1da   : > { %v6546_v21 = vadd.f32 %v5090_v2, %v3197_v4  ;;  %v4979_v49 = vpop.f32.mrb[112].mxu0  ;;  %v4420_v2 = vcombine.low %v323_v10, %v331_v5 }
 0x1db   : > { %v5091_v61 = vpop.f32.mrb[112].mxu1  ;;  %v4980_v30 = vpop.f32.mrb[113].mxu0 }
 0x1dc   : > { %v4981_v16 = vadd.f32 %v4980_v30, %v4979_v49  ;;  %v5092_v25 = vpop.f32.mrb[113].mxu1  ;;  %v4982_v26 = vpop.f32.mrb[114].mxu0  ;;  %v4422_v30 = vcombine.low %v324_v18, %v332_v13  ;;  %v355_v18 = vld [vmem:[%s5834_s29 + $0x530] sm:$0xff] }
 0x1dd   : > { %v5093_v27 = vadd.f32 %v5092_v25, %v5091_v61  ;;  %v5094_v34 = vpop.f32.mrb[114].mxu1  ;;  %v4983_v1 = vpop.f32.mrb[115].mxu0  ;;  %v363_v13 = vld [vmem:[%s5834_s29 + $0x570] sm:$0xff] }
 0x1de   : > { %v3202_v24 = vadd.f32 %v4981_v16, %v6398_v59  ;;  %v4984_v44 = vadd.f32 %v4983_v1, %v4982_v26  ;;  %v5095_v60 = vpop.f32.mrb[115].mxu1  ;;  %v4439_v26 = vcombine.high %v340_v58, %v348_v55 }
 0x1df   : > { %v5096_v48 = vadd.f32 %v5095_v60, %v5094_v34  ;;  %3804 = vmatmul.mubr.bf16.gmra.mrb[220].mxu0 %v4404_v6  ;;  %v4437_v6 = vcombine.high %v339_v46, %v347_v39 }
 0x1e0   : > { %v6551_v47 = vadd.f32 %v5093_v27, %v3202_v24  ;;  %v3205_v51 = vadd.f32 %v4984_v44, %v6400_v62  ;;  %3965 = vmatmul.mubr.bf16.gmra.mrb[220].mxu1 %v4406_v57  ;;  %3811 = vmatprep.mubr.bf16.mxu0 %v4421_v29  ;;  %v356_v24 = vld [vmem:[%s5834_s29 + $0x538] sm:$0xff] }
 0x1e1   : > { %3972 = vmatprep.mubr.bf16.mxu1 %v4423_v52  ;;  %v364_v44 = vld [vmem:[%s5834_s29 + $0x578] sm:$0xff] }
 0x1e2   : > { %v6556_v43 = vadd.f32 %v5096_v48, %v3205_v51  ;;  %v4985_v15 = vpop.f32.mrb[116].mxu0  ;;  %v4436_v48 = vcombine.low %v339_v46, %v347_v39 }
 0x1e3   : > { %v5097_v28 = vpop.f32.mrb[116].mxu1  ;;  %v4986_v59 = vpop.f32.mrb[117].mxu0 }
 0x1e4   : > { %v4987_v4 = vadd.f32 %v4986_v59, %v4985_v15  ;;  %v5098_v49 = vpop.f32.mrb[117].mxu1  ;;  %v4988_v61 = vpop.f32.mrb[118].mxu0  ;;  %v4438_v59 = vcombine.low %v340_v58, %v348_v55  ;;  %v371_v58 = vld [vmem:[%s5834_s29 + $0x5b0] sm:$0xff] }
 0x1e5   : > { %v5099_v62 = vadd.f32 %v5098_v49, %v5097_v28  ;;  %v5100_v16 = vpop.f32.mrb[118].mxu1  ;;  %v4989_v25 = vpop.f32.mrb[119].mxu0  ;;  %v379_v55 = vld [vmem:[%s5834_s29 + $0x5f0] sm:$0xff] }
 0x1e6   : > { %v3210_v57 = vadd.f32 %v4987_v4, %v6406_v37  ;;  %v4990_v29 = vadd.f32 %v4989_v25, %v4988_v61  ;;  %v5101_v27 = vpop.f32.mrb[119].mxu1  ;;  %v4455_v61 = vcombine.high %v356_v24, %v364_v44 }
 0x1e7   : > { %v5102_v34 = vadd.f32 %v5101_v27, %v5100_v16  ;;  %3812 = vmatmul.mubr.bf16.gmra.mrb[224].mxu0 %v4420_v2  ;;  %v4453_v2 = vcombine.high %v355_v18, %v363_v13 }
 0x1e8   : > { %v6561_v10 = vadd.f32 %v5099_v62, %v3210_v57  ;;  %v3213_v5 = vadd.f32 %v4990_v29, %v6408_v31  ;;  %3973 = vmatmul.mubr.bf16.gmra.mrb[224].mxu1 %v4422_v30  ;;  %3819 = vmatprep.mubr.bf16.mxu0 %v4437_v6  ;;  %v372_v57 = vld [vmem:[%s5834_s29 + $0x5b8] sm:$0xff] }
 0x1e9   : > { %3980 = vmatprep.mubr.bf16.mxu1 %v4439_v26  ;;  %v380_v29 = vld [vmem:[%s5834_s29 + $0x5f8] sm:$0xff] }
 0x1ea   : > { %v6566_v1 = vadd.f32 %v5102_v34, %v3213_v5  ;;  %v4991_v52 = vpop.f32.mrb[120].mxu0  ;;  %v4452_v34 = vcombine.low %v355_v18, %v363_v13 }
 0x1eb   : > { %v5103_v60 = vpop.f32.mrb[120].mxu1  ;;  %v4992_v37 = vpop.f32.mrb[121].mxu0 }
 0x1ec   : > { %v4993_v51 = vadd.f32 %v4992_v37, %v4991_v52  ;;  %v5104_v15 = vpop.f32.mrb[121].mxu1  ;;  %v4994_v28 = vpop.f32.mrb[122].mxu0  ;;  %v4454_v37 = vcombine.low %v356_v24, %v364_v44  ;;  %v387_v24 = vld [vmem:[%s5834_s29 + $0x630] sm:$0xff] }
 0x1ed   : > { %v5105_v31 = vadd.f32 %v5104_v15, %v5103_v60  ;;  %v5106_v4 = vpop.f32.mrb[122].mxu1  ;;  %v4995_v49 = vpop.f32.mrb[123].mxu0  ;;  %v395_v44 = vld [vmem:[%s5834_s29 + $0x670] sm:$0xff] }
 0x1ee   : > { %v3218_v30 = vadd.f32 %v4993_v51, %v6414_v9  ;;  %v4996_v6 = vadd.f32 %v4995_v49, %v4994_v28  ;;  %v5107_v62 = vpop.f32.mrb[123].mxu1  ;;  %v4471_v28 = vcombine.high %v372_v57, %v380_v29 }
 0x1ef   : > { %v5108_v16 = vadd.f32 %v5107_v62, %v5106_v4  ;;  %3820 = vmatmul.mubr.bf16.gmra.mrb[228].mxu0 %v4436_v48  ;;  %v4469_v48 = vcombine.high %v371_v58, %v379_v55 }
 0x1f0   : > { %v6571_v46 = vadd.f32 %v5105_v31, %v3218_v30  ;;  %v3221_v39 = vadd.f32 %v4996_v6, %v6416_v0  ;;  %3981 = vmatmul.mubr.bf16.gmra.mrb[228].mxu1 %v4438_v59  ;;  %3827 = vmatprep.mubr.bf16.mxu0 %v4453_v2  ;;  %v388_v30 = vld [vmem:[%s5834_s29 + $0x638] sm:$0xff] }
 0x1f1   : > { %3988 = vmatprep.mubr.bf16.mxu1 %v4455_v61  ;;  %v396_v6 = vld [vmem:[%s5834_s29 + $0x678] sm:$0xff] }
 0x1f2   : > { %v6576_v25 = vadd.f32 %v5108_v16, %v3221_v39  ;;  %v4997_v26 = vpop.f32.mrb[124].mxu0  ;;  %v4468_v16 = vcombine.low %v371_v58, %v379_v55 }
 0x1f3   : > { %v5109_v27 = vpop.f32.mrb[124].mxu1  ;;  %v4998_v9 = vpop.f32.mrb[125].mxu0 }
 0x1f4   : > { %v4999_v5 = vadd.f32 %v4998_v9, %v4997_v26  ;;  %v5110_v52 = vpop.f32.mrb[125].mxu1  ;;  %v5000_v60 = vpop.f32.mrb[126].mxu0  ;;  %v4470_v9 = vcombine.low %v372_v57, %v380_v29  ;;  %v403_v57 = vld [vmem:[%s5834_s29 + $0x6b0] sm:$0xff] }
 0x1f5   : > { %v5111_v0 = vadd.f32 %v5110_v52, %v5109_v27  ;;  %v5112_v51 = vpop.f32.mrb[126].mxu1  ;;  %v5001_v15 = vpop.f32.mrb[127].mxu0  ;;  %v411_v29 = vld [vmem:[%s5834_s29 + $0x6f0] sm:$0xff] }
 0x1f6   : > { %v3226_v59 = vadd.f32 %v4999_v5, %v6422_v50  ;;  %v5002_v2 = vadd.f32 %v5001_v15, %v5000_v60  ;;  %v5113_v31 = vpop.f32.mrb[127].mxu1  ;;  %v4487_v60 = vcombine.high %v388_v30, %v396_v6 }
 0x1f7   : > { %v5114_v4 = vadd.f32 %v5113_v31, %v5112_v51  ;;  %3828 = vmatmul.mubr.bf16.gmra.mrb[232].mxu0 %v4452_v34  ;;  %v4485_v34 = vcombine.high %v387_v24, %v395_v44 }
 0x1f8   : > { %v6581_v18 = vadd.f32 %v5111_v0, %v3226_v59  ;;  %v3229_v13 = vadd.f32 %v5002_v2, %v6424_v33  ;;  %3989 = vmatmul.mubr.bf16.gmra.mrb[232].mxu1 %v4454_v37  ;;  %3835 = vmatprep.mubr.bf16.mxu0 %v4469_v48  ;;  %v404_v59 = vld [vmem:[%s5834_s29 + $0x6b8] sm:$0xff] }
 0x1f9   : > { %3996 = vmatprep.mubr.bf16.mxu1 %v4471_v28  ;;  %v412_v2 = vld [vmem:[%s5834_s29 + $0x6f8] sm:$0xff] }
 0x1fa   : > { %v6586_v49 = vadd.f32 %v5114_v4, %v3229_v13  ;;  %v5131_v61 = vpop.f32.mrb[128].mxu0  ;;  %v4484_v4 = vcombine.low %v387_v24, %v395_v44 }
 0x1fb   : > { %v5243_v62 = vpop.f32.mrb[128].mxu1  ;;  %v5132_v50 = vpop.f32.mrb[129].mxu0 }
 0x1fc   : > { %v5133_v39 = vadd.f32 %v5132_v50, %v5131_v61  ;;  %v5244_v26 = vpop.f32.mrb[129].mxu1  ;;  %v5134_v27 = vpop.f32.mrb[130].mxu0  ;;  %v4486_v50 = vcombine.low %v388_v30, %v396_v6  ;;  %v419_v30 = vld [vmem:[%s5834_s29 + $0x730] sm:$0xff] }
 0x1fd   : > { %v5245_v33 = vadd.f32 %v5244_v26, %v5243_v62  ;;  %v5246_v5 = vpop.f32.mrb[130].mxu1  ;;  %v5135_v52 = vpop.f32.mrb[131].mxu0  ;;  %v427_v6 = vld [vmem:[%s5834_s29 + $0x770] sm:$0xff] }
 0x1fe   : > { %v3428_v37 = vadd.f32 %v5133_v39, %v6431_v3  ;;  %v5136_v48 = vadd.f32 %v5135_v52, %v5134_v27  ;;  %v5247_v0 = vpop.f32.mrb[131].mxu1  ;;  %v4503_v27 = vcombine.high %v404_v59, %v412_v2 }
 0x1ff   : > { %v5248_v51 = vadd.f32 %v5247_v0, %v5246_v5  ;;  %3836 = vmatmul.mubr.bf16.gmra.mrb[236].mxu0 %v4468_v16  ;;  %v4501_v16 = vcombine.high %v403_v57, %v411_v29 }
 0x200   : > { %v6591_v58 = vadd.f32 %v5245_v33, %v3428_v37  ;;  %v3431_v55 = vadd.f32 %v5136_v48, %v6436_v38  ;;  %3997 = vmatmul.mubr.bf16.gmra.mrb[236].mxu1 %v4470_v9  ;;  %3843 = vmatprep.mubr.bf16.mxu0 %v4485_v34  ;;  %v420_v37 = vld [vmem:[%s5834_s29 + $0x738] sm:$0xff] }
 0x201   : > { %4004 = vmatprep.mubr.bf16.mxu1 %v4487_v60  ;;  %v428_v48 = vld [vmem:[%s5834_s29 + $0x778] sm:$0xff] }
 0x202   : > { %v6596_v15 = vadd.f32 %v5248_v51, %v3431_v55  ;;  %v5137_v28 = vpop.f32.mrb[132].mxu0  ;;  %v4500_v51 = vcombine.low %v403_v57, %v411_v29 }
 0x203   : > { %v5249_v31 = vpop.f32.mrb[132].mxu1  ;;  %v5138_v3 = vpop.f32.mrb[133].mxu0 }
 0x204   : > { %v5139_v13 = vadd.f32 %v5138_v3, %v5137_v28  ;;  %v5250_v61 = vpop.f32.mrb[133].mxu1  ;;  %v5140_v62 = vpop.f32.mrb[134].mxu0  ;;  %v4502_v3 = vcombine.low %v404_v59, %v412_v2  ;;  %v435_v59 = vld [vmem:[%s5834_s29 + $0x7b0] sm:$0xff] }
 0x205   : > { %v5251_v38 = vadd.f32 %v5250_v61, %v5249_v31  ;;  %v5252_v39 = vpop.f32.mrb[134].mxu1  ;;  %v5141_v26 = vpop.f32.mrb[135].mxu0  ;;  %v443_v2 = vld [vmem:[%s5834_s29 + $0x7f0] sm:$0xff] }
 0x206   : > { %v3436_v9 = vadd.f32 %v5139_v13, %v6441_v35  ;;  %v5142_v34 = vadd.f32 %v5141_v26, %v5140_v62  ;;  %v5253_v33 = vpop.f32.mrb[135].mxu1  ;;  %v4519_v62 = vcombine.high %v420_v37, %v428_v48 }
 0x207   : > { %v5254_v5 = vadd.f32 %v5253_v33, %v5252_v39  ;;  %3844 = vmatmul.mubr.bf16.gmra.mrb[240].mxu0 %v4484_v4  ;;  %v4517_v4 = vcombine.high %v419_v30, %v427_v6 }
 0x208   : > { %v6601_v24 = vadd.f32 %v5251_v38, %v3436_v9  ;;  %v3439_v44 = vadd.f32 %v5142_v34, %v6446_v17  ;;  %4005 = vmatmul.mubr.bf16.gmra.mrb[240].mxu1 %v4486_v50  ;;  %3851 = vmatprep.mubr.bf16.mxu0 %v4501_v16  ;;  %v436_v9 = vld [vmem:[%s5834_s29 + $0x7b8] sm:$0xff] }
 0x209   : > { %4012 = vmatprep.mubr.bf16.mxu1 %v4503_v27  ;;  %v444_v34 = vld [vmem:[%s5834_s29 + $0x7f8] sm:$0xff]  ;;  %s4278_s29 = sshll.u32 %s6781_s21, 3  ;;  %s4279_s21 = sshll.u32 %s6783_s13, 3 }
 0x20a   : > { %v6606_v52 = vadd.f32 %v5254_v5, %v3439_v44  ;;  %v5143_v60 = vpop.f32.mrb[136].mxu0  ;;  %v4516_v5 = vcombine.low %v419_v30, %v427_v6  ;;  %s6703_s19 = scalar_lea.vmem %s6778_s2, %s4278_s29  ;;  %s187_s23 = scalar_lea.vmem %s6779_s3, %s4279_s21 }
 0x20b   : > { %v5255_v0 = vpop.f32.mrb[136].mxu1  ;;  %v5144_v35 = vpop.f32.mrb[137].mxu0 }
 0x20c   : > { %v5145_v55 = vadd.f32 %v5144_v35, %v5143_v60  ;;  %v5256_v28 = vpop.f32.mrb[137].mxu1  ;;  %v5146_v31 = vpop.f32.mrb[138].mxu0  ;;  %v4518_v35 = vcombine.low %v420_v37, %v428_v48 }
 0x20d   : > { %v5257_v17 = vadd.f32 %v5256_v28, %v5255_v0  ;;  %v5258_v13 = vpop.f32.mrb[138].mxu1  ;;  %v5147_v61 = vpop.f32.mrb[139].mxu0 }
 0x20e   : > { %v3444_v50 = vadd.f32 %v5145_v55, %v6451_v12  ;;  %v5148_v16 = vadd.f32 %v5147_v61, %v5146_v31  ;;  %v5259_v38 = vpop.f32.mrb[139].mxu1  ;;  %v4535_v31 = vcombine.high %v436_v9, %v444_v34 }
 0x20f   : > { %v5260_v39 = vadd.f32 %v5259_v38, %v5258_v13  ;;  %3852 = vmatmul.mubr.bf16.gmra.mrb[244].mxu0 %v4500_v51  ;;  %v4533_v51 = vcombine.high %v435_v59, %v443_v2 }
 0x210   : > { %v6611_v57 = vadd.f32 %v5257_v17, %v3444_v50  ;;  %v3447_v29 = vadd.f32 %v5148_v16, %v6456_v7  ;;  %4013 = vmatmul.mubr.bf16.gmra.mrb[244].mxu1 %v4502_v3  ;;  %3859 = vmatprep.mubr.bf16.mxu0 %v4517_v4  ;;  %v4532_v50 = vcombine.low %v435_v59, %v443_v2 }
 0x211   : > { %4020 = vmatprep.mubr.bf16.mxu1 %v4519_v62 }
 0x212   : > { %v6616_v26 = vadd.f32 %v5260_v39, %v3447_v29  ;;  %v5149_v27 = vpop.f32.mrb[140].mxu0  ;;  %v4534_v39 = vcombine.low %v436_v9, %v444_v34 }
 0x213   : > { %v5261_v33 = vpop.f32.mrb[140].mxu1  ;;  %v5150_v12 = vpop.f32.mrb[141].mxu0 }
 0x214   : > { %v5151_v44 = vadd.f32 %v5150_v12, %v5149_v27  ;;  %v5262_v60 = vpop.f32.mrb[141].mxu1  ;;  %v5152_v0 = vpop.f32.mrb[142].mxu0 }
 0x215   : > { %v5263_v55 = vadd.f32 %v5262_v60, %v5261_v33  ;;  %v5264_v7 = vpop.f32.mrb[142].mxu1  ;;  %v5153_v28 = vpop.f32.mrb[143].mxu0 }
 0x216   : > { %v3452_v3 = vadd.f32 %v5151_v44, %v6461_v53  ;;  %v5154_v4 = vadd.f32 %v5153_v28, %v5152_v0  ;;  %v5265_v17 = vpop.f32.mrb[143].mxu1 }
 0x217   : > { %v5266_v13 = vadd.f32 %v5265_v17, %v5264_v7  ;;  %3860 = vmatmul.mubr.bf16.gmra.mrb[248].mxu0 %v4516_v5 }
 0x218   : > { %v6621_v61 = vadd.f32 %v5263_v55, %v3452_v3  ;;  %v3455_v62 = vadd.f32 %v5154_v4, %v6466_v40  ;;  %4021 = vmatmul.mubr.bf16.gmra.mrb[248].mxu1 %v4518_v35  ;;  %3867 = vmatprep.mubr.bf16.mxu0 %v4533_v51 }
 0x219   : > { %4028 = vmatprep.mubr.bf16.mxu1 %v4535_v31 }
 0x21a   : > { %v6624_v30 = vadd.f32 %v5266_v13, %v3455_v62  ;;  %v5155_v6 = vpop.f32.mrb[144].mxu0 }
 0x21b   : > { %v5267_v37 = vpop.f32.mrb[144].mxu1  ;;  %v5156_v48 = vpop.f32.mrb[145].mxu0 }
 0x21c   : > { %v5157_v16 = vadd.f32 %v5156_v48, %v5155_v6  ;;  %v5268_v38 = vpop.f32.mrb[145].mxu1  ;;  %v5158_v53 = vpop.f32.mrb[146].mxu0 }
 0x21d   : > { %v5269_v29 = vadd.f32 %v5268_v38, %v5267_v37  ;;  %v5270_v27 = vpop.f32.mrb[146].mxu1  ;;  %v5159_v33 = vpop.f32.mrb[147].mxu0 }
 0x21e   : > { %v3460_v12 = vadd.f32 %v5157_v16, %v6471_v42  ;;  %v5160_v5 = vadd.f32 %v5159_v33, %v5158_v53  ;;  %v5271_v40 = vpop.f32.mrb[147].mxu1 }
 0x21f   : > { %v5272_v44 = vadd.f32 %v5271_v40, %v5270_v27  ;;  %3868 = vmatmul.mubr.bf16.gmra.mrb[252].mxu0 %v4532_v50 }
 0x220   : > { %v6627_v60 = vadd.f32 %v5269_v29, %v3460_v12  ;;  %v3463_v0 = vadd.f32 %v5160_v5, %v6476_v36  ;;  %4029 = vmatmul.mubr.bf16.gmra.mrb[252].mxu1 %v4534_v39 }
 0x222   : > { %v6630_v35 = vadd.f32 %v5272_v44, %v3463_v0  ;;  %v5161_v59 = vpop.f32.mrb[148].mxu0 }
 0x223   : > { %v5273_v2 = vpop.f32.mrb[148].mxu1  ;;  %v5162_v51 = vpop.f32.mrb[149].mxu0 }
 0x224   : > { %v5163_v9 = vadd.f32 %v5162_v51, %v5161_v59  ;;  %v5274_v34 = vpop.f32.mrb[149].mxu1  ;;  %v5164_v55 = vpop.f32.mrb[150].mxu0 }
 0x225   : > { %v5275_v7 = vadd.f32 %v5274_v34, %v5273_v2  ;;  %v5276_v28 = vpop.f32.mrb[150].mxu1  ;;  %v5165_v42 = vpop.f32.mrb[151].mxu0 }
 0x226   : > { %v3468_v31 = vadd.f32 %v5163_v9, %v6481_v22  ;;  %v5166_v3 = vadd.f32 %v5165_v42, %v5164_v55  ;;  %v5277_v4 = vpop.f32.mrb[151].mxu1 }
 0x227   : > { %v5278_v17 = vadd.f32 %v5277_v4, %v5276_v28 }
 0x228   : > { %v6633_v13 = vadd.f32 %v5275_v7, %v3468_v31  ;;  %v3471_v36 = vadd.f32 %v5166_v3, %v6486_v20 }
 0x22a   : > { %v6636_v62 = vadd.f32 %v5278_v17, %v3471_v36  ;;  %v5167_v6 = vpop.f32.mrb[152].mxu0 }
 0x22b   : > { %v5279_v37 = vpop.f32.mrb[152].mxu1  ;;  %v5168_v48 = vpop.f32.mrb[153].mxu0 }
 0x22c   : > { %v5169_v50 = vadd.f32 %v5168_v48, %v5167_v6  ;;  %v5280_v16 = vpop.f32.mrb[153].mxu1  ;;  %v5170_v38 = vpop.f32.mrb[154].mxu0 }
 0x22d   : > { %v5281_v53 = vadd.f32 %v5280_v16, %v5279_v37  ;;  %v5282_v39 = vpop.f32.mrb[154].mxu1  ;;  %v5171_v29 = vpop.f32.mrb[155].mxu0 }
 0x22e   : > { %v3476_v22 = vadd.f32 %v5169_v50, %v6491_v11  ;;  %v5172_v27 = vadd.f32 %v5171_v29, %v5170_v38  ;;  %v5283_v33 = vpop.f32.mrb[155].mxu1 }
 0x22f   : > { %v5284_v12 = vadd.f32 %v5283_v33, %v5282_v39 }
 0x230   : > { %v6639_v5 = vadd.f32 %v5281_v53, %v3476_v22  ;;  %v3479_v20 = vadd.f32 %v5172_v27, %v6496_v8 }
 0x232   : > { %v6642_v40 = vadd.f32 %v5284_v12, %v3479_v20  ;;  %v5173_v44 = vpop.f32.mrb[156].mxu0 }
 0x233   : > { %v5285_v0 = vpop.f32.mrb[156].mxu1  ;;  %v5174_v59 = vpop.f32.mrb[157].mxu0 }
 0x234   : > { %v5175_v2 = vadd.f32 %v5174_v59, %v5173_v44  ;;  %v5286_v51 = vpop.f32.mrb[157].mxu1  ;;  %v5176_v9 = vpop.f32.mrb[158].mxu0 }
 0x235   : > { %v5287_v34 = vadd.f32 %v5286_v51, %v5285_v0  ;;  %v5288_v55 = vpop.f32.mrb[158].mxu1  ;;  %v5177_v7 = vpop.f32.mrb[159].mxu0 }
 0x236   : > { %v3484_v11 = vadd.f32 %v5175_v2, %v6501_v54  ;;  %v5178_v28 = vadd.f32 %v5177_v7, %v5176_v9  ;;  %v5289_v42 = vpop.f32.mrb[159].mxu1 }
 0x237   : > { %v5290_v31 = vadd.f32 %v5289_v42, %v5288_v55 }
 0x238   : > { %v6645_v3 = vadd.f32 %v5287_v34, %v3484_v11  ;;  %v3487_v8 = vadd.f32 %v5178_v28, %v6506_v56 }
 0x23a   : > { %v6648_v4 = vadd.f32 %v5290_v31, %v3487_v8  ;;  %v5179_v17 = vpop.f32.mrb[160].mxu0 }
 0x23b   : > { %v5291_v36 = vpop.f32.mrb[160].mxu1  ;;  %v5180_v6 = vpop.f32.mrb[161].mxu0 }
 0x23c   : > { %v5181_v37 = vadd.f32 %v5180_v6, %v5179_v17  ;;  %v5292_v48 = vpop.f32.mrb[161].mxu1  ;;  %v5182_v50 = vpop.f32.mrb[162].mxu0 }
 0x23d   : > { %v5293_v16 = vadd.f32 %v5292_v48, %v5291_v36  ;;  %v5294_v38 = vpop.f32.mrb[162].mxu1  ;;  %v5183_v53 = vpop.f32.mrb[163].mxu0 }
 0x23e   : > { %v3492_v54 = vadd.f32 %v5181_v37, %v6511_v19  ;;  %v5184_v39 = vadd.f32 %v5183_v53, %v5182_v50  ;;  %v5295_v29 = vpop.f32.mrb[163].mxu1 }
 0x23f   : > { %v5296_v22 = vadd.f32 %v5295_v29, %v5294_v38 }
 0x240   : > { %v6651_v27 = vadd.f32 %v5293_v16, %v3492_v54  ;;  %v3495_v56 = vadd.f32 %v5184_v39, %v6516_v45 }
 0x242   : > { %v6654_v33 = vadd.f32 %v5296_v22, %v3495_v56  ;;  %v5185_v12 = vpop.f32.mrb[164].mxu0 }
 0x243   : > { %v5297_v20 = vpop.f32.mrb[164].mxu1  ;;  %v5186_v44 = vpop.f32.mrb[165].mxu0 }
 0x244   : > { %v5187_v0 = vadd.f32 %v5186_v44, %v5185_v12  ;;  %v5298_v59 = vpop.f32.mrb[165].mxu1  ;;  %v5188_v2 = vpop.f32.mrb[166].mxu0 }
 0x245   : > { %v5299_v51 = vadd.f32 %v5298_v59, %v5297_v20  ;;  %v5300_v9 = vpop.f32.mrb[166].mxu1  ;;  %v5189_v34 = vpop.f32.mrb[167].mxu0 }
 0x246   : > { %v3500_v19 = vadd.f32 %v5187_v0, %v6521_v41  ;;  %v5190_v55 = vadd.f32 %v5189_v34, %v5188_v2  ;;  %v5301_v7 = vpop.f32.mrb[167].mxu1 }
 0x247   : > { %v5302_v11 = vadd.f32 %v5301_v7, %v5300_v9 }
 0x248   : > { %v6657_v28 = vadd.f32 %v5299_v51, %v3500_v19  ;;  %v3503_v45 = vadd.f32 %v5190_v55, %v6526_v32 }
 0x24a   : > { %v6660_v42 = vadd.f32 %v5302_v11, %v3503_v45  ;;  %v5191_v31 = vpop.f32.mrb[168].mxu0 }
 0x24b   : > { %v5303_v8 = vpop.f32.mrb[168].mxu1  ;;  %v5192_v17 = vpop.f32.mrb[169].mxu0 }
 0x24c   : > { %v5193_v36 = vadd.f32 %v5192_v17, %v5191_v31  ;;  %v5304_v6 = vpop.f32.mrb[169].mxu1  ;;  %v5194_v37 = vpop.f32.mrb[170].mxu0 }
 0x24d   : > { %v5305_v48 = vadd.f32 %v5304_v6, %v5303_v8  ;;  %v5306_v50 = vpop.f32.mrb[170].mxu1  ;;  %v5195_v16 = vpop.f32.mrb[171].mxu0 }
 0x24e   : > { %v3508_v41 = vadd.f32 %v5193_v36, %v6531_v63  ;;  %v5196_v38 = vadd.f32 %v5195_v16, %v5194_v37  ;;  %v5307_v53 = vpop.f32.mrb[171].mxu1 }
 0x24f   : > { %v5308_v54 = vadd.f32 %v5307_v53, %v5306_v50 }
 0x250   : > { %v6663_v39 = vadd.f32 %v5305_v48, %v3508_v41  ;;  %v3511_v32 = vadd.f32 %v5196_v38, %v6536_v14 }
 0x252   : > { %v6666_v29 = vadd.f32 %v5308_v54, %v3511_v32  ;;  %v5197_v22 = vpop.f32.mrb[172].mxu0 }
 0x253   : > { %v5309_v56 = vpop.f32.mrb[172].mxu1  ;;  %v5198_v12 = vpop.f32.mrb[173].mxu0 }
 0x254   : > { %v5199_v20 = vadd.f32 %v5198_v12, %v5197_v22  ;;  %v5310_v44 = vpop.f32.mrb[173].mxu1  ;;  %v5200_v0 = vpop.f32.mrb[174].mxu0 }
 0x255   : > { %v5311_v59 = vadd.f32 %v5310_v44, %v5309_v56  ;;  %v5312_v2 = vpop.f32.mrb[174].mxu1  ;;  %v5201_v51 = vpop.f32.mrb[175].mxu0 }
 0x256   : > { %v3516_v63 = vadd.f32 %v5199_v20, %v6541_v23  ;;  %v5202_v9 = vadd.f32 %v5201_v51, %v5200_v0  ;;  %v5313_v34 = vpop.f32.mrb[175].mxu1 }
 0x257   : > { %v5314_v19 = vadd.f32 %v5313_v34, %v5312_v2 }
 0x258   : > { %v6669_v55 = vadd.f32 %v5311_v59, %v3516_v63  ;;  %v3519_v14 = vadd.f32 %v5202_v9, %v6546_v21 }
 0x25a   : > { %v6672_v7 = vadd.f32 %v5314_v19, %v3519_v14  ;;  %v5203_v11 = vpop.f32.mrb[176].mxu0 }
 0x25b   : > { %v5315_v45 = vpop.f32.mrb[176].mxu1  ;;  %v5204_v31 = vpop.f32.mrb[177].mxu0 }
 0x25c   : > { %v5205_v8 = vadd.f32 %v5204_v31, %v5203_v11  ;;  %v5316_v17 = vpop.f32.mrb[177].mxu1  ;;  %v5206_v36 = vpop.f32.mrb[178].mxu0 }
 0x25d   : > { %v5317_v6 = vadd.f32 %v5316_v17, %v5315_v45  ;;  %v5318_v37 = vpop.f32.mrb[178].mxu1  ;;  %v5207_v48 = vpop.f32.mrb[179].mxu0 }
 0x25e   : > { %v3524_v23 = vadd.f32 %v5205_v8, %v6551_v47  ;;  %v5208_v50 = vadd.f32 %v5207_v48, %v5206_v36  ;;  %v5319_v16 = vpop.f32.mrb[179].mxu1 }
 0x25f   : > { %v5320_v41 = vadd.f32 %v5319_v16, %v5318_v37 }
 0x260   : > { %v6675_v38 = vadd.f32 %v5317_v6, %v3524_v23  ;;  %v3527_v21 = vadd.f32 %v5208_v50, %v6556_v43 }
 0x262   : > { %v6678_v53 = vadd.f32 %v5320_v41, %v3527_v21  ;;  %v5209_v54 = vpop.f32.mrb[180].mxu0 }
 0x263   : > { %v5321_v32 = vpop.f32.mrb[180].mxu1  ;;  %v5210_v22 = vpop.f32.mrb[181].mxu0 }
 0x264   : > { %v5211_v56 = vadd.f32 %v5210_v22, %v5209_v54  ;;  %v5322_v12 = vpop.f32.mrb[181].mxu1  ;;  %v5212_v20 = vpop.f32.mrb[182].mxu0 }
 0x265   : > { %v5323_v44 = vadd.f32 %v5322_v12, %v5321_v32  ;;  %v5324_v0 = vpop.f32.mrb[182].mxu1  ;;  %v5213_v59 = vpop.f32.mrb[183].mxu0 }
 0x266   : > { %v3532_v47 = vadd.f32 %v5211_v56, %v6561_v10  ;;  %v5214_v2 = vadd.f32 %v5213_v59, %v5212_v20  ;;  %v5325_v51 = vpop.f32.mrb[183].mxu1 }
 0x267   : > { %v5326_v63 = vadd.f32 %v5325_v51, %v5324_v0 }
 0x268   : > { %v6681_v9 = vadd.f32 %v5323_v44, %v3532_v47  ;;  %v3535_v43 = vadd.f32 %v5214_v2, %v6566_v1 }
 0x26a   : > { %v6684_v34 = vadd.f32 %v5326_v63, %v3535_v43  ;;  %v5215_v19 = vpop.f32.mrb[184].mxu0 }
 0x26b   : > { %v5327_v14 = vpop.f32.mrb[184].mxu1  ;;  %v5216_v11 = vpop.f32.mrb[185].mxu0 }
 0x26c   : > { %v5217_v45 = vadd.f32 %v5216_v11, %v5215_v19  ;;  %v5328_v31 = vpop.f32.mrb[185].mxu1  ;;  %v5218_v8 = vpop.f32.mrb[186].mxu0 }
 0x26d   : > { %v5329_v17 = vadd.f32 %v5328_v31, %v5327_v14  ;;  %v5330_v36 = vpop.f32.mrb[186].mxu1  ;;  %v5219_v6 = vpop.f32.mrb[187].mxu0 }
 0x26e   : > { %v3540_v10 = vadd.f32 %v5217_v45, %v6571_v46  ;;  %v5220_v37 = vadd.f32 %v5219_v6, %v5218_v8  ;;  %v5331_v48 = vpop.f32.mrb[187].mxu1 }
 0x26f   : > { %v5332_v23 = vadd.f32 %v5331_v48, %v5330_v36 }
 0x270   : > { %v6687_v50 = vadd.f32 %v5329_v17, %v3540_v10  ;;  %v3543_v1 = vadd.f32 %v5220_v37, %v6576_v25 }
 0x272   : > { %v6690_v16 = vadd.f32 %v5332_v23, %v3543_v1  ;;  %v5221_v41 = vpop.f32.mrb[188].mxu0 }
 0x273   : > { %v5333_v21 = vpop.f32.mrb[188].mxu1  ;;  %v5222_v54 = vpop.f32.mrb[189].mxu0 }
 0x274   : > { %v5223_v32 = vadd.f32 %v5222_v54, %v5221_v41  ;;  %v5334_v22 = vpop.f32.mrb[189].mxu1  ;;  %v5224_v56 = vpop.f32.mrb[190].mxu0 }
 0x275   : > { %v5335_v12 = vadd.f32 %v5334_v22, %v5333_v21  ;;  %v5336_v20 = vpop.f32.mrb[190].mxu1  ;;  %v5225_v44 = vpop.f32.mrb[191].mxu0 }
 0x276   : > { %v3548_v46 = vadd.f32 %v5223_v32, %v6581_v18  ;;  %v5226_v0 = vadd.f32 %v5225_v44, %v5224_v56  ;;  %v5337_v59 = vpop.f32.mrb[191].mxu1 }
 0x277   : > { %v5338_v47 = vadd.f32 %v5337_v59, %v5336_v20 }
 0x278   : > { %v6693_v2 = vadd.f32 %v5335_v12, %v3548_v46  ;;  %v3551_v25 = vadd.f32 %v5226_v0, %v6586_v49 }
 0x27a   : > { %v6696_v51 = vadd.f32 %v5338_v47, %v3551_v25  ;;  %v5355_v63 = vpop.f32.mrb[192].mxu0 }
 0x27b   : > { %v5467_v43 = vpop.f32.mrb[192].mxu1  ;;  %v5356_v19 = vpop.f32.mrb[193].mxu0 }
 0x27c   : > { %v5357_v14 = vadd.f32 %v5356_v19, %v5355_v63  ;;  %v5468_v11 = vpop.f32.mrb[193].mxu1  ;;  %v5358_v45 = vpop.f32.mrb[194].mxu0 }
 0x27d   : > { %v5469_v31 = vadd.f32 %v5468_v11, %v5467_v43  ;;  %v5470_v8 = vpop.f32.mrb[194].mxu1  ;;  %v5359_v17 = vpop.f32.mrb[195].mxu0 }
 0x27e   : > { %v3750_v18 = vadd.f32 %v5357_v14, %v6591_v58  ;;  %v5360_v36 = vadd.f32 %v5359_v17, %v5358_v45  ;;  %v5471_v6 = vpop.f32.mrb[195].mxu1 }
 0x27f   : > { %v5472_v49 = vadd.f32 %v5471_v6, %v5470_v8 }
 0x280   : > { %v3911_v10 = vadd.f32 %v5469_v31, %v3750_v18  ;;  %v3753_v37 = vadd.f32 %v5360_v36, %v6596_v15 }
 0x282   : > { %4037 = vst [vmem:[%s6703_s19] sm:$0xff] %v3911_v10  ;;  %v3914_v48 = vadd.f32 %v5472_v49, %v3753_v37  ;;  %v5361_v23 = vpop.f32.mrb[196].mxu0  ;;  %v4106_v21 = vmul.f32 %v3911_v10, %v3911_v10 }
 0x283   : > { %v5473_v1 = vpop.f32.mrb[196].mxu1  ;;  %v5362_v41 = vpop.f32.mrb[197].mxu0 }
 0x284   : > { %4038 = vst [vmem:[%s6703_s19 + $0x8] sm:$0xff] %v3914_v48  ;;  %v4069_v58 = vadd.f32 %v3914_v48, %v3911_v10  ;;  %v4107_v54 = vmul.f32 %v3914_v48, %v3914_v48  ;;  %v5363_v32 = vadd.f32 %v5362_v41, %v5361_v23  ;;  %v5474_v22 = vpop.f32.mrb[197].mxu1  ;;  %v5364_v56 = vpop.f32.mrb[198].mxu0 }
 0x285   : > { %v5475_v12 = vadd.f32 %v5474_v22, %v5473_v1  ;;  %v5476_v20 = vpop.f32.mrb[198].mxu1  ;;  %v5365_v44 = vpop.f32.mrb[199].mxu0 }
 0x286   : > { %v4138_v46 = vadd.f32 %v4107_v54, %v4106_v21  ;;  %v3758_v15 = vadd.f32 %v5363_v32, %v6601_v24  ;;  %v5366_v0 = vadd.f32 %v5365_v44, %v5364_v56  ;;  %v5477_v59 = vpop.f32.mrb[199].mxu1 }
 0x287   : > { %v5478_v47 = vadd.f32 %v5477_v59, %v5476_v20 }
 0x288   : > { %v3919_v25 = vadd.f32 %v5475_v12, %v3758_v15  ;;  %v3761_v63 = vadd.f32 %v5366_v0, %v6606_v52 }
 0x28a   : > { %4039 = vst [vmem:[%s6703_s19 + $0x10] sm:$0xff] %v3919_v25  ;;  %v4070_v43 = vadd.f32 %v4069_v58, %v3919_v25  ;;  %v4108_v19 = vmul.f32 %v3919_v25, %v3919_v25  ;;  %v3922_v14 = vadd.f32 %v5478_v47, %v3761_v63  ;;  %v5367_v11 = vpop.f32.mrb[200].mxu0 }
 0x28b   : > { %v5479_v45 = vpop.f32.mrb[200].mxu1  ;;  %v5368_v31 = vpop.f32.mrb[201].mxu0 }
 0x28c   : > { %v4139_v8 = vadd.f32 %v4138_v46, %v4108_v19  ;;  %4040 = vst [vmem:[%s6703_s19 + $0x18] sm:$0xff] %v3922_v14  ;;  %v4071_v17 = vadd.f32 %v4070_v43, %v3922_v14  ;;  %v4109_v18 = vmul.f32 %v3922_v14, %v3922_v14  ;;  %v5369_v36 = vadd.f32 %v5368_v31, %v5367_v11  ;;  %v5480_v24 = vpop.f32.mrb[201].mxu1  ;;  %v5370_v6 = vpop.f32.mrb[202].mxu0 }
 0x28d   : > { %v5481_v49 = vadd.f32 %v5480_v24, %v5479_v45  ;;  %v5482_v10 = vpop.f32.mrb[202].mxu1  ;;  %v5371_v37 = vpop.f32.mrb[203].mxu0 }
 0x28e   : > { %v4140_v52 = vadd.f32 %v4139_v8, %v4109_v18  ;;  %v3766_v48 = vadd.f32 %v5369_v36, %v6611_v57  ;;  %v5372_v23 = vadd.f32 %v5371_v37, %v5370_v6  ;;  %v5483_v1 = vpop.f32.mrb[203].mxu1 }
 0x28f   : > { %v5484_v41 = vadd.f32 %v5483_v1, %v5482_v10 }
 0x290   : > { %v3927_v21 = vadd.f32 %v5481_v49, %v3766_v48  ;;  %v3769_v58 = vadd.f32 %v5372_v23, %v6616_v26 }
 0x292   : > { %4041 = vst [vmem:[%s6703_s19 + $0x20] sm:$0xff] %v3927_v21  ;;  %v4072_v54 = vadd.f32 %v4071_v17, %v3927_v21  ;;  %v4110_v32 = vmul.f32 %v3927_v21, %v3927_v21  ;;  %v3930_v22 = vadd.f32 %v5484_v41, %v3769_v58  ;;  %v5373_v56 = vpop.f32.mrb[204].mxu0 }
 0x293   : > { %v5485_v12 = vpop.f32.mrb[204].mxu1  ;;  %v5374_v20 = vpop.f32.mrb[205].mxu0 }
 0x294   : > { %v4141_v44 = vadd.f32 %v4140_v52, %v4110_v32  ;;  %4042 = vst [vmem:[%s6703_s19 + $0x28] sm:$0xff] %v3930_v22  ;;  %v4073_v46 = vadd.f32 %v4072_v54, %v3930_v22  ;;  %v4111_v15 = vmul.f32 %v3930_v22, %v3930_v22  ;;  %v5375_v0 = vadd.f32 %v5374_v20, %v5373_v56  ;;  %v5486_v57 = vpop.f32.mrb[205].mxu1  ;;  %v5376_v59 = vpop.f32.mrb[206].mxu0 }
 0x295   : > { %v5487_v47 = vadd.f32 %v5486_v57, %v5485_v12  ;;  %v5488_v25 = vpop.f32.mrb[206].mxu1  ;;  %v5377_v63 = vpop.f32.mrb[207].mxu0 }
 0x296   : > { %v4142_v26 = vadd.f32 %v4141_v44, %v4111_v15  ;;  %v3774_v43 = vadd.f32 %v5375_v0, %v6621_v61  ;;  %v5378_v19 = vadd.f32 %v5377_v63, %v5376_v59  ;;  %v5489_v14 = vpop.f32.mrb[207].mxu1 }
 0x297   : > { %v5490_v11 = vadd.f32 %v5489_v14, %v5488_v25 }
 0x298   : > { %v3935_v45 = vadd.f32 %v5487_v47, %v3774_v43  ;;  %v3777_v31 = vadd.f32 %v5378_v19, %v6624_v30 }
 0x29a   : > { %4043 = vst [vmem:[%s6703_s19 + $0x30] sm:$0xff] %v3935_v45  ;;  %v4074_v8 = vadd.f32 %v4073_v46, %v3935_v45  ;;  %v4112_v17 = vmul.f32 %v3935_v45, %v3935_v45  ;;  %v3938_v18 = vadd.f32 %v5490_v11, %v3777_v31  ;;  %v5379_v36 = vpop.f32.mrb[208].mxu0 }
 0x29b   : > { %v5491_v24 = vpop.f32.mrb[208].mxu1  ;;  %v5380_v6 = vpop.f32.mrb[209].mxu0 }
 0x29c   : > { %v4143_v49 = vadd.f32 %v4142_v26, %v4112_v17  ;;  %4044 = vst [vmem:[%s6703_s19 + $0x38] sm:$0xff] %v3938_v18  ;;  %v4075_v10 = vadd.f32 %v4074_v8, %v3938_v18  ;;  %v4113_v37 = vmul.f32 %v3938_v18, %v3938_v18  ;;  %v5381_v52 = vadd.f32 %v5380_v6, %v5379_v36  ;;  %v5492_v61 = vpop.f32.mrb[209].mxu1  ;;  %v5382_v48 = vpop.f32.mrb[210].mxu0 }
 0x29d   : > { %v5493_v23 = vadd.f32 %v5492_v61, %v5491_v24  ;;  %v5494_v1 = vpop.f32.mrb[210].mxu1  ;;  %v5383_v41 = vpop.f32.mrb[211].mxu0 }
 0x29e   : > { %v4144_v30 = vadd.f32 %v4143_v49, %v4113_v37  ;;  %v3782_v21 = vadd.f32 %v5381_v52, %v6627_v60  ;;  %v5384_v58 = vadd.f32 %v5383_v41, %v5382_v48  ;;  %v5495_v54 = vpop.f32.mrb[211].mxu1 }
 0x29f   : > { %v5496_v32 = vadd.f32 %v5495_v54, %v5494_v1 }
 0x2a0   : > { %v3943_v22 = vadd.f32 %v5493_v23, %v3782_v21  ;;  %v3785_v56 = vadd.f32 %v5384_v58, %v6630_v35 }
 0x2a2   : > { %4045 = vst [vmem:[%s6703_s19 + $0x40] sm:$0xff] %v3943_v22  ;;  %v4076_v12 = vadd.f32 %v4075_v10, %v3943_v22  ;;  %v4114_v20 = vmul.f32 %v3943_v22, %v3943_v22  ;;  %v3946_v44 = vadd.f32 %v5496_v32, %v3785_v56  ;;  %v5385_v46 = vpop.f32.mrb[212].mxu0 }
 0x2a3   : > { %v5497_v15 = vpop.f32.mrb[212].mxu1  ;;  %v5386_v0 = vpop.f32.mrb[213].mxu0 }
 0x2a4   : > { %v4145_v57 = vadd.f32 %v4144_v30, %v4114_v20  ;;  %4046 = vst [vmem:[%s6703_s19 + $0x48] sm:$0xff] %v3946_v44  ;;  %v4077_v59 = vadd.f32 %v4076_v12, %v3946_v44  ;;  %v4115_v47 = vmul.f32 %v3946_v44, %v3946_v44  ;;  %v5387_v25 = vadd.f32 %v5386_v0, %v5385_v46  ;;  %v5498_v60 = vpop.f32.mrb[213].mxu1  ;;  %v5388_v63 = vpop.f32.mrb[214].mxu0 }
 0x2a5   : > { %v5499_v26 = vadd.f32 %v5498_v60, %v5497_v15  ;;  %v5500_v43 = vpop.f32.mrb[214].mxu1  ;;  %v5389_v19 = vpop.f32.mrb[215].mxu0 }
 0x2a6   : > { %v4146_v35 = vadd.f32 %v4145_v57, %v4115_v47  ;;  %v3790_v14 = vadd.f32 %v5387_v25, %v6633_v13  ;;  %v5390_v11 = vadd.f32 %v5389_v19, %v5388_v63  ;;  %v5501_v45 = vpop.f32.mrb[215].mxu1 }
 0x2a7   : > { %v5502_v31 = vadd.f32 %v5501_v45, %v5500_v43 }
 0x2a8   : > { %v3951_v8 = vadd.f32 %v5499_v26, %v3790_v14  ;;  %v3793_v17 = vadd.f32 %v5390_v11, %v6636_v62 }
 0x2aa   : > { %4047 = vst [vmem:[%s6703_s19 + $0x50] sm:$0xff] %v3951_v8  ;;  %v4078_v18 = vadd.f32 %v4077_v59, %v3951_v8  ;;  %v4116_v36 = vmul.f32 %v3951_v8, %v3951_v8  ;;  %v3954_v24 = vadd.f32 %v5502_v31, %v3793_v17  ;;  %v5391_v6 = vpop.f32.mrb[216].mxu0 }
 0x2ab   : > { %v5503_v49 = vpop.f32.mrb[216].mxu1  ;;  %v5392_v10 = vpop.f32.mrb[217].mxu0 }
 0x2ac   : > { %v4147_v37 = vadd.f32 %v4146_v35, %v4116_v36  ;;  %4048 = vst [vmem:[%s6703_s19 + $0x58] sm:$0xff] %v3954_v24  ;;  %v4079_v52 = vadd.f32 %v4078_v18, %v3954_v24  ;;  %v4117_v61 = vmul.f32 %v3954_v24, %v3954_v24  ;;  %v5393_v48 = vadd.f32 %v5392_v10, %v5391_v6  ;;  %v5504_v13 = vpop.f32.mrb[217].mxu1  ;;  %v5394_v23 = vpop.f32.mrb[218].mxu0 }
 0x2ad   : > { %v5505_v1 = vadd.f32 %v5504_v13, %v5503_v49  ;;  %v5506_v41 = vpop.f32.mrb[218].mxu1  ;;  %v5395_v30 = vpop.f32.mrb[219].mxu0 }
 0x2ae   : > { %v4148_v62 = vadd.f32 %v4147_v37, %v4117_v61  ;;  %v3798_v21 = vadd.f32 %v5393_v48, %v6639_v5  ;;  %v5396_v58 = vadd.f32 %v5395_v30, %v5394_v23  ;;  %v5507_v54 = vpop.f32.mrb[219].mxu1 }
 0x2af   : > { %v5508_v32 = vadd.f32 %v5507_v54, %v5506_v41 }
 0x2b0   : > { %v3959_v22 = vadd.f32 %v5505_v1, %v3798_v21  ;;  %v3801_v56 = vadd.f32 %v5396_v58, %v6642_v40 }
 0x2b2   : > { %4049 = vst [vmem:[%s6703_s19 + $0x60] sm:$0xff] %v3959_v22  ;;  %v4080_v12 = vadd.f32 %v4079_v52, %v3959_v22  ;;  %v4118_v20 = vmul.f32 %v3959_v22, %v3959_v22  ;;  %v3962_v44 = vadd.f32 %v5508_v32, %v3801_v56  ;;  %v5397_v46 = vpop.f32.mrb[220].mxu0 }
 0x2b3   : > { %v5509_v15 = vpop.f32.mrb[220].mxu1  ;;  %v5398_v0 = vpop.f32.mrb[221].mxu0 }
 0x2b4   : > { %v4149_v57 = vadd.f32 %v4148_v62, %v4118_v20  ;;  %4050 = vst [vmem:[%s6703_s19 + $0x68] sm:$0xff] %v3962_v44  ;;  %v4081_v59 = vadd.f32 %v4080_v12, %v3962_v44  ;;  %v4119_v47 = vmul.f32 %v3962_v44, %v3962_v44  ;;  %v5399_v25 = vadd.f32 %v5398_v0, %v5397_v46  ;;  %v5510_v5 = vpop.f32.mrb[221].mxu1  ;;  %v5400_v60 = vpop.f32.mrb[222].mxu0 }
 0x2b5   : > { %v5511_v63 = vadd.f32 %v5510_v5, %v5509_v15  ;;  %v5512_v26 = vpop.f32.mrb[222].mxu1  ;;  %v5401_v43 = vpop.f32.mrb[223].mxu0 }
 0x2b6   : > { %v4150_v40 = vadd.f32 %v4149_v57, %v4119_v47  ;;  %v3806_v19 = vadd.f32 %v5399_v25, %v6645_v3  ;;  %v5402_v35 = vadd.f32 %v5401_v43, %v5400_v60  ;;  %v5513_v14 = vpop.f32.mrb[223].mxu1 }
 0x2b7   : > { %v5514_v11 = vadd.f32 %v5513_v14, %v5512_v26 }
 0x2b8   : > { %v3967_v45 = vadd.f32 %v5511_v63, %v3806_v19  ;;  %v3809_v31 = vadd.f32 %v5402_v35, %v6648_v4 }
 0x2ba   : > { %4051 = vst [vmem:[%s6703_s19 + $0x70] sm:$0xff] %v3967_v45  ;;  %v4082_v8 = vadd.f32 %v4081_v59, %v3967_v45  ;;  %v4120_v17 = vmul.f32 %v3967_v45, %v3967_v45  ;;  %v3970_v18 = vadd.f32 %v5514_v11, %v3809_v31  ;;  %v5403_v36 = vpop.f32.mrb[224].mxu0 }
 0x2bb   : > { %v5515_v24 = vpop.f32.mrb[224].mxu1  ;;  %v5404_v6 = vpop.f32.mrb[225].mxu0 }
 0x2bc   : > { %v4151_v49 = vadd.f32 %v4150_v40, %v4120_v17  ;;  %4052 = vst [vmem:[%s6703_s19 + $0x78] sm:$0xff] %v3970_v18  ;;  %v4083_v10 = vadd.f32 %v4082_v8, %v3970_v18  ;;  %v4121_v37 = vmul.f32 %v3970_v18, %v3970_v18  ;;  %v5405_v52 = vadd.f32 %v5404_v6, %v5403_v36  ;;  %v5516_v3 = vpop.f32.mrb[225].mxu1  ;;  %v5406_v61 = vpop.f32.mrb[226].mxu0 }
 0x2bd   : > { %v5517_v48 = vadd.f32 %v5516_v3, %v5515_v24  ;;  %v5518_v13 = vpop.f32.mrb[226].mxu1  ;;  %v5407_v23 = vpop.f32.mrb[227].mxu0 }
 0x2be   : > { %v4152_v4 = vadd.f32 %v4151_v49, %v4121_v37  ;;  %v3814_v1 = vadd.f32 %v5405_v52, %v6651_v27  ;;  %v5408_v41 = vadd.f32 %v5407_v23, %v5406_v61  ;;  %v5519_v30 = vpop.f32.mrb[227].mxu1 }
 0x2bf   : > { %v5520_v62 = vadd.f32 %v5519_v30, %v5518_v13 }
 0x2c0   : > { %v3975_v21 = vadd.f32 %v5517_v48, %v3814_v1  ;;  %v3817_v58 = vadd.f32 %v5408_v41, %v6654_v33 }
 0x2c2   : > { %4053 = vst [vmem:[%s6703_s19 + $0x80] sm:$0xff] %v3975_v21  ;;  %v4084_v54 = vadd.f32 %v4083_v10, %v3975_v21  ;;  %v4122_v32 = vmul.f32 %v3975_v21, %v3975_v21  ;;  %v3978_v22 = vadd.f32 %v5520_v62, %v3817_v58  ;;  %v5409_v56 = vpop.f32.mrb[228].mxu0 }
 0x2c3   : > { %v5521_v12 = vpop.f32.mrb[228].mxu1  ;;  %v5410_v20 = vpop.f32.mrb[229].mxu0 }
 0x2c4   : > { %v4153_v44 = vadd.f32 %v4152_v4, %v4122_v32  ;;  %4054 = vst [vmem:[%s6703_s19 + $0x88] sm:$0xff] %v3978_v22  ;;  %v4085_v46 = vadd.f32 %v4084_v54, %v3978_v22  ;;  %v4123_v15 = vmul.f32 %v3978_v22, %v3978_v22  ;;  %v5411_v0 = vadd.f32 %v5410_v20, %v5409_v56  ;;  %v5522_v27 = vpop.f32.mrb[229].mxu1  ;;  %v5412_v57 = vpop.f32.mrb[230].mxu0 }
 0x2c5   : > { %v5523_v59 = vadd.f32 %v5522_v27, %v5521_v12  ;;  %v5524_v47 = vpop.f32.mrb[230].mxu1  ;;  %v5413_v25 = vpop.f32.mrb[231].mxu0 }
 0x2c6   : > { %v4154_v33 = vadd.f32 %v4153_v44, %v4123_v15  ;;  %v3822_v5 = vadd.f32 %v5411_v0, %v6657_v28  ;;  %v5414_v60 = vadd.f32 %v5413_v25, %v5412_v57  ;;  %v5525_v63 = vpop.f32.mrb[231].mxu1 }
 0x2c7   : > { %v5526_v26 = vadd.f32 %v5525_v63, %v5524_v47 }
 0x2c8   : > { %v3983_v43 = vadd.f32 %v5523_v59, %v3822_v5  ;;  %v3825_v40 = vadd.f32 %v5414_v60, %v6660_v42 }
 0x2ca   : > { %4055 = vst [vmem:[%s6703_s19 + $0x90] sm:$0xff] %v3983_v43  ;;  %v4086_v19 = vadd.f32 %v4085_v46, %v3983_v43  ;;  %v4124_v35 = vmul.f32 %v3983_v43, %v3983_v43  ;;  %v3986_v14 = vadd.f32 %v5526_v26, %v3825_v40  ;;  %v5415_v11 = vpop.f32.mrb[232].mxu0 }
 0x2cb   : > { %v5527_v45 = vpop.f32.mrb[232].mxu1  ;;  %v5416_v31 = vpop.f32.mrb[233].mxu0 }
 0x2cc   : > { %v4155_v8 = vadd.f32 %v4154_v33, %v4124_v35  ;;  %4056 = vst [vmem:[%s6703_s19 + $0x98] sm:$0xff] %v3986_v14  ;;  %v4087_v17 = vadd.f32 %v4086_v19, %v3986_v14  ;;  %v4125_v18 = vmul.f32 %v3986_v14, %v3986_v14  ;;  %v5417_v36 = vadd.f32 %v5416_v31, %v5415_v11  ;;  %v5528_v28 = vpop.f32.mrb[233].mxu1  ;;  %v5418_v24 = vpop.f32.mrb[234].mxu0 }
 0x2cd   : > { %v5529_v6 = vadd.f32 %v5528_v28, %v5527_v45  ;;  %v5530_v49 = vpop.f32.mrb[234].mxu1  ;;  %v5419_v10 = vpop.f32.mrb[235].mxu0 }
 0x2ce   : > { %v4156_v42 = vadd.f32 %v4155_v8, %v4125_v18  ;;  %v3830_v37 = vadd.f32 %v5417_v36, %v6663_v39  ;;  %v5420_v52 = vadd.f32 %v5419_v10, %v5418_v24  ;;  %v5531_v3 = vpop.f32.mrb[235].mxu1 }
 0x2cf   : > { %v5532_v61 = vadd.f32 %v5531_v3, %v5530_v49 }
 0x2d0   : > { %v3991_v48 = vadd.f32 %v5529_v6, %v3830_v37  ;;  %v3833_v13 = vadd.f32 %v5420_v52, %v6666_v29 }
 0x2d2   : > { %4057 = vst [vmem:[%s6703_s19 + $0xa0] sm:$0xff] %v3991_v48  ;;  %v4088_v23 = vadd.f32 %v4087_v17, %v3991_v48  ;;  %v4126_v4 = vmul.f32 %v3991_v48, %v3991_v48  ;;  %v3994_v1 = vadd.f32 %v5532_v61, %v3833_v13  ;;  %v5421_v41 = vpop.f32.mrb[236].mxu0 }
 0x2d3   : > { %v5533_v30 = vpop.f32.mrb[236].mxu1  ;;  %v5422_v62 = vpop.f32.mrb[237].mxu0 }
 0x2d4   : > { %v4157_v21 = vadd.f32 %v4156_v42, %v4126_v4  ;;  %4058 = vst [vmem:[%s6703_s19 + $0xa8] sm:$0xff] %v3994_v1  ;;  %v4089_v58 = vadd.f32 %v4088_v23, %v3994_v1  ;;  %v4127_v54 = vmul.f32 %v3994_v1, %v3994_v1  ;;  %v5423_v32 = vadd.f32 %v5422_v62, %v5421_v41  ;;  %v5534_v39 = vpop.f32.mrb[237].mxu1  ;;  %v5424_v22 = vpop.f32.mrb[238].mxu0 }
 0x2d5   : > { %v5535_v56 = vadd.f32 %v5534_v39, %v5533_v30  ;;  %v5536_v12 = vpop.f32.mrb[238].mxu1  ;;  %v5425_v20 = vpop.f32.mrb[239].mxu0 }
 0x2d6   : > { %v4158_v29 = vadd.f32 %v4157_v21, %v4127_v54  ;;  %v3838_v44 = vadd.f32 %v5423_v32, %v6669_v55  ;;  %v5426_v46 = vadd.f32 %v5425_v20, %v5424_v22  ;;  %v5537_v15 = vpop.f32.mrb[239].mxu1 }
 0x2d7   : > { %v5538_v0 = vadd.f32 %v5537_v15, %v5536_v12 }
 0x2d8   : > { %v3999_v27 = vadd.f32 %v5535_v56, %v3838_v44  ;;  %v3841_v57 = vadd.f32 %v5426_v46, %v6672_v7 }
 0x2da   : > { %4059 = vst [vmem:[%s6703_s19 + $0xb0] sm:$0xff] %v3999_v27  ;;  %v4090_v59 = vadd.f32 %v4089_v58, %v3999_v27  ;;  %v4128_v47 = vmul.f32 %v3999_v27, %v3999_v27  ;;  %v4002_v25 = vadd.f32 %v5538_v0, %v3841_v57  ;;  %v5427_v33 = vpop.f32.mrb[240].mxu0 }
 0x2db   : > { %v5539_v5 = vpop.f32.mrb[240].mxu1  ;;  %v5428_v60 = vpop.f32.mrb[241].mxu0 }
 0x2dc   : > { %v4159_v63 = vadd.f32 %v4158_v29, %v4128_v47  ;;  %4060 = vst [vmem:[%s6703_s19 + $0xb8] sm:$0xff] %v4002_v25  ;;  %v4091_v26 = vadd.f32 %v4090_v59, %v4002_v25  ;;  %v4129_v43 = vmul.f32 %v4002_v25, %v4002_v25  ;;  %v5429_v40 = vadd.f32 %v5428_v60, %v5427_v33  ;;  %v5540_v55 = vpop.f32.mrb[241].mxu1  ;;  %v5430_v19 = vpop.f32.mrb[242].mxu0 }
 0x2dd   : > { %v5541_v35 = vadd.f32 %v5540_v55, %v5539_v5  ;;  %v5542_v14 = vpop.f32.mrb[242].mxu1  ;;  %v5431_v11 = vpop.f32.mrb[243].mxu0 }
 0x2de   : > { %v4160_v7 = vadd.f32 %v4159_v63, %v4129_v43  ;;  %v3846_v45 = vadd.f32 %v5429_v40, %v6675_v38  ;;  %v5432_v31 = vadd.f32 %v5431_v11, %v5430_v19  ;;  %v5543_v8 = vpop.f32.mrb[243].mxu1 }
 0x2df   : > { %v5544_v17 = vadd.f32 %v5543_v8, %v5542_v14 }
 0x2e0   : > { %v4007_v18 = vadd.f32 %v5541_v35, %v3846_v45  ;;  %v3849_v36 = vadd.f32 %v5432_v31, %v6678_v53 }
 0x2e2   : > { %4061 = vst [vmem:[%s6703_s19 + $0xc0] sm:$0xff] %v4007_v18  ;;  %v4092_v28 = vadd.f32 %v4091_v26, %v4007_v18  ;;  %v4130_v24 = vmul.f32 %v4007_v18, %v4007_v18  ;;  %v4010_v6 = vadd.f32 %v5544_v17, %v3849_v36  ;;  %v5433_v49 = vpop.f32.mrb[244].mxu0 }
 0x2e3   : > { %v5545_v10 = vpop.f32.mrb[244].mxu1  ;;  %v5434_v42 = vpop.f32.mrb[245].mxu0 }
 0x2e4   : > { %v4161_v37 = vadd.f32 %v4160_v7, %v4130_v24  ;;  %4062 = vst [vmem:[%s6703_s19 + $0xc8] sm:$0xff] %v4010_v6  ;;  %v4093_v52 = vadd.f32 %v4092_v28, %v4010_v6  ;;  %v4131_v3 = vmul.f32 %v4010_v6, %v4010_v6  ;;  %v5435_v61 = vadd.f32 %v5434_v42, %v5433_v49  ;;  %v5546_v38 = vpop.f32.mrb[245].mxu1  ;;  %v5436_v48 = vpop.f32.mrb[246].mxu0 }
 0x2e5   : > { %v5547_v13 = vadd.f32 %v5546_v38, %v5545_v10  ;;  %v5548_v23 = vpop.f32.mrb[246].mxu1  ;;  %v5437_v4 = vpop.f32.mrb[247].mxu0 }
 0x2e6   : > { %v4162_v53 = vadd.f32 %v4161_v37, %v4131_v3  ;;  %v3854_v1 = vadd.f32 %v5435_v61, %v6681_v9  ;;  %v5438_v41 = vadd.f32 %v5437_v4, %v5436_v48  ;;  %v5549_v30 = vpop.f32.mrb[247].mxu1 }
 0x2e7   : > { %v5550_v62 = vadd.f32 %v5549_v30, %v5548_v23  ;;  %v4175_v23 = vlaneseq }
 0x2e8   : > { %v4015_v21 = vadd.f32 %v5547_v13, %v3854_v1  ;;  %v3857_v58 = vadd.f32 %v5438_v41, %v6684_v34 }
 0x2e9   : > { %v4176_v41 = vshrl.u32 %v4175_v23, 7 }
 0x2ea   : > { %4063 = vst [vmem:[%s6703_s19 + $0xd0] sm:$0xff] %v4015_v21  ;;  %v4094_v54 = vadd.f32 %v4093_v52, %v4015_v21  ;;  %v4132_v32 = vmul.f32 %v4015_v21, %v4015_v21  ;;  %v4018_v39 = vadd.f32 %v5550_v62, %v3857_v58  ;;  %v5439_v22 = vpop.f32.mrb[248].mxu0 }
 0x2eb   : > { %v5551_v56 = vpop.f32.mrb[248].mxu1  ;;  %v5440_v12 = vpop.f32.mrb[249].mxu0  ;;  %vm4178_vm0 = vcmp.eq.s32.totalorder %v4176_v41, 1  ;;  %vm4177_vm1 = vcmp.eq.s32.totalorder %v4176_v41, 0 }
 0x2ec   : > { %v4163_v20 = vadd.f32 %v4162_v53, %v4132_v32  ;;  %4064 = vst [vmem:[%s6703_s19 + $0xd8] sm:$0xff] %v4018_v39  ;;  %v4095_v29 = vadd.f32 %v4094_v54, %v4018_v39  ;;  %v4133_v44 = vmul.f32 %v4018_v39, %v4018_v39  ;;  %v5441_v46 = vadd.f32 %v5440_v12, %v5439_v22  ;;  %v5552_v9 = vpop.f32.mrb[249].mxu1  ;;  %v5442_v15 = vpop.f32.mrb[250].mxu0 }
 0x2ed   : > { %v5553_v0 = vadd.f32 %v5552_v9, %v5551_v56  ;;  %v5554_v27 = vpop.f32.mrb[250].mxu1  ;;  %v5443_v57 = vpop.f32.mrb[251].mxu0 }
 0x2ee   : > { %v4164_v34 = vadd.f32 %v4163_v20, %v4133_v44  ;;  %v3862_v59 = vadd.f32 %v5441_v46, %v6687_v50  ;;  %v5444_v47 = vadd.f32 %v5443_v57, %v5442_v15  ;;  %v5555_v25 = vpop.f32.mrb[251].mxu1 }
 0x2ef   : > { %v5556_v33 = vadd.f32 %v5555_v25, %v5554_v27 }
 0x2f0   : > { %v4023_v5 = vadd.f32 %v5553_v0, %v3862_v59  ;;  %v3865_v60 = vadd.f32 %v5444_v47, %v6690_v16 }
 0x2f2   : > { %4065 = vst [vmem:[%s6703_s19 + $0xe0] sm:$0xff] %v4023_v5  ;;  %v4096_v63 = vadd.f32 %v4095_v29, %v4023_v5  ;;  %v4134_v26 = vmul.f32 %v4023_v5, %v4023_v5  ;;  %v4026_v43 = vadd.f32 %v5556_v33, %v3865_v60  ;;  %v5445_v40 = vpop.f32.mrb[252].mxu0 }
 0x2f3   : > { %v5557_v55 = vpop.f32.mrb[252].mxu1  ;;  %v5446_v19 = vpop.f32.mrb[253].mxu0 }
 0x2f4   : > { %v4165_v35 = vadd.f32 %v4164_v34, %v4134_v26  ;;  %4066 = vst [vmem:[%s6703_s19 + $0xe8] sm:$0xff] %v4026_v43  ;;  %v4097_v14 = vadd.f32 %v4096_v63, %v4026_v43  ;;  %v4135_v11 = vmul.f32 %v4026_v43, %v4026_v43  ;;  %v5447_v7 = vadd.f32 %v5446_v19, %v5445_v40  ;;  %v5558_v50 = vpop.f32.mrb[253].mxu1  ;;  %v5448_v45 = vpop.f32.mrb[254].mxu0 }
 0x2f5   : > { %v5559_v31 = vadd.f32 %v5558_v50, %v5557_v55  ;;  %v5560_v8 = vpop.f32.mrb[254].mxu1  ;;  %v5449_v17 = vpop.f32.mrb[255].mxu0 }
 0x2f6   : > { %v4166_v16 = vadd.f32 %v4165_v35, %v4135_v11  ;;  %v3870_v18 = vadd.f32 %v5447_v7, %v6693_v2  ;;  %v5450_v36 = vadd.f32 %v5449_v17, %v5448_v45  ;;  %v5561_v28 = vpop.f32.mrb[255].mxu1 }
 0x2f7   : > { %v5562_v24 = vadd.f32 %v5561_v28, %v5560_v8 }
 0x2f8   : > { %v4031_v6 = vadd.f32 %v5559_v31, %v3870_v18  ;;  %v3873_v49 = vadd.f32 %v5450_v36, %v6696_v51 }
 0x2fa   : > { %4067 = vst [vmem:[%s6703_s19 + $0xf0] sm:$0xff] %v4031_v6  ;;  %v4098_v10 = vadd.f32 %v4097_v14, %v4031_v6  ;;  %v4136_v42 = vmul.f32 %v4031_v6, %v4031_v6  ;;  %v4034_v37 = vadd.f32 %v5562_v24, %v3873_v49 }
 0x2fc   : > { %v4167_v52 = vadd.f32 %v4166_v16, %v4136_v42  ;;  %4068 = vst [vmem:[%s6703_s19 + $0xf8] sm:$0xff] %v4034_v37  ;;  %v4099_v3 = vadd.f32 %v4098_v10, %v4034_v37  ;;  %v4137_v61 = vmul.f32 %v4034_v37, %v4034_v37 }
 0x2fe   : > { %v4100_v38 = vrot.slane %v4099_v3, 4  ;;  %v4168_v48 = vadd.f32 %v4167_v52, %v4137_v61 }
 0x300   : > { %v4101_v2 = vadd.f32 %v4100_v38, %v4099_v3  ;;  %v4169_v13 = vrot.slane %v4168_v48, 4 }
 0x302   : > { %v4102_v4 = vrot.slane %v4101_v2, 2  ;;  %v4170_v53 = vadd.f32 %v4169_v13, %v4168_v48 }
 0x304   : > { %v4103_v1 = vadd.f32 %v4102_v4, %v4101_v2  ;;  %v4171_v51 = vrot.slane %v4170_v53, 2 }
 0x306   : > { %v4172_v30 = vadd.f32 %v4171_v51, %v4170_v53  ;;  %v4104_v62 = vrot.slane %v4103_v1, 1 }
 0x308   : > { %v4173_v21 = vrot.slane %v4172_v30, 1  ;;  %v4105_v54 = vadd.f32 %v4104_v62, %v4103_v1 }
 0x30a   : > { %v4174_v58 = vadd.f32 %v4173_v21, %v4172_v30 }
 0x30c   : > { %v4179_v32 = vsel %vm4178_vm0, %v4174_v58, 0.0 }
 0x30d   : > { %v4180_v39 = vsel %vm4177_vm1, %v4105_v54, %v4179_v32 }
 0x30e   : > { %4181 = vst [vmem:[%s187_s23] sm:$0xff] %v4180_v39 }
 0x30f PF: > { %s14_s12 = sadd.s32 1, %s5705_s12  }
 0x310   : > { %p11_p5 = scmp.ge.s32.totalorder %s14_s12, 4  }
 0x312   :  { %13 = sbr.rel (!%p11_p5) target bundleno = 1 (0x1), region = 70 }

// kernel: _lambda_.64
= control target key start
LH: loop header
LB: loop body
LE: loop exit
PB: predicated region body
PF: predicated region fallthrough
CT: control target
= control target key end

     0   :  { %s4271_s1 = inlined_call_operand.vmem [shape: bf16[3200,128], index: 1, kind: input, shape index: {}]   ;;  %s4272_s0 = inlined_call_operand.vmem [shape: bf16[32,3200], index: 0, kind: input, shape index: {}]   ;;  %s4273_s2 = inlined_call_operand.vmem [shape: f32[32,128], index: 2, kind: output, shape index: {0}]   ;;  %s4274_s3 = inlined_call_operand.vmem [shape: f32[1,8,128], index: 3, kind: output, shape index: {1}]  }
   0x1   :  { %v3212_v0 = vld [vmem:[%s4271_s1 + $0x40] sm:$0xff]   ;;  %v3216_v4 = vld [vmem:[%s4271_s1 + $0x48] sm:$0xff]   ;;  %v3220_v8 = vld [vmem:[%s4271_s1 + $0x50] sm:$0xff]  }
   0x2   :  { %v3213_v1 = vld [vmem:[%s4271_s1 + $0xc0] sm:$0xff]   ;;  %2846 = vmatprep.subr.bf16.mxu0 %v3212_v0  ;;  %v3217_v5 = vld [vmem:[%s4271_s1 + $0xc8] sm:$0xff]   ;;  %v3221_v9 = vld [vmem:[%s4271_s1 + $0xd0] sm:$0xff]  }
   0x3   :  { %v3214_v2 = vld [vmem:[%s4271_s1] sm:$0xff]   ;;  %2874 = vmatprep.subr.bf16.mxu1 %v3213_v1  ;;  %v3218_v6 = vld [vmem:[%s4271_s1 + $0x8] sm:$0xff]   ;;  %v3222_v10 = vld [vmem:[%s4271_s1 + $0x10] sm:$0xff]  }
   0x4   :  { %v3215_v3 = vld [vmem:[%s4271_s1 + $0x80] sm:$0xff]   ;;  %2847 = vmatpush3.bf16.msra.mxu0 %v3214_v2  ;;  %v3219_v7 = vld [vmem:[%s4271_s1 + $0x88] sm:$0xff]   ;;  %v3223_v11 = vld [vmem:[%s4271_s1 + $0x90] sm:$0xff]  }
   0x5   :  { %2875 = vmatpush3.bf16.msra.mxu1 %v3215_v3  ;;  %2848 = vmatprep.subr.bf16.mxu0 %v3216_v4  ;;  %v3224_v12 = vld [vmem:[%s4271_s1 + $0x58] sm:$0xff]   ;;  %v3228_v16 = vld [vmem:[%s4271_s1 + $0x60] sm:$0xff]   ;;  %v3232_v20 = vld [vmem:[%s4271_s1 + $0x68] sm:$0xff]  }
   0x6   :  { %2876 = vmatprep.subr.bf16.mxu1 %v3217_v5  ;;  %v3225_v13 = vld [vmem:[%s4271_s1 + $0xd8] sm:$0xff]   ;;  %v3229_v17 = vld [vmem:[%s4271_s1 + $0xe0] sm:$0xff]   ;;  %v3233_v21 = vld [vmem:[%s4271_s1 + $0xe8] sm:$0xff]  }
   0x7   :  { %v3226_v14 = vld [vmem:[%s4271_s1 + $0x18] sm:$0xff]   ;;  %v3230_v18 = vld [vmem:[%s4271_s1 + $0x20] sm:$0xff]   ;;  %v3234_v22 = vld [vmem:[%s4271_s1 + $0x28] sm:$0xff]  }
   0x8   :  { %2849 = vmatpush3.bf16.msra.mxu0 %v3218_v6  ;;  %v3227_v15 = vld [vmem:[%s4271_s1 + $0x98] sm:$0xff]   ;;  %v3231_v19 = vld [vmem:[%s4271_s1 + $0xa0] sm:$0xff]   ;;  %v3235_v23 = vld [vmem:[%s4271_s1 + $0xa8] sm:$0xff]  }
   0x9   :  { %2877 = vmatpush3.bf16.msra.mxu1 %v3219_v7  ;;  %2850 = vmatprep.subr.bf16.mxu0 %v3220_v8  ;;  %v3236_v24 = vld [vmem:[%s4271_s1 + $0x70] sm:$0xff]   ;;  %v3240_v28 = vld [vmem:[%s4271_s1 + $0x78] sm:$0xff]   ;;  %v3244_v32 = vld [vmem:[%s4272_s0] ss:$100 sps:$4 sm:$0xff]  }
   0xa   :  { %2878 = vmatprep.subr.bf16.mxu1 %v3221_v9  ;;  %v3237_v25 = vld [vmem:[%s4271_s1 + $0xf0] sm:$0xff]   ;;  %v3241_v29 = vld [vmem:[%s4271_s1 + $0xf8] sm:$0xff]   ;;  %v3246_v33 = vld [vmem:[%s4272_s0 + $0x4] ss:$100 sps:$4 sm:$0xff]  }
   0xb   :  { %v3238_v26 = vld [vmem:[%s4271_s1 + $0x30] sm:$0xff]   ;;  %v3242_v30 = vld [vmem:[%s4271_s1 + $0x38] sm:$0xff]   ;;  %v3247_v34 = vld [vmem:[%s4272_s0 + $0x8] ss:$100 sps:$4 sm:$0xff]   ;;  %1950 = vmatprep.mubr.bf16.mxu0 %v3246_v33 }
   0xc   :  { %2851 = vmatpush3.bf16.msra.mxu0 %v3222_v10  ;;  %v3239_v27 = vld [vmem:[%s4271_s1 + $0xb0] sm:$0xff]   ;;  %v3243_v31 = vld [vmem:[%s4271_s1 + $0xb8] sm:$0xff]   ;;  %v3250_v36 = vld [vmem:[%s4271_s1 + $0x140] sm:$0xff]  }
   0xd   :  { %2879 = vmatpush3.bf16.msra.mxu1 %v3223_v11  ;;  %2852 = vmatprep.subr.bf16.mxu0 %v3224_v12  ;;  %v3249_v35 = vld [vmem:[%s4272_s0 + $0xc] ss:$100 sps:$4 sm:$0xff]   ;;  %v3251_v37 = vld [vmem:[%s4271_s1 + $0x100] sm:$0xff]   ;;  %v3262_v48 = vld [vmem:[%s4271_s1 + $0x158] sm:$0xff]  }
   0xe   :  { %2880 = vmatprep.subr.bf16.mxu1 %v3225_v13  ;;  %1999 = vmatprep.mubr.bf16.mxu1 %v3249_v35  ;;  %v3252_v38 = vld [vmem:[%s4271_s1 + $0x1c0] sm:$0xff]   ;;  %v3254_v40 = vld [vmem:[%s4271_s1 + $0x148] sm:$0xff]   ;;  %v3258_v44 = vld [vmem:[%s4271_s1 + $0x150] sm:$0xff]  }
   0xf   :  { %v3253_v39 = vld [vmem:[%s4271_s1 + $0x180] sm:$0xff]   ;;  %v3255_v41 = vld [vmem:[%s4271_s1 + $0x108] sm:$0xff]   ;;  %v3259_v45 = vld [vmem:[%s4271_s1 + $0x110] sm:$0xff]  }
  0x10   :  { %2853 = vmatpush3.bf16.msra.mxu0 %v3226_v14  ;;  %v3256_v42 = vld [vmem:[%s4271_s1 + $0x1c8] sm:$0xff]   ;;  %v3260_v46 = vld [vmem:[%s4271_s1 + $0x1d0] sm:$0xff]   ;;  %v3263_v49 = vld [vmem:[%s4271_s1 + $0x118] sm:$0xff]  }
  0x11   :  { %2881 = vmatpush3.bf16.msra.mxu1 %v3227_v15  ;;  %2854 = vmatprep.subr.bf16.mxu0 %v3228_v16  ;;  %v3257_v43 = vld [vmem:[%s4271_s1 + $0x188] sm:$0xff]   ;;  %v3261_v47 = vld [vmem:[%s4271_s1 + $0x190] sm:$0xff]   ;;  %v3264_v50 = vld [vmem:[%s4271_s1 + $0x1d8] sm:$0xff]  }
  0x12   :  { %2882 = vmatprep.subr.bf16.mxu1 %v3229_v17  ;;  %v3265_v51 = vld [vmem:[%s4271_s1 + $0x198] sm:$0xff]   ;;  %v3266_v52 = vld [vmem:[%s4271_s1 + $0x160] sm:$0xff]   ;;  %v3270_v56 = vld [vmem:[%s4271_s1 + $0x168] sm:$0xff]  }
  0x13   :  { %v3267_v53 = vld [vmem:[%s4271_s1 + $0x120] sm:$0xff]   ;;  %v3271_v57 = vld [vmem:[%s4272_s0 + $0xcc] ss:$100 sps:$4 sm:$0xff]   ;;  %v3273_v58 = vld [vmem:[%s4272_s0 + $0xd4] ss:$100 sps:$4 sm:$0xff]  }
  0x14   :  { %2855 = vmatpush3.bf16.msra.mxu0 %v3230_v18  ;;  %v3268_v54 = vld [vmem:[%s4271_s1 + $0x1e0] sm:$0xff]   ;;  %v3275_v59 = vld [vmem:[%s4271_s1 + $0x128] sm:$0xff]   ;;  %v3277_v61 = vld [vmem:[%s4272_s0 + $0xd0] ss:$100 sps:$4 sm:$0xff]  }
  0x15   :  { %2883 = vmatpush3.bf16.msra.mxu1 %v3231_v19  ;;  %2856 = vmatprep.subr.bf16.mxu0 %v3232_v20  ;;  %v3269_v55 = vld [vmem:[%s4271_s1 + $0x1a0] sm:$0xff]   ;;  %v3276_v60 = vld [vmem:[%s4272_s0 + $0xc8] ss:$100 sps:$4 sm:$0xff]   ;;  %v3280_v0 = vld [vmem:[%s4271_s1 + $0x170] sm:$0xff]  }
  0x16   :  { %2884 = vmatprep.subr.bf16.mxu1 %v3233_v21  ;;  %v3278_v62 = vld [vmem:[%s4271_s1 + $0x1e8] sm:$0xff]   ;;  %v3281_v1 = vld [vmem:[%s4271_s1 + $0x130] sm:$0xff]   ;;  %v3284_v4 = vld [vmem:[%s4271_s1 + $0x178] sm:$0xff]  }
  0x17   :  { %v3279_v63 = vld [vmem:[%s4271_s1 + $0x1a8] sm:$0xff]   ;;  %v3282_v2 = vld [vmem:[%s4271_s1 + $0x1f0] sm:$0xff]   ;;  %v3285_v5 = vld [vmem:[%s4271_s1 + $0x138] sm:$0xff]  }
  0x18   :  { %2857 = vmatpush3.bf16.msra.mxu0 %v3234_v22  ;;  %v3283_v3 = vld [vmem:[%s4271_s1 + $0x1b0] sm:$0xff]   ;;  %v3286_v6 = vld [vmem:[%s4271_s1 + $0x1f8] sm:$0xff]   ;;  %v3291_v10 = vld [vmem:[%s4271_s1 + $0x240] sm:$0xff]  }
  0x19   :  { %2885 = vmatpush3.bf16.msra.mxu1 %v3235_v23  ;;  %2858 = vmatprep.subr.bf16.mxu0 %v3236_v24  ;;  %v3287_v7 = vld [vmem:[%s4272_s0 + $0x10] ss:$100 sps:$4 sm:$0xff]   ;;  %v3290_v9 = vld [vmem:[%s4271_s1 + $0x1b8] sm:$0xff]   ;;  %v3295_v13 = vld [vmem:[%s4271_s1 + $0x200] sm:$0xff]  }
  0x1a   :  { %2886 = vmatprep.subr.bf16.mxu1 %v3237_v25  ;;  %v3289_v8 = vld [vmem:[%s4272_s0 + $0x14] ss:$100 sps:$4 sm:$0xff]   ;;  %v3294_v12 = vld [vmem:[%s4272_s0 + $0x1c] ss:$100 sps:$4 sm:$0xff]   ;;  %v3298_v16 = vld [vmem:[%s4271_s1 + $0x248] sm:$0xff]  }
  0x1b   :  { %v3292_v11 = vld [vmem:[%s4272_s0 + $0x18] ss:$100 sps:$4 sm:$0xff]   ;;  %v3296_v14 = vld [vmem:[%s4271_s1 + $0x2c0] sm:$0xff]   ;;  %v3299_v17 = vld [vmem:[%s4271_s1 + $0x208] sm:$0xff]  }
  0x1c   :  { %2859 = vmatpush3.bf16.msra.mxu0 %v3238_v26  ;;  %v3297_v15 = vld [vmem:[%s4271_s1 + $0x280] sm:$0xff]   ;;  %v3300_v18 = vld [vmem:[%s4271_s1 + $0x2c8] sm:$0xff]   ;;  %v3304_v21 = vld [vmem:[%s4272_s0 + $0xd8] ss:$100 sps:$4 sm:$0xff]  }
  0x1d   :  { %2887 = vmatpush3.bf16.msra.mxu1 %v3239_v27  ;;  %2860 = vmatprep.subr.bf16.mxu0 %v3240_v28  ;;  %v3301_v19 = vld [vmem:[%s4272_s0 + $0xdc] ss:$100 sps:$4 sm:$0xff]   ;;  %v3303_v20 = vld [vmem:[%s4271_s1 + $0x288] sm:$0xff]   ;;  %v3305_v22 = vld [vmem:[%s4271_s1 + $0x250] sm:$0xff]  }
  0x1e   :  { %2888 = vmatprep.subr.bf16.mxu1 %v3241_v29  ;;  %v3306_v23 = vld [vmem:[%s4272_s0 + $0xe4] ss:$100 sps:$4 sm:$0xff]   ;;  %v3308_v24 = vld [vmem:[%s4271_s1 + $0x210] sm:$0xff]   ;;  %v3312_v28 = vld [vmem:[%s4271_s1 + $0x258] sm:$0xff]  }
  0x1f   :  { %v3309_v25 = vld [vmem:[%s4272_s0 + $0xe0] ss:$100 sps:$4 sm:$0xff]   ;;  %v3310_v26 = vld [vmem:[%s4271_s1 + $0x2d0] sm:$0xff]   ;;  %v3313_v29 = vld [vmem:[%s4271_s1 + $0x218] sm:$0xff]  }
  0x20   :  { %2861 = vmatpush3.bf16.msra.mxu0 %v3242_v30  ;;  %v3311_v27 = vld [vmem:[%s4271_s1 + $0x290] sm:$0xff]   ;;  %v3314_v30 = vld [vmem:[%s4271_s1 + $0x2d8] sm:$0xff]   ;;  %v3317_v33 = vld [vmem:[%s4271_s1 + $0x220] sm:$0xff]  }
  0x21   :  { %2889 = vmatpush3.bf16.msra.mxu1 %v3243_v31  ;;  %2902 = vmatprep.subr.bf16.mxu0 %v3250_v36  ;;  %v3315_v31 = vld [vmem:[%s4271_s1 + $0x298] sm:$0xff]   ;;  %v3319_v35 = vld [vmem:[%s4271_s1 + $0x2a0] sm:$0xff]   ;;  %v3320_v36 = vld [vmem:[%s4271_s1 + $0x268] sm:$0xff]  }
  0x22   :  { %2930 = vmatprep.subr.bf16.mxu1 %v3252_v38  ;;  %v3322_v38 = vld [vmem:[%s4271_s1 + $0x2e8] sm:$0xff]  }
  0x23   :  { %1951 = vmatmul.mubr.bf16.vlgmr.msra.gmra.mrb[0].mxu0 %v3244_v32  ;;  %v3316_v32 = vld [vmem:[%s4271_s1 + $0x260] sm:$0xff]  }
  0x24   :  { %2000 = vmatmul.mubr.bf16.vlgmr.msra.gmra.mrb[0].mxu1 %v3247_v34  ;;  %2903 = vmatpush3.bf16.msra.mxu0 %v3251_v37  ;;  %v3318_v34 = vld [vmem:[%s4271_s1 + $0x2e0] sm:$0xff]   ;;  %v3321_v37 = vld [vmem:[%s4271_s1 + $0x228] sm:$0xff]  }
  0x25   :  { %2931 = vmatpush3.bf16.msra.mxu1 %v3253_v39  ;;  %2904 = vmatprep.subr.bf16.mxu0 %v3254_v40  ;;  %v3323_v39 = vld [vmem:[%s4271_s1 + $0x2a8] sm:$0xff]   ;;  %v3324_v40 = vld [vmem:[%s4271_s1 + $0x270] sm:$0xff]  }
  0x26   :  { %2932 = vmatprep.subr.bf16.mxu1 %v3256_v42  ;;  %1958 = vmatprep.mubr.bf16.mxu0 %v3271_v57  ;;  %v3326_v42 = vld [vmem:[%s4271_s1 + $0x2f0] sm:$0xff]   ;;  %v3343_v57 = vld [vmem:[%s4271_s1 + $0x308] sm:$0xff]  }
  0x27   :  { %2007 = vmatprep.mubr.bf16.mxu1 %v3273_v58  ;;  %v3344_v58 = vld [vmem:[%s4271_s1 + $0x3c8] sm:$0xff]  }
  0x28   :  { %2905 = vmatpush3.bf16.msra.mxu0 %v3255_v41  ;;  %v3325_v41 = vld [vmem:[%s4271_s1 + $0x230] sm:$0xff]  }
  0x29   :  { %2933 = vmatpush3.bf16.msra.mxu1 %v3257_v43  ;;  %2906 = vmatprep.subr.bf16.mxu0 %v3258_v44  ;;  %v3327_v43 = vld [vmem:[%s4271_s1 + $0x2b0] sm:$0xff]   ;;  %v3328_v44 = vld [vmem:[%s4271_s1 + $0x278] sm:$0xff]  }
  0x2a   :  { %2934 = vmatprep.subr.bf16.mxu1 %v3260_v46  ;;  %v3330_v46 = vld [vmem:[%s4271_s1 + $0x2f8] sm:$0xff]  }
  0x2b   :  { %1959 = vmatmul.mubr.bf16.gmra.mrb[4].mxu0 %v3276_v60  ;;  %v3347_v60 = vld [vmem:[%s4271_s1 + $0x388] sm:$0xff]  }
  0x2c   :  { %2907 = vmatpush3.bf16.msra.mxu0 %v3259_v45  ;;  %2008 = vmatmul.mubr.bf16.gmra.mrb[4].mxu1 %v3277_v61  ;;  %v3329_v45 = vld [vmem:[%s4271_s1 + $0x238] sm:$0xff]   ;;  %v3348_v61 = vld [vmem:[%s4272_s0 + $0xe8] ss:$100 sps:$4 sm:$0xff]  }
  0x2d   :  { %2935 = vmatpush3.bf16.msra.mxu1 %v3261_v47  ;;  %2908 = vmatprep.subr.bf16.mxu0 %v3262_v48  ;;  %v3331_v47 = vld [vmem:[%s4272_s0 + $0x20] ss:$100 sps:$4 sm:$0xff]  }
  0x2e   :  { %2936 = vmatprep.subr.bf16.mxu1 %v3264_v50  ;;  %2048 = vmatprep.mubr.bf16.mxu0 %v3289_v8  ;;  %v3333_v48 = vld [vmem:[%s4272_s0 + $0x24] ss:$100 sps:$4 sm:$0xff]  }
  0x2f   :  { %2097 = vmatprep.mubr.bf16.mxu1 %v3294_v12  ;;  %v3335_v50 = vld [vmem:[%s4271_s1 + $0x340] sm:$0xff]   ;;  %v3364_v12 = vld [vmem:[%s4271_s1 + $0x368] sm:$0xff]  }
  0x30   :  { %2909 = vmatpush3.bf16.msra.mxu0 %v3263_v49  ;;  %v3334_v49 = vld [vmem:[%s4271_s1 + $0x2b8] sm:$0xff]   ;;  %v3360_v8 = vld [vmem:[%s4271_s1 + $0x360] sm:$0xff]  }
  0x31   :  { %2937 = vmatpush3.bf16.msra.mxu1 %v3265_v51  ;;  %2910 = vmatprep.subr.bf16.mxu0 %v3266_v52  ;;  %v3336_v51 = vld [vmem:[%s4272_s0 + $0x28] ss:$100 sps:$4 sm:$0xff]  }
  0x32   :  { %2938 = vmatprep.subr.bf16.mxu1 %v3268_v54  ;;  %v3338_v52 = vld [vmem:[%s4272_s0 + $0x2c] ss:$100 sps:$4 sm:$0xff]   ;;  %v3340_v54 = vld [vmem:[%s4271_s1 + $0x3c0] sm:$0xff]  }
  0x34   :  { %2911 = vmatpush3.bf16.msra.mxu0 %v3267_v53  ;;  %v3339_v53 = vld [vmem:[%s4271_s1 + $0x300] sm:$0xff]  }
  0x35   :  { %2939 = vmatpush3.bf16.msra.mxu1 %v3269_v55  ;;  %2912 = vmatprep.subr.bf16.mxu0 %v3270_v56  ;;  %v3341_v55 = vld [vmem:[%s4271_s1 + $0x380] sm:$0xff]   ;;  %v3342_v56 = vld [vmem:[%s4271_s1 + $0x348] sm:$0xff]  }
  0x36   :  { %2940 = vmatprep.subr.bf16.mxu1 %v3278_v62  ;;  %v3349_v62 = vld [vmem:[%s4271_s1 + $0x350] sm:$0xff]  }
  0x38   :  { %2913 = vmatpush3.bf16.msra.mxu0 %v3275_v59  ;;  %v3345_v59 = vld [vmem:[%s4272_s0 + $0xec] ss:$100 sps:$4 sm:$0xff]  }
  0x39   :  { %2941 = vmatpush3.bf16.msra.mxu1 %v3279_v63  ;;  %2914 = vmatprep.subr.bf16.mxu0 %v3280_v0  ;;  %v3350_v63 = vld [vmem:[%s4272_s0 + $0xf4] ss:$100 sps:$4 sm:$0xff]  }
  0x3a   :  { %2942 = vmatprep.subr.bf16.mxu1 %v3282_v2  ;;  %v3352_v0 = vld [vmem:[%s4271_s1 + $0x310] sm:$0xff]  }
  0x3b   :  { %v3354_v2 = vld [vmem:[%s4271_s1 + $0x3d0] sm:$0xff]  }
  0x3c   :  { %2915 = vmatpush3.bf16.msra.mxu0 %v3281_v1  ;;  %v3353_v1 = vld [vmem:[%s4272_s0 + $0xf0] ss:$100 sps:$4 sm:$0xff]  }
  0x3d   :  { %2943 = vmatpush3.bf16.msra.mxu1 %v3283_v3  ;;  %2916 = vmatprep.subr.bf16.mxu0 %v3284_v4  ;;  %v3355_v3 = vld [vmem:[%s4271_s1 + $0x390] sm:$0xff]   ;;  %v3356_v4 = vld [vmem:[%s4271_s1 + $0x358] sm:$0xff]  }
  0x3e   :  { %2944 = vmatprep.subr.bf16.mxu1 %v3286_v6  ;;  %v3358_v6 = vld [vmem:[%s4271_s1 + $0x3d8] sm:$0xff]  }
  0x40   :  { %2917 = vmatpush3.bf16.msra.mxu0 %v3285_v5  ;;  %v3357_v5 = vld [vmem:[%s4271_s1 + $0x318] sm:$0xff]  }
  0x41   :  { %2945 = vmatpush3.bf16.msra.mxu1 %v3290_v9  ;;  %2958 = vmatprep.subr.bf16.mxu0 %v3291_v10  ;;  %v3361_v9 = vld [vmem:[%s4271_s1 + $0x320] sm:$0xff]  }
  0x42   :  { %2986 = vmatprep.subr.bf16.mxu1 %v3296_v14  ;;  %v3362_v10 = vld [vmem:[%s4271_s1 + $0x3e0] sm:$0xff]   ;;  %v3366_v14 = vld [vmem:[%s4271_s1 + $0x3e8] sm:$0xff]  }
  0x43   :  { %2049 = vmatmul.mubr.bf16.vlgmr.msra.gmra.mrb[8].mxu0 %v3287_v7  ;;  %v3359_v7 = vld [vmem:[%s4271_s1 + $0x398] sm:$0xff]  }
  0x44   :  { %2959 = vmatpush3.bf16.msra.mxu0 %v3295_v13  ;;  %2098 = vmatmul.mubr.bf16.vlgmr.msra.gmra.mrb[8].mxu1 %v3292_v11  ;;  %v3363_v11 = vld [vmem:[%s4271_s1 + $0x3a0] sm:$0xff]   ;;  %v3365_v13 = vld [vmem:[%s4271_s1 + $0x328] sm:$0xff]  }
  0x45   :  { %2987 = vmatpush3.bf16.msra.mxu1 %v3297_v15  ;;  %2960 = vmatprep.subr.bf16.mxu0 %v3298_v16  ;;  %v3367_v15 = vld [vmem:[%s4271_s1 + $0x3a8] sm:$0xff]   ;;  %v3368_v16 = vld [vmem:[%s4271_s1 + $0x370] sm:$0xff]  }
  0x46   :  { %2988 = vmatprep.subr.bf16.mxu1 %v3300_v18  ;;  %2056 = vmatprep.mubr.bf16.mxu0 %v3301_v19  ;;  %v3370_v18 = vld [vmem:[%s4271_s1 + $0x3f0] sm:$0xff]  }
  0x47   :  { %2105 = vmatprep.mubr.bf16.mxu1 %v3306_v23  ;;  %v3371_v19 = vld [vmem:[%s4271_s1 + $0x3b0] sm:$0xff]  }
  0x48   :  { %2961 = vmatpush3.bf16.msra.mxu0 %v3299_v17  ;;  %v3369_v17 = vld [vmem:[%s4271_s1 + $0x330] sm:$0xff]  }
  0x49   :  { %2989 = vmatpush3.bf16.msra.mxu1 %v3303_v20  ;;  %2962 = vmatprep.subr.bf16.mxu0 %v3305_v22  ;;  %v3372_v20 = vld [vmem:[%s4271_s1 + $0x378] sm:$0xff]   ;;  %v3375_v23 = vld [vmem:[%s4272_s0 + $0x30] ss:$100 sps:$4 sm:$0xff]  }
  0x4a   :  { %2990 = vmatprep.subr.bf16.mxu1 %v3310_v26  ;;  %v3374_v22 = vld [vmem:[%s4271_s1 + $0x3f8] sm:$0xff]   ;;  %v3379_v26 = vld [vmem:[%s4271_s1 + $0x440] sm:$0xff]  }
  0x4b   :  { %2057 = vmatmul.mubr.bf16.gmra.mrb[12].mxu0 %v3304_v21  ;;  %v3373_v21 = vld [vmem:[%s4271_s1 + $0x338] sm:$0xff]  }
  0x4c   :  { %2963 = vmatpush3.bf16.msra.mxu0 %v3308_v24  ;;  %2106 = vmatmul.mubr.bf16.gmra.mrb[12].mxu1 %v3309_v25  ;;  %v3377_v24 = vld [vmem:[%s4272_s0 + $0x34] ss:$100 sps:$4 sm:$0xff]  }
  0x4d   :  { %2991 = vmatpush3.bf16.msra.mxu1 %v3311_v27  ;;  %2964 = vmatprep.subr.bf16.mxu0 %v3312_v28  ;;  %v3378_v25 = vld [vmem:[%s4271_s1 + $0x3b8] sm:$0xff]  }
  0x4e   :  { %2992 = vmatprep.subr.bf16.mxu1 %v3314_v30  ;;  %2146 = vmatprep.mubr.bf16.mxu0 %v3333_v48  ;;  %v3380_v27 = vld [vmem:[%s4272_s0 + $0x38] ss:$100 sps:$4 sm:$0xff]   ;;  %v3384_v30 = vld [vmem:[%s4271_s1 + $0x4c0] sm:$0xff]  }
  0x4f   :  { %2195 = vmatprep.mubr.bf16.mxu1 %v3338_v52  ;;  %v3382_v28 = vld [vmem:[%s4272_s0 + $0x3c] ss:$100 sps:$4 sm:$0xff]   ;;  %v3408_v52 = vld [vmem:[%s4271_s1 + $0x468] sm:$0xff]  }
  0x50   :  { %2965 = vmatpush3.bf16.msra.mxu0 %v3313_v29  ;;  %v3383_v29 = vld [vmem:[%s4271_s1 + $0x400] sm:$0xff]  }
  0x51   :  { %2993 = vmatpush3.bf16.msra.mxu1 %v3315_v31  ;;  %2966 = vmatprep.subr.bf16.mxu0 %v3316_v32  ;;  %v3385_v31 = vld [vmem:[%s4271_s1 + $0x480] sm:$0xff]   ;;  %v3386_v32 = vld [vmem:[%s4271_s1 + $0x448] sm:$0xff]  }
  0x52   :  { %2994 = vmatprep.subr.bf16.mxu1 %v3318_v34  ;;  %v3388_v34 = vld [vmem:[%s4271_s1 + $0x4c8] sm:$0xff]   ;;  %v3404_v48 = vld [vmem:[%s4271_s1 + $0x460] sm:$0xff]  }
  0x54   :  { %2967 = vmatpush3.bf16.msra.mxu0 %v3317_v33  ;;  %v3387_v33 = vld [vmem:[%s4271_s1 + $0x408] sm:$0xff]  }
  0x55   :  { %2995 = vmatpush3.bf16.msra.mxu1 %v3319_v35  ;;  %2968 = vmatprep.subr.bf16.mxu0 %v3320_v36  ;;  %v3389_v35 = vld [vmem:[%s4272_s0 + $0xfc] ss:$100 sps:$4 sm:$0xff]   ;;  %v3391_v36 = vld [vmem:[%s4271_s1 + $0x488] sm:$0xff]  }
  0x56   :  { %2996 = vmatprep.subr.bf16.mxu1 %v3322_v38  ;;  %v3393_v38 = vld [vmem:[%s4271_s1 + $0x450] sm:$0xff]  }
  0x58   :  { %2969 = vmatpush3.bf16.msra.mxu0 %v3321_v37  ;;  %v3392_v37 = vld [vmem:[%s4272_s0 + $0xf8] ss:$100 sps:$4 sm:$0xff]  }
  0x59   :  { %2997 = vmatpush3.bf16.msra.mxu1 %v3323_v39  ;;  %2970 = vmatprep.subr.bf16.mxu0 %v3324_v40  ;;  %v3394_v39 = vld [vmem:[%s4272_s0 + $0x104] ss:$100 sps:$4 sm:$0xff]   ;;  %v3396_v40 = vld [vmem:[%s4271_s1 + $0x410] sm:$0xff]  }
  0x5a   :  { %2998 = vmatprep.subr.bf16.mxu1 %v3326_v42  ;;  %v3398_v42 = vld [vmem:[%s4271_s1 + $0x4d0] sm:$0xff]  }
  0x5c   :  { %2971 = vmatpush3.bf16.msra.mxu0 %v3325_v41  ;;  %v3397_v41 = vld [vmem:[%s4272_s0 + $0x100] ss:$100 sps:$4 sm:$0xff]  }
  0x5d   :  { %2999 = vmatpush3.bf16.msra.mxu1 %v3327_v43  ;;  %2972 = vmatprep.subr.bf16.mxu0 %v3328_v44  ;;  %v3399_v43 = vld [vmem:[%s4271_s1 + $0x490] sm:$0xff]   ;;  %v3400_v44 = vld [vmem:[%s4271_s1 + $0x458] sm:$0xff]  }
  0x5e   :  { %3000 = vmatprep.subr.bf16.mxu1 %v3330_v46  ;;  %v3402_v46 = vld [vmem:[%s4271_s1 + $0x4d8] sm:$0xff]  }
  0x60   :  { %2973 = vmatpush3.bf16.msra.mxu0 %v3329_v45  ;;  %v3401_v45 = vld [vmem:[%s4271_s1 + $0x418] sm:$0xff]  }
  0x61   :  { %3001 = vmatpush3.bf16.msra.mxu1 %v3334_v49  ;;  %3014 = vmatprep.subr.bf16.mxu0 %v3335_v50  ;;  %v3405_v49 = vld [vmem:[%s4271_s1 + $0x420] sm:$0xff]  }
  0x62   :  { %3042 = vmatprep.subr.bf16.mxu1 %v3340_v54  ;;  %v3406_v50 = vld [vmem:[%s4271_s1 + $0x4e0] sm:$0xff]   ;;  %v3410_v54 = vld [vmem:[%s4271_s1 + $0x4e8] sm:$0xff]  }
  0x63   :  { %2147 = vmatmul.mubr.bf16.vlgmr.msra.gmra.mrb[16].mxu0 %v3331_v47  ;;  %v3403_v47 = vld [vmem:[%s4271_s1 + $0x498] sm:$0xff]  }
  0x64   :  { %3015 = vmatpush3.bf16.msra.mxu0 %v3339_v53  ;;  %2196 = vmatmul.mubr.bf16.vlgmr.msra.gmra.mrb[16].mxu1 %v3336_v51  ;;  %v3407_v51 = vld [vmem:[%s4271_s1 + $0x4a0] sm:$0xff]   ;;  %v3409_v53 = vld [vmem:[%s4271_s1 + $0x428] sm:$0xff]  }
  0x65   :  { %3043 = vmatpush3.bf16.msra.mxu1 %v3341_v55  ;;  %3016 = vmatprep.subr.bf16.mxu0 %v3342_v56  ;;  %v3411_v55 = vld [vmem:[%s4271_s1 + $0x4a8] sm:$0xff]   ;;  %v3412_v56 = vld [vmem:[%s4271_s1 + $0x470] sm:$0xff]  }
  0x66   :  { %3044 = vmatprep.subr.bf16.mxu1 %v3344_v58  ;;  %2154 = vmatprep.mubr.bf16.mxu0 %v3345_v59  ;;  %v3414_v58 = vld [vmem:[%s4271_s1 + $0x4f0] sm:$0xff]  }
  0x67   :  { %2203 = vmatprep.mubr.bf16.mxu1 %v3350_v63  ;;  %v3415_v59 = vld [vmem:[%s4271_s1 + $0x4b0] sm:$0xff]   ;;  %v3419_v63 = vld [vmem:[%s4272_s0 + $0x40] ss:$100 sps:$4 sm:$0xff]  }
  0x68   :  { %3017 = vmatpush3.bf16.msra.mxu0 %v3343_v57  ;;  %v3413_v57 = vld [vmem:[%s4271_s1 + $0x430] sm:$0xff]  }
  0x69   :  { %3045 = vmatpush3.bf16.msra.mxu1 %v3347_v60  ;;  %3018 = vmatprep.subr.bf16.mxu0 %v3349_v62  ;;  %v3416_v60 = vld [vmem:[%s4271_s1 + $0x478] sm:$0xff]  }
  0x6a   :  { %3046 = vmatprep.subr.bf16.mxu1 %v3354_v2  ;;  %v3418_v62 = vld [vmem:[%s4271_s1 + $0x4f8] sm:$0xff]   ;;  %v3423_v2 = vld [vmem:[%s4271_s1 + $0x540] sm:$0xff]  }
  0x6b   :  { %2155 = vmatmul.mubr.bf16.gmra.mrb[20].mxu0 %v3348_v61  ;;  %v3417_v61 = vld [vmem:[%s4271_s1 + $0x438] sm:$0xff]  }
  0x6c   :  { %3019 = vmatpush3.bf16.msra.mxu0 %v3352_v0  ;;  %2204 = vmatmul.mubr.bf16.gmra.mrb[20].mxu1 %v3353_v1  ;;  %v3421_v0 = vld [vmem:[%s4272_s0 + $0x44] ss:$100 sps:$4 sm:$0xff]   ;;  %v3422_v1 = vld [vmem:[%s4271_s1 + $0x4b8] sm:$0xff]  }
  0x6d   :  { %3047 = vmatpush3.bf16.msra.mxu1 %v3355_v3  ;;  %3020 = vmatprep.subr.bf16.mxu0 %v3356_v4  ;;  %v3424_v3 = vld [vmem:[%s4272_s0 + $0x48] ss:$100 sps:$4 sm:$0xff]  }
  0x6e   :  { %3048 = vmatprep.subr.bf16.mxu1 %v3358_v6  ;;  %2244 = vmatprep.mubr.bf16.mxu0 %v3377_v24  ;;  %v3426_v4 = vld [vmem:[%s4272_s0 + $0x4c] ss:$100 sps:$4 sm:$0xff]   ;;  %v3428_v6 = vld [vmem:[%s4271_s1 + $0x5c0] sm:$0xff]  }
  0x6f   :  { %2293 = vmatprep.mubr.bf16.mxu1 %v3382_v28  ;;  %v3448_v24 = vld [vmem:[%s4271_s1 + $0x560] sm:$0xff]   ;;  %v3452_v28 = vld [vmem:[%s4271_s1 + $0x568] sm:$0xff]  }
  0x70   :  { %3021 = vmatpush3.bf16.msra.mxu0 %v3357_v5  ;;  %v3427_v5 = vld [vmem:[%s4271_s1 + $0x500] sm:$0xff]  }
  0x71   :  { %3049 = vmatpush3.bf16.msra.mxu1 %v3359_v7  ;;  %3022 = vmatprep.subr.bf16.mxu0 %v3360_v8  ;;  %v3429_v7 = vld [vmem:[%s4271_s1 + $0x580] sm:$0xff]   ;;  %v3430_v8 = vld [vmem:[%s4271_s1 + $0x548] sm:$0xff]  }
  0x72   :  { %3050 = vmatprep.subr.bf16.mxu1 %v3362_v10  ;;  %v3432_v10 = vld [vmem:[%s4271_s1 + $0x5c8] sm:$0xff]  }
  0x74   :  { %3023 = vmatpush3.bf16.msra.mxu0 %v3361_v9  ;;  %v3431_v9 = vld [vmem:[%s4271_s1 + $0x508] sm:$0xff]  }
  0x75   :  { %3051 = vmatpush3.bf16.msra.mxu1 %v3363_v11  ;;  %3024 = vmatprep.subr.bf16.mxu0 %v3364_v12  ;;  %v3433_v11 = vld [vmem:[%s4272_s0 + $0x10c] ss:$100 sps:$4 sm:$0xff]  }
  0x76   :  { %3052 = vmatprep.subr.bf16.mxu1 %v3366_v14  ;;  %v3435_v12 = vld [vmem:[%s4271_s1 + $0x588] sm:$0xff]   ;;  %v3437_v14 = vld [vmem:[%s4271_s1 + $0x550] sm:$0xff]  }
  0x78   :  { %3025 = vmatpush3.bf16.msra.mxu0 %v3365_v13  ;;  %v3436_v13 = vld [vmem:[%s4272_s0 + $0x108] ss:$100 sps:$4 sm:$0xff]  }
  0x79   :  { %3053 = vmatpush3.bf16.msra.mxu1 %v3367_v15  ;;  %3026 = vmatprep.subr.bf16.mxu0 %v3368_v16  ;;  %v3438_v15 = vld [vmem:[%s4272_s0 + $0x114] ss:$100 sps:$4 sm:$0xff]  }
  0x7a   :  { %3054 = vmatprep.subr.bf16.mxu1 %v3370_v18  ;;  %v3440_v16 = vld [vmem:[%s4271_s1 + $0x510] sm:$0xff]  }
  0x7b   :  { %v3442_v18 = vld [vmem:[%s4271_s1 + $0x5d0] sm:$0xff]  }
  0x7c   :  { %3027 = vmatpush3.bf16.msra.mxu0 %v3369_v17  ;;  %v3441_v17 = vld [vmem:[%s4272_s0 + $0x110] ss:$100 sps:$4 sm:$0xff]  }
  0x7d   :  { %3055 = vmatpush3.bf16.msra.mxu1 %v3371_v19  ;;  %3028 = vmatprep.subr.bf16.mxu0 %v3372_v20  ;;  %v3443_v19 = vld [vmem:[%s4271_s1 + $0x590] sm:$0xff]   ;;  %v3444_v20 = vld [vmem:[%s4271_s1 + $0x558] sm:$0xff]  }
  0x7e   :  { %3056 = vmatprep.subr.bf16.mxu1 %v3374_v22  ;;  %v3446_v22 = vld [vmem:[%s4271_s1 + $0x5d8] sm:$0xff]  }
  0x80   :  { %3029 = vmatpush3.bf16.msra.mxu0 %v3373_v21  ;;  %v3445_v21 = vld [vmem:[%s4271_s1 + $0x518] sm:$0xff]  }
  0x81   :  { %3057 = vmatpush3.bf16.msra.mxu1 %v3378_v25  ;;  %3070 = vmatprep.subr.bf16.mxu0 %v3379_v26  ;;  %v3449_v25 = vld [vmem:[%s4271_s1 + $0x520] sm:$0xff]  }
  0x82   :  { %3098 = vmatprep.subr.bf16.mxu1 %v3384_v30  ;;  %v3450_v26 = vld [vmem:[%s4271_s1 + $0x5e0] sm:$0xff]   ;;  %v3454_v30 = vld [vmem:[%s4271_s1 + $0x5e8] sm:$0xff]  }
  0x83   :  { %2245 = vmatmul.mubr.bf16.vlgmr.msra.gmra.mrb[24].mxu0 %v3375_v23  ;;  %v3447_v23 = vld [vmem:[%s4271_s1 + $0x598] sm:$0xff]  }
  0x84   :  { %3071 = vmatpush3.bf16.msra.mxu0 %v3383_v29  ;;  %2294 = vmatmul.mubr.bf16.vlgmr.msra.gmra.mrb[24].mxu1 %v3380_v27  ;;  %v3451_v27 = vld [vmem:[%s4271_s1 + $0x5a0] sm:$0xff]   ;;  %v3453_v29 = vld [vmem:[%s4271_s1 + $0x528] sm:$0xff]  }
  0x85   :  { %3099 = vmatpush3.bf16.msra.mxu1 %v3385_v31  ;;  %3072 = vmatprep.subr.bf16.mxu0 %v3386_v32  ;;  %v3455_v31 = vld [vmem:[%s4271_s1 + $0x5a8] sm:$0xff]   ;;  %v3456_v32 = vld [vmem:[%s4271_s1 + $0x570] sm:$0xff]  }
  0x86   :  { %3100 = vmatprep.subr.bf16.mxu1 %v3388_v34  ;;  %2252 = vmatprep.mubr.bf16.mxu0 %v3389_v35  ;;  %v3458_v34 = vld [vmem:[%s4271_s1 + $0x5f0] sm:$0xff]  }
  0x87   :  { %2301 = vmatprep.mubr.bf16.mxu1 %v3394_v39  ;;  %v3459_v35 = vld [vmem:[%s4271_s1 + $0x5b0] sm:$0xff]  }
  0x88   :  { %3073 = vmatpush3.bf16.msra.mxu0 %v3387_v33  ;;  %v3457_v33 = vld [vmem:[%s4271_s1 + $0x530] sm:$0xff]  }
  0x89   :  { %3101 = vmatpush3.bf16.msra.mxu1 %v3391_v36  ;;  %3074 = vmatprep.subr.bf16.mxu0 %v3393_v38  ;;  %v3460_v36 = vld [vmem:[%s4271_s1 + $0x578] sm:$0xff]   ;;  %v3463_v39 = vld [vmem:[%s4272_s0 + $0x50] ss:$100 sps:$4 sm:$0xff]  }
  0x8a   :  { %3102 = vmatprep.subr.bf16.mxu1 %v3398_v42  ;;  %v3462_v38 = vld [vmem:[%s4271_s1 + $0x5f8] sm:$0xff]   ;;  %v3467_v42 = vld [vmem:[%s4271_s1 + $0x600] sm:$0xff]  }
  0x8b   :  { %2253 = vmatmul.mubr.bf16.gmra.mrb[28].mxu0 %v3392_v37  ;;  %v3461_v37 = vld [vmem:[%s4271_s1 + $0x538] sm:$0xff]  }
  0x8c   :  { %3075 = vmatpush3.bf16.msra.mxu0 %v3396_v40  ;;  %2302 = vmatmul.mubr.bf16.gmra.mrb[28].mxu1 %v3397_v41  ;;  %v3465_v40 = vld [vmem:[%s4272_s0 + $0x54] ss:$100 sps:$4 sm:$0xff]  }
  0x8d   :  { %3103 = vmatpush3.bf16.msra.mxu1 %v3399_v43  ;;  %3076 = vmatprep.subr.bf16.mxu0 %v3400_v44  ;;  %v3466_v41 = vld [vmem:[%s4271_s1 + $0x5b8] sm:$0xff]  }
  0x8e   :  { %3104 = vmatprep.subr.bf16.mxu1 %v3402_v46  ;;  %2342 = vmatprep.mubr.bf16.mxu0 %v3421_v0  ;;  %v3468_v43 = vld [vmem:[%s4272_s0 + $0x58] ss:$100 sps:$4 sm:$0xff]  }
  0x8f   :  { %2391 = vmatprep.mubr.bf16.mxu1 %v3426_v4  ;;  %v3470_v44 = vld [vmem:[%s4272_s0 + $0x5c] ss:$100 sps:$4 sm:$0xff]  }
  0x90   :  { %3077 = vmatpush3.bf16.msra.mxu0 %v3401_v45  ;;  %v3471_v45 = vld [vmem:[%s4271_s1 + $0x608] sm:$0xff]   ;;  %v3472_v46 = vld [vmem:[%s4272_s0 + $0x11c] ss:$100 sps:$4 sm:$0xff]  }
  0x91   :  { %3105 = vmatpush3.bf16.msra.mxu1 %v3403_v47  ;;  %3078 = vmatprep.subr.bf16.mxu0 %v3404_v48  ;;  %v3474_v47 = vld [vmem:[%s4272_s0 + $0x118] ss:$100 sps:$4 sm:$0xff]   ;;  %v3475_v48 = vld [vmem:[%s4271_s1 + $0x610] sm:$0xff]  }
  0x92   :  { %3106 = vmatprep.subr.bf16.mxu1 %v3406_v50  ;;  %v3479_v50 = vld [vmem:[%s4271_s1 + $0x618] sm:$0xff]  }
  0x94   :  { %3079 = vmatpush3.bf16.msra.mxu0 %v3405_v49  ;;  %v3476_v49 = vld [vmem:[%s4272_s0 + $0x124] ss:$100 sps:$4 sm:$0xff]  }
  0x95   :  { %3107 = vmatpush3.bf16.msra.mxu1 %v3407_v51  ;;  %3080 = vmatprep.subr.bf16.mxu0 %v3408_v52  ;;  %v3478_v51 = vld [vmem:[%s4272_s0 + $0x120] ss:$100 sps:$4 sm:$0xff]  }
  0x96   :  { %3108 = vmatprep.subr.bf16.mxu1 %v3410_v54  ;;  %v3480_v52 = vld [vmem:[%s4271_s1 + $0x620] sm:$0xff]   ;;  %v3481_v54 = vld [vmem:[%s4271_s1 + $0x628] sm:$0xff]  }
  0x98   :  { %3081 = vmatpush3.bf16.msra.mxu0 %v3409_v53  ;;  %v3484_v53 = vld [vmem:[%s4272_s0 + $0x60] ss:$100 sps:$4 sm:$0xff]  }
  0x99   :  { %3109 = vmatpush3.bf16.msra.mxu1 %v3411_v55  ;;  %3082 = vmatprep.subr.bf16.mxu0 %v3412_v56  ;;  %v3482_v55 = vld [vmem:[%s4271_s1 + $0x630] sm:$0xff]   ;;  %v3483_v56 = vld [vmem:[%s4271_s1 + $0x638] sm:$0xff]  }
  0x9a   :  { %3110 = vmatprep.subr.bf16.mxu1 %v3414_v58 }
  0x9c   :  { %3083 = vmatpush3.bf16.msra.mxu0 %v3413_v57 }
  0x9d   :  { %3111 = vmatpush3.bf16.msra.mxu1 %v3415_v59  ;;  %3084 = vmatprep.subr.bf16.mxu0 %v3416_v60 }
  0x9e   :  { %3112 = vmatprep.subr.bf16.mxu1 %v3418_v62 }
  0xa0   :  { %3085 = vmatpush3.bf16.msra.mxu0 %v3417_v61 }
  0xa1   :  { %3113 = vmatpush3.bf16.msra.mxu1 %v3422_v1  ;;  %3126 = vmatprep.subr.bf16.mxu0 %v3423_v2 }
  0xa2   :  { %3154 = vmatprep.subr.bf16.mxu1 %v3428_v6 }
  0xa3   :  { %2343 = vmatmul.mubr.bf16.vlgmr.msra.gmra.mrb[32].mxu0 %v3419_v63  ;;  %v3485_v63 = vld [vmem:[%s4272_s0 + $0x128] ss:$100 sps:$4 sm:$0xff]  }
  0xa4   :  { %3127 = vmatpush3.bf16.msra.mxu0 %v3427_v5  ;;  %2392 = vmatmul.mubr.bf16.vlgmr.msra.gmra.mrb[32].mxu1 %v3424_v3 }
  0xa5   :  { %3155 = vmatpush3.bf16.msra.mxu1 %v3429_v7  ;;  %3128 = vmatprep.subr.bf16.mxu0 %v3430_v8 }
  0xa6   :  { %3156 = vmatprep.subr.bf16.mxu1 %v3432_v10  ;;  %2350 = vmatprep.mubr.bf16.mxu0 %v3433_v11 }
  0xa7   :  { %2399 = vmatprep.mubr.bf16.mxu1 %v3438_v15 }
  0xa8   :  { %3129 = vmatpush3.bf16.msra.mxu0 %v3431_v9 }
  0xa9   :  { %3157 = vmatpush3.bf16.msra.mxu1 %v3435_v12  ;;  %3130 = vmatprep.subr.bf16.mxu0 %v3437_v14 }
  0xaa   :  { %3158 = vmatprep.subr.bf16.mxu1 %v3442_v18 }
  0xab   :  { %2351 = vmatmul.mubr.bf16.gmra.mrb[36].mxu0 %v3436_v13 }
  0xac   :  { %3131 = vmatpush3.bf16.msra.mxu0 %v3440_v16  ;;  %2400 = vmatmul.mubr.bf16.gmra.mrb[36].mxu1 %v3441_v17 }
  0xad   :  { %3159 = vmatpush3.bf16.msra.mxu1 %v3443_v19  ;;  %3132 = vmatprep.subr.bf16.mxu0 %v3444_v20 }
  0xae   :  { %3160 = vmatprep.subr.bf16.mxu1 %v3446_v22  ;;  %2440 = vmatprep.mubr.bf16.mxu0 %v3465_v40 }
  0xaf   :  { %2489 = vmatprep.mubr.bf16.mxu1 %v3470_v44 }
  0xb0   :  { %3133 = vmatpush3.bf16.msra.mxu0 %v3445_v21 }
  0xb1   :  { %3161 = vmatpush3.bf16.msra.mxu1 %v3447_v23  ;;  %3134 = vmatprep.subr.bf16.mxu0 %v3448_v24 }
  0xb2   :  { %3162 = vmatprep.subr.bf16.mxu1 %v3450_v26 }
  0xb4   :  { %3135 = vmatpush3.bf16.msra.mxu0 %v3449_v25 }
  0xb5   :  { %3163 = vmatpush3.bf16.msra.mxu1 %v3451_v27  ;;  %3136 = vmatprep.subr.bf16.mxu0 %v3452_v28 }
  0xb6   :  { %3164 = vmatprep.subr.bf16.mxu1 %v3454_v30 }
  0xb8   :  { %3137 = vmatpush3.bf16.msra.mxu0 %v3453_v29 }
  0xb9   :  { %3165 = vmatpush3.bf16.msra.mxu1 %v3455_v31  ;;  %3138 = vmatprep.subr.bf16.mxu0 %v3456_v32 }
  0xba   :  { %3166 = vmatprep.subr.bf16.mxu1 %v3458_v34 }
  0xbc   :  { %3139 = vmatpush3.bf16.msra.mxu0 %v3457_v33 }
  0xbd   :  { %3167 = vmatpush3.bf16.msra.mxu1 %v3459_v35  ;;  %3140 = vmatprep.subr.bf16.mxu0 %v3460_v36 }
  0xbe   :  { %3168 = vmatprep.subr.bf16.mxu1 %v3462_v38 }
  0xc0   :  { %3141 = vmatpush3.bf16.msra.mxu0 %v3461_v37 }
  0xc1   :  { %3169 = vmatpush3.bf16.msra.mxu1 %v3466_v41  ;;  %3192 = vmatprep.subr.bf16.mxu0 %v3467_v42 }
  0xc3   :  { %2441 = vmatmul.mubr.bf16.vlgmr.msra.gmra.mrb[40].mxu0 %v3463_v39 }
  0xc4   :  { %3193 = vmatpush3.bf16.msra.mxu0 %v3467_v42  ;;  %2490 = vmatmul.mubr.bf16.vlgmr.msra.gmra.mrb[40].mxu1 %v3468_v43 }
  0xc5   :  { %3194 = vmatprep.subr.bf16.mxu0 %v3471_v45  ;;  %2448 = vmatprep.mubr.bf16.mxu0 %v3472_v46 }
  0xc6   :  { %2497 = vmatprep.mubr.bf16.mxu1 %v3476_v49 }
  0xc8   :  { %3195 = vmatpush3.bf16.msra.mxu0 %v3471_v45 }
  0xc9   :  { %3196 = vmatprep.subr.bf16.mxu0 %v3475_v48 }
  0xcb   :  { %2449 = vmatmul.mubr.bf16.gmra.mrb[44].mxu0 %v3474_v47 }
  0xcc   :  { %3197 = vmatpush3.bf16.msra.mxu0 %v3475_v48  ;;  %2498 = vmatmul.mubr.bf16.gmra.mrb[44].mxu1 %v3478_v51 }
  0xcd   :  { %3198 = vmatprep.subr.bf16.mxu0 %v3479_v50  ;;  %3208 = vmatprep.mubr.bf16.mxu0 %v3484_v53 }
  0xd0   :  { %3199 = vmatpush3.bf16.msra.mxu0 %v3479_v50 }
  0xd1   :  { %3200 = vmatprep.subr.bf16.mxu0 %v3480_v52 }
  0xd4   :  { %3201 = vmatpush3.bf16.msra.mxu0 %v3480_v52 }
  0xd5   :  { %3202 = vmatprep.subr.bf16.mxu0 %v3481_v54 }
  0xd8   :  { %3203 = vmatpush3.bf16.msra.mxu0 %v3481_v54 }
  0xd9   :  { %3204 = vmatprep.subr.bf16.mxu0 %v3482_v55 }
  0xdc   :  { %3205 = vmatpush3.bf16.msra.mxu0 %v3482_v55 }
  0xdd   :  { %3206 = vmatprep.subr.bf16.mxu0 %v3483_v56 }
  0xe0   :  { %3207 = vmatpush3.bf16.msra.mxu0 %v3483_v56 }
  0xe3   :  { %3209 = vmatmul.mubr.bf16.vlgmr.msra.gmra.mrb[48].mxu0 %v3485_v63 }
  0xf6   :  { %v2862_v57 = vpop.f32.mrb[0].mxu0 }
  0xf7   :  { %v2890_v58 = vpop.f32.mrb[0].mxu1  ;;  %v2863_v59 = vpop.f32.mrb[1].mxu0 }
  0xf8   :  { %v2864_v60 = vadd.f32 %v2863_v59, %v2862_v57  ;;  %v2891_v61 = vpop.f32.mrb[1].mxu1  ;;  %v2865_v62 = vpop.f32.mrb[2].mxu0 }
  0xf9   :  { %v2892_v0 = vadd.f32 %v2891_v61, %v2890_v58  ;;  %v2893_v1 = vpop.f32.mrb[2].mxu1  ;;  %v2866_v2 = vpop.f32.mrb[3].mxu0 }
  0xfa   :  { %v2867_v3 = vadd.f32 %v2866_v2, %v2865_v62  ;;  %v2894_v4 = vpop.f32.mrb[3].mxu1 }
  0xfb   :  { %v2002_v5 = vadd.f32 %v2892_v0, %v2864_v60  ;;  %v2895_v6 = vadd.f32 %v2894_v4, %v2893_v1 }
  0xfd   :  { %v2005_v7 = vadd.f32 %v2895_v6, %v2867_v3 }
  0xfe   :  { %v2868_v8 = vpop.f32.mrb[4].mxu0 }
  0xff   :  { %v2896_v9 = vpop.f32.mrb[4].mxu1  ;;  %v2869_v10 = vpop.f32.mrb[5].mxu0 }
 0x100   :  { %v2897_v11 = vpop.f32.mrb[5].mxu1  ;;  %v2870_v12 = vadd.f32 %v2869_v10, %v2868_v8  ;;  %v2871_v14 = vpop.f32.mrb[6].mxu0 }
 0x101   :  { %v2898_v13 = vadd.f32 %v2897_v11, %v2896_v9  ;;  %v2899_v15 = vpop.f32.mrb[6].mxu1  ;;  %v2872_v16 = vpop.f32.mrb[7].mxu0 }
 0x102   :  { %v2900_v17 = vpop.f32.mrb[7].mxu1  ;;  %v2873_v19 = vadd.f32 %v2872_v16, %v2871_v14 }
 0x103   :  { %v2010_v18 = vadd.f32 %v2898_v13, %v2870_v12  ;;  %v2901_v20 = vadd.f32 %v2900_v17, %v2899_v15 }
 0x105   :  { %v2013_v21 = vadd.f32 %v2901_v20, %v2873_v19 }
 0x116   :  { %v2918_v22 = vpop.f32.mrb[8].mxu0 }
 0x117   :  { %v2919_v23 = vpop.f32.mrb[9].mxu0  ;;  %v2946_v26 = vpop.f32.mrb[8].mxu1 }
 0x118   :  { %v2920_v24 = vadd.f32 %v2919_v23, %v2918_v22  ;;  %v2921_v25 = vpop.f32.mrb[10].mxu0  ;;  %v2947_v30 = vpop.f32.mrb[9].mxu1 }
 0x119   :  { %v2922_v27 = vpop.f32.mrb[11].mxu0  ;;  %v2948_v31 = vadd.f32 %v2947_v30, %v2946_v26  ;;  %v2949_v32 = vpop.f32.mrb[10].mxu1 }
 0x11a   :  { %v2051_v28 = vadd.f32 %v2920_v24, %v2002_v5  ;;  %v2923_v29 = vadd.f32 %v2922_v27, %v2921_v25  ;;  %v2950_v34 = vpop.f32.mrb[11].mxu1 }
 0x11b   :  { %v2951_v36 = vadd.f32 %v2950_v34, %v2949_v32 }
 0x11c   :  { %v2054_v33 = vadd.f32 %v2923_v29, %v2005_v7  ;;  %v2100_v35 = vadd.f32 %v2948_v31, %v2051_v28 }
 0x11e   :  { %v2103_v37 = vadd.f32 %v2951_v36, %v2054_v33  ;;  %v2924_v38 = vpop.f32.mrb[12].mxu0 }
 0x11f   :  { %v2925_v39 = vpop.f32.mrb[13].mxu0  ;;  %v2952_v42 = vpop.f32.mrb[12].mxu1 }
 0x120   :  { %v2926_v40 = vadd.f32 %v2925_v39, %v2924_v38  ;;  %v2927_v41 = vpop.f32.mrb[14].mxu0  ;;  %v2953_v46 = vpop.f32.mrb[13].mxu1 }
 0x121   :  { %v2928_v43 = vpop.f32.mrb[15].mxu0  ;;  %v2954_v47 = vadd.f32 %v2953_v46, %v2952_v42  ;;  %v2955_v48 = vpop.f32.mrb[14].mxu1 }
 0x122   :  { %v2059_v44 = vadd.f32 %v2926_v40, %v2010_v18  ;;  %v2929_v45 = vadd.f32 %v2928_v43, %v2927_v41  ;;  %v2956_v50 = vpop.f32.mrb[15].mxu1 }
 0x123   :  { %v2957_v52 = vadd.f32 %v2956_v50, %v2955_v48 }
 0x124   :  { %v2062_v49 = vadd.f32 %v2929_v45, %v2013_v21  ;;  %v2108_v51 = vadd.f32 %v2954_v47, %v2059_v44 }
 0x126   :  { %v2111_v53 = vadd.f32 %v2957_v52, %v2062_v49 }
 0x136   :  { %v2974_v54 = vpop.f32.mrb[16].mxu0 }
 0x137   :  { %v2975_v55 = vpop.f32.mrb[17].mxu0  ;;  %v3002_v60 = vpop.f32.mrb[16].mxu1 }
 0x138   :  { %v2976_v56 = vadd.f32 %v2975_v55, %v2974_v54  ;;  %v2977_v57 = vpop.f32.mrb[18].mxu0  ;;  %v3003_v62 = vpop.f32.mrb[17].mxu1 }
 0x139   :  { %v2978_v58 = vpop.f32.mrb[19].mxu0  ;;  %v3004_v0 = vadd.f32 %v3003_v62, %v3002_v60  ;;  %v3005_v1 = vpop.f32.mrb[18].mxu1 }
 0x13a   :  { %v2149_v59 = vadd.f32 %v2976_v56, %v2100_v35  ;;  %v2979_v61 = vadd.f32 %v2978_v58, %v2977_v57  ;;  %v3006_v2 = vpop.f32.mrb[19].mxu1 }
 0x13b   :  { %v3007_v4 = vadd.f32 %v3006_v2, %v3005_v1 }
 0x13c   :  { %v2152_v63 = vadd.f32 %v2979_v61, %v2103_v37  ;;  %v2198_v3 = vadd.f32 %v3004_v0, %v2149_v59 }
 0x13e   :  { %v2201_v5 = vadd.f32 %v3007_v4, %v2152_v63  ;;  %v2980_v6 = vpop.f32.mrb[20].mxu0 }
 0x13f   :  { %v2981_v7 = vpop.f32.mrb[21].mxu0  ;;  %v3008_v10 = vpop.f32.mrb[20].mxu1 }
 0x140   :  { %v2982_v8 = vadd.f32 %v2981_v7, %v2980_v6  ;;  %v2983_v9 = vpop.f32.mrb[22].mxu0  ;;  %v3009_v14 = vpop.f32.mrb[21].mxu1 }
 0x141   :  { %v2984_v11 = vpop.f32.mrb[23].mxu0  ;;  %v3010_v15 = vadd.f32 %v3009_v14, %v3008_v10  ;;  %v3011_v16 = vpop.f32.mrb[22].mxu1 }
 0x142   :  { %v2157_v12 = vadd.f32 %v2982_v8, %v2108_v51  ;;  %v2985_v13 = vadd.f32 %v2984_v11, %v2983_v9  ;;  %v3012_v18 = vpop.f32.mrb[23].mxu1 }
 0x143   :  { %v3013_v20 = vadd.f32 %v3012_v18, %v3011_v16 }
 0x144   :  { %v2160_v17 = vadd.f32 %v2985_v13, %v2111_v53  ;;  %v2206_v19 = vadd.f32 %v3010_v15, %v2157_v12 }
 0x146   :  { %v2209_v21 = vadd.f32 %v3013_v20, %v2160_v17 }
 0x156   :  { %v3030_v22 = vpop.f32.mrb[24].mxu0 }
 0x157   :  { %v3031_v23 = vpop.f32.mrb[25].mxu0  ;;  %v3058_v26 = vpop.f32.mrb[24].mxu1 }
 0x158   :  { %v3032_v24 = vadd.f32 %v3031_v23, %v3030_v22  ;;  %v3033_v25 = vpop.f32.mrb[26].mxu0  ;;  %v3059_v30 = vpop.f32.mrb[25].mxu1 }
 0x159   :  { %v3034_v27 = vpop.f32.mrb[27].mxu0  ;;  %v3060_v31 = vadd.f32 %v3059_v30, %v3058_v26  ;;  %v3061_v32 = vpop.f32.mrb[26].mxu1 }
 0x15a   :  { %v2247_v28 = vadd.f32 %v3032_v24, %v2198_v3  ;;  %v3035_v29 = vadd.f32 %v3034_v27, %v3033_v25  ;;  %v3062_v34 = vpop.f32.mrb[27].mxu1 }
 0x15b   :  { %v3063_v36 = vadd.f32 %v3062_v34, %v3061_v32 }
 0x15c   :  { %v2250_v33 = vadd.f32 %v3035_v29, %v2201_v5  ;;  %v2296_v35 = vadd.f32 %v3060_v31, %v2247_v28 }
 0x15e   :  { %v2299_v37 = vadd.f32 %v3063_v36, %v2250_v33  ;;  %v3036_v38 = vpop.f32.mrb[28].mxu0 }
 0x15f   :  { %v3037_v39 = vpop.f32.mrb[29].mxu0  ;;  %v3064_v44 = vpop.f32.mrb[28].mxu1 }
 0x160   :  { %v3038_v40 = vadd.f32 %v3037_v39, %v3036_v38  ;;  %v3039_v41 = vpop.f32.mrb[30].mxu0  ;;  %v3065_v46 = vpop.f32.mrb[29].mxu1 }
 0x161   :  { %v3040_v42 = vpop.f32.mrb[31].mxu0  ;;  %v3066_v48 = vadd.f32 %v3065_v46, %v3064_v44  ;;  %v3067_v49 = vpop.f32.mrb[30].mxu1 }
 0x162   :  { %v2255_v43 = vadd.f32 %v3038_v40, %v2206_v19  ;;  %v3041_v45 = vadd.f32 %v3040_v42, %v3039_v41  ;;  %v3068_v50 = vpop.f32.mrb[31].mxu1 }
 0x163   :  { %v3069_v52 = vadd.f32 %v3068_v50, %v3067_v49 }
 0x164   :  { %v2258_v47 = vadd.f32 %v3041_v45, %v2209_v21  ;;  %v2304_v51 = vadd.f32 %v3066_v48, %v2255_v43 }
 0x166   :  { %v2307_v53 = vadd.f32 %v3069_v52, %v2258_v47 }
 0x176   :  { %v3086_v54 = vpop.f32.mrb[32].mxu0 }
 0x177   :  { %v3087_v55 = vpop.f32.mrb[33].mxu0  ;;  %v3114_v58 = vpop.f32.mrb[32].mxu1 }
 0x178   :  { %v3088_v56 = vadd.f32 %v3087_v55, %v3086_v54  ;;  %v3089_v57 = vpop.f32.mrb[34].mxu0  ;;  %v3115_v62 = vpop.f32.mrb[33].mxu1 }
 0x179   :  { %v3090_v59 = vpop.f32.mrb[35].mxu0  ;;  %v3116_v63 = vadd.f32 %v3115_v62, %v3114_v58  ;;  %v3117_v0 = vpop.f32.mrb[34].mxu1 }
 0x17a   :  { %v2345_v60 = vadd.f32 %v3088_v56, %v2296_v35  ;;  %v3091_v61 = vadd.f32 %v3090_v59, %v3089_v57  ;;  %v3118_v2 = vpop.f32.mrb[35].mxu1 }
 0x17b   :  { %v3119_v4 = vadd.f32 %v3118_v2, %v3117_v0 }
 0x17c   :  { %v2348_v1 = vadd.f32 %v3091_v61, %v2299_v37  ;;  %v2394_v3 = vadd.f32 %v3116_v63, %v2345_v60 }
 0x17e   :  { %v2397_v5 = vadd.f32 %v3119_v4, %v2348_v1  ;;  %v3092_v6 = vpop.f32.mrb[36].mxu0 }
 0x17f   :  { %v3093_v7 = vpop.f32.mrb[37].mxu0  ;;  %v3120_v10 = vpop.f32.mrb[36].mxu1 }
 0x180   :  { %v3094_v8 = vadd.f32 %v3093_v7, %v3092_v6  ;;  %v3095_v9 = vpop.f32.mrb[38].mxu0  ;;  %v3121_v14 = vpop.f32.mrb[37].mxu1 }
 0x181   :  { %v3096_v11 = vpop.f32.mrb[39].mxu0  ;;  %v3122_v15 = vadd.f32 %v3121_v14, %v3120_v10  ;;  %v3123_v16 = vpop.f32.mrb[38].mxu1 }
 0x182   :  { %v2353_v12 = vadd.f32 %v3094_v8, %v2304_v51  ;;  %v3097_v13 = vadd.f32 %v3096_v11, %v3095_v9  ;;  %v3124_v18 = vpop.f32.mrb[39].mxu1  ;;  %v2581_v11 = vlaneseq }
 0x183   :  { %v3125_v20 = vadd.f32 %v3124_v18, %v3123_v16 }
 0x184   :  { %v2356_v17 = vadd.f32 %v3097_v13, %v2307_v53  ;;  %v2402_v19 = vadd.f32 %v3122_v15, %v2353_v12  ;;  %v2582_v16 = vshrl.u32 %v2581_v11, 7 }
 0x186   :  { %v2405_v21 = vadd.f32 %v3125_v20, %v2356_v17  ;;  %vm2584_vm0 = vcmp.eq.s32.totalorder %v2582_v16, 1  ;;  %vm2583_vm1 = vcmp.eq.s32.totalorder %v2582_v16, 0 }
 0x196   :  { %v3142_v22 = vpop.f32.mrb[40].mxu0 }
 0x197   :  { %v3143_v23 = vpop.f32.mrb[41].mxu0  ;;  %v3170_v28 = vpop.f32.mrb[40].mxu1 }
 0x198   :  { %v3144_v24 = vadd.f32 %v3143_v23, %v3142_v22  ;;  %v3145_v25 = vpop.f32.mrb[42].mxu0  ;;  %v3171_v30 = vpop.f32.mrb[41].mxu1 }
 0x199   :  { %v3146_v26 = vpop.f32.mrb[43].mxu0  ;;  %v3172_v32 = vadd.f32 %v3171_v30, %v3170_v28  ;;  %v3173_v33 = vpop.f32.mrb[42].mxu1 }
 0x19a   :  { %v2443_v27 = vadd.f32 %v3144_v24, %v2394_v3  ;;  %v3147_v29 = vadd.f32 %v3146_v26, %v3145_v25  ;;  %v3174_v34 = vpop.f32.mrb[43].mxu1 }
 0x19b   :  { %v3175_v35 = vadd.f32 %v3174_v34, %v3173_v33 }
 0x19c   :  { %v2446_v31 = vadd.f32 %v3147_v29, %v2397_v5  ;;  %v2492_v37 = vadd.f32 %v3172_v32, %v2443_v27 }
 0x19e   :  { %v3148_v36 = vpop.f32.mrb[44].mxu0  ;;  %v2495_v41 = vadd.f32 %v3175_v35, %v2446_v31 }
 0x19f   :  { %v3149_v38 = vpop.f32.mrb[45].mxu0  ;;  %v3176_v44 = vpop.f32.mrb[44].mxu1 }
 0x1a0   :  { %v3150_v39 = vadd.f32 %v3149_v38, %v3148_v36  ;;  %v3151_v40 = vpop.f32.mrb[46].mxu0  ;;  %v3177_v46 = vpop.f32.mrb[45].mxu1 }
 0x1a1   :  { %v3152_v42 = vpop.f32.mrb[47].mxu0  ;;  %v3178_v48 = vadd.f32 %v3177_v46, %v3176_v44  ;;  %v3179_v49 = vpop.f32.mrb[46].mxu1 }
 0x1a2   :  { %v2451_v43 = vadd.f32 %v3150_v39, %v2402_v19  ;;  %v3153_v45 = vadd.f32 %v3152_v42, %v3151_v40  ;;  %v3180_v50 = vpop.f32.mrb[47].mxu1 }
 0x1a3   :  { %v3181_v51 = vadd.f32 %v3180_v50, %v3179_v49 }
 0x1a4   :  { %v2454_v47 = vadd.f32 %v3153_v45, %v2405_v21  ;;  %v2500_v52 = vadd.f32 %v3178_v48, %v2451_v43 }
 0x1a6   :  { %v2503_v53 = vadd.f32 %v3181_v51, %v2454_v47 }
 0x1b6   :  { %v3210_v54 = vpop.f32.mrb[48].mxu0 }
 0x1b7   :  { %v2549_v55 = vadd.f32 %v3210_v54, %v2500_v52  ;;  %v2540_v56 = vpop.f32.mrb[49].mxu0 }
 0x1b8   :  { %v2541_v57 = vadd.f32 %v2540_v56, %v2492_v37  ;;  %v3211_v58 = vpop.f32.mrb[50].mxu0 }
 0x1b9   :  { %2557 = vst [vmem:[%s4273_s2 + $0x10] sm:$0xff] %v2549_v55  ;;  %v2552_v59 = vadd.f32 %v3211_v58, %v2503_v53  ;;  %v2543_v60 = vpop.f32.mrb[51].mxu0  ;;  %v2570_v1 = vmul.f32 %v2549_v55, %v2549_v55 }
 0x1ba   :  { %2555 = vst [vmem:[%s4273_s2] sm:$0xff] %v2541_v57  ;;  %v2544_v61 = vadd.f32 %v2543_v60, %v2495_v41  ;;  %v2568_v62 = vmul.f32 %v2541_v57, %v2541_v57 }
 0x1bb   :  { %2558 = vst [vmem:[%s4273_s2 + $0x18] sm:$0xff] %v2552_v59  ;;  %v2571_v4 = vmul.f32 %v2552_v59, %v2552_v59 }
 0x1bc   :  { %2556 = vst [vmem:[%s4273_s2 + $0x8] sm:$0xff] %v2544_v61  ;;  %v2559_v63 = vadd.f32 %v2544_v61, %v2541_v57  ;;  %v2569_v0 = vmul.f32 %v2544_v61, %v2544_v61 }
 0x1be   :  { %v2560_v2 = vadd.f32 %v2559_v63, %v2549_v55  ;;  %v2572_v3 = vadd.f32 %v2569_v0, %v2568_v62 }
 0x1c0   :  { %v2561_v5 = vadd.f32 %v2560_v2, %v2552_v59  ;;  %v2573_v6 = vadd.f32 %v2572_v3, %v2570_v1 }
 0x1c2   :  { %v2562_v7 = vrot.slane %v2561_v5, 4  ;;  %v2574_v8 = vadd.f32 %v2573_v6, %v2571_v4 }
 0x1c4   :  { %v2563_v9 = vadd.f32 %v2562_v7, %v2561_v5  ;;  %v2575_v10 = vrot.slane %v2574_v8, 4 }
 0x1c6   :  { %v2564_v12 = vrot.slane %v2563_v9, 2  ;;  %v2576_v13 = vadd.f32 %v2575_v10, %v2574_v8 }
 0x1c8   :  { %v2565_v14 = vadd.f32 %v2564_v12, %v2563_v9  ;;  %v2577_v15 = vrot.slane %v2576_v13, 2 }
 0x1ca   :  { %v2578_v17 = vadd.f32 %v2577_v15, %v2576_v13  ;;  %v2566_v18 = vrot.slane %v2565_v14, 1 }
 0x1cc   :  { %v2579_v19 = vrot.slane %v2578_v17, 1  ;;  %v2567_v21 = vadd.f32 %v2566_v18, %v2565_v14 }
 0x1ce   :  { %v2580_v20 = vadd.f32 %v2579_v19, %v2578_v17 }
 0x1d0   :  { %v2585_v22 = vsel %vm2584_vm0, %v2580_v20, 0.0 }
 0x1d1   :  { %v2586_v23 = vsel %vm2583_vm1, %v2567_v21, %v2585_v22 }
 0x1d2   :  { %2587 = vst [vmem:[%s4274_s3] sm:$0xff] %v2586_v23 }

// kernel: _lambda_.99
= control target key start
LH: loop header
LB: loop body
LE: loop exit
PB: predicated region body
PF: predicated region fallthrough
CT: control target
= control target key end

     0   :  { %s155_s0 = inlined_call_operand.vmem [shape: f32[32,128], index: 0, kind: input, shape index: {}]   ;;  %s156_s1 = inlined_call_operand.vmem [shape: f32[1,128], index: 1, kind: input, shape index: {}]   ;;  %s157_s2 = inlined_call_operand.vmem [shape: f32[1,128], index: 2, kind: input, shape index: {}]   ;;  %s158_s3 = inlined_call_operand.hbm [shape: f32[32,128], index: 3, kind: output, shape index: {}]  }
   0x1   :  { %v15_v0 = vld [vmem:[%s155_s0] sm:$0xff]  ;;  %v16_v4 = vld [vmem:[%s155_s0 + $0x8] sm:$0xff]  ;;  %v17_v5 = vld [vmem:[%s155_s0 + $0x10] sm:$0xff] }
   0x2   :  { %v73_v1 = vld [vmem:[%s156_s1] ss:$0 sm:$0xff]  ;;  %v18_v6 = vld [vmem:[%s155_s0 + $0x18] sm:$0xff] }
   0x3   :  { %v74_v2 = vld [vmem:[%s157_s2] ss:$0 sm:$0xff]  ;;  %v26_v3 = vmul.f32 %v73_v1, %v15_v0  ;;  %v27_v7 = vmul.f32 %v73_v1, %v16_v4  ;;  %v28_v8 = vmul.f32 %v73_v1, %v17_v5  ;;  %v29_v9 = vmul.f32 %v73_v1, %v18_v6 }
   0x4   :  { %8 = vsyncpa [#allocation3], 0  ;;  %s102_s1 = smov [#allocation2]  }
   0x5   :  { %v37_v10 = vadd.f32 %v74_v2, %v26_v3  ;;  %v38_v11 = vadd.f32 %v74_v2, %v27_v7  ;;  %v39_v12 = vadd.f32 %v74_v2, %v28_v8  ;;  %v40_v13 = vadd.f32 %v74_v2, %v29_v9  ;;  %s62_s2 = sshll.u32 %s102_s1, 4  ;;  %s63_s2 = int_to_ptr.vmem [resolvable:$true] %s62_s2 }
   0x6   :  { %s78_s0 = scalar_lea.vmem %s63_s2, 512  ;;  %p83_p1 = scmp.lt.s32.totalorder %s63_s2, %s63_s2 }
   0x7   :  { %vm41_vm0 = vcmp.ge.f32.partialorder %v37_v10, 0.0  ;;  %v45_v14 = vmul.f32 0.0, %v37_v10  ;;  %vm42_vm1 = vcmp.ge.f32.partialorder %v38_v11, 0.0  ;;  %v46_v15 = vmul.f32 0.0, %v38_v11  ;;  %p79_p0 = scmp.ne.s32.totalorder %s63_s2, %s78_s0  ;;  %p84_p2 = scmp.lt.s32.totalorder %s78_s0, %s78_s0 }
   0x8   :  { %vm43_vm2 = vcmp.ge.f32.partialorder %v39_v12, 0.0  ;;  %v47_v16 = vmul.f32 0.0, %v39_v12  ;;  %vm44_vm3 = vcmp.ge.f32.partialorder %v40_v13, 0.0  ;;  %v48_v18 = vmul.f32 0.0, %v40_v13 }
   0x9   :  { %v49_v17 = vsel %vm41_vm0, %v37_v10, %v45_v14  ;;  %v50_v19 = vsel %vm42_vm1, %v38_v11, %v46_v15  ;;  %p85_p3 = por %p84_p2, %p83_p1 }
   0xa   :  { %53 = vst [vmem:[#allocation2] sm:$0xff] %v49_v17  ;;  %v51_v20 = vsel %vm43_vm2, %v39_v12, %v47_v16  ;;  %54 = vst [vmem:[#allocation2 + $0x8] sm:$0xff] %v50_v19  ;;  %v52_v21 = vsel %vm44_vm3, %v40_v13, %v48_v18 }
   0xb   :  { %55 = vst [vmem:[#allocation2 + $0x10] sm:$0xff] %v51_v20  ;;  %56 = vst [vmem:[#allocation2 + $0x18] sm:$0xff] %v52_v21  ;;  %p86_p4 = pnand %p85_p3, %p79_p0 }
   0xd   :  { %89 = shalt.err (!%p86_p4)
}
   0xe   :  { %s90_s26 = scalar_lea.hbm %s158_s3, 512 }
   0xf   :  { %p91_p5 = scmp.ne.s32.totalorder %s158_s3, %s90_s26  ;;  %p94_p6 = scmp.lt.u32.totalorder %s90_s26, %s158_s3 }
  0x11   :  { %p96_p7 = pnand %p94_p6, %p91_p5 }
  0x13   :  { %99 = shalt.err (!%p96_p7)
}
  0x14   :  { %s103_s4 = smov 128   ;;  %s104_s5 = smov 8  }
  0x15   :  { %68 = dma.vmem_to_hbm [thread:$0]  %s63_s2, 512, %s158_s3, [#allocation3], %s103_s4, %s103_s4, %s104_s5  }
  0x16   :  { %100 = dma.done.wait [#allocation3], 512  }
  0x17   :  { %101 = vsyncadd [#allocation3], 4294966784 }
  0x18   :  { %72 = vsyncpa [#allocation3], 1 }

</bundles_post_ra>
